<compile_context>
chip_gen: v7x
topology: tpu7x:2x2x1
jax: 0.10.0
libtpu: 0.0.40
codegen_flags: <defaults>
</compile_context>

<pallas_src>
import jax
import jax.numpy as jnp
import numpy as np
from jax.experimental import pallas as pl
from jax.experimental.pallas import tpu as pltpu

_EPS = 1e-5            # torch BatchNorm2d default eps
_LEAKY_SLOPE = 0.2     # torch LeakyReLU(0.2)

# MXU operand dtype: bf16 operands + f32 accumulation ~doubles MXU throughput
# on v5e/v6e/v7x and halves operand VMEM/HBM bytes.  Set to jnp.float32 to
# recover exact f32 numerics (and tighten the test tolerance to ~1e-3).
MXU_DTYPE = jnp.bfloat16

# Layers whose (post space-to-depth) input channel count is >= this use the
# per-tap matmul-accumulation path (K = Ci per tap already feeds the MXU well);
# smaller layers build one im2col slab so the single contraction has a deep K.
# At production channel counts (features=64) every layer past the first takes
# the per-tap path; the threshold is 64 here so the small CI config exercises
# both paths.
PER_TAP_MIN_CIN = 64


# ----------------------------- kernels --------------------------------------

def _conv_body(x, w_ref, k, Ho, Wo, per_tap):
    """k x k valid stride-1 conv of x (Hi, Wi, Ci); returns f32 (Ho, Wo, Cout)."""
    if per_tap:
        # Per-tap accumulation: one MXU contraction (K = Ci) per tap, f32
        # accumulator held as a value (single grid step -> no scratch needed).
        # The kx sublane shift is hoisted out of the ky loop so only k (not
        # k*k) realigned copies of the activation are made; the ky slice is on
        # the leading dim (free addressing).
        acc = None
        for kx in range(k):
            xs = x[:, kx:kx + Wo, :]                          # (Hi, Wo, Ci)
            for ky in range(k):
                t = ky * k + kx
                part = jnp.einsum('hwc,co->hwo', xs[ky:ky + Ho], w_ref[t],
                                  preferred_element_type=jnp.float32)
                acc = part if acc is None else acc + part
        return acc
    # im2col slab: k*k contiguous taps concatenated on the lane (channel) dim,
    # contracted in ONE MXU matmul with K = k*k*Ci (only for tiny Ci).
    taps = [x[ky:ky + Ho, kx:kx + Wo, :]
            for ky in range(k) for kx in range(k)]
    slab = taps[0] if len(taps) == 1 else jnp.concatenate(taps, axis=-1)
    return jnp.einsum('hwk,ko->hwo', slab, w_ref[...],
                      preferred_element_type=jnp.float32)


def _make_layer_kernel(k, Ho, Wo, use_act, per_tap):
    """One CNNBlock: conv(k, valid) + folded-affine shift (+ LeakyReLU)."""
    def kernel(x_ref, w_ref, shift_ref, o_ref):
        y = _conv_body(x_ref[0], w_ref, k, Ho, Wo, per_tap) + shift_ref[...]
        if use_act:
            y = jnp.maximum(y, _LEAKY_SLOPE * y)              # LeakyReLU(0.2)
        o_ref[0] = y.astype(o_ref.dtype)
    return kernel


def _make_tail_kernel(k1, per_tap1, He, We, Ho3, Wo3):
    """Fused tail: stride-1 CNNBlock (conv+BN+LeakyReLU) + final Cout=1 conv.

    The first conv is evaluated on a 1-px-extended output grid (He, We) =
    (Ho2+2, Wo2+2) of the pad-by-2 input; multiplying by `mask` (0 on the 1-px
    border, 1 inside) reproduces exactly the zero-padded activation the final
    conv needs -- no in-kernel pad / sublane concatenate required.
    """
    def kernel(x_ref, w2_ref, shift2_ref, mask_ref, w3_ref, b3_ref, o_ref):
        y = _conv_body(x_ref[0], w2_ref, k1, He, We, per_tap1) + shift2_ref[...]
        y = jnp.maximum(y, _LEAKY_SLOPE * y)
        y = y * mask_ref[...]                  # (He, We, 1) lane broadcast
        # Final 4x4 conv, Cout=1: tiny per-tap accumulation kept in VMEM,
        # avoiding a standalone N=1 kernel and an HBM round trip of the widest
        # activation.  (Output stays (Ho3, Wo3, 1); the wrapper squeezes it.)
        acc = None
        for kx in range(4):
            ys = y[:, kx:kx + Wo3, :]
            for ky in range(4):
                t = ky * 4 + kx
                part = jnp.einsum('hwc,co->hwo', ys[ky:ky + Ho3], w3_ref[t],
                                  preferred_element_type=jnp.float32)
                acc = part if acc is None else acc + part
        o_ref[0] = (acc + b3_ref[...]).astype(o_ref.dtype)
    return kernel


# ----------------------------- wrappers --------------------------------------

def _fold_affine(layer):
    """Loop-invariant fold of conv-bias / eval-mode BN into (scale, shift)."""
    if layer['use_bn']:
        scale = layer['bn_g'] * jax.lax.rsqrt(layer['bn_v'] + _EPS)
        shift = layer['bn_b'] - layer['bn_m'] * scale
    else:
        cout = layer['w'].shape[-1]
        scale = jnp.ones((cout,), jnp.float32)
        shift = layer['b']
    return scale, shift


def _prep_weight(w_hwio, scale, stride):
    """Fold BN scale into the weights and reorder to the kernel's tap layout."""
    cin, cout = w_hwio.shape[2], w_hwio.shape[3]
    wf = w_hwio * scale                                       # fold (hoisted)
    if stride == 2:
        # stride-2 4x4 conv == stride-1 2x2 conv on space-to-depth(2) input.
        w6 = (wf.reshape(2, 2, 2, 2, cin, cout)               # (kpy,ry,kpx,rx,ci,co)
                .transpose(0, 2, 1, 3, 4, 5))                 # (kpy,kpx,ry,rx,ci,co)
        k, ci, w4 = 2, 4 * cin, w6
    else:
        k, ci, w4 = 4, cin, wf                                # (ky,kx,ci,co)
    per_tap = ci >= PER_TAP_MIN_CIN
    w_r = (w4.reshape(k * k, ci, cout) if per_tap
           else w4.reshape(k * k * ci, cout))
    return w_r, k, ci, per_tap


def _pad_s2d(x_nhwc, stride, pad):
    """Wrapper-side zero pad (+ space-to-depth(2) for stride-2 layers)."""
    B, H, W, C = x_nhwc.shape
    xp = jnp.pad(x_nhwc, ((0, 0), (pad, pad), (pad, pad), (0, 0)))
    if stride == 1:
        return xp
    Hp, Wp = H + 2 * pad, W + 2 * pad
    assert Hp % 2 == 0 and Wp % 2 == 0
    xp = xp.reshape(B, Hp // 2, 2, Wp // 2, 2, C)
    return xp.transpose(0, 1, 3, 2, 4, 5).reshape(B, Hp // 2, Wp // 2, 4 * C)


def _conv_block(x_nhwc, layer, out_dtype):
    """One CNNBlock (or a standalone final conv) as a single pallas_call."""
    B = x_nhwc.shape[0]
    cout = layer['w'].shape[-1]
    scale, shift = _fold_affine(layer)
    w_r, k, ci, per_tap = _prep_weight(layer['w'], scale, layer['stride'])

    # TODO(synk): do the zero halo / space-to-depth inside the kernel (masked
    # boundary taps) to remove this extra HBM round trip for stride-2 layers.
    x_in = _pad_s2d(x_nhwc, layer['stride'], 1).astype(MXU_DTYPE)
    _, Hi, Wi, _ = x_in.shape
    Ho, Wo = Hi - k + 1, Wi - k + 1

    w_r = w_r.astype(MXU_DTYPE)
    shift = shift.reshape(1, cout).astype(jnp.float32)
    w_idx = (lambda b: (0, 0, 0)) if per_tap else (lambda b: (0, 0))

    # TODO(synk): for production H/W on v7x (64 MiB VMEM), add a grid axis over
    # output-row blocks with a (k-1)-row input halo (pl.ANY + manual DMA),
    # single-buffer the grid-invariant weight/shift specs (pl.Buffered(1)) and
    # set CompilerParams(vmem_limit_bytes=...) to the real block footprint.
    return pl.pallas_call(
        _make_layer_kernel(k, Ho, Wo, layer['use_act'], per_tap),
        out_shape=jax.ShapeDtypeStruct((B, Ho, Wo, cout), out_dtype),
        grid_spec=pltpu.PrefetchScalarGridSpec(
            num_scalar_prefetch=0,
            grid=(B,),
            in_specs=[
                pl.BlockSpec((1, Hi, Wi, ci), lambda b: (b, 0, 0, 0)),
                pl.BlockSpec(w_r.shape, w_idx),          # grid-invariant
                pl.BlockSpec((1, cout), lambda b: (0, 0)),
            ],
            out_specs=pl.BlockSpec((1, Ho, Wo, cout), lambda b: (b, 0, 0, 0)),
        ),
        compiler_params=pltpu.CompilerParams(
            dimension_semantics=("parallel",)),
    )(x_in, w_r, shift)


def _fused_tail_block(x_nhwc, blk, fin):
    """Last stride-1 CNNBlock + final Cout=1 conv fused into one pallas_call."""
    assert blk['stride'] == 1 and fin['stride'] == 1
    B = x_nhwc.shape[0]
    cmid = blk['w'].shape[-1]
    scale2, shift2 = _fold_affine(blk)
    w2_r, k1, ci, per_tap1 = _prep_weight(blk['w'], scale2, 1)

    # Pad by 2 so the first conv is evaluated on a 1-px-extended grid; the
    # border is zeroed in-kernel with `mask`, reproducing the zero-padded
    # activation the final conv expects.
    x_in = jnp.pad(x_nhwc, ((0, 0), (2, 2), (2, 2), (0, 0))).astype(MXU_DTYPE)
    _, Hi, Wi, _ = x_in.shape
    He, We = Hi - k1 + 1, Wi - k1 + 1            # = Ho2 + 2, Wo2 + 2
    Ho2, Wo2 = He - 2, We - 2
    Ho3, Wo3 = He - 4 + 1, We - 4 + 1            # final conv output

    mask_np = np.zeros((He, We, 1), np.float32)
    mask_np[1:Ho2 + 1, 1:Wo2 + 1, :] = 1.0
    mask = jnp.asarray(mask_np)

    w2_r = w2_r.astype(MXU_DTYPE)
    shift2 = shift2.reshape(1, cmid).astype(jnp.float32)
    w3_r = fin['w'].reshape(16, cmid, 1).astype(jnp.float32)
    b3 = fin['b'].reshape(1, 1).astype(jnp.float32)
    w2_idx = (lambda b: (0, 0, 0)) if per_tap1 else (lambda b: (0, 0))

    return pl.pallas_call(
        _make_tail_kernel(k1, per_tap1, He, We, Ho3, Wo3),
        out_shape=jax.ShapeDtypeStruct((B, Ho3, Wo3, 1), jnp.float32),
        grid_spec=pltpu.PrefetchScalarGridSpec(
            num_scalar_prefetch=0,
            grid=(B,),
            in_specs=[
                pl.BlockSpec((1, Hi, Wi, ci), lambda b: (b, 0, 0, 0)),
                pl.BlockSpec(w2_r.shape, w2_idx),
                pl.BlockSpec((1, cmid), lambda b: (0, 0)),
                pl.BlockSpec((He, We, 1), lambda b: (0, 0, 0)),
                pl.BlockSpec((16, cmid, 1), lambda b: (0, 0, 0)),
                pl.BlockSpec((1, 1), lambda b: (0, 0)),
            ],
            out_specs=pl.BlockSpec((1, Ho3, Wo3, 1), lambda b: (b, 0, 0, 0)),
        ),
        compiler_params=pltpu.CompilerParams(
            dimension_semantics=("parallel",)),
    )(x_in, w2_r, shift2, mask, w3_r, b3)


def discriminator_forward(x_nchw, layers):
    """PatchGAN discriminator forward (logits, no sigmoid), NCHW in/out."""
    x = jnp.transpose(x_nchw, (0, 2, 3, 1)).astype(MXU_DTYPE)   # NHWC once
    n = len(layers)
    fuse_tail = (n >= 2
                 and layers[-2]['stride'] == 1 and layers[-2]['use_act']
                 and layers[-1]['stride'] == 1 and not layers[-1]['use_act']
                 and not layers[-1]['use_bn']
                 and layers[-1]['w'].shape[-1] == 1)
    n_solo = n - 2 if fuse_tail else n
    for idx in range(n_solo):
        out_dtype = jnp.float32 if idx == n - 1 else MXU_DTYPE
        x = _conv_block(x, layers[idx], out_dtype)
    if fuse_tail:
        x = _fused_tail_block(x, layers[-2], layers[-1])        # (B,Ho,Wo,1) f32
    # TODO(synk): for the small-input config, the remaining stride-2 blocks
    # could also be folded into a single pallas_call per image (all activations
    # fit in VMEM); kept as separate calls here for generality/robustness.
    return jnp.transpose(x, (0, 3, 1, 2))                       # NCHW once


# ----------------------------- parameters / reference -----------------------

def discriminator_configs(in_channels=3, features=64, n_layers=3):
    cfgs = [dict(cin=in_channels, cout=features, stride=2,
                 use_bn=False, use_act=True)]                   # initial
    mult = 1
    for i in range(1, n_layers):
        mult_prev, mult = mult, min(2 ** i, 8)
        cfgs.append(dict(cin=features * mult_prev, cout=features * mult,
                         stride=2 if i < n_layers - 1 else 1,
                         use_bn=True, use_act=True))
    cfgs.append(dict(cin=features * mult, cout=1, stride=1,
                     use_bn=False, use_act=False))              # final conv
    return cfgs


def init_discriminator_params(key, in_channels=3, features=64, n_layers=3):
    layers = []
    for cfg in discriminator_configs(in_channels, features, n_layers):
        key, kw, kb, kg, kbb, km, kv = jax.random.split(key, 7)
        cin, cout = cfg['cin'], cfg['cout']
        layer = dict(cfg)
        layer['w'] = 0.1 * jax.random.normal(kw, (4, 4, cin, cout), jnp.float32)
        if cfg['use_bn']:
            layer['bn_g'] = 1.0 + 0.1 * jax.random.normal(kg, (cout,), jnp.float32)
            layer['bn_b'] = 0.1 * jax.random.normal(kbb, (cout,), jnp.float32)
            layer['bn_m'] = 0.1 * jax.random.normal(km, (cout,), jnp.float32)
            layer['bn_v'] = 1.0 + jnp.abs(
                0.1 * jax.random.normal(kv, (cout,), jnp.float32))
        else:
            layer['b'] = 0.1 * jax.random.normal(kb, (cout,), jnp.float32)
        layers.append(layer)
    return layers


def ref_forward(x_nchw, layers):
    """Pure-JAX f32 reference matching the PyTorch forward (eval-mode BN)."""
    x = jnp.transpose(x_nchw, (0, 2, 3, 1)).astype(jnp.float32)
    for layer in layers:
        x = jax.lax.conv_general_dilated(
            x, layer['w'], (layer['stride'], layer['stride']),
            [(1, 1), (1, 1)], dimension_numbers=('NHWC', 'HWIO', 'NHWC'))
        if layer['use_bn']:
            x = ((x - layer['bn_m']) * layer['bn_g']
                 * jax.lax.rsqrt(layer['bn_v'] + _EPS) + layer['bn_b'])
        else:
            x = x + layer['b']
        if layer['use_act']:
            x = jnp.where(x > 0, x, _LEAKY_SLOPE * x)
    return jnp.transpose(x, (0, 3, 1, 2))


if __name__ == "__main__":
    key = jax.random.PRNGKey(0)
    kx_, kp = jax.random.split(key)
    B, Cin, H, W = 2, 3, 32, 32            # small PatchGAN input
    features, n_layers = 16, 3
    x = jax.random.normal(kx_, (B, Cin, H, W), jnp.float32)
    layers = init_discriminator_params(kp, Cin, features, n_layers)

    fwd = jax.jit(lambda inp: discriminator_forward(inp, layers))
    y = jax.block_until_ready(fwd(x))
    y_ref = ref_forward(x, layers)
    # bf16 MXU operands + bf16 inter-layer activations through 4 conv layers:
    # compare against the f32 reference with a correspondingly loose tolerance.
    np.testing.assert_allclose(np.asarray(y), np.asarray(y_ref),
                               rtol=1e-1, atol=1e-1)
    assert y.shape == (B, 1, H // 4 - 2, W // 4 - 2)
    print("KERNEL_OK")
</pallas_src>

<mosaic_0001>
module attributes {stable_mosaic.version = 11 : i64} {
  func.func @kernel(%arg0: i32, %arg1: memref<1x17x17x12xbf16, #tpu.memory_space<vmem>>, %arg2: memref<48x16xbf16, #tpu.memory_space<vmem>>, %arg3: memref<1x16xf32, #tpu.memory_space<vmem>>, %arg4: memref<1x16x16x16xbf16, #tpu.memory_space<vmem>>) attributes {dimension_semantics = [#tpu.dimension_semantics<parallel>], iteration_bounds = array<i64: 2>, scalar_prefetch = 0 : i64, scratch_operands = 0 : i64, tpu.core_type = #tpu.core_type<tc>, window_params = [{transform_indices = @transform_0, window_bounds = array<i64: 1, 17, 17, 12>}, {pipeline_mode = #tpu.pipeline_mode<synchronous>, transform_indices = @transform_1, window_bounds = array<i64: 48, 16>}, {pipeline_mode = #tpu.pipeline_mode<synchronous>, transform_indices = @transform_2, window_bounds = array<i64: 1, 16>}, {transform_indices = @transform_3, window_bounds = array<i64: 1, 16, 16, 16>}]} {
    %c0 = arith.constant 0 : index
    %c0_0 = arith.constant 0 : index
    %c0_1 = arith.constant 0 : index
    %c0_2 = arith.constant 0 : index
    %0 = vector.load %arg1[%c0, %c0_0, %c0_1, %c0_2] : memref<1x17x17x12xbf16, #tpu.memory_space<vmem>>, vector<1x17x17x12xbf16>
    %1 = vector.shape_cast %0 : vector<1x17x17x12xbf16> to vector<17x17x12xbf16>
    %2 = vector.extract_strided_slice %1 {offsets = [0, 0, 0], sizes = [16, 16, 12], strides = [1, 1, 1]} : vector<17x17x12xbf16> to vector<16x16x12xbf16>
    %3 = vector.extract_strided_slice %1 {offsets = [0, 1, 0], sizes = [16, 16, 12], strides = [1, 1, 1]} : vector<17x17x12xbf16> to vector<16x16x12xbf16>
    %4 = vector.extract_strided_slice %1 {offsets = [1, 0, 0], sizes = [16, 16, 12], strides = [1, 1, 1]} : vector<17x17x12xbf16> to vector<16x16x12xbf16>
    %5 = vector.extract_strided_slice %1 {offsets = [1, 1, 0], sizes = [16, 16, 12], strides = [1, 1, 1]} : vector<17x17x12xbf16> to vector<16x16x12xbf16>
    %6 = tpu.concatenate %2, %3, %4, %5 in 2 : vector<16x16x12xbf16>, vector<16x16x12xbf16>, vector<16x16x12xbf16>, vector<16x16x12xbf16> -> vector<16x16x48xbf16>
    %c0_3 = arith.constant 0 : index
    %c0_4 = arith.constant 0 : index
    %7 = vector.load %arg2[%c0_3, %c0_4] : memref<48x16xbf16, #tpu.memory_space<vmem>>, vector<48x16xbf16>
    "tpu.trace_start"() <{level = 10 : i32, message = "hwk,ko->hwo"}> : () -> ()
    %cst = arith.constant dense<0.000000e+00> : vector<16x16x16xf32>
    %8 = tpu.matmul %6, %7, %cst {dimension_numbers = #tpu.dot_dimension_numbers<[2], [0], [0, 1], [1], [0, 0, 0, 1, 1, 1], [], []>} : vector<16x16x48xbf16>, vector<48x16xbf16>, vector<16x16x16xf32> -> vector<16x16x16xf32>
    "tpu.trace_stop"() : () -> ()
    %c0_5 = arith.constant 0 : index
    %c0_6 = arith.constant 0 : index
    %9 = vector.load %arg3[%c0_5, %c0_6] : memref<1x16xf32, #tpu.memory_space<vmem>>, vector<1x16xf32>
    %10 = vector.shape_cast %9 : vector<1x16xf32> to vector<1x1x16xf32>
    %11 = vector.broadcast %10 : vector<1x1x16xf32> to vector<16x16x16xf32>
    %12 = arith.addf %8, %11 : vector<16x16x16xf32>
    %cst_7 = arith.constant 2.000000e-01 : f32
    %13 = vector.broadcast %cst_7 : f32 to vector<16x16x16xf32>
    %14 = arith.mulf %13, %12 : vector<16x16x16xf32>
    %15 = arith.maximumf %12, %14 : vector<16x16x16xf32>
    %16 = arith.truncf %15 : vector<16x16x16xf32> to vector<16x16x16xbf16>
    %c0_8 = arith.constant 0 : index
    %c0_9 = arith.constant 0 : index
    %c0_10 = arith.constant 0 : index
    %c0_11 = arith.constant 0 : index
    %17 = vector.load %arg4[%c0_8, %c0_9, %c0_10, %c0_11] : memref<1x16x16x16xbf16, #tpu.memory_space<vmem>>, vector<1x16x16x16xbf16>
    %18 = vector.shape_cast %17 : vector<1x16x16x16xbf16> to vector<16x16x16xbf16>
    %19 = vector.shape_cast %16 : vector<16x16x16xbf16> to vector<1x16x16x16xbf16>
    tpu.vector_store %arg4[%c0_8, %c0_9, %c0_10, %c0_11], %19 {strides = array<i32>} : memref<1x16x16x16xbf16, #tpu.memory_space<vmem>>, vector<1x16x16x16xbf16>,
    return
  }
  func.func @transform_0(%arg0: i32) -> (i32, i32, i32, i32) {
    %c0_i32 = arith.constant 0 : i32
    %c0_i32_0 = arith.constant 0 : i32
    %c0_i32_1 = arith.constant 0 : i32
    %c0_i32_2 = arith.constant 0 : i32
    return %arg0, %c0_i32, %c0_i32_0, %c0_i32_1 : i32, i32, i32, i32
  }
  func.func @transform_1(%arg0: i32) -> (i32, i32) {
    %c0_i32 = arith.constant 0 : i32
    %c0_i32_0 = arith.constant 0 : i32
    %c0_i32_1 = arith.constant 0 : i32
    return %c0_i32, %c0_i32_0 : i32, i32
  }
  func.func @transform_2(%arg0: i32) -> (i32, i32) {
    %c0_i32 = arith.constant 0 : i32
    %c0_i32_0 = arith.constant 0 : i32
    %c0_i32_1 = arith.constant 0 : i32
    return %c0_i32, %c0_i32_0 : i32, i32
  }
  func.func @transform_3(%arg0: i32) -> (i32, i32, i32, i32) {
    %c0_i32 = arith.constant 0 : i32
    %c0_i32_0 = arith.constant 0 : i32
    %c0_i32_1 = arith.constant 0 : i32
    %c0_i32_2 = arith.constant 0 : i32
    return %arg0, %c0_i32, %c0_i32_0, %c0_i32_1 : i32, i32, i32, i32
  }
}

module attributes {stable_mosaic.version = 11 : i64} {
  func.func @kernel(%arg0: i32, %arg1: memref<1x9x9x64xbf16, #tpu.memory_space<vmem>>, %arg2: memref<4x64x32xbf16, #tpu.memory_space<vmem>>, %arg3: memref<1x32xf32, #tpu.memory_space<vmem>>, %arg4: memref<1x8x8x32xbf16, #tpu.memory_space<vmem>>) attributes {dimension_semantics = [#tpu.dimension_semantics<parallel>], iteration_bounds = array<i64: 2>, scalar_prefetch = 0 : i64, scratch_operands = 0 : i64, tpu.core_type = #tpu.core_type<tc>, window_params = [{transform_indices = @transform_0, window_bounds = array<i64: 1, 9, 9, 64>}, {pipeline_mode = #tpu.pipeline_mode<synchronous>, transform_indices = @transform_1, window_bounds = array<i64: 4, 64, 32>}, {pipeline_mode = #tpu.pipeline_mode<synchronous>, transform_indices = @transform_2, window_bounds = array<i64: 1, 32>}, {transform_indices = @transform_3, window_bounds = array<i64: 1, 8, 8, 32>}]} {
    %c0 = arith.constant 0 : index
    %c0_0 = arith.constant 0 : index
    %c0_1 = arith.constant 0 : index
    %c0_2 = arith.constant 0 : index
    %0 = vector.load %arg1[%c0, %c0_0, %c0_1, %c0_2] : memref<1x9x9x64xbf16, #tpu.memory_space<vmem>>, vector<1x9x9x64xbf16>
    %1 = vector.shape_cast %0 : vector<1x9x9x64xbf16> to vector<9x9x64xbf16>
    %2 = vector.extract_strided_slice %1 {offsets = [0, 0, 0], sizes = [9, 8, 64], strides = [1, 1, 1]} : vector<9x9x64xbf16> to vector<9x8x64xbf16>
    %3 = vector.extract_strided_slice %2 {offsets = [0, 0, 0], sizes = [8, 8, 64], strides = [1, 1, 1]} : vector<9x8x64xbf16> to vector<8x8x64xbf16>
    %c0_3 = arith.constant 0 : index
    %c0_4 = arith.constant 0 : index
    %c0_5 = arith.constant 0 : index
    %4 = vector.load %arg2[%c0_3, %c0_4, %c0_5] : memref<4x64x32xbf16, #tpu.memory_space<vmem>>, vector<1x64x32xbf16>
    %5 = vector.shape_cast %4 : vector<1x64x32xbf16> to vector<64x32xbf16>
    "tpu.trace_start"() <{level = 10 : i32, message = "hwc,co->hwo"}> : () -> ()
    %cst = arith.constant dense<0.000000e+00> : vector<8x8x32xf32>
    %6 = tpu.matmul %3, %5, %cst {dimension_numbers = #tpu.dot_dimension_numbers<[2], [0], [0, 1], [1], [0, 0, 0, 1, 1, 1], [], []>} : vector<8x8x64xbf16>, vector<64x32xbf16>, vector<8x8x32xf32> -> vector<8x8x32xf32>
    "tpu.trace_stop"() : () -> ()
    %7 = vector.extract_strided_slice %2 {offsets = [1, 0, 0], sizes = [8, 8, 64], strides = [1, 1, 1]} : vector<9x8x64xbf16> to vector<8x8x64xbf16>
    %c2 = arith.constant 2 : index
    %c0_6 = arith.constant 0 : index
    %c0_7 = arith.constant 0 : index
    %8 = vector.load %arg2[%c2, %c0_6, %c0_7] : memref<4x64x32xbf16, #tpu.memory_space<vmem>>, vector<1x64x32xbf16>
    %9 = vector.shape_cast %8 : vector<1x64x32xbf16> to vector<64x32xbf16>
    "tpu.trace_start"() <{level = 10 : i32, message = "hwc,co->hwo"}> : () -> ()
    %cst_8 = arith.constant dense<0.000000e+00> : vector<8x8x32xf32>
    %10 = tpu.matmul %7, %9, %cst_8 {dimension_numbers = #tpu.dot_dimension_numbers<[2], [0], [0, 1], [1], [0, 0, 0, 1, 1, 1], [], []>} : vector<8x8x64xbf16>, vector<64x32xbf16>, vector<8x8x32xf32> -> vector<8x8x32xf32>
    "tpu.trace_stop"() : () -> ()
    %11 = arith.addf %6, %10 : vector<8x8x32xf32>
    %12 = vector.extract_strided_slice %1 {offsets = [0, 1, 0], sizes = [9, 8, 64], strides = [1, 1, 1]} : vector<9x9x64xbf16> to vector<9x8x64xbf16>
    %13 = vector.extract_strided_slice %12 {offsets = [0, 0, 0], sizes = [8, 8, 64], strides = [1, 1, 1]} : vector<9x8x64xbf16> to vector<8x8x64xbf16>
    %c1 = arith.constant 1 : index
    %c0_9 = arith.constant 0 : index
    %c0_10 = arith.constant 0 : index
    %14 = vector.load %arg2[%c1, %c0_9, %c0_10] : memref<4x64x32xbf16, #tpu.memory_space<vmem>>, vector<1x64x32xbf16>
    %15 = vector.shape_cast %14 : vector<1x64x32xbf16> to vector<64x32xbf16>
    "tpu.trace_start"() <{level = 10 : i32, message = "hwc,co->hwo"}> : () -> ()
    %cst_11 = arith.constant dense<0.000000e+00> : vector<8x8x32xf32>
    %16 = tpu.matmul %13, %15, %cst_11 {dimension_numbers = #tpu.dot_dimension_numbers<[2], [0], [0, 1], [1], [0, 0, 0, 1, 1, 1], [], []>} : vector<8x8x64xbf16>, vector<64x32xbf16>, vector<8x8x32xf32> -> vector<8x8x32xf32>
    "tpu.trace_stop"() : () -> ()
    %17 = arith.addf %11, %16 : vector<8x8x32xf32>
    %18 = vector.extract_strided_slice %12 {offsets = [1, 0, 0], sizes = [8, 8, 64], strides = [1, 1, 1]} : vector<9x8x64xbf16> to vector<8x8x64xbf16>
    %c3 = arith.constant 3 : index
    %c0_12 = arith.constant 0 : index
    %c0_13 = arith.constant 0 : index
    %19 = vector.load %arg2[%c3, %c0_12, %c0_13] : memref<4x64x32xbf16, #tpu.memory_space<vmem>>, vector<1x64x32xbf16>
    %20 = vector.shape_cast %19 : vector<1x64x32xbf16> to vector<64x32xbf16>
    "tpu.trace_start"() <{level = 10 : i32, message = "hwc,co->hwo"}> : () -> ()
    %cst_14 = arith.constant dense<0.000000e+00> : vector<8x8x32xf32>
    %21 = tpu.matmul %18, %20, %cst_14 {dimension_numbers = #tpu.dot_dimension_numbers<[2], [0], [0, 1], [1], [0, 0, 0, 1, 1, 1], [], []>} : vector<8x8x64xbf16>, vector<64x32xbf16>, vector<8x8x32xf32> -> vector<8x8x32xf32>
    "tpu.trace_stop"() : () -> ()
    %22 = arith.addf %17, %21 : vector<8x8x32xf32>
    %c0_15 = arith.constant 0 : index
    %c0_16 = arith.constant 0 : index
    %23 = vector.load %arg3[%c0_15, %c0_16] : memref<1x32xf32, #tpu.memory_space<vmem>>, vector<1x32xf32>
    %24 = vector.shape_cast %23 : vector<1x32xf32> to vector<1x1x32xf32>
    %25 = vector.broadcast %24 : vector<1x1x32xf32> to vector<8x8x32xf32>
    %26 = arith.addf %22, %25 : vector<8x8x32xf32>
    %cst_17 = arith.constant 2.000000e-01 : f32
    %27 = vector.broadcast %cst_17 : f32 to vector<8x8x32xf32>
    %28 = arith.mulf %27, %26 : vector<8x8x32xf32>
    %29 = arith.maximumf %26, %28 : vector<8x8x32xf32>
    %30 = arith.truncf %29 : vector<8x8x32xf32> to vector<8x8x32xbf16>
    %c0_18 = arith.constant 0 : index
    %c0_19 = arith.constant 0 : index
    %c0_20 = arith.constant 0 : index
    %c0_21 = arith.constant 0 : index
    %31 = vector.load %arg4[%c0_18, %c0_19, %c0_20, %c0_21] : memref<1x8x8x32xbf16, #tpu.memory_space<vmem>>, vector<1x8x8x32xbf16>
    %32 = vector.shape_cast %31 : vector<1x8x8x32xbf16> to vector<8x8x32xbf16>
    %33 = vector.shape_cast %30 : vector<8x8x32xbf16> to vector<1x8x8x32xbf16>
    tpu.vector_store %arg4[%c0_18, %c0_19, %c0_20, %c0_21], %33 {strides = array<i32>} : memref<1x8x8x32xbf16, #tpu.memory_space<vmem>>, vector<1x8x8x32xbf16>,
    return
  }
  func.func @transform_0(%arg0: i32) -> (i32, i32, i32, i32) {
    %c0_i32 = arith.constant 0 : i32
    %c0_i32_0 = arith.constant 0 : i32
    %c0_i32_1 = arith.constant 0 : i32
    %c0_i32_2 = arith.constant 0 : i32
    return %arg0, %c0_i32, %c0_i32_0, %c0_i32_1 : i32, i32, i32, i32
  }
  func.func @transform_1(%arg0: i32) -> (i32, i32, i32) {
    %c0_i32 = arith.constant 0 : i32
    %c0_i32_0 = arith.constant 0 : i32
    %c0_i32_1 = arith.constant 0 : i32
    %c0_i32_2 = arith.constant 0 : i32
    return %c0_i32, %c0_i32_0, %c0_i32_1 : i32, i32, i32
  }
  func.func @transform_2(%arg0: i32) -> (i32, i32) {
    %c0_i32 = arith.constant 0 : i32
    %c0_i32_0 = arith.constant 0 : i32
    %c0_i32_1 = arith.constant 0 : i32
    return %c0_i32, %c0_i32_0 : i32, i32
  }
  func.func @transform_3(%arg0: i32) -> (i32, i32, i32, i32) {
    %c0_i32 = arith.constant 0 : i32
    %c0_i32_0 = arith.constant 0 : i32
    %c0_i32_1 = arith.constant 0 : i32
    %c0_i32_2 = arith.constant 0 : i32
    return %arg0, %c0_i32, %c0_i32_0, %c0_i32_1 : i32, i32, i32, i32
  }
}

module attributes {stable_mosaic.version = 11 : i64} {
  func.func @kernel(%arg0: i32, %arg1: memref<1x12x12x32xbf16, #tpu.memory_space<vmem>>, %arg2: memref<512x64xbf16, #tpu.memory_space<vmem>>, %arg3: memref<1x64xf32, #tpu.memory_space<vmem>>, %arg4: memref<9x9x1xf32, #tpu.memory_space<vmem>>, %arg5: memref<16x64x1xf32, #tpu.memory_space<vmem>>, %arg6: memref<1x1xf32, #tpu.memory_space<vmem>>, %arg7: memref<1x6x6x1xf32, #tpu.memory_space<vmem>>) attributes {dimension_semantics = [#tpu.dimension_semantics<parallel>], iteration_bounds = array<i64: 2>, scalar_prefetch = 0 : i64, scratch_operands = 0 : i64, tpu.core_type = #tpu.core_type<tc>, window_params = [{transform_indices = @transform_0, window_bounds = array<i64: 1, 12, 12, 32>}, {pipeline_mode = #tpu.pipeline_mode<synchronous>, transform_indices = @transform_1, window_bounds = array<i64: 512, 64>}, {pipeline_mode = #tpu.pipeline_mode<synchronous>, transform_indices = @transform_2, window_bounds = array<i64: 1, 64>}, {pipeline_mode = #tpu.pipeline_mode<synchronous>, transform_indices = @transform_3, window_bounds = array<i64: 9, 9, 1>}, {pipeline_mode = #tpu.pipeline_mode<synchronous>, transform_indices = @transform_4, window_bounds = array<i64: 16, 64, 1>}, {pipeline_mode = #tpu.pipeline_mode<synchronous>, transform_indices = @transform_5, window_bounds = array<i64: 1, 1>}, {transform_indices = @transform_6, window_bounds = array<i64: 1, 6, 6, 1>}]} {
    %c0 = arith.constant 0 : index
    %c0_0 = arith.constant 0 : index
    %c0_1 = arith.constant 0 : index
    %c0_2 = arith.constant 0 : index
    %0 = vector.load %arg1[%c0, %c0_0, %c0_1, %c0_2] : memref<1x12x12x32xbf16, #tpu.memory_space<vmem>>, vector<1x12x12x32xbf16>
    %1 = vector.shape_cast %0 : vector<1x12x12x32xbf16> to vector<12x12x32xbf16>
    %2 = vector.extract_strided_slice %1 {offsets = [0, 0, 0], sizes = [9, 9, 32], strides = [1, 1, 1]} : vector<12x12x32xbf16> to vector<9x9x32xbf16>
    %3 = vector.extract_strided_slice %1 {offsets = [0, 1, 0], sizes = [9, 9, 32], strides = [1, 1, 1]} : vector<12x12x32xbf16> to vector<9x9x32xbf16>
    %4 = vector.extract_strided_slice %1 {offsets = [0, 2, 0], sizes = [9, 9, 32], strides = [1, 1, 1]} : vector<12x12x32xbf16> to vector<9x9x32xbf16>
    %5 = vector.extract_strided_slice %1 {offsets = [0, 3, 0], sizes = [9, 9, 32], strides = [1, 1, 1]} : vector<12x12x32xbf16> to vector<9x9x32xbf16>
    %6 = vector.extract_strided_slice %1 {offsets = [1, 0, 0], sizes = [9, 9, 32], strides = [1, 1, 1]} : vector<12x12x32xbf16> to vector<9x9x32xbf16>
    %7 = vector.extract_strided_slice %1 {offsets = [1, 1, 0], sizes = [9, 9, 32], strides = [1, 1, 1]} : vector<12x12x32xbf16> to vector<9x9x32xbf16>
    %8 = vector.extract_strided_slice %1 {offsets = [1, 2, 0], sizes = [9, 9, 32], strides = [1, 1, 1]} : vector<12x12x32xbf16> to vector<9x9x32xbf16>
    %9 = vector.extract_strided_slice %1 {offsets = [1, 3, 0], sizes = [9, 9, 32], strides = [1, 1, 1]} : vector<12x12x32xbf16> to vector<9x9x32xbf16>
    %10 = vector.extract_strided_slice %1 {offsets = [2, 0, 0], sizes = [9, 9, 32], strides = [1, 1, 1]} : vector<12x12x32xbf16> to vector<9x9x32xbf16>
    %11 = vector.extract_strided_slice %1 {offsets = [2, 1, 0], sizes = [9, 9, 32], strides = [1, 1, 1]} : vector<12x12x32xbf16> to vector<9x9x32xbf16>
    %12 = vector.extract_strided_slice %1 {offsets = [2, 2, 0], sizes = [9, 9, 32], strides = [1, 1, 1]} : vector<12x12x32xbf16> to vector<9x9x32xbf16>
    %13 = vector.extract_strided_slice %1 {offsets = [2, 3, 0], sizes = [9, 9, 32], strides = [1, 1, 1]} : vector<12x12x32xbf16> to vector<9x9x32xbf16>
    %14 = vector.extract_strided_slice %1 {offsets = [3, 0, 0], sizes = [9, 9, 32], strides = [1, 1, 1]} : vector<12x12x32xbf16> to vector<9x9x32xbf16>
    %15 = vector.extract_strided_slice %1 {offsets = [3, 1, 0], sizes = [9, 9, 32], strides = [1, 1, 1]} : vector<12x12x32xbf16> to vector<9x9x32xbf16>
    %16 = vector.extract_strided_slice %1 {offsets = [3, 2, 0], sizes = [9, 9, 32], strides = [1, 1, 1]} : vector<12x12x32xbf16> to vector<9x9x32xbf16>
    %17 = vector.extract_strided_slice %1 {offsets = [3, 3, 0], sizes = [9, 9, 32], strides = [1, 1, 1]} : vector<12x12x32xbf16> to vector<9x9x32xbf16>
    %18 = tpu.concatenate %2, %3, %4, %5, %6, %7, %8, %9, %10, %11, %12, %13, %14, %15, %16, %17 in 2 : vector<9x9x32xbf16>, vector<9x9x32xbf16>, vector<9x9x32xbf16>, vector<9x9x32xbf16>, vector<9x9x32xbf16>, vector<9x9x32xbf16>, vector<9x9x32xbf16>, vector<9x9x32xbf16>, vector<9x9x32xbf16>, vector<9x9x32xbf16>, vector<9x9x32xbf16>, vector<9x9x32xbf16>, vector<9x9x32xbf16>, vector<9x9x32xbf16>, vector<9x9x32xbf16>, vector<9x9x32xbf16> -> vector<9x9x512xbf16>
    %c0_3 = arith.constant 0 : index
    %c0_4 = arith.constant 0 : index
    %19 = vector.load %arg2[%c0_3, %c0_4] : memref<512x64xbf16, #tpu.memory_space<vmem>>, vector<512x64xbf16>
    "tpu.trace_start"() <{level = 10 : i32, message = "hwk,ko->hwo"}> : () -> ()
    %cst = arith.constant dense<0.000000e+00> : vector<9x9x64xf32>
    %20 = tpu.matmul %18, %19, %cst {dimension_numbers = #tpu.dot_dimension_numbers<[2], [0], [0, 1], [1], [0, 0, 0, 1, 1, 1], [], []>} : vector<9x9x512xbf16>, vector<512x64xbf16>, vector<9x9x64xf32> -> vector<9x9x64xf32>
    "tpu.trace_stop"() : () -> ()
    %c0_5 = arith.constant 0 : index
    %c0_6 = arith.constant 0 : index
    %21 = vector.load %arg3[%c0_5, %c0_6] : memref<1x64xf32, #tpu.memory_space<vmem>>, vector<1x64xf32>
    %22 = vector.shape_cast %21 : vector<1x64xf32> to vector<1x1x64xf32>
    %23 = vector.broadcast %22 : vector<1x1x64xf32> to vector<9x9x64xf32>
    %24 = arith.addf %20, %23 : vector<9x9x64xf32>
    %cst_7 = arith.constant 2.000000e-01 : f32
    %25 = vector.broadcast %cst_7 : f32 to vector<9x9x64xf32>
    %26 = arith.mulf %25, %24 : vector<9x9x64xf32>
    %27 = arith.maximumf %24, %26 : vector<9x9x64xf32>
    %c0_8 = arith.constant 0 : index
    %c0_9 = arith.constant 0 : index
    %c0_10 = arith.constant 0 : index
    %28 = vector.load %arg4[%c0_8, %c0_9, %c0_10] : memref<9x9x1xf32, #tpu.memory_space<vmem>>, vector<9x9x1xf32>
    %29 = vector.broadcast %28 : vector<9x9x1xf32> to vector<9x9x64xf32>
    %30 = arith.mulf %27, %29 : vector<9x9x64xf32>
    %31 = vector.extract_strided_slice %30 {offsets = [0, 0, 0], sizes = [9, 6, 64], strides = [1, 1, 1]} : vector<9x9x64xf32> to vector<9x6x64xf32>
    %32 = vector.extract_strided_slice %31 {offsets = [0, 0, 0], sizes = [6, 6, 64], strides = [1, 1, 1]} : vector<9x6x64xf32> to vector<6x6x64xf32>
    %c0_11 = arith.constant 0 : index
    %c0_12 = arith.constant 0 : index
    %c0_13 = arith.constant 0 : index
    %33 = vector.load %arg5[%c0_11, %c0_12, %c0_13] : memref<16x64x1xf32, #tpu.memory_space<vmem>>, vector<1x64x1xf32>
    %34 = vector.shape_cast %33 : vector<1x64x1xf32> to vector<64x1xf32>
    "tpu.trace_start"() <{level = 10 : i32, message = "hwc,co->hwo"}> : () -> ()
    %cst_14 = arith.constant dense<0.000000e+00> : vector<6x6x1xf32>
    %35 = tpu.matmul %32, %34, %cst_14 {dimension_numbers = #tpu.dot_dimension_numbers<[2], [0], [0, 1], [1], [0, 0, 0, 1, 1, 1], [], []>} : vector<6x6x64xf32>, vector<64x1xf32>, vector<6x6x1xf32> -> vector<6x6x1xf32>
    "tpu.trace_stop"() : () -> ()
    %36 = vector.extract_strided_slice %31 {offsets = [1, 0, 0], sizes = [6, 6, 64], strides = [1, 1, 1]} : vector<9x6x64xf32> to vector<6x6x64xf32>
    %c4 = arith.constant 4 : index
    %c0_15 = arith.constant 0 : index
    %c0_16 = arith.constant 0 : index
    %37 = vector.load %arg5[%c4, %c0_15, %c0_16] : memref<16x64x1xf32, #tpu.memory_space<vmem>>, vector<1x64x1xf32>
    %38 = vector.shape_cast %37 : vector<1x64x1xf32> to vector<64x1xf32>
    "tpu.trace_start"() <{level = 10 : i32, message = "hwc,co->hwo"}> : () -> ()
    %cst_17 = arith.constant dense<0.000000e+00> : vector<6x6x1xf32>
    %39 = tpu.matmul %36, %38, %cst_17 {dimension_numbers = #tpu.dot_dimension_numbers<[2], [0], [0, 1], [1], [0, 0, 0, 1, 1, 1], [], []>} : vector<6x6x64xf32>, vector<64x1xf32>, vector<6x6x1xf32> -> vector<6x6x1xf32>
    "tpu.trace_stop"() : () -> ()
    %40 = arith.addf %35, %39 : vector<6x6x1xf32>
    %41 = vector.extract_strided_slice %31 {offsets = [2, 0, 0], sizes = [6, 6, 64], strides = [1, 1, 1]} : vector<9x6x64xf32> to vector<6x6x64xf32>
    %c8 = arith.constant 8 : index
    %c0_18 = arith.constant 0 : index
    %c0_19 = arith.constant 0 : index
    %42 = vector.load %arg5[%c8, %c0_18, %c0_19] : memref<16x64x1xf32, #tpu.memory_space<vmem>>, vector<1x64x1xf32>
    %43 = vector.shape_cast %42 : vector<1x64x1xf32> to vector<64x1xf32>
    "tpu.trace_start"() <{level = 10 : i32, message = "hwc,co->hwo"}> : () -> ()
    %cst_20 = arith.constant dense<0.000000e+00> : vector<6x6x1xf32>
    %44 = tpu.matmul %41, %43, %cst_20 {dimension_numbers = #tpu.dot_dimension_numbers<[2], [0], [0, 1], [1], [0, 0, 0, 1, 1, 1], [], []>} : vector<6x6x64xf32>, vector<64x1xf32>, vector<6x6x1xf32> -> vector<6x6x1xf32>
    "tpu.trace_stop"() : () -> ()
    %45 = arith.addf %40, %44 : vector<6x6x1xf32>
    %46 = vector.extract_strided_slice %31 {offsets = [3, 0, 0], sizes = [6, 6, 64], strides = [1, 1, 1]} : vector<9x6x64xf32> to vector<6x6x64xf32>
    %c12 = arith.constant 12 : index
    %c0_21 = arith.constant 0 : index
    %c0_22 = arith.constant 0 : index
    %47 = vector.load %arg5[%c12, %c0_21, %c0_22] : memref<16x64x1xf32, #tpu.memory_space<vmem>>, vector<1x64x1xf32>
    %48 = vector.shape_cast %47 : vector<1x64x1xf32> to vector<64x1xf32>
    "tpu.trace_start"() <{level = 10 : i32, message = "hwc,co->hwo"}> : () -> ()
    %cst_23 = arith.constant dense<0.000000e+00> : vector<6x6x1xf32>
    %49 = tpu.matmul %46, %48, %cst_23 {dimension_numbers = #tpu.dot_dimension_numbers<[2], [0], [0, 1], [1], [0, 0, 0, 1, 1, 1], [], []>} : vector<6x6x64xf32>, vector<64x1xf32>, vector<6x6x1xf32> -> vector<6x6x1xf32>
    "tpu.trace_stop"() : () -> ()
    %50 = arith.addf %45, %49 : vector<6x6x1xf32>
    %51 = vector.extract_strided_slice %30 {offsets = [0, 1, 0], sizes = [9, 6, 64], strides = [1, 1, 1]} : vector<9x9x64xf32> to vector<9x6x64xf32>
    %52 = vector.extract_strided_slice %51 {offsets = [0, 0, 0], sizes = [6, 6, 64], strides = [1, 1, 1]} : vector<9x6x64xf32> to vector<6x6x64xf32>
    %c1 = arith.constant 1 : index
    %c0_24 = arith.constant 0 : index
    %c0_25 = arith.constant 0 : index
    %53 = vector.load %arg5[%c1, %c0_24, %c0_25] : memref<16x64x1xf32, #tpu.memory_space<vmem>>, vector<1x64x1xf32>
    %54 = vector.shape_cast %53 : vector<1x64x1xf32> to vector<64x1xf32>
    "tpu.trace_start"() <{level = 10 : i32, message = "hwc,co->hwo"}> : () -> ()
    %cst_26 = arith.constant dense<0.000000e+00> : vector<6x6x1xf32>
    %55 = tpu.matmul %52, %54, %cst_26 {dimension_numbers = #tpu.dot_dimension_numbers<[2], [0], [0, 1], [1], [0, 0, 0, 1, 1, 1], [], []>} : vector<6x6x64xf32>, vector<64x1xf32>, vector<6x6x1xf32> -> vector<6x6x1xf32>
    "tpu.trace_stop"() : () -> ()
    %56 = arith.addf %50, %55 : vector<6x6x1xf32>
    %57 = vector.extract_strided_slice %51 {offsets = [1, 0, 0], sizes = [6, 6, 64], strides = [1, 1, 1]} : vector<9x6x64xf32> to vector<6x6x64xf32>
    %c5 = arith.constant 5 : index
    %c0_27 = arith.constant 0 : index
    %c0_28 = arith.constant 0 : index
    %58 = vector.load %arg5[%c5, %c0_27, %c0_28] : memref<16x64x1xf32, #tpu.memory_space<vmem>>, vector<1x64x1xf32>
    %59 = vector.shape_cast %58 : vector<1x64x1xf32> to vector<64x1xf32>
    "tpu.trace_start"() <{level = 10 : i32, message = "hwc,co->hwo"}> : () -> ()
    %cst_29 = arith.constant dense<0.000000e+00> : vector<6x6x1xf32>
    %60 = tpu.matmul %57, %59, %cst_29 {dimension_numbers = #tpu.dot_dimension_numbers<[2], [0], [0, 1], [1], [0, 0, 0, 1, 1, 1], [], []>} : vector<6x6x64xf32>, vector<64x1xf32>, vector<6x6x1xf32> -> vector<6x6x1xf32>
    "tpu.trace_stop"() : () -> ()
    %61 = arith.addf %56, %60 : vector<6x6x1xf32>
    %62 = vector.extract_strided_slice %51 {offsets = [2, 0, 0], sizes = [6, 6, 64], strides = [1, 1, 1]} : vector<9x6x64xf32> to vector<6x6x64xf32>
    %c9 = arith.constant 9 : index
    %c0_30 = arith.constant 0 : index
    %c0_31 = arith.constant 0 : index
    %63 = vector.load %arg5[%c9, %c0_30, %c0_31] : memref<16x64x1xf32, #tpu.memory_space<vmem>>, vector<1x64x1xf32>
    %64 = vector.shape_cast %63 : vector<1x64x1xf32> to vector<64x1xf32>
    "tpu.trace_start"() <{level = 10 : i32, message = "hwc,co->hwo"}> : () -> ()
    %cst_32 = arith.constant dense<0.000000e+00> : vector<6x6x1xf32>
    %65 = tpu.matmul %62, %64, %cst_32 {dimension_numbers = #tpu.dot_dimension_numbers<[2], [0], [0, 1], [1], [0, 0, 0, 1, 1, 1], [], []>} : vector<6x6x64xf32>, vector<64x1xf32>, vector<6x6x1xf32> -> vector<6x6x1xf32>
    "tpu.trace_stop"() : () -> ()
    %66 = arith.addf %61, %65 : vector<6x6x1xf32>
    %67 = vector.extract_strided_slice %51 {offsets = [3, 0, 0], sizes = [6, 6, 64], strides = [1, 1, 1]} : vector<9x6x64xf32> to vector<6x6x64xf32>
    %c13 = arith.constant 13 : index
    %c0_33 = arith.constant 0 : index
    %c0_34 = arith.constant 0 : index
    %68 = vector.load %arg5[%c13, %c0_33, %c0_34] : memref<16x64x1xf32, #tpu.memory_space<vmem>>, vector<1x64x1xf32>
    %69 = vector.shape_cast %68 : vector<1x64x1xf32> to vector<64x1xf32>
    "tpu.trace_start"() <{level = 10 : i32, message = "hwc,co->hwo"}> : () -> ()
    %cst_35 = arith.constant dense<0.000000e+00> : vector<6x6x1xf32>
    %70 = tpu.matmul %67, %69, %cst_35 {dimension_numbers = #tpu.dot_dimension_numbers<[2], [0], [0, 1], [1], [0, 0, 0, 1, 1, 1], [], []>} : vector<6x6x64xf32>, vector<64x1xf32>, vector<6x6x1xf32> -> vector<6x6x1xf32>
    "tpu.trace_stop"() : () -> ()
    %71 = arith.addf %66, %70 : vector<6x6x1xf32>
    %72 = vector.extract_strided_slice %30 {offsets = [0, 2, 0], sizes = [9, 6, 64], strides = [1, 1, 1]} : vector<9x9x64xf32> to vector<9x6x64xf32>
    %73 = vector.extract_strided_slice %72 {offsets = [0, 0, 0], sizes = [6, 6, 64], strides = [1, 1, 1]} : vector<9x6x64xf32> to vector<6x6x64xf32>
    %c2 = arith.constant 2 : index
    %c0_36 = arith.constant 0 : index
    %c0_37 = arith.constant 0 : index
    %74 = vector.load %arg5[%c2, %c0_36, %c0_37] : memref<16x64x1xf32, #tpu.memory_space<vmem>>, vector<1x64x1xf32>
    %75 = vector.shape_cast %74 : vector<1x64x1xf32> to vector<64x1xf32>
    "tpu.trace_start"() <{level = 10 : i32, message = "hwc,co->hwo"}> : () -> ()
    %cst_38 = arith.constant dense<0.000000e+00> : vector<6x6x1xf32>
    %76 = tpu.matmul %73, %75, %cst_38 {dimension_numbers = #tpu.dot_dimension_numbers<[2], [0], [0, 1], [1], [0, 0, 0, 1, 1, 1], [], []>} : vector<6x6x64xf32>, vector<64x1xf32>, vector<6x6x1xf32> -> vector<6x6x1xf32>
    "tpu.trace_stop"() : () -> ()
    %77 = arith.addf %71, %76 : vector<6x6x1xf32>
    %78 = vector.extract_strided_slice %72 {offsets = [1, 0, 0], sizes = [6, 6, 64], strides = [1, 1, 1]} : vector<9x6x64xf32> to vector<6x6x64xf32>
    %c6 = arith.constant 6 : index
    %c0_39 = arith.constant 0 : index
    %c0_40 = arith.constant 0 : index
    %79 = vector.load %arg5[%c6, %c0_39, %c0_40] : memref<16x64x1xf32, #tpu.memory_space<vmem>>, vector<1x64x1xf32>
    %80 = vector.shape_cast %79 : vector<1x64x1xf32> to vector<64x1xf32>
    "tpu.trace_start"() <{level = 10 : i32, message = "hwc,co->hwo"}> : () -> ()
    %cst_41 = arith.constant dense<0.000000e+00> : vector<6x6x1xf32>
    %81 = tpu.matmul %78, %80, %cst_41 {dimension_numbers = #tpu.dot_dimension_numbers<[2], [0], [0, 1], [1], [0, 0, 0, 1, 1, 1], [], []>} : vector<6x6x64xf32>, vector<64x1xf32>, vector<6x6x1xf32> -> vector<6x6x1xf32>
    "tpu.trace_stop"() : () -> ()
    %82 = arith.addf %77, %81 : vector<6x6x1xf32>
    %83 = vector.extract_strided_slice %72 {offsets = [2, 0, 0], sizes = [6, 6, 64], strides = [1, 1, 1]} : vector<9x6x64xf32> to vector<6x6x64xf32>
    %c10 = arith.constant 10 : index
    %c0_42 = arith.constant 0 : index
    %c0_43 = arith.constant 0 : index
    %84 = vector.load %arg5[%c10, %c0_42, %c0_43] : memref<16x64x1xf32, #tpu.memory_space<vmem>>, vector<1x64x1xf32>
    %85 = vector.shape_cast %84 : vector<1x64x1xf32> to vector<64x1xf32>
    "tpu.trace_start"() <{level = 10 : i32, message = "hwc,co->hwo"}> : () -> ()
    %cst_44 = arith.constant dense<0.000000e+00> : vector<6x6x1xf32>
    %86 = tpu.matmul %83, %85, %cst_44 {dimension_numbers = #tpu.dot_dimension_numbers<[2], [0], [0, 1], [1], [0, 0, 0, 1, 1, 1], [], []>} : vector<6x6x64xf32>, vector<64x1xf32>, vector<6x6x1xf32> -> vector<6x6x1xf32>
    "tpu.trace_stop"() : () -> ()
    %87 = arith.addf %82, %86 : vector<6x6x1xf32>
    %88 = vector.extract_strided_slice %72 {offsets = [3, 0, 0], sizes = [6, 6, 64], strides = [1, 1, 1]} : vector<9x6x64xf32> to vector<6x6x64xf32>
    %c14 = arith.constant 14 : index
    %c0_45 = arith.constant 0 : index
    %c0_46 = arith.constant 0 : index
    %89 = vector.load %arg5[%c14, %c0_45, %c0_46] : memref<16x64x1xf32, #tpu.memory_space<vmem>>, vector<1x64x1xf32>
    %90 = vector.shape_cast %89 : vector<1x64x1xf32> to vector<64x1xf32>
    "tpu.trace_start"() <{level = 10 : i32, message = "hwc,co->hwo"}> : () -> ()
    %cst_47 = arith.constant dense<0.000000e+00> : vector<6x6x1xf32>
    %91 = tpu.matmul %88, %90, %cst_47 {dimension_numbers = #tpu.dot_dimension_numbers<[2], [0], [0, 1], [1], [0, 0, 0, 1, 1, 1], [], []>} : vector<6x6x64xf32>, vector<64x1xf32>, vector<6x6x1xf32> -> vector<6x6x1xf32>
    "tpu.trace_stop"() : () -> ()
    %92 = arith.addf %87, %91 : vector<6x6x1xf32>
    %93 = vector.extract_strided_slice %30 {offsets = [0, 3, 0], sizes = [9, 6, 64], strides = [1, 1, 1]} : vector<9x9x64xf32> to vector<9x6x64xf32>
    %94 = vector.extract_strided_slice %93 {offsets = [0, 0, 0], sizes = [6, 6, 64], strides = [1, 1, 1]} : vector<9x6x64xf32> to vector<6x6x64xf32>
    %c3 = arith.constant 3 : index
    %c0_48 = arith.constant 0 : index
    %c0_49 = arith.constant 0 : index
    %95 = vector.load %arg5[%c3, %c0_48, %c0_49] : memref<16x64x1xf32, #tpu.memory_space<vmem>>, vector<1x64x1xf32>
    %96 = vector.shape_cast %95 : vector<1x64x1xf32> to vector<64x1xf32>
    "tpu.trace_start"() <{level = 10 : i32, message = "hwc,co->hwo"}> : () -> ()
    %cst_50 = arith.constant dense<0.000000e+00> : vector<6x6x1xf32>
    %97 = tpu.matmul %94, %96, %cst_50 {dimension_numbers = #tpu.dot_dimension_numbers<[2], [0], [0, 1], [1], [0, 0, 0, 1, 1, 1], [], []>} : vector<6x6x64xf32>, vector<64x1xf32>, vector<6x6x1xf32> -> vector<6x6x1xf32>
    "tpu.trace_stop"() : () -> ()
    %98 = arith.addf %92, %97 : vector<6x6x1xf32>
    %99 = vector.extract_strided_slice %93 {offsets = [1, 0, 0], sizes = [6, 6, 64], strides = [1, 1, 1]} : vector<9x6x64xf32> to vector<6x6x64xf32>
    %c7 = arith.constant 7 : index
    %c0_51 = arith.constant 0 : index
    %c0_52 = arith.constant 0 : index
    %100 = vector.load %arg5[%c7, %c0_51, %c0_52] : memref<16x64x1xf32, #tpu.memory_space<vmem>>, vector<1x64x1xf32>
    %101 = vector.shape_cast %100 : vector<1x64x1xf32> to vector<64x1xf32>
    "tpu.trace_start"() <{level = 10 : i32, message = "hwc,co->hwo"}> : () -> ()
    %cst_53 = arith.constant dense<0.000000e+00> : vector<6x6x1xf32>
    %102 = tpu.matmul %99, %101, %cst_53 {dimension_numbers = #tpu.dot_dimension_numbers<[2], [0], [0, 1], [1], [0, 0, 0, 1, 1, 1], [], []>} : vector<6x6x64xf32>, vector<64x1xf32>, vector<6x6x1xf32> -> vector<6x6x1xf32>
    "tpu.trace_stop"() : () -> ()
    %103 = arith.addf %98, %102 : vector<6x6x1xf32>
    %104 = vector.extract_strided_slice %93 {offsets = [2, 0, 0], sizes = [6, 6, 64], strides = [1, 1, 1]} : vector<9x6x64xf32> to vector<6x6x64xf32>
    %c11 = arith.constant 11 : index
    %c0_54 = arith.constant 0 : index
    %c0_55 = arith.constant 0 : index
    %105 = vector.load %arg5[%c11, %c0_54, %c0_55] : memref<16x64x1xf32, #tpu.memory_space<vmem>>, vector<1x64x1xf32>
    %106 = vector.shape_cast %105 : vector<1x64x1xf32> to vector<64x1xf32>
    "tpu.trace_start"() <{level = 10 : i32, message = "hwc,co->hwo"}> : () -> ()
    %cst_56 = arith.constant dense<0.000000e+00> : vector<6x6x1xf32>
    %107 = tpu.matmul %104, %106, %cst_56 {dimension_numbers = #tpu.dot_dimension_numbers<[2], [0], [0, 1], [1], [0, 0, 0, 1, 1, 1], [], []>} : vector<6x6x64xf32>, vector<64x1xf32>, vector<6x6x1xf32> -> vector<6x6x1xf32>
    "tpu.trace_stop"() : () -> ()
    %108 = arith.addf %103, %107 : vector<6x6x1xf32>
    %109 = vector.extract_strided_slice %93 {offsets = [3, 0, 0], sizes = [6, 6, 64], strides = [1, 1, 1]} : vector<9x6x64xf32> to vector<6x6x64xf32>
    %c15 = arith.constant 15 : index
    %c0_57 = arith.constant 0 : index
    %c0_58 = arith.constant 0 : index
    %110 = vector.load %arg5[%c15, %c0_57, %c0_58] : memref<16x64x1xf32, #tpu.memory_space<vmem>>, vector<1x64x1xf32>
    %111 = vector.shape_cast %110 : vector<1x64x1xf32> to vector<64x1xf32>
    "tpu.trace_start"() <{level = 10 : i32, message = "hwc,co->hwo"}> : () -> ()
    %cst_59 = arith.constant dense<0.000000e+00> : vector<6x6x1xf32>
    %112 = tpu.matmul %109, %111, %cst_59 {dimension_numbers = #tpu.dot_dimension_numbers<[2], [0], [0, 1], [1], [0, 0, 0, 1, 1, 1], [], []>} : vector<6x6x64xf32>, vector<64x1xf32>, vector<6x6x1xf32> -> vector<6x6x1xf32>
    "tpu.trace_stop"() : () -> ()
    %113 = arith.addf %108, %112 : vector<6x6x1xf32>
    %c0_60 = arith.constant 0 : index
    %c0_61 = arith.constant 0 : index
    %114 = vector.load %arg6[%c0_60, %c0_61] : memref<1x1xf32, #tpu.memory_space<vmem>>, vector<1x1xf32>
    %115 = vector.shape_cast %114 : vector<1x1xf32> to vector<1x1x1xf32>
    %116 = vector.broadcast %115 : vector<1x1x1xf32> to vector<6x6x1xf32>
    %117 = arith.addf %113, %116 : vector<6x6x1xf32>
    %c0_62 = arith.constant 0 : index
    %c0_63 = arith.constant 0 : index
    %c0_64 = arith.constant 0 : index
    %c0_65 = arith.constant 0 : index
    %118 = vector.load %arg7[%c0_62, %c0_63, %c0_64, %c0_65] : memref<1x6x6x1xf32, #tpu.memory_space<vmem>>, vector<1x6x6x1xf32>
    %119 = vector.shape_cast %118 : vector<1x6x6x1xf32> to vector<6x6x1xf32>
    %120 = vector.shape_cast %117 : vector<6x6x1xf32> to vector<1x6x6x1xf32>
    tpu.vector_store %arg7[%c0_62, %c0_63, %c0_64, %c0_65], %120 {strides = array<i32>} : memref<1x6x6x1xf32, #tpu.memory_space<vmem>>, vector<1x6x6x1xf32>,
    return
  }
  func.func @transform_0(%arg0: i32) -> (i32, i32, i32, i32) {
    %c0_i32 = arith.constant 0 : i32
    %c0_i32_0 = arith.constant 0 : i32
    %c0_i32_1 = arith.constant 0 : i32
    %c0_i32_2 = arith.constant 0 : i32
    return %arg0, %c0_i32, %c0_i32_0, %c0_i32_1 : i32, i32, i32, i32
  }
  func.func @transform_1(%arg0: i32) -> (i32, i32) {
    %c0_i32 = arith.constant 0 : i32
    %c0_i32_0 = arith.constant 0 : i32
    %c0_i32_1 = arith.constant 0 : i32
    return %c0_i32, %c0_i32_0 : i32, i32
  }
  func.func @transform_2(%arg0: i32) -> (i32, i32) {
    %c0_i32 = arith.constant 0 : i32
    %c0_i32_0 = arith.constant 0 : i32
    %c0_i32_1 = arith.constant 0 : i32
    return %c0_i32, %c0_i32_0 : i32, i32
  }
  func.func @transform_3(%arg0: i32) -> (i32, i32, i32) {
    %c0_i32 = arith.constant 0 : i32
    %c0_i32_0 = arith.constant 0 : i32
    %c0_i32_1 = arith.constant 0 : i32
    %c0_i32_2 = arith.constant 0 : i32
    return %c0_i32, %c0_i32_0, %c0_i32_1 : i32, i32, i32
  }
  func.func @transform_4(%arg0: i32) -> (i32, i32, i32) {
    %c0_i32 = arith.constant 0 : i32
    %c0_i32_0 = arith.constant 0 : i32
    %c0_i32_1 = arith.constant 0 : i32
    %c0_i32_2 = arith.constant 0 : i32
    return %c0_i32, %c0_i32_0, %c0_i32_1 : i32, i32, i32
  }
  func.func @transform_5(%arg0: i32) -> (i32, i32) {
    %c0_i32 = arith.constant 0 : i32
    %c0_i32_0 = arith.constant 0 : i32
    %c0_i32_1 = arith.constant 0 : i32
    return %c0_i32, %c0_i32_0 : i32, i32
  }
  func.func @transform_6(%arg0: i32) -> (i32, i32, i32, i32) {
    %c0_i32 = arith.constant 0 : i32
    %c0_i32_0 = arith.constant 0 : i32
    %c0_i32_1 = arith.constant 0 : i32
    %c0_i32_2 = arith.constant 0 : i32
    return %arg0, %c0_i32, %c0_i32_0, %c0_i32_1 : i32, i32, i32, i32
  }
}

</mosaic_0001>

<bundles_post_ra>
// kernel: _lambda_.3
= control target key start
LH: loop header
LB: loop body
LE: loop exit
PB: predicated region body
PF: predicated region fallthrough
CT: control target
= control target key end

     0   :  { %s1536_s12 = smov 0   ;;  %s1952_s0 = inlined_call_operand.vmem [shape: bf16[2,17,17,12], index: 0, kind: input, shape index: {}]   ;;  %s1953_s1 = inlined_call_operand.vmem [shape: bf16[48,16], index: 1, kind: input, shape index: {}]   ;;  %s1954_s2 = inlined_call_operand.vmem [shape: f32[1,16], index: 2, kind: input, shape index: {}]   ;;  %s1955_s3 = inlined_call_operand.vmem [shape: bf16[2,16,16,16], index: 3, kind: output, shape index: {}]  }
   0x1 LB: > { %s1264_s13 = sadd.s32 4294967295, %s1511_s12   ;;  %p1268_p0 = scmp.ge.s32.totalorder %s1511_s12, 1  ;;  %s1511_s12 = sphi %s1536_s12, %s13_s12  }
   0x2   : > { %p137_p1 = scmp.lt.s32.totalorder %s1511_s12, 3 }
   0x4   : > { %p138_p2 = pnand %p1268_p0, %p137_p1 }
   0x5   : > { %p161_p3 = scmp.lt.s32.totalorder (!%p138_p2), %s1264_s13, 1  ;;  %vm351_vm0 = vsmask.f32 (!%p138_p2), 7424  ;;  %s1513_s18 = smov (!%p138_p2), 24   ;;  %vm660_vm1 = vcmask (!%p138_p2), 97280   ;;  %vm693_vm2 = vcmask (!%p138_p2), 195584  }
   0x6   : > { %141 = sbr.rel (%p138_p2) target bundleno = 451 (0x1c3), region = 32  ;;  %s1514_s19 = smov (!%p138_p2), 12   ;;  %vm726_vm3 = vcmask (!%p138_p2), 293888   ;;  %vm790_vm4 = vcmask (!%p138_p2), 392192   ;;  %vm1176_vm5 = vcmask (!%p138_p2), 125952  }
   0x7   : > { %s1515_s20 = smov (!%p138_p2), 36  }
   0xd   : > { %s1957_s13 = smov (!%p161_p3, %s1264_s13), 1 }
   0xe   : > { %s1456_s14 = smul.u32 204, %s1957_s13  ;;  %s1360_s29 = sshll.u32 %s1957_s13, 7 }
   0xf   : > { %s1856_s5 = scalar_lea.vmem %s1955_s3, %s1360_s29 }
  0x10   : > { %s1550_s17 = scalar_lea.vmem %s1952_s0, %s1456_s14 }
  0x11   : > { %v1553_v0 = vld [vmem:[%s1550_s17 + $0x6c] sm:$0xff]   ;;  %v1561_v2 = vld [vmem:[%s1550_s17 + $0x78] sm:$0xff]   ;;  %v1472_v6 = vld [vmem:[%s1550_s17 + $0x14] ss:$0 sps:$4 sm:$0x11]  }
  0x12   : > { %v1556_v1 = vld [vmem:[%s1550_s17 + $0xc] sm:$0xff]   ;;  %597 = vrot.lane.b32.xlu1 %v1553_v0, %s1513_s18  ;;  %v461_v3 = vshrl.u32 %v1553_v0, 16  ;;  %v1567_v4 = vld [vmem:[%s1550_s17 + $0x18] sm:$0xff]   ;;  %v372_v9 = vshll.u32 %v1472_v6, 16  ;;  %v1575_v10 = vld [vmem:[%s1550_s17] sm:$0xff]   ;;  %v463_v13 = vshll.u32 %v1553_v0, 16 }
  0x13   : > { %581 = vrot.lane.b32.xlu0 %v1556_v1, %s1513_s18  ;;  %v365_v5 = vshrl.u32 %v1556_v1, 16  ;;  %v367_v7 = vshll.u32 %v1556_v1, 16  ;;  %v1474_v11 = vld [vmem:[%s1550_s17 + $0x8] ss:$0 sps:$4 sm:$0x11]   ;;  %v353_v16 = vshrl.u32 %v1575_v10, 16 }
  0x14   : > { %v1475_v12 = vld [vmem:[%s1550_s17 + $0x74] ss:$0 sps:$4 sm:$0x11]   ;;  %v374_v15 = vrot.slane %v372_v9, 1  ;;  %v355_v17 = vshll.u32 %v1575_v10, 16  ;;  %v1585_v18 = vld [vmem:[%s1550_s17 + $0x60] sm:$0xff]  }
  0x15   : > { %v369_v8 = vrot.slane %v367_v7, 1  ;;  %v360_v19 = vshll.u32 %v1474_v11, 16  ;;  %v465_v20 = vrot.slane %v463_v13, 1  ;;  %v468_v21 = vshll.u32 %v1475_v12, 16  ;;  %v1593_v30 = vld [vmem:[%s1550_s17 + $0x84] sm:$0xff]   ;;  %v1629_v11 = vld [vmem:[%s1550_s17 + $0x30] sm:$0xff]  }
  0x16   : > { %599 = vrot.lane.b32.xlu1 %v1561_v2, %s1513_s18  ;;  %v473_v22 = vshrl.u32 %v1561_v2, 16  ;;  %v357_v24 = vrot.slane %v355_v17, 1  ;;  %v1477_v25 = vld [vmem:[%s1550_s17 + $0x68] ss:$0 sps:$4 sm:$0x11]   ;;  %v449_v29 = vshrl.u32 %v1585_v18, 16 }
  0x17   : > { %583 = vrot.lane.b32.xlu0 %v1567_v4, %s1513_s18  ;;  %v370_v14 = vor.u32 %v369_v8, %v365_v5  ;;  %v362_v26 = vrot.slane %v360_v19, 1  ;;  %v466_v27 = vor.u32 %v465_v20, %v461_v3  ;;  %v470_v28 = vrot.slane %v468_v21, 1  ;;  %v1478_v34 = vld [vmem:[%s1550_s17 + $0x80] ss:$0 sps:$4 sm:$0x11]   ;;  %v1606_v46 = vld [vmem:[%s1550_s17 + $0x24] sm:$0xff]  }
  0x18   : > { %v358_v31 = vor.u32 %v357_v24, %v353_v16  ;;  %v451_v32 = vshll.u32 %v1585_v18, 16  ;;  %v456_v33 = vshll.u32 %v1477_v25, 16  ;;  %v475_v35 = vshll.u32 %v1561_v2, 16  ;;  %v1479_v37 = vld [vmem:[%s1550_s17 + $0x20] ss:$0 sps:$4 sm:$0x11]  }
  0x19   : > { %v375_v23 = vsel %vm351_vm0, %v370_v14, %v374_v15  ;;  %v471_v36 = vsel %vm351_vm0, %v466_v27, %v470_v28  ;;  %v377_v38 = vshrl.u32 %v1567_v4, 16  ;;  %v480_v43 = vshll.u32 %v1478_v34, 16  ;;  %v1481_v49 = vld [vmem:[%s1550_s17 + $0x8c] ss:$0 sps:$4 sm:$0x11]   ;;  %v1625_v8 = vld [vmem:[%s1550_s17 + $0x90] sm:$0xff]  }
  0x1a   : > { %546 = vrot.lane.b32.xlu1 %v375_v23, %s1514_s19  ;;  %v363_v39 = vsel %vm351_vm0, %v358_v31, %v362_v26  ;;  %v453_v40 = vrot.slane %v451_v32, 1  ;;  %v458_v41 = vrot.slane %v456_v33, 1  ;;  %v477_v42 = vrot.slane %v475_v35, 1  ;;  %v1483_v57 = vld [vmem:[%s1550_s17 + $0x2c] ss:$0 sps:$4 sm:$0x11]  }
  0x1b   : > { %544 = vrot.lane.b32.xlu0 %v363_v39, %s1514_s19  ;;  %v379_v44 = vshll.u32 %v1567_v4, 16  ;;  %v384_v45 = vshll.u32 %v1479_v37, 16  ;;  %v487_v50 = vshll.u32 %v1593_v30, 16  ;;  %v482_v51 = vrot.slane %v480_v43, 1  ;;  %v1634_v13 = vld [vmem:[%s1550_s17 + $0x9c] sm:$0xff]   ;;  %v1653_v31 = vld [vmem:[%s1550_s17 + $0xb4] sm:$0xff]  }
  0x1c   : > { %v454_v47 = vor.u32 %v453_v40, %v449_v29  ;;  %v478_v48 = vor.u32 %v477_v42, %v473_v22  ;;  %v485_v55 = vshrl.u32 %v1593_v30, 16  ;;  %v492_v60 = vshll.u32 %v1481_v49, 16  ;;  %v1486_v9 = vld [vmem:[%s1550_s17 + $0x98] ss:$0 sps:$4 sm:$0x11]   ;;  %v1644_v22 = vld [vmem:[%s1550_s17 + $0x48] sm:$0xff]  }
  0x1d   : > { %v381_v52 = vrot.slane %v379_v44, 1  ;;  %v386_v54 = vrot.slane %v384_v45, 1  ;;  %v489_v56 = vrot.slane %v487_v50, 1  ;;  %v391_v61 = vshll.u32 %v1606_v46, 16  ;;  %v1659_v35 = vld [vmem:[%s1550_s17 + $0x54] sm:$0xff]   ;;  %v1671_v45 = vld [vmem:[%s1550_s17 + $0x3c] sm:$0xff]  }
  0x1e   : > { %562 = vrot.lane.b32.xlu1 %v471_v36, %s1514_s19  ;;  %v1611_v53 = vsel %vm351_vm0, %v454_v47, %v458_v41  ;;  %v483_v58 = vsel %vm351_vm0, %v478_v48, %v482_v51  ;;  %v389_v62 = vshrl.u32 %v1606_v46, 16  ;;  %v396_v63 = vshll.u32 %v1483_v57, 16  ;;  %v1487_v19 = vld [vmem:[%s1550_s17 + $0x38] ss:$0 sps:$4 sm:$0x11]  }
  0x1f   : > { %560 = vrot.lane.b32.xlu0 %v1611_v53, %s1514_s19  ;;  %v382_v59 = vor.u32 %v381_v52, %v377_v38  ;;  %v490_v5 = vor.u32 %v489_v56, %v485_v55  ;;  %v494_v6 = vrot.slane %v492_v60, 1  ;;  %v393_v7 = vrot.slane %v391_v61, 1  ;;  %v1495_v32 = vld [vmem:[%s1550_s17 + $0x50] ss:$0 sps:$4 sm:$0x11]  }
  0x20   : > { %v398_v12 = vrot.slane %v396_v63, 1  ;;  %v499_v16 = vshll.u32 %v1625_v8, 16  ;;  %v504_v17 = vshll.u32 %v1486_v9, 16  ;;  %v403_v20 = vshll.u32 %v1629_v11, 16 }
  0x21   : > { %v387_v3 = vsel %vm351_vm0, %v382_v59, %v386_v54  ;;  %v495_v14 = vsel %vm351_vm0, %v490_v5, %v494_v6  ;;  %v394_v15 = vor.u32 %v393_v7, %v389_v62  ;;  %v511_v21 = vshll.u32 %v1634_v13, 16  ;;  %v1497_v42 = vld [vmem:[%s1550_s17 + $0xbc] ss:$0 sps:$4 sm:$0x11]   ;;  %v1680_v54 = vld [vmem:[%s1550_s17 + $0xc0] sm:$0xff]   ;;  %v1503_v7 = vld [vmem:[%s1953_s1 + $0x8] sm:$0xff]  }
  0x22   : > { %644 = vrot.lane.b32.xlu1 %v471_v36, %s1515_s20  ;;  %v497_v24 = vshrl.u32 %v1625_v8, 16  ;;  %v401_v25 = vshrl.u32 %v1629_v11, 16  ;;  %v509_v26 = vshrl.u32 %v1634_v13, 16  ;;  %v501_v27 = vrot.slane %v499_v16, 1  ;;  %v1502_v62 = vld [vmem:[%s1953_s1] sm:$0xff]  }
  0x23   : > { %628 = vrot.lane.b32.xlu0 %v375_v23, %s1515_s20  ;;  %v1647_v23 = vsel %vm351_vm0, %v394_v15, %v398_v12  ;;  %v506_v28 = vrot.slane %v504_v17, 1  ;;  %v405_v29 = vrot.slane %v403_v20, 1  ;;  %v425_v33 = vshrl.u32 %v1644_v22, 16  ;;  %v1489_v44 = vld [vmem:[%s1550_s17 + $0xa4] ss:$0 sps:$4 sm:$0x11]   ;;  %1412 = vmatprep.subr.bf16.mxu0 %v1502_v62 }
  0x24   : > { %v427_v34 = vshll.u32 %v1644_v22, 16  ;;  %v408_v36 = vshll.u32 %v1487_v19, 16  ;;  %v513_v37 = vrot.slane %v511_v21, 1  ;;  %v432_v39 = vshll.u32 %v1495_v32, 16  ;;  %1450 = vmatprep.subr.bf16.mxu1 %v1502_v62  ;;  %1413 = vmatpush3.bf16.msra.mxu0 %v1502_v62 }
  0x25   : > { %v533_v40 = vshrl.u32 %v1653_v31, 16  ;;  %v535_v41 = vshll.u32 %v1653_v31, 16  ;;  %v437_v43 = vshrl.u32 %v1659_v35, 16  ;;  %v540_v50 = vshll.u32 %v1497_v42, 16  ;;  %1453 = vmatpush3.bf16.msra.mxu1 %v1502_v62  ;;  %1414 = vmatprep.subr.bf16.mxu0 %v1503_v7 }
  0x26   : > { %646 = vrot.lane.b32.xlu1 %v483_v58, %s1515_s20  ;;  %v429_v38 = vrot.slane %v427_v34, 1  ;;  %v434_v48 = vrot.slane %v432_v39, 1  ;;  %v1499_v51 = vld [vmem:[%s1550_s17 + $0x5c] ss:$0 sps:$4 sm:$0x11]   ;;  %v439_v52 = vshll.u32 %v1659_v35, 16  ;;  %v502_v55 = vor.u32 %v501_v27, %v497_v24  ;;  %1451 = vmatprep.subr.bf16.mxu1 %v1503_v7 }
  0x27   : > { %630 = vrot.lane.b32.xlu0 %v387_v3, %s1515_s20  ;;  %v537_v49 = vrot.slane %v535_v41, 1  ;;  %v444_v60 = vshll.u32 %v1499_v51, 16  ;;  %v619_v61 = vshll.u32 %v1680_v54, 16  ;;  %v406_v63 = vor.u32 %v405_v29, %v401_v25  ;;  %v1501_v5 = vld [vmem:[%s1550_s17 + $0xc8] ss:$0 sps:$4 sm:$0x11]  }
  0x28   : > { %v430_v47 = vor.u32 %v429_v38, %v425_v33  ;;  %v441_v59 = vrot.slane %v439_v52, 1  ;;  %v617_v6 = vshrl.u32 %v1680_v54, 16  ;;  %v507_v17 = vsel %vm351_vm0, %v502_v55, %v506_v28  ;;  %v1491_v20 = vld [vmem:[%s1550_s17 + $0x44] ss:$0 sps:$4 sm:$0x11]   ;;  %v1504_v29 = vld [vmem:[%s1953_s1 + $0x10] sm:$0xff]   ;;  %1415 = vmatpush3.bf16.msra.mxu0 %v1503_v7 }
  0x29   : > { %v538_v57 = vor.u32 %v537_v49, %v533_v40  ;;  %v446_v15 = vrot.slane %v444_v60, 1  ;;  %v621_v16 = vrot.slane %v619_v61, 1  ;;  %v516_v19 = vshll.u32 %v1489_v44, 16  ;;  %1454 = vmatpush3.bf16.msra.mxu1 %v1503_v7  ;;  %1416 = vmatprep.subr.bf16.mxu0 %v1504_v29  ;;  %v1494_v42 = vld [vmem:[%s1550_s17 + $0xb0] ss:$0 sps:$4 sm:$0x11]  }
  0x2a   : > { %564 = vrot.lane.b32.xlu1 %v483_v58, %s1514_s19  ;;  %v1683_v56 = vsel %vm351_vm0, %v430_v47, %v434_v48  ;;  %v542_v58 = vrot.slane %v540_v50, 1  ;;  %v442_v12 = vor.u32 %v441_v59, %v437_v43  ;;  %v415_v21 = vshll.u32 %v1671_v45, 16  ;;  %1452 = vmatprep.subr.bf16.mxu1 %v1504_v29 }
  0x2b   : > { %548 = vrot.lane.b32.xlu0 %v387_v3, %s1514_s19  ;;  %v410_v3 = vrot.slane %v408_v36, 1  ;;  %v624_v24 = vshll.u32 %v1501_v5, 16  ;;  %v622_v27 = vor.u32 %v621_v16, %v617_v6  ;;  %v514_v32 = vor.u32 %v513_v37, %v509_v26  ;;  %v1719_v37 = vld [vmem:[%s1550_s17 + $0xa8] sm:$0xff]  }
  0x2c   : > { %v1698_v9 = vsel %vm351_vm0, %v538_v57, %v542_v58  ;;  %v447_v25 = vsel %vm351_vm0, %v442_v12, %v446_v15  ;;  %v413_v33 = vshrl.u32 %v1671_v45, 16  ;;  %v518_v34 = vrot.slane %v516_v19, 1  ;;  %1417 = vmatpush3.bf16.msra.mxu0 %v1504_v29 }
  0x2d   : > { %v411_v28 = vsel %vm351_vm0, %v406_v63, %v410_v3  ;;  %v417_v36 = vrot.slane %v415_v21, 1  ;;  %v420_v38 = vshll.u32 %v1491_v20, 16  ;;  %1455 = vmatpush3.bf16.msra.mxu1 %v1504_v29  ;;  %v523_v43 = vshll.u32 %v1719_v37, 16 }
  0x2e   : > { %566 = vrot.lane.b32.xlu1 %v495_v14, %s1514_s19  ;;  %v521_v44 = vshrl.u32 %v1719_v37, 16  ;;  %v528_v48 = vshll.u32 %v1494_v42, 16 }
  0x2f   : > { %550 = vrot.lane.b32.xlu0 %v1647_v23, %s1514_s19  ;;  %v418_v40 = vor.u32 %v417_v36, %v413_v33  ;;  %v422_v26 = vrot.slane %v420_v38, 1  ;;  %v525_v47 = vrot.slane %v523_v43, 1 }
  0x30   : > { %v530_v50 = vrot.slane %v528_v48, 1 }
  0x31   : > { %v423_v41 = vsel %vm351_vm0, %v418_v40, %v422_v26  ;;  %v526_v49 = vor.u32 %v525_v47, %v521_v44 }
  0x32   : > { %601 = vrot.lane.b32.xlu1 %v1593_v30, %s1513_s18 }
  0x33   : > { %585 = vrot.lane.b32.xlu0 %v1606_v46, %s1513_s18  ;;  %v531_v51 = vsel %vm351_vm0, %v526_v49, %v530_v50 }
  0x36   : > { %603 = vrot.lane.b32.xlu1 %v1625_v8, %s1513_s18 }
  0x37   : > { %587 = vrot.lane.b32.xlu0 %v1629_v11, %s1513_s18 }
  0x3a   : > { %648 = vrot.lane.b32.xlu1 %v495_v14, %s1515_s20  ;;  %v626_v14 = vrot.slane %v624_v24, 1 }
  0x3b   : > { %632 = vrot.lane.b32.xlu0 %v1647_v23, %s1515_s20  ;;  %v519_v23 = vsel %vm351_vm0, %v514_v32, %v518_v34 }
  0x3c   : > { %v627_v39 = vsel %vm351_vm0, %v622_v27, %v626_v14 }
  0x3e   : > { %650 = vrot.lane.b32.xlu1 %v507_v17, %s1515_s20 }
  0x3f   : > { %634 = vrot.lane.b32.xlu0 %v411_v28, %s1515_s20 }
  0x42   : > { %568 = vrot.lane.b32.xlu1 %v507_v17, %s1514_s19 }
  0x43   : > { %552 = vrot.lane.b32.xlu0 %v411_v28, %s1514_s19 }
  0x46   : > { %570 = vrot.lane.b32.xlu1 %v519_v23, %s1514_s19 }
  0x47   : > { %554 = vrot.lane.b32.xlu0 %v423_v41, %s1514_s19 }
  0x4a   : > { %605 = vrot.lane.b32.xlu1 %v1634_v13, %s1513_s18 }
  0x4b   : > { %589 = vrot.lane.b32.xlu0 %v1671_v45, %s1513_s18 }
  0x4e   : > { %607 = vrot.lane.b32.xlu1 %v1719_v37, %s1513_s18 }
  0x4f   : > { %591 = vrot.lane.b32.xlu0 %v1644_v22, %s1513_s18 }
  0x52   : > { %652 = vrot.lane.b32.xlu1 %v519_v23, %s1515_s20 }
  0x53   : > { %636 = vrot.lane.b32.xlu0 %v423_v41, %s1515_s20 }
  0x56   : > { %654 = vrot.lane.b32.xlu1 %v531_v51, %s1515_s20 }
  0x57   : > { %638 = vrot.lane.b32.xlu0 %v1683_v56, %s1515_s20 }
  0x5a   : > { %572 = vrot.lane.b32.xlu1 %v531_v51, %s1514_s19 }
  0x5b   : > { %556 = vrot.lane.b32.xlu0 %v1683_v56, %s1514_s19 }
  0x5e   : > { %574 = vrot.lane.b32.xlu1 %v1698_v9, %s1514_s19 }
  0x5f   : > { %558 = vrot.lane.b32.xlu0 %v447_v25, %s1514_s19 }
  0x62   : > { %609 = vrot.lane.b32.xlu1 %v1653_v31, %s1513_s18 }
  0x63   : > { %593 = vrot.lane.b32.xlu0 %v1659_v35, %s1513_s18 }
  0x66   : > { %611 = vrot.lane.b32.xlu1 %v1680_v54, %s1513_s18 }
  0x67   : > { %595 = vrot.lane.b32.xlu0 %v1585_v18, %s1513_s18 }
  0x6a   : > { %656 = vrot.lane.b32.xlu1 %v1698_v9, %s1515_s20 }
  0x6b   : > { %640 = vrot.lane.b32.xlu0 %v447_v25, %s1515_s20 }
  0x6e   : > { %658 = vrot.lane.b32.xlu1 %v627_v39, %s1515_s20 }
  0x6f   : > { %642 = vrot.lane.b32.xlu0 %v1611_v53, %s1515_s20 }
  0x84   : > { %v598_v52 = vpop.permute.xlu1 %597 }
  0x85   : > { %v582_v55 = vpop.permute.xlu0 %581 }
  0x88   : > { %v600_v56 = vpop.permute.xlu1 %599 }
  0x89   : > { %v584_v57 = vpop.permute.xlu0 %583 }
  0x8c   : > { %v547_v58 = vpop.permute.xlu1 %546 }
  0x8d   : > { %v545_v59 = vpop.permute.xlu0 %544 }
  0x8e   : > { %v662_v62 = vsel %vm660_vm1, %v1575_v10, %v545_v59  ;;  %v664_v10 = vsel %vm660_vm1, %v1556_v1, %v547_v58 }
  0x8f   : > { %v695_v7 = vsel %vm693_vm2, %v662_v62, %v582_v55  ;;  %v697_v15 = vsel %vm693_vm2, %v664_v10, %v584_v57 }
  0x90   : > { %v563_v54 = vpop.permute.xlu1 %562 }
  0x91   : > { %v561_v60 = vpop.permute.xlu0 %560  ;;  %v680_v63 = vsel %vm660_vm1, %v1553_v0, %v563_v54 }
  0x92   : > { %v678_v53 = vsel %vm660_vm1, %v1585_v18, %v561_v60  ;;  %v713_v9 = vsel %vm693_vm2, %v680_v63, %v600_v56 }
  0x93   : > { %v711_v3 = vsel %vm693_vm2, %v678_v53, %v598_v52 }
  0x94   : > { %v645_v61 = vpop.permute.xlu1 %644 }
  0x95   : > { %v744_v5 = vsel %vm726_vm3, %v711_v3, %v645_v61  ;;  %v629_v6 = vpop.permute.xlu0 %628 }
  0x96   : > { %1434 = vmatprep.mubr.msk.bf16.mxu1 %vm790_vm4, %v744_v5  ;;  %v728_v0 = vsel %vm726_vm3, %v695_v7, %v629_v6 }
  0x97   : > { %1418 = vmatprep.mubr.msk.bf16.mxu0 %vm790_vm4, %v728_v0 }
  0x98   : > { %v647_v12 = vpop.permute.xlu1 %646 }
  0x99   : > { %v746_v18 = vsel %vm726_vm3, %v713_v9, %v647_v12  ;;  %v631_v16 = vpop.permute.xlu0 %630 }
  0x9a   : > { %1435 = vmatmul.mubr.msk.bf16.vlgmr.msra.gmra.mrb[0].mxu1 %vm790_vm4, %v746_v18  ;;  %v730_v19 = vsel %vm726_vm3, %v697_v15, %v631_v16 }
  0x9b   : > { %1419 = vmatmul.mubr.msk.bf16.vlgmr.msra.gmra.mrb[0].mxu0 %vm790_vm4, %v730_v19 }
  0x9c   : > { %v565_v17 = vpop.permute.xlu1 %564 }
  0x9d   : > { %v549_v20 = vpop.permute.xlu0 %548  ;;  %v682_v14 = vsel %vm660_vm1, %v1561_v2, %v565_v17 }
  0x9e   : > { %v666_v34 = vsel %vm660_vm1, %v1567_v4, %v549_v20 }
  0xa0   : > { %v567_v21 = vpop.permute.xlu1 %566 }
  0xa1   : > { %v551_v24 = vpop.permute.xlu0 %550  ;;  %v684_v36 = vsel %vm660_vm1, %v1593_v30, %v567_v21 }
  0xa2   : > { %v668_v4 = vsel %vm660_vm1, %v1606_v46, %v551_v24 }
  0xa4   : > { %v602_v1 = vpop.permute.xlu1 %601 }
  0xa5   : > { %v586_v25 = vpop.permute.xlu0 %585  ;;  %v715_v29 = vsel %vm693_vm2, %v682_v14, %v602_v1 }
  0xa6   : > { %v699_v38 = vsel %vm693_vm2, %v666_v34, %v586_v25 }
  0xa8   : > { %v604_v27 = vpop.permute.xlu1 %603 }
  0xa9   : > { %v588_v28 = vpop.permute.xlu0 %587  ;;  %v717_v39 = vsel %vm693_vm2, %v684_v36, %v604_v27 }
  0xaa   : > { %v701_v41 = vsel %vm693_vm2, %v668_v4, %v588_v28  ;;  %v1845_v28 = vld [vmem:[%s1954_s2] ss:$0 sm:$0xff] }
  0xac   : > { %v649_v32 = vpop.permute.xlu1 %648 }
  0xad   : > { %v748_v33 = vsel %vm726_vm3, %v715_v29, %v649_v32  ;;  %v633_v23 = vpop.permute.xlu0 %632 }
  0xae   : > { %1438 = vmatprep.mubr.msk.bf16.mxu1 %vm790_vm4, %v748_v33  ;;  %v732_v40 = vsel %vm726_vm3, %v699_v38, %v633_v23 }
  0xaf   : > { %1422 = vmatprep.mubr.msk.bf16.mxu0 %vm790_vm4, %v732_v40 }
  0xb0   : > { %v651_v2 = vpop.permute.xlu1 %650 }
  0xb1   : > { %v750_v26 = vsel %vm726_vm3, %v717_v39, %v651_v2  ;;  %v635_v30 = vpop.permute.xlu0 %634 }
  0xb2   : > { %1439 = vmatmul.mubr.msk.bf16.gmra.mrb[4].mxu1 %vm790_vm4, %v750_v26  ;;  %v734_v43 = vsel %vm726_vm3, %v701_v41, %v635_v30 }
  0xb3   : > { %1423 = vmatmul.mubr.msk.bf16.gmra.mrb[4].mxu0 %vm790_vm4, %v734_v43 }
  0xb4   : > { %v569_v42 = vpop.permute.xlu1 %568 }
  0xb5   : > { %v553_v44 = vpop.permute.xlu0 %552  ;;  %v686_v52 = vsel %vm660_vm1, %v1625_v8, %v569_v42 }
  0xb6   : > { %v670_v58 = vsel %vm660_vm1, %v1629_v11, %v553_v44 }
  0xb8   : > { %v571_v47 = vpop.permute.xlu1 %570 }
  0xb9   : > { %v555_v48 = vpop.permute.xlu0 %554  ;;  %v688_v59 = vsel %vm660_vm1, %v1634_v13, %v571_v47 }
  0xba   : > { %v672_v11 = vsel %vm660_vm1, %v1671_v45, %v555_v48 }
  0xbc   : > { %v606_v49 = vpop.permute.xlu1 %605 }
  0xbd   : > { %v590_v50 = vpop.permute.xlu0 %589  ;;  %v719_v55 = vsel %vm693_vm2, %v686_v52, %v606_v49 }
  0xbe   : > { %v703_v54 = vsel %vm693_vm2, %v670_v58, %v590_v50 }
  0xc0   : > { %v608_v51 = vpop.permute.xlu1 %607 }
  0xc1   : > { %v592_v46 = vpop.permute.xlu0 %591  ;;  %v721_v60 = vsel %vm693_vm2, %v688_v59, %v608_v51 }
  0xc2   : > { %v705_v53 = vsel %vm693_vm2, %v672_v11, %v592_v46 }
  0xc4   : > { %v653_v56 = vpop.permute.xlu1 %652 }
  0xc5   : > { %v752_v57 = vsel %vm726_vm3, %v719_v55, %v653_v56  ;;  %v637_v61 = vpop.permute.xlu0 %636 }
  0xc6   : > { %1442 = vmatprep.mubr.msk.bf16.mxu1 %vm790_vm4, %v752_v57  ;;  %v736_v62 = vsel %vm726_vm3, %v703_v54, %v637_v61 }
  0xc7   : > { %1426 = vmatprep.mubr.msk.bf16.mxu0 %vm790_vm4, %v736_v62 }
  0xc8   : > { %v655_v8 = vpop.permute.xlu1 %654 }
  0xc9   : > { %v754_v63 = vsel %vm726_vm3, %v721_v60, %v655_v8  ;;  %v639_v13 = vpop.permute.xlu0 %638 }
  0xca   : > { %1443 = vmatmul.mubr.msk.bf16.gmra.mrb[8].mxu1 %vm790_vm4, %v754_v63  ;;  %v738_v5 = vsel %vm726_vm3, %v705_v53, %v639_v13 }
  0xcb   : > { %1427 = vmatmul.mubr.msk.bf16.gmra.mrb[8].mxu0 %vm790_vm4, %v738_v5 }
  0xcc   : > { %v573_v3 = vpop.permute.xlu1 %572 }
  0xcd   : > { %v557_v6 = vpop.permute.xlu0 %556  ;;  %v690_v18 = vsel %vm660_vm1, %v1719_v37, %v573_v3 }
  0xce   : > { %v674_v19 = vsel %vm660_vm1, %v1644_v22, %v557_v6 }
  0xd0   : > { %v575_v7 = vpop.permute.xlu1 %574 }
  0xd1   : > { %v559_v9 = vpop.permute.xlu0 %558  ;;  %v692_v20 = vsel %vm660_vm1, %v1653_v31, %v575_v7 }
  0xd2   : > { %v676_v22 = vsel %vm660_vm1, %v1659_v35, %v559_v9 }
  0xd4   : > { %v610_v12 = vpop.permute.xlu1 %609 }
  0xd5   : > { %v594_v10 = vpop.permute.xlu0 %593  ;;  %v723_v15 = vsel %vm693_vm2, %v690_v18, %v610_v12 }
  0xd6   : > { %v707_v21 = vsel %vm693_vm2, %v674_v19, %v594_v10 }
  0xd8   : > { %v612_v0 = vpop.permute.xlu1 %611 }
  0xd9   : > { %v596_v45 = vpop.permute.xlu0 %595  ;;  %v725_v24 = vsel %vm693_vm2, %v692_v20, %v612_v0 }
  0xda   : > { %v709_v31 = vsel %vm693_vm2, %v676_v22, %v596_v45 }
  0xdc   : > { %v657_v16 = vpop.permute.xlu1 %656 }
  0xdd   : > { %v756_v17 = vsel %vm726_vm3, %v723_v15, %v657_v16  ;;  %v641_v1 = vpop.permute.xlu0 %640 }
  0xde   : > { %1446 = vmatprep.mubr.msk.bf16.mxu1 %vm790_vm4, %v756_v17  ;;  %v740_v25 = vsel %vm726_vm3, %v707_v21, %v641_v1 }
  0xdf   : > { %1430 = vmatprep.mubr.msk.bf16.mxu0 %vm790_vm4, %v740_v25 }
  0xe0   : > { %v659_v37 = vpop.permute.xlu1 %658 }
  0xe1   : > { %v758_v27 = vsel %vm726_vm3, %v725_v24, %v659_v37  ;;  %v643_v14 = vpop.permute.xlu0 %642 }
  0xe2   : > { %1447 = vmatmul.mubr.msk.bf16.gmra.mrb[12].mxu1 %vm790_vm4, %v758_v27  ;;  %v742_v29 = vsel %vm726_vm3, %v709_v31, %v643_v14 }
  0xe3   : > { %1431 = vmatmul.mubr.msk.bf16.gmra.mrb[12].mxu0 %vm790_vm4, %v742_v29 }
 0x16d   : > { %v1436_v32 = vpop.f32.mrb[0].mxu1 }
 0x16e   : > { %v930_v33 = vadd.f32 %v1436_v32, %v1845_v28  ;;  %v921_v34 = vpop.f32.mrb[1].mxu1  ;;  %v1420_v2 = vpop.f32.mrb[0].mxu0 }
 0x16f   : > { %v922_v36 = vadd.f32 %v1845_v28, %v921_v34  ;;  %v1437_v38 = vpop.f32.mrb[2].mxu1  ;;  %v866_v4 = vadd.f32 %v1420_v2, %v1845_v28  ;;  %v857_v30 = vpop.f32.mrb[1].mxu0 }
 0x170   : > { %v1002_v35 = vmul.f32 0.2, %v930_v33  ;;  %v933_v39 = vadd.f32 %v1437_v38, %v1845_v28  ;;  %v924_v23 = vpop.f32.mrb[3].mxu1  ;;  %v858_v43 = vadd.f32 %v1845_v28, %v857_v30  ;;  %v1421_v47 = vpop.f32.mrb[2].mxu0 }
 0x171   : > { %v1000_v40 = vmul.f32 0.2, %v922_v36  ;;  %v925_v26 = vadd.f32 %v1845_v28, %v924_v23  ;;  %v986_v49 = vmul.f32 0.2, %v866_v4  ;;  %v869_v51 = vadd.f32 %v1421_v47, %v1845_v28  ;;  %v860_v55 = vpop.f32.mrb[3].mxu0 }
 0x172   : > { %v1034_v41 = vmax.f32 %v930_v33, %v1002_v35  ;;  %v1003_v42 = vmul.f32 0.2, %v933_v39  ;;  %v984_v46 = vmul.f32 0.2, %v858_v43  ;;  %v861_v57 = vadd.f32 %v1845_v28, %v860_v55 }
 0x173   : > { %v1032_v44 = vmax.f32 %v922_v36, %v1000_v40  ;;  %v1001_v48 = vmul.f32 0.2, %v925_v26  ;;  %v1018_v59 = vmax.f32 %v866_v4, %v986_v49  ;;  %v987_v54 = vmul.f32 0.2, %v869_v51 }
 0x174   : > { %v1379_v50 = vpack.c.bf16 %v1034_v41, %v1034_v41  ;;  %v1035_v52 = vmax.f32 %v933_v39, %v1003_v42  ;;  %v1016_v61 = vmax.f32 %v858_v43, %v984_v46  ;;  %v985_v8 = vmul.f32 0.2, %v861_v57 }
 0x175   : > { %v1377_v56 = vpack.c.bf16 %v1032_v44, %v1032_v44  ;;  %v1033_v58 = vmax.f32 %v925_v26, %v1001_v48  ;;  %v1363_v63 = vpack.c.bf16 %v1018_v59, %v1018_v59  ;;  %v1019_v11 = vmax.f32 %v869_v51, %v987_v54 }
 0x176   : > { %1195 = vst.msk [vmem:[%s1856_s5 + $0x48] sm:$0xf] %vm1176_vm5, %v1379_v50  ;;  %v1380_v60 = vpack.c.bf16 %v1035_v52, %v1035_v52  ;;  %v1361_v53 = vpack.c.bf16 %v1016_v61, %v1016_v61  ;;  %v1017_v13 = vmax.f32 %v861_v57, %v985_v8 }
 0x177   : > { %1193 = vst.msk [vmem:[%s1856_s5 + $0x40] sm:$0xf] %vm1176_vm5, %v1377_v56  ;;  %v1378_v62 = vpack.c.bf16 %v1033_v58, %v1033_v58  ;;  %1179 = vst.msk [vmem:[%s1856_s5 + $0x8] sm:$0xf] %vm1176_vm5, %v1363_v63  ;;  %v1364_v3 = vpack.c.bf16 %v1019_v11, %v1019_v11 }
 0x178   : > { %1196 = vst.msk [vmem:[%s1856_s5 + $0x4c] sm:$0xf] %vm1176_vm5, %v1380_v60  ;;  %1177 = vst.msk [vmem:[%s1856_s5] sm:$0xf] %vm1176_vm5, %v1361_v53  ;;  %v1362_v5 = vpack.c.bf16 %v1017_v13, %v1017_v13 }
 0x179   : > { %1194 = vst.msk [vmem:[%s1856_s5 + $0x44] sm:$0xf] %vm1176_vm5, %v1378_v62  ;;  %1180 = vst.msk [vmem:[%s1856_s5 + $0xc] sm:$0xf] %vm1176_vm5, %v1364_v3 }
 0x17a   : > { %1178 = vst.msk [vmem:[%s1856_s5 + $0x4] sm:$0xf] %vm1176_vm5, %v1362_v5 }
 0x185   : > { %v1440_v6 = vpop.f32.mrb[4].mxu1 }
 0x186   : > { %v946_v7 = vadd.f32 %v1440_v6, %v1845_v28  ;;  %v937_v9 = vpop.f32.mrb[5].mxu1  ;;  %v1424_v45 = vpop.f32.mrb[4].mxu0 }
 0x187   : > { %v938_v12 = vadd.f32 %v1845_v28, %v937_v9  ;;  %v1441_v10 = vpop.f32.mrb[6].mxu1  ;;  %v882_v19 = vadd.f32 %v1424_v45, %v1845_v28  ;;  %v873_v21 = vpop.f32.mrb[5].mxu0 }
 0x188   : > { %v1006_v0 = vmul.f32 0.2, %v946_v7  ;;  %v949_v18 = vadd.f32 %v1441_v10, %v1845_v28  ;;  %v940_v15 = vpop.f32.mrb[7].mxu1  ;;  %v874_v1 = vadd.f32 %v1845_v28, %v873_v21  ;;  %v1425_v25 = vpop.f32.mrb[6].mxu0 }
 0x189   : > { %v1004_v16 = vmul.f32 0.2, %v938_v12  ;;  %v941_v17 = vadd.f32 %v1845_v28, %v940_v15  ;;  %v990_v22 = vmul.f32 0.2, %v882_v19  ;;  %v885_v14 = vadd.f32 %v1425_v25, %v1845_v28  ;;  %v876_v32 = vpop.f32.mrb[7].mxu0 }
 0x18a   : > { %v1038_v20 = vmax.f32 %v946_v7, %v1006_v0  ;;  %v1007_v24 = vmul.f32 0.2, %v949_v18  ;;  %v988_v33 = vmul.f32 0.2, %v874_v1  ;;  %v877_v36 = vadd.f32 %v1845_v28, %v876_v32 }
 0x18b   : > { %v1036_v37 = vmax.f32 %v938_v12, %v1004_v16  ;;  %v1005_v27 = vmul.f32 0.2, %v941_v17  ;;  %v1022_v35 = vmax.f32 %v882_v19, %v990_v22  ;;  %v991_v39 = vmul.f32 0.2, %v885_v14 }
 0x18c   : > { %v1383_v31 = vpack.c.bf16 %v1038_v20, %v1038_v20  ;;  %v1039_v29 = vmax.f32 %v949_v18, %v1007_v24  ;;  %v1020_v2 = vmax.f32 %v874_v1, %v988_v33  ;;  %v989_v40 = vmul.f32 0.2, %v877_v36 }
 0x18d   : > { %v1381_v34 = vpack.c.bf16 %v1036_v37, %v1036_v37  ;;  %v1037_v38 = vmax.f32 %v941_v17, %v1005_v27  ;;  %v1367_v4 = vpack.c.bf16 %v1022_v35, %v1022_v35  ;;  %v1023_v41 = vmax.f32 %v885_v14, %v991_v39 }
 0x18e   : > { %1199 = vst.msk [vmem:[%s1856_s5 + $0x58] sm:$0xf] %vm1176_vm5, %v1383_v31  ;;  %v1384_v23 = vpack.c.bf16 %v1039_v29, %v1039_v29  ;;  %v1365_v30 = vpack.c.bf16 %v1020_v2, %v1020_v2  ;;  %v1021_v42 = vmax.f32 %v877_v36, %v989_v40 }
 0x18f   : > { %1197 = vst.msk [vmem:[%s1856_s5 + $0x50] sm:$0xf] %vm1176_vm5, %v1381_v34  ;;  %v1382_v26 = vpack.c.bf16 %v1037_v38, %v1037_v38  ;;  %1183 = vst.msk [vmem:[%s1856_s5 + $0x18] sm:$0xf] %vm1176_vm5, %v1367_v4  ;;  %v1368_v43 = vpack.c.bf16 %v1023_v41, %v1023_v41 }
 0x190   : > { %1200 = vst.msk [vmem:[%s1856_s5 + $0x5c] sm:$0xf] %vm1176_vm5, %v1384_v23  ;;  %1181 = vst.msk [vmem:[%s1856_s5 + $0x10] sm:$0xf] %vm1176_vm5, %v1365_v30  ;;  %v1366_v44 = vpack.c.bf16 %v1021_v42, %v1021_v42 }
 0x191   : > { %1198 = vst.msk [vmem:[%s1856_s5 + $0x54] sm:$0xf] %vm1176_vm5, %v1382_v26  ;;  %1184 = vst.msk [vmem:[%s1856_s5 + $0x1c] sm:$0xf] %vm1176_vm5, %v1368_v43 }
 0x192   : > { %1182 = vst.msk [vmem:[%s1856_s5 + $0x14] sm:$0xf] %vm1176_vm5, %v1366_v44 }
 0x19d   : > { %v1444_v47 = vpop.f32.mrb[8].mxu1 }
 0x19e   : > { %v962_v48 = vadd.f32 %v1444_v47, %v1845_v28  ;;  %v953_v49 = vpop.f32.mrb[9].mxu1  ;;  %v1428_v56 = vpop.f32.mrb[8].mxu0 }
 0x19f   : > { %v954_v50 = vadd.f32 %v1845_v28, %v953_v49  ;;  %v1445_v51 = vpop.f32.mrb[10].mxu1  ;;  %v898_v59 = vadd.f32 %v1428_v56, %v1845_v28  ;;  %v889_v60 = vpop.f32.mrb[9].mxu0 }
 0x1a0   : > { %v1010_v52 = vmul.f32 0.2, %v962_v48  ;;  %v965_v55 = vadd.f32 %v1445_v51, %v1845_v28  ;;  %v956_v46 = vpop.f32.mrb[11].mxu1  ;;  %v890_v8 = vadd.f32 %v1845_v28, %v889_v60  ;;  %v1429_v63 = vpop.f32.mrb[10].mxu0 }
 0x1a1   : > { %v1008_v57 = vmul.f32 0.2, %v954_v50  ;;  %v957_v58 = vadd.f32 %v1845_v28, %v956_v46  ;;  %v994_v53 = vmul.f32 0.2, %v898_v59  ;;  %v901_v3 = vadd.f32 %v1429_v63, %v1845_v28  ;;  %v892_v6 = vpop.f32.mrb[11].mxu0 }
 0x1a2   : > { %v1042_v54 = vmax.f32 %v962_v48, %v1010_v52  ;;  %v1011_v61 = vmul.f32 0.2, %v965_v55  ;;  %v992_v7 = vmul.f32 0.2, %v890_v8  ;;  %v893_v12 = vadd.f32 %v1845_v28, %v892_v6 }
 0x1a3   : > { %v1040_v62 = vmax.f32 %v954_v50, %v1008_v57  ;;  %v1009_v11 = vmul.f32 0.2, %v957_v58  ;;  %v1026_v0 = vmax.f32 %v898_v59, %v994_v53  ;;  %v995_v18 = vmul.f32 0.2, %v901_v3 }
 0x1a4   : > { %v1387_v13 = vpack.c.bf16 %v1042_v54, %v1042_v54  ;;  %v1043_v5 = vmax.f32 %v965_v55, %v1011_v61  ;;  %v1024_v45 = vmax.f32 %v890_v8, %v992_v7  ;;  %v993_v16 = vmul.f32 0.2, %v893_v12 }
 0x1a5   : > { %v1385_v9 = vpack.c.bf16 %v1040_v62, %v1040_v62  ;;  %v1041_v10 = vmax.f32 %v957_v58, %v1009_v11  ;;  %v1371_v19 = vpack.c.bf16 %v1026_v0, %v1026_v0  ;;  %v1027_v20 = vmax.f32 %v901_v3, %v995_v18 }
 0x1a6   : > { %1203 = vst.msk [vmem:[%s1856_s5 + $0x68] sm:$0xf] %vm1176_vm5, %v1387_v13  ;;  %v1388_v15 = vpack.c.bf16 %v1043_v5, %v1043_v5  ;;  %v1369_v21 = vpack.c.bf16 %v1024_v45, %v1024_v45  ;;  %v1025_v24 = vmax.f32 %v893_v12, %v993_v16 }
 0x1a7   : > { %1201 = vst.msk [vmem:[%s1856_s5 + $0x60] sm:$0xf] %vm1176_vm5, %v1385_v9  ;;  %v1386_v17 = vpack.c.bf16 %v1041_v10, %v1041_v10  ;;  %1187 = vst.msk [vmem:[%s1856_s5 + $0x28] sm:$0xf] %vm1176_vm5, %v1371_v19  ;;  %v1372_v1 = vpack.c.bf16 %v1027_v20, %v1027_v20 }
 0x1a8   : > { %1204 = vst.msk [vmem:[%s1856_s5 + $0x6c] sm:$0xf] %vm1176_vm5, %v1388_v15  ;;  %1185 = vst.msk [vmem:[%s1856_s5 + $0x20] sm:$0xf] %vm1176_vm5, %v1369_v21  ;;  %v1370_v37 = vpack.c.bf16 %v1025_v24, %v1025_v24 }
 0x1a9   : > { %1202 = vst.msk [vmem:[%s1856_s5 + $0x64] sm:$0xf] %vm1176_vm5, %v1386_v17  ;;  %1188 = vst.msk [vmem:[%s1856_s5 + $0x2c] sm:$0xf] %vm1176_vm5, %v1372_v1 }
 0x1aa   : > { %1186 = vst.msk [vmem:[%s1856_s5 + $0x24] sm:$0xf] %vm1176_vm5, %v1370_v37 }
 0x1b5   : > { %v1448_v25 = vpop.f32.mrb[12].mxu1 }
 0x1b6   : > { %v978_v27 = vadd.f32 %v1448_v25, %v1845_v28  ;;  %v969_v22 = vpop.f32.mrb[13].mxu1  ;;  %v1432_v34 = vpop.f32.mrb[12].mxu0 }
 0x1b7   : > { %v970_v31 = vadd.f32 %v1845_v28, %v969_v22  ;;  %v1449_v14 = vpop.f32.mrb[14].mxu1  ;;  %v914_v35 = vadd.f32 %v1432_v34, %v1845_v28  ;;  %v905_v23 = vpop.f32.mrb[13].mxu0 }
 0x1b8   : > { %v1014_v29 = vmul.f32 0.2, %v978_v27  ;;  %v981_v32 = vadd.f32 %v1449_v14, %v1845_v28  ;;  %v972_v33 = vpop.f32.mrb[15].mxu1  ;;  %v906_v40 = vadd.f32 %v1845_v28, %v905_v23  ;;  %v1433_v4 = vpop.f32.mrb[14].mxu0 }
 0x1b9   : > { %v1012_v36 = vmul.f32 0.2, %v970_v31  ;;  %v973_v38 = vadd.f32 %v1845_v28, %v972_v33  ;;  %v998_v30 = vmul.f32 0.2, %v914_v35  ;;  %v917_v43 = vadd.f32 %v1433_v4, %v1845_v28  ;;  %v908_v47 = vpop.f32.mrb[15].mxu0 }
 0x1ba   : > { %v1046_v39 = vmax.f32 %v978_v27, %v1014_v29  ;;  %v1015_v2 = vmul.f32 0.2, %v981_v32  ;;  %v996_v48 = vmul.f32 0.2, %v906_v40  ;;  %v909_v50 = vadd.f32 %v1845_v28, %v908_v47 }
 0x1bb   : > { %v1044_v26 = vmax.f32 %v970_v31, %v1012_v36  ;;  %v1013_v41 = vmul.f32 0.2, %v973_v38  ;;  %v1030_v52 = vmax.f32 %v914_v35, %v998_v30  ;;  %v999_v55 = vmul.f32 0.2, %v917_v43 }
 0x1bc   : > { %v1391_v42 = vpack.c.bf16 %v1046_v39, %v1046_v39  ;;  %v1047_v44 = vmax.f32 %v981_v32, %v1015_v2  ;;  %v1028_v56 = vmax.f32 %v906_v40, %v996_v48  ;;  %v997_v57 = vmul.f32 0.2, %v909_v50 }
 0x1bd   : > { %v1389_v49 = vpack.c.bf16 %v1044_v26, %v1044_v26  ;;  %v1045_v51 = vmax.f32 %v973_v38, %v1013_v41  ;;  %v1375_v59 = vpack.c.bf16 %v1030_v52, %v1030_v52  ;;  %v1031_v54 = vmax.f32 %v917_v43, %v999_v55 }
 0x1be   : > { %1207 = vst.msk [vmem:[%s1856_s5 + $0x78] sm:$0xf] %vm1176_vm5, %v1391_v42  ;;  %v1392_v46 = vpack.c.bf16 %v1047_v44, %v1047_v44  ;;  %v1373_v28 = vpack.c.bf16 %v1028_v56, %v1028_v56  ;;  %v1029_v60 = vmax.f32 %v909_v50, %v997_v57 }
 0x1bf   : > { %1205 = vst.msk [vmem:[%s1856_s5 + $0x70] sm:$0xf] %vm1176_vm5, %v1389_v49  ;;  %v1390_v58 = vpack.c.bf16 %v1045_v51, %v1045_v51  ;;  %1191 = vst.msk [vmem:[%s1856_s5 + $0x38] sm:$0xf] %vm1176_vm5, %v1375_v59  ;;  %v1376_v61 = vpack.c.bf16 %v1031_v54, %v1031_v54 }
 0x1c0   : > { %1208 = vst.msk [vmem:[%s1856_s5 + $0x7c] sm:$0xf] %vm1176_vm5, %v1392_v46  ;;  %1189 = vst.msk [vmem:[%s1856_s5 + $0x30] sm:$0xf] %vm1176_vm5, %v1373_v28  ;;  %v1374_v8 = vpack.c.bf16 %v1029_v60, %v1029_v60 }
 0x1c1   : > { %1206 = vst.msk [vmem:[%s1856_s5 + $0x74] sm:$0xf] %vm1176_vm5, %v1390_v58  ;;  %1192 = vst.msk [vmem:[%s1856_s5 + $0x3c] sm:$0xf] %vm1176_vm5, %v1376_v61 }
 0x1c2   : > { %1190 = vst.msk [vmem:[%s1856_s5 + $0x34] sm:$0xf] %vm1176_vm5, %v1374_v8 }
 0x1c3 PF: > { %s13_s12 = sadd.s32 1, %s1511_s12  }
 0x1c4   : > { %p10_p4 = scmp.ge.s32.totalorder %s13_s12, 4  }
 0x1c6   :  { %12 = sbr.rel (!%p10_p4) target bundleno = 1 (0x1), region = 62 }

// kernel: _lambda_.4
= control target key start
LH: loop header
LB: loop body
LE: loop exit
PB: predicated region body
PF: predicated region fallthrough
CT: control target
= control target key end

     0   :  { %s1186_s12 = smov 0   ;;  %s1404_s0 = inlined_call_operand.vmem [shape: bf16[2,9,9,64], index: 0, kind: input, shape index: {}]   ;;  %s1405_s1 = inlined_call_operand.vmem [shape: bf16[4,64,32], index: 1, kind: input, shape index: {}]   ;;  %s1406_s2 = inlined_call_operand.vmem [shape: f32[1,32], index: 2, kind: input, shape index: {}]   ;;  %s1407_s3 = inlined_call_operand.vmem [shape: bf16[2,8,8,32], index: 3, kind: output, shape index: {}]  }
   0x1 LB: > { %s921_s13 = sadd.s32 4294967295, %s1164_s12   ;;  %p925_p0 = scmp.ge.s32.totalorder %s1164_s12, 1  ;;  %s1164_s12 = sphi %s1186_s12, %s13_s12  }
   0x2   : > { %p137_p1 = scmp.lt.s32.totalorder %s1164_s12, 3 }
   0x4   : > { %p138_p2 = pnand %p925_p0, %p137_p1 }
   0x5   : > { %v1134_v0 = vld [vmem:[%s1405_s1 + $0x40] sm:$0xff] (!%p138_p2)   ;;  %p161_p3 = scmp.lt.s32.totalorder (!%p138_p2), %s921_s13, 1  ;;  %v1136_v2 = vld [vmem:[%s1405_s1 + $0x48] sm:$0xff] (!%p138_p2)   ;;  %v1138_v4 = vld [vmem:[%s1405_s1 + $0x50] sm:$0xff] (!%p138_p2)   ;;  %vm251_vm0 = vcmask (!%p138_p2), 523264   ;;  %vm857_vm4 = vcmask (!%p138_p2), 257024  }
   0x6   : > { %141 = sbr.rel (%p138_p2) target bundleno = 286 (0x11e), region = 32  ;;  %v1135_v1 = vld [vmem:[%s1405_s1 + $0x20] sm:$0xff] (!%p138_p2)   ;;  %1037 = vmatprep.subr.bf16.mxu1 (!%p138_p2), %v1134_v0  ;;  %v1137_v3 = vld [vmem:[%s1405_s1 + $0x28] sm:$0xff] (!%p138_p2)   ;;  %v1139_v5 = vld [vmem:[%s1405_s1 + $0x30] sm:$0xff] (!%p138_p2)   ;;  %vm445_vm1 = vsmask.f32 (!%p138_p2), 3328 }
   0x7   : > { %1069 = vmatprep.subr.bf16.mxu0 (!%p138_p2), %v1135_v1  ;;  %1038 = vmatpush3.bf16.msra.mxu1 (!%p138_p2), %v1134_v0  ;;  %v1140_v6 = vld [vmem:[%s1405_s1 + $0x58] sm:$0xff] (!%p138_p2)   ;;  %v1145_v18 = vld [vmem:[%s1405_s1] sm:$0xff] (!%p138_p2)   ;;  %vm446_vm2 = vsmask.f32 (!%p138_p2), 7440  ;;  %v1147_v41 = vld [vmem:[%s1405_s1 + $0x8] sm:$0xff] (!%p138_p2)  }
   0x8   : > { %1070 = vmatpush3.bf16.msra.mxu0 (!%p138_p2), %v1135_v1  ;;  %1039 = vmatprep.subr.bf16.mxu1 (!%p138_p2), %v1136_v2  ;;  %v1141_v9 = vld [vmem:[%s1405_s1 + $0x38] sm:$0xff] (!%p138_p2)   ;;  %v1264_v32 = vld [vmem:[%s1405_s1 + $0x60] sm:$0xff] (!%p138_p2)   ;;  %vm1275_vm3 = vmor (!%p138_p2), %vm445_vm1, %vm446_vm2 }
   0x9   : > { %1071 = vmatprep.subr.bf16.mxu0 (!%p138_p2), %v1137_v3  ;;  %v1151_v57 = vld [vmem:[%s1405_s1 + $0x10] sm:$0xff] (!%p138_p2)  }
   0xb   : > { %1040 = vmatpush3.bf16.msra.mxu1 (!%p138_p2), %v1136_v2 }
   0xc   : > { %1072 = vmatpush3.bf16.msra.mxu0 (!%p138_p2), %v1137_v3  ;;  %1041 = vmatprep.subr.bf16.mxu1 (!%p138_p2), %v1138_v4 }
   0xd   : > { %s1411_s13 = smov (!%p161_p3, %s921_s13), 1  ;;  %1073 = vmatprep.subr.bf16.mxu0 %v1139_v5 }
   0xe   : > { %s1125_s24 = smul.u32 72, %s1411_s13  ;;  %s1004_s27 = sshll.u32 %s1411_s13, 5 }
   0xf   : > { %1042 = vmatpush3.bf16.msra.mxu1 %v1138_v4  ;;  %s1383_s30 = scalar_lea.vmem %s1407_s3, %s1004_s27 }
  0x10   : > { %s1218_s29 = scalar_lea.vmem %s1404_s0, %s1125_s24  ;;  %1074 = vmatpush3.bf16.msra.mxu0 %v1139_v5  ;;  %1043 = vmatprep.subr.bf16.mxu1 %v1140_v6 }
  0x11   : > { %v1224_v7 = vld [vmem:[%s1218_s29 + $0x8] sm:$0xf]  ;;  %v1227_v8 = vld [vmem:[%s1218_s29 + $0x10] sm:$0xf]  ;;  %v1236_v12 = vld [vmem:[%s1218_s29 + $0x20] sm:$0xf]  ;;  %1075 = vmatprep.subr.bf16.mxu0 %v1141_v9 }
  0x12   : > { %v937_v10 = vcombine.low %v1224_v7, %v1227_v8  ;;  %v463_v11 = vshrl.u32 %v1224_v7, 16  ;;  %v1239_v13 = vld [vmem:[%s1218_s29 + $0x18] sm:$0xf]  ;;  %v466_v14 = vshll.u32 %v1224_v7, 16  ;;  %v477_v15 = vshrl.u32 %v1227_v8, 16 }
  0x13   : > { %v480_v16 = vshll.u32 %v1227_v8, 16  ;;  %v505_v17 = vshrl.u32 %v1236_v12, 16  ;;  %v1250_v19 = vld [vmem:[%s1218_s29] sm:$0xf]  ;;  %v173_v20 = vld [vmem:[%s1218_s29 + $0x4] sm:$0x1]  ;;  %v938_v25 = vcombine.low %v1239_v13, %v1236_v12  ;;  %1044 = vmatpush3.bf16.msra.mxu1 %v1140_v6 }
  0x14   : > { %1045 = vmatprep.mubr.msk.bf16.mxu1 %vm251_vm0, %v937_v10  ;;  %v479_v21 = vrot.slane %v477_v15, 4  ;;  %v175_v23 = vld [vmem:[%s1218_s29 + $0xc] sm:$0x1]  ;;  %v177_v24 = vld [vmem:[%s1218_s29 + $0x14] sm:$0x1]  ;;  %v508_v26 = vshll.u32 %v1236_v12, 16  ;;  %1076 = vmatpush3.bf16.msra.mxu0 %v1141_v9  ;;  %v949_v4 = vcombine.low %v1250_v19, %v1224_v7 }
  0x15   : > { %v482_v22 = vrot.slane %v480_v16, 5  ;;  %v179_v27 = vld [vmem:[%s1218_s29 + $0x1c] sm:$0x1]  ;;  %v465_v28 = vrot.slane %v463_v11, 4  ;;  %v449_v29 = vshrl.u32 %v1250_v19, 16  ;;  %v452_v30 = vshll.u32 %v1250_v19, 16  ;;  %1053 = vmatprep.subr.bf16.mxu1 %v1145_v18  ;;  %1085 = vmatprep.subr.bf16.mxu0 %v1264_v32 }
  0x16   : > { %v458_v31 = vshll.u32 %v173_v20, 16  ;;  %v468_v33 = vrot.slane %v466_v14, 5  ;;  %v472_v34 = vshll.u32 %v175_v23, 16  ;;  %v486_v36 = vshll.u32 %v177_v24, 16  ;;  %v181_v37 = vld [vmem:[%s1218_s29 + $0x24] sm:$0x1]  ;;  %1046 = vmatmul.mubr.msk.bf16.vlgmr.msra.gmra.mrb[0].mxu1 %vm251_vm0, %v938_v25 }
  0x17   : > { %v483_v35 = vor.u32 %v482_v22, %v479_v21  ;;  %v451_v38 = vrot.slane %v449_v29, 4  ;;  %v454_v39 = vrot.slane %v452_v30, 5  ;;  %v491_v40 = vshrl.u32 %v1239_v13, 16  ;;  %1054 = vmatpush3.bf16.msra.mxu1 %v1145_v18  ;;  %v1288_v62 = vld [vmem:[%s1218_s29 + $0x28] sm:$0xf]  ;;  %v1153_v22 = vld [vmem:[%s1405_s1 + $0x18] sm:$0xff]  }
  0x18   : > { %v460_v42 = vrot.slane %v458_v31, 5  ;;  %v469_v43 = vor.u32 %v468_v33, %v465_v28  ;;  %v474_v44 = vrot.slane %v472_v34, 5  ;;  %v494_v49 = vshll.u32 %v1239_v13, 16  ;;  %1055 = vmatprep.subr.bf16.mxu1 %v1147_v41  ;;  %v1291_v63 = vld [vmem:[%s1218_s29 + $0x30] sm:$0xf]  ;;  %v1148_v19 = vld [vmem:[%s1405_s1 + $0x68] sm:$0xff]  }
  0x19   : > { %v484_v45 = vrot.slane %v483_v35, 4  ;;  %v455_v47 = vor.u32 %v454_v39, %v451_v38  ;;  %v493_v48 = vrot.slane %v491_v40, 4  ;;  %v500_v50 = vshll.u32 %v179_v27, 16  ;;  %v1296_v2 = vld [vmem:[%s1218_s29 + $0x38] sm:$0xf] }
  0x1a   : > { %v470_v51 = vrot.slane %v469_v43, 4  ;;  %v488_v52 = vrot.slane %v486_v36, 5  ;;  %v507_v53 = vrot.slane %v505_v17, 4  ;;  %v510_v54 = vrot.slane %v508_v26, 5  ;;  %v1299_v3 = vld [vmem:[%s1218_s29 + $0x40] sm:$0xf] }
  0x1b   : > { %v456_v55 = vrot.slane %v455_v47, 4  ;;  %v496_v56 = vrot.slane %v494_v49, 5  ;;  %v502_v59 = vrot.slane %v500_v50, 5  ;;  %v514_v61 = vshll.u32 %v181_v37, 16  ;;  %1056 = vmatpush3.bf16.msra.mxu1 %v1147_v41  ;;  %v183_v11 = vld [vmem:[%s1218_s29 + $0x2c] sm:$0x1] }
  0x1c   : > { %v1285_v58 = vsel %vm1275_vm3, %v470_v51, %v474_v44  ;;  %v511_v60 = vor.u32 %v510_v54, %v507_v53  ;;  %v1305_v5 = vsel %vm1275_vm3, %v484_v45, %v488_v52  ;;  %v939_v9 = vcombine.low %v1288_v62, %v1291_v63  ;;  %1057 = vmatprep.subr.bf16.mxu1 %v1151_v57  ;;  %v185_v26 = vld [vmem:[%s1218_s29 + $0x34] sm:$0x1]  ;;  %v187_v27 = vld [vmem:[%s1218_s29 + $0x3c] sm:$0x1] }
  0x1d   : > { %v461_v0 = vsel %vm1275_vm3, %v456_v55, %v460_v42  ;;  %v497_v1 = vor.u32 %v496_v56, %v493_v48  ;;  %v519_v10 = vshrl.u32 %v1288_v62, 16  ;;  %v522_v15 = vshll.u32 %v1288_v62, 16  ;;  %v1152_v44 = vld [vmem:[%s1405_s1 + $0x70] sm:$0xff]   ;;  %v1154_v54 = vld [vmem:[%s1405_s1 + $0x78] sm:$0xff]  }
  0x1e   : > { %v969_v6 = vcombine.low %v461_v0, %v1285_v58  ;;  %v533_v7 = vshrl.u32 %v1291_v63, 16  ;;  %v536_v16 = vshll.u32 %v1291_v63, 16  ;;  %v512_v17 = vrot.slane %v511_v60, 4  ;;  %1049 = vmatprep.mubr.msk.bf16.mxu1 %vm251_vm0, %v939_v9  ;;  %v189_v60 = vld [vmem:[%s1218_s29 + $0x44] sm:$0x1] }
  0x1f   : > { %v498_v14 = vrot.slane %v497_v1, 4  ;;  %v516_v18 = vrot.slane %v514_v61, 5  ;;  %v940_v20 = vcombine.low %v1296_v2, %v1299_v3  ;;  %v547_v21 = vshrl.u32 %v1296_v2, 16  ;;  %1058 = vmatpush3.bf16.msra.mxu1 %v1151_v57 }
  0x20   : > { %1077 = vmatprep.mubr.msk.bf16.mxu0 %vm251_vm0, %v969_v6  ;;  %v550_v24 = vshll.u32 %v1296_v2, 16  ;;  %v521_v25 = vrot.slane %v519_v10, 4  ;;  %v524_v29 = vrot.slane %v522_v15, 5  ;;  %v528_v30 = vshll.u32 %v183_v11, 16  ;;  %1059 = vmatprep.subr.bf16.mxu1 %v1153_v22 }
  0x21   : > { %v1328_v23 = vsel %vm1275_vm3, %v498_v14, %v502_v59  ;;  %1050 = vmatmul.mubr.msk.bf16.gmra.mrb[4].mxu1 %vm251_vm0, %v940_v20  ;;  %v950_v31 = vcombine.low %v1227_v8, %v1239_v13  ;;  %v535_v33 = vrot.slane %v533_v7, 4  ;;  %v538_v34 = vrot.slane %v536_v16, 5 }
  0x22   : > { %v970_v28 = vcombine.low %v1305_v5, %v1328_v23  ;;  %1061 = vmatprep.mubr.msk.bf16.mxu1 %vm251_vm0, %v949_v4  ;;  %v525_v35 = vor.u32 %v524_v29, %v521_v25  ;;  %v530_v36 = vrot.slane %v528_v30, 5  ;;  %v542_v37 = vshll.u32 %v185_v26, 16 }
  0x23   : > { %v549_v38 = vrot.slane %v547_v21, 4  ;;  %v517_v39 = vsel %vm1275_vm3, %v512_v17, %v516_v18  ;;  %v539_v40 = vor.u32 %v538_v34, %v535_v33  ;;  %v552_v41 = vrot.slane %v550_v24, 5  ;;  %1060 = vmatpush3.bf16.msra.mxu1 %v1153_v22  ;;  %v1001_v17 = vld [vmem:[%s1406_s2] ss:$0 sm:$0xff] }
  0x24   : > { %1078 = vmatmul.mubr.msk.bf16.vlgmr.msra.gmra.mrb[0].mxu0 %vm251_vm0, %v970_v28  ;;  %v556_v8 = vshll.u32 %v187_v27, 16  ;;  %v691_v13 = vshrl.u32 %v1299_v3, 16  ;;  %v694_v42 = vshll.u32 %v1299_v3, 16  ;;  %v526_v43 = vrot.slane %v525_v35, 4 }
  0x25   : > { %1086 = vmatpush3.bf16.msra.mxu0 %v1264_v32  ;;  %v544_v45 = vrot.slane %v542_v37, 5  ;;  %v540_v47 = vrot.slane %v539_v40, 4  ;;  %v553_v48 = vor.u32 %v552_v41, %v549_v38  ;;  %v951_v32 = vcombine.low %v1236_v12, %v1288_v62 }
  0x26   : > { %1087 = vmatprep.subr.bf16.mxu0 %v1148_v19  ;;  %v558_v49 = vrot.slane %v556_v8, 5  ;;  %v531_v50 = vsel %vm1275_vm3, %v526_v43, %v530_v36  ;;  %v989_v12 = vcombine.low %v1285_v58, %v1305_v5  ;;  %v693_v55 = vrot.slane %v691_v13, 4 }
  0x27   : > { %v971_v51 = vcombine.low %v517_v39, %v531_v50  ;;  %v545_v52 = vsel %vm1275_vm3, %v540_v47, %v544_v45  ;;  %v554_v53 = vrot.slane %v553_v48, 4  ;;  %v696_v56 = vrot.slane %v694_v42, 5 }
  0x28   : > { %v952_v61 = vcombine.low %v1291_v63, %v1296_v2  ;;  %v700_v62 = vshll.u32 %v189_v60, 16  ;;  %v990_v0 = vcombine.low %v1328_v23, %v517_v39  ;;  %v991_v1 = vcombine.low %v531_v50, %v545_v52 }
  0x29   : > { %1088 = vmatpush3.bf16.msra.mxu0 %v1148_v19  ;;  %1062 = vmatmul.mubr.msk.bf16.vlgmr.msra.gmra.mrb[0].mxu1 %vm251_vm0, %v950_v31  ;;  %v559_v57 = vsel %vm1275_vm3, %v554_v53, %v558_v49  ;;  %v697_v58 = vor.u32 %v696_v56, %v693_v55 }
  0x2a   : > { %1089 = vmatprep.subr.bf16.mxu0 %v1152_v44  ;;  %1081 = vmatprep.mubr.msk.bf16.mxu0 %vm251_vm0, %v971_v51  ;;  %v972_v59 = vcombine.low %v545_v52, %v559_v57  ;;  %v702_v4 = vrot.slane %v700_v62, 5 }
  0x2b   : > { %1065 = vmatprep.mubr.msk.bf16.mxu1 %vm251_vm0, %v951_v32  ;;  %v698_v3 = vrot.slane %v697_v58, 4 }
  0x2c   : > { %1082 = vmatmul.mubr.msk.bf16.gmra.mrb[4].mxu0 %vm251_vm0, %v972_v59 }
  0x2d   : > { %1090 = vmatpush3.bf16.msra.mxu0 %v1152_v44  ;;  %1093 = vmatprep.mubr.msk.bf16.mxu0 %vm251_vm0, %v989_v12  ;;  %v703_v5 = vsel %vm1275_vm3, %v698_v3, %v702_v4 }
  0x2e   : > { %1091 = vmatprep.subr.bf16.mxu0 %v1154_v54  ;;  %v992_v63 = vcombine.low %v559_v57, %v703_v5 }
  0x31   : > { %1092 = vmatpush3.bf16.msra.mxu0 %v1154_v54  ;;  %1066 = vmatmul.mubr.msk.bf16.gmra.mrb[4].mxu1 %vm251_vm0, %v952_v61 }
  0x34   : > { %1094 = vmatmul.mubr.msk.bf16.vlgmr.msra.gmra.mrb[0].mxu0 %vm251_vm0, %v990_v0 }
  0x35   : > { %1097 = vmatprep.mubr.msk.bf16.mxu0 %vm251_vm0, %v991_v1 }
  0x3c   : > { %1098 = vmatmul.mubr.msk.bf16.gmra.mrb[4].mxu0 %vm251_vm0, %v992_v63 }
  0xfc   : > { %v1063_v2 = vpop.f32.mrb[0].mxu1 }
  0xfd   : > { %v405_v6 = vpop.f32.mrb[1].mxu1 }
  0xfe   : > { %v1064_v9 = vpop.f32.mrb[2].mxu1 }
  0xff   : > { %v408_v10 = vpop.f32.mrb[3].mxu1 }
 0x104   : > { %v1067_v11 = vpop.f32.mrb[4].mxu1 }
 0x105   : > { %v421_v14 = vpop.f32.mrb[5].mxu1 }
 0x106   : > { %v1068_v15 = vpop.f32.mrb[6].mxu1 }
 0x107   : > { %v424_v7 = vpop.f32.mrb[7].mxu1  ;;  %v1095_v16 = vpop.f32.mrb[0].mxu0 }
 0x108   : > { %v1101_v18 = vadd.f32 %v1095_v16, %v1063_v2  ;;  %v779_v46 = vpop.f32.mrb[1].mxu0 }
 0x109   : > { %v1102_v19 = vadd.f32 %v779_v46, %v405_v6  ;;  %v1096_v20 = vpop.f32.mrb[2].mxu0 }
 0x10a   : > { %v827_v21 = vadd.f32 %v1101_v18, %v1001_v17  ;;  %v1103_v22 = vadd.f32 %v1096_v20, %v1064_v9  ;;  %v782_v23 = vpop.f32.mrb[3].mxu0 }
 0x10b   : > { %v825_v24 = vadd.f32 %v1102_v19, %v1001_v17  ;;  %v1104_v25 = vadd.f32 %v782_v23, %v408_v10 }
 0x10c   : > { %v835_v26 = vmul.f32 0.2, %v827_v21  ;;  %v828_v27 = vadd.f32 %v1103_v22, %v1001_v17 }
 0x10d   : > { %v833_v28 = vmul.f32 0.2, %v825_v24  ;;  %v826_v29 = vadd.f32 %v1104_v25, %v1001_v17 }
 0x10e   : > { %v843_v30 = vmax.f32 %v827_v21, %v835_v26  ;;  %v836_v31 = vmul.f32 0.2, %v828_v27 }
 0x10f   : > { %v841_v33 = vmax.f32 %v825_v24, %v833_v28  ;;  %v834_v34 = vmul.f32 0.2, %v826_v29  ;;  %v1099_v35 = vpop.f32.mrb[4].mxu0 }
 0x110   : > { %v851_v36 = vpack.c.bf16 %v843_v30, %v843_v30  ;;  %v844_v37 = vmax.f32 %v828_v27, %v836_v31  ;;  %v1105_v38 = vadd.f32 %v1099_v35, %v1067_v11  ;;  %v795_v39 = vpop.f32.mrb[5].mxu0 }
 0x111   : > { %v849_v40 = vpack.c.bf16 %v841_v33, %v841_v33  ;;  %v842_v41 = vmax.f32 %v826_v29, %v834_v34  ;;  %v1106_v8 = vadd.f32 %v795_v39, %v421_v14  ;;  %v1100_v13 = vpop.f32.mrb[6].mxu0 }
 0x112   : > { %860 = vst.msk [vmem:[%s1383_s30 + $0x8] sm:$0xf] %vm857_vm4, %v851_v36  ;;  %v852_v42 = vpack.c.bf16 %v844_v37, %v844_v37  ;;  %v831_v43 = vadd.f32 %v1105_v38, %v1001_v17  ;;  %v1107_v44 = vadd.f32 %v1100_v13, %v1068_v15  ;;  %v798_v45 = vpop.f32.mrb[7].mxu0 }
 0x113   : > { %858 = vst.msk [vmem:[%s1383_s30] sm:$0xf] %vm857_vm4, %v849_v40  ;;  %v850_v47 = vpack.c.bf16 %v842_v41, %v842_v41  ;;  %v829_v48 = vadd.f32 %v1106_v8, %v1001_v17  ;;  %v1108_v49 = vadd.f32 %v798_v45, %v424_v7 }
 0x114   : > { %861 = vst.msk [vmem:[%s1383_s30 + $0xc] sm:$0xf] %vm857_vm4, %v852_v42  ;;  %v839_v32 = vmul.f32 0.2, %v831_v43  ;;  %v832_v50 = vadd.f32 %v1107_v44, %v1001_v17 }
 0x115   : > { %859 = vst.msk [vmem:[%s1383_s30 + $0x4] sm:$0xf] %vm857_vm4, %v850_v47  ;;  %v837_v51 = vmul.f32 0.2, %v829_v48  ;;  %v830_v52 = vadd.f32 %v1108_v49, %v1001_v17 }
 0x116   : > { %v847_v53 = vmax.f32 %v831_v43, %v839_v32  ;;  %v840_v54 = vmul.f32 0.2, %v832_v50 }
 0x117   : > { %v845_v12 = vmax.f32 %v829_v48, %v837_v51  ;;  %v838_v55 = vmul.f32 0.2, %v830_v52 }
 0x118   : > { %v855_v56 = vpack.c.bf16 %v847_v53, %v847_v53  ;;  %v848_v57 = vmax.f32 %v832_v50, %v840_v54 }
 0x119   : > { %v853_v59 = vpack.c.bf16 %v845_v12, %v845_v12  ;;  %v846_v60 = vmax.f32 %v830_v52, %v838_v55 }
 0x11a   : > { %864 = vst.msk [vmem:[%s1383_s30 + $0x18] sm:$0xf] %vm857_vm4, %v855_v56  ;;  %v856_v61 = vpack.c.bf16 %v848_v57, %v848_v57 }
 0x11b   : > { %862 = vst.msk [vmem:[%s1383_s30 + $0x10] sm:$0xf] %vm857_vm4, %v853_v59  ;;  %v854_v58 = vpack.c.bf16 %v846_v60, %v846_v60 }
 0x11c   : > { %865 = vst.msk [vmem:[%s1383_s30 + $0x1c] sm:$0xf] %vm857_vm4, %v856_v61 }
 0x11d   : > { %863 = vst.msk [vmem:[%s1383_s30 + $0x14] sm:$0xf] %vm857_vm4, %v854_v58 }
 0x11e PF: > { %s13_s12 = sadd.s32 1, %s1164_s12  }
 0x11f   : > { %p10_p4 = scmp.ge.s32.totalorder %s13_s12, 4  }
 0x121   :  { %12 = sbr.rel (!%p10_p4) target bundleno = 1 (0x1), region = 65 }

// kernel: _lambda_.5
= control target key start
LH: loop header
LB: loop body
LE: loop exit
PB: predicated region body
PF: predicated region fallthrough
CT: control target
= control target key end

     0   :  { %s10024_s23 = smov 0   ;;  %s14018_s0 = inlined_call_operand.vmem [shape: bf16[2,12,12,32], index: 0, kind: input, shape index: {}]   ;;  %s14019_s1 = inlined_call_operand.vmem [shape: bf16[512,64], index: 1, kind: input, shape index: {}]   ;;  %s14020_s2 = inlined_call_operand.vmem [shape: f32[1,64], index: 2, kind: input, shape index: {}]   ;;  %s14021_s3 = inlined_call_operand.vmem [shape: f32[9,9,1], index: 3, kind: input, shape index: {}]   ;;  %s14022_s4 = inlined_call_operand.vmem [shape: f32[16,64,1], index: 4, kind: input, shape index: {}]   ;;  %s14023_s5 = inlined_call_operand.<no memory space> [shape: f32[1,1], index: 5, kind: input, shape index: {}]   ;;  %s14024_s6 = inlined_call_operand.vmem [shape: f32[2,6,6,1], index: 6, kind: output, shape index: {}]  }
   0x1   :  { %v11_v0 = vstv %s14023_s5 }
   0x2   :  { %12 = vst [vmem:[#allocation2] sm:$0x1] %v11_v0 }
   0x3 LB: > { %s8614_s24 = sadd.s32 4294967295, %s9975_s23   ;;  %p8618_p0 = scmp.ge.s32.totalorder %s9975_s23, 1  ;;  %s9975_s23 = sphi %s10024_s23, %s18_s23  }
   0x4   : > { %p214_p1 = scmp.lt.s32.totalorder %s9975_s23, 3 }
   0x6   : > { %p215_p2 = pnand %p8618_p0, %p214_p1 }
   0x8   : > { %218 = sbr.rel (%p215_p2) target bundleno = 963 (0x3c3), region = 44 }
   0xf   : > { %p244_p3 = scmp.lt.s32.totalorder %s8614_s24, 1  ;;  %s9977_s28 = smov 64   ;;  %v9937_v19 = vld [vmem:[%s14019_s1 + $0x40] sm:$0xff]   ;;  %v9941_v42 = vld [vmem:[%s14019_s1 + $0x48] sm:$0xff]   ;;  %v9945_v56 = vld [vmem:[%s14019_s1 + $0x50] sm:$0xff]   ;;  %vm543_vm0 = vcmask 261120  }
  0x10   : > { %v9938_v23 = vld [vmem:[%s14019_s1 + $0xc0] sm:$0xff]   ;;  %8894 = vmatprep.subr.bf16.mxu0 %v9937_v19  ;;  %s9978_s11 = smov 32   ;;  %v9942_v43 = vld [vmem:[%s14019_s1 + $0xc8] sm:$0xff]   ;;  %s9979_s18 = smov 96   ;;  %v9946_v62 = vld [vmem:[%s14019_s1 + $0xd0] sm:$0xff]   ;;  %vm562_vm1 = vcmask 523264  }
  0x11   : > { %s14569_s24 = smov (!%p244_p3, %s8614_s24), 1  ;;  %8946 = vmatprep.subr.bf16.mxu1 %v9938_v23  ;;  %v9939_v25 = vld [vmem:[%s14019_s1] sm:$0xff]   ;;  %v9943_v50 = vld [vmem:[%s14019_s1 + $0x8] sm:$0xff]   ;;  %v9947_v63 = vld [vmem:[%s14019_s1 + $0x10] sm:$0xff]   ;;  %vm581_vm2 = vcmask 785408   ;;  %vm9983_vm3 = vmmov 0  }
  0x12   : > { %s9904_s5 = smul.u32 96, %s14569_s24  ;;  %v9940_v29 = vld [vmem:[%s14019_s1 + $0x80] sm:$0xff]   ;;  %8895 = vmatpush3.bf16.msra.mxu0 %v9939_v25  ;;  %v9944_v52 = vld [vmem:[%s14019_s1 + $0x88] sm:$0xff]   ;;  %vm8552_vm4 = vcmask 5120  }
  0x13   : > { %8947 = vmatpush3.bf16.msra.mxu1 %v9940_v29  ;;  %8896 = vmatprep.subr.bf16.mxu0 %v9941_v42  ;;  %v9957_v29 = vld [vmem:[%s14019_s1 + $0x68] sm:$0xff]   ;;  %s9905_s7 = smul.u32 48, %s14569_s24 }
  0x14   : > { %s10038_s27 = scalar_lea.vmem %s14018_s0, %s9904_s5  ;;  %8948 = vmatprep.subr.bf16.mxu1 %v9942_v43  ;;  %v9962_v43 = vld [vmem:[%s14019_s1 + $0xf0] sm:$0xff]  }
  0x15   : > { %v10041_v1 = vld [vmem:[%s10038_s27 + $0x10] sm:$0x3f]   ;;  %v10044_v2 = vld [vmem:[%s10038_s27 + $0x8] sm:$0x3f]   ;;  %v10049_v5 = vld [vmem:[%s10038_s27 + $0x20] sm:$0x3f]   ;;  %s13960_s9 = scalar_lea.vmem %s14024_s6, %s9905_s7 }
  0x16   : > { %v407_v3 = vrot.slane %v10041_v1, 1  ;;  %v406_v4 = vrot.slane %v10044_v2, 1  ;;  %v10053_v6 = vld [vmem:[%s10038_s27 + $0x18] sm:$0x3f]   ;;  %v334_v7 = vshll.u32 %v10044_v2, 16  ;;  %v409_v8 = vrot.slane %v10049_v5, 1  ;;  %8897 = vmatpush3.bf16.msra.mxu0 %v9943_v50 }
  0x17   : > { %v332_v9 = vshrl.u32 %v10044_v2, 16  ;;  %v355_v10 = vshll.u32 %v10049_v5, 16  ;;  %v341_v11 = vshll.u32 %v10041_v1, 16  ;;  %v408_v12 = vrot.slane %v10053_v6, 1  ;;  %v10083_v33 = vld [vmem:[%s10038_s27] sm:$0x3f]   ;;  %8949 = vmatpush3.bf16.msra.mxu1 %v9944_v52  ;;  %8898 = vmatprep.subr.bf16.mxu0 %v9945_v56 }
  0x18   : > { %418 = vrot.lane.b32.xlu1 %v407_v3, %s9977_s28  ;;  %416 = vrot.lane.b32.xlu0 %v406_v4, %s9977_s28  ;;  %v346_v13 = vshrl.u32 %v10053_v6, 16  ;;  %v348_v14 = vshll.u32 %v10053_v6, 16  ;;  %v336_v15 = vrot.slane %v334_v7, 1  ;;  %v353_v17 = vshrl.u32 %v10049_v5, 16  ;;  %v10087_v37 = vld [vmem:[%s10038_s27 + $0x28] sm:$0x3f]  }
  0x19   : > { %v357_v18 = vrot.slane %v355_v10, 1  ;;  %v339_v21 = vshrl.u32 %v10041_v1, 16  ;;  %v343_v22 = vrot.slane %v341_v11, 1  ;;  %v439_v28 = vrot.slane %v341_v11, 2  ;;  %v10100_v46 = vld [vmem:[%s10038_s27 + $0x30] sm:$0x3f]   ;;  %8950 = vmatprep.subr.bf16.mxu1 %v9946_v62 }
  0x1a   : > { %v350_v16 = vrot.slane %v348_v14, 1  ;;  %v337_v20 = vor.u32 %v336_v15, %v332_v9  ;;  %v435_v31 = vrot.slane %v332_v9, 1  ;;  %v436_v32 = vrot.slane %v334_v7, 2  ;;  %v9948_v3 = vld [vmem:[%s14019_s1 + $0x90] sm:$0xff]   ;;  %v9949_v9 = vld [vmem:[%s14019_s1 + $0x58] sm:$0xff]   ;;  %8899 = vmatpush3.bf16.msra.mxu0 %v9947_v63 }
  0x1b   : > { %v358_v26 = vor.u32 %v357_v18, %v353_v17  ;;  %v438_v27 = vrot.slane %v339_v21, 1  ;;  %v344_v30 = vor.u32 %v343_v22, %v339_v21  ;;  %v444_v35 = vrot.slane %v353_v17, 1  ;;  %8951 = vmatpush3.bf16.msra.mxu1 %v9948_v3  ;;  %8900 = vmatprep.subr.bf16.mxu0 %v9949_v9  ;;  %v9951_v15 = vld [vmem:[%s14019_s1 + $0x18] sm:$0xff]   ;;  %v9954_v22 = vld [vmem:[%s14019_s1 + $0xe0] sm:$0xff]  }
  0x1c   : > { %422 = vrot.lane.b32.xlu1 %v409_v8, %s9977_s28  ;;  %420 = vrot.lane.b32.xlu0 %v408_v12, %s9977_s28  ;;  %v351_v24 = vor.u32 %v350_v16, %v346_v13  ;;  %v445_v36 = vrot.slane %v355_v10, 2  ;;  %v437_v38 = vor.u32 %v436_v32, %v435_v31  ;;  %v441_v39 = vrot.slane %v346_v13, 1  ;;  %v10131_v8 = vld [vmem:[%s10038_s27 + $0x38] sm:$0x3f]   ;;  %v9958_v31 = vld [vmem:[%s14019_s1 + $0xe8] sm:$0xff]  }
  0x1d   : > { %v440_v34 = vor.u32 %v439_v28, %v438_v27  ;;  %v442_v40 = vrot.slane %v348_v14, 2  ;;  %v327_v41 = vshll.u32 %v10083_v33, 16  ;;  %v362_v45 = vshll.u32 %v10087_v37, 16  ;;  %v9950_v12 = vld [vmem:[%s14019_s1 + $0xd8] sm:$0xff]   ;;  %v10142_v14 = vld [vmem:[%s10038_s27 + $0x40] sm:$0x3f]  }
  0x1e   : > { %v446_v44 = vor.u32 %v445_v36, %v444_v35  ;;  %v325_v48 = vshrl.u32 %v10083_v33, 16  ;;  %v405_v51 = vrot.slane %v10083_v33, 1  ;;  %v360_v53 = vshrl.u32 %v10087_v37, 16  ;;  %8952 = vmatprep.subr.bf16.mxu1 %v9950_v12  ;;  %v9952_v17 = vld [vmem:[%s14019_s1 + $0x98] sm:$0xff]   ;;  %8901 = vmatpush3.bf16.msra.mxu0 %v9951_v15  ;;  %v9956_v27 = vld [vmem:[%s14019_s1 + $0xa0] sm:$0xff]  }
  0x1f   : > { %v443_v47 = vor.u32 %v442_v40, %v441_v39  ;;  %v329_v49 = vrot.slane %v327_v41, 1  ;;  %v364_v54 = vrot.slane %v362_v45, 1  ;;  %v369_v55 = vshll.u32 %v10100_v46, 16  ;;  %8953 = vmatpush3.bf16.msra.mxu1 %v9952_v17  ;;  %v9966_v52 = vld [vmem:[%s14019_s1 + $0xf8] sm:$0xff]  }
  0x20   : > { %393 = vrot.lane.b32.xlu1 %v351_v24, %s9978_s11  ;;  %389 = vrot.lane.b32.xlu0 %v337_v20, %s9978_s11  ;;  %v432_v58 = vrot.slane %v325_v48, 1  ;;  %v433_v59 = vrot.slane %v327_v41, 2  ;;  %v410_v60 = vrot.slane %v10087_v37, 1  ;;  %v367_v61 = vshrl.u32 %v10100_v46, 16  ;;  %v9953_v20 = vld [vmem:[%s14019_s1 + $0x60] sm:$0xff]   ;;  %v9961_v41 = vld [vmem:[%s14019_s1 + $0x70] sm:$0xff]  }
  0x21   : > { %v330_v57 = vor.u32 %v329_v49, %v325_v48  ;;  %v447_v0 = vrot.slane %v360_v53, 1  ;;  %v365_v4 = vor.u32 %v364_v54, %v360_v53  ;;  %v371_v7 = vrot.slane %v369_v55, 1  ;;  %8902 = vmatprep.subr.bf16.mxu0 %v9953_v20  ;;  %v9955_v24 = vld [vmem:[%s14019_s1 + $0x20] sm:$0xff]   ;;  %8954 = vmatprep.subr.bf16.mxu1 %v9954_v22  ;;  %v9964_v49 = vld [vmem:[%s14019_s1 + $0xb0] sm:$0xff]   ;;  %v9967_v54 = vld [vmem:[%s14019_s1 + $0x38] sm:$0xff]  }
  0x22   : > { %v434_v10 = vor.u32 %v433_v59, %v432_v58  ;;  %v448_v11 = vrot.slane %v362_v45, 2  ;;  %v411_v13 = vrot.slane %v10100_v46, 1  ;;  %v376_v16 = vshll.u32 %v10131_v8, 16  ;;  %8903 = vmatpush3.bf16.msra.mxu0 %v9955_v24  ;;  %v10195_v45 = vld [vmem:[%s10038_s27 + $0x50] sm:$0x3f]  }
  0x23   : > { %v372_v18 = vor.u32 %v371_v7, %v367_v61  ;;  %v450_v19 = vrot.slane %v367_v61, 1  ;;  %v374_v21 = vshrl.u32 %v10131_v8, 16  ;;  %v451_v23 = vrot.slane %v369_v55, 2  ;;  %8955 = vmatpush3.bf16.msra.mxu1 %v9956_v27  ;;  %8904 = vmatprep.subr.bf16.mxu0 %v9957_v29  ;;  %v10225_v63 = vld [vmem:[%s10038_s27 + $0x58] sm:$0x3f]   ;;  %v2964_v29 = vld [vmem:[%s14021_s3 + $0x40] sm:$0xff] }
  0x24   : > { %395 = vrot.lane.b32.xlu1 %v358_v26, %s9978_s11  ;;  %391 = vrot.lane.b32.xlu0 %v344_v30, %s9978_s11  ;;  %v449_v25 = vor.u32 %v448_v11, %v447_v0  ;;  %v378_v26 = vrot.slane %v376_v16, 1  ;;  %v383_v28 = vshll.u32 %v10142_v14, 16  ;;  %v10173_v30 = vld [vmem:[%s10038_s27 + $0x48] sm:$0x3f]   ;;  %v412_v32 = vrot.slane %v10131_v8, 1 }
  0x25   : > { %v381_v36 = vshrl.u32 %v10142_v14, 16  ;;  %8956 = vmatprep.subr.bf16.mxu1 %v9958_v31  ;;  %v452_v39 = vor.u32 %v451_v23, %v450_v19  ;;  %v453_v42 = vrot.slane %v374_v21, 1  ;;  %v485_v48 = vshll.u32 %v10173_v30, 16  ;;  %v2962_v31 = vld [vmem:[%s14021_s3 + $0x30] sm:$0xff] }
  0x26   : > { %v379_v35 = vor.u32 %v378_v26, %v374_v21  ;;  %v385_v40 = vrot.slane %v383_v28, 1  ;;  %v483_v53 = vshrl.u32 %v10173_v30, 16  ;;  %v413_v58 = vrot.slane %v10142_v14, 1  ;;  %v2958_v26 = vld [vmem:[%s14021_s3 + $0x10] sm:$0xff] }
  0x27   : > { %v487_v56 = vrot.slane %v485_v48, 1  ;;  %v456_v59 = vrot.slane %v381_v36, 1  ;;  %v507_v61 = vshll.u32 %v10195_v45, 16  ;;  %v505_v3 = vshrl.u32 %v10195_v45, 16 }
  0x28   : > { %463 = vrot.lane.b32.xlu1 %v440_v34, %s9979_s18  ;;  %461 = vrot.lane.b32.xlu0 %v437_v38, %s9979_s18  ;;  %v9959_v34 = vld [vmem:[%s14019_s1 + $0x28] sm:$0xff]   ;;  %v386_v50 = vor.u32 %v385_v40, %v381_v36  ;;  %v491_v7 = vrot.slane %v10173_v30, 1  ;;  %v494_v9 = vrot.slane %v483_v53, 1  ;;  %v529_v11 = vshll.u32 %v10225_v63, 16  ;;  %v2970_v36 = vld [vmem:[%s14021_s3 + $0x70] sm:$0xff] }
  0x29   : > { %v9960_v38 = vld [vmem:[%s14019_s1 + $0xa8] sm:$0xff]   ;;  %8905 = vmatpush3.bf16.msra.mxu0 %v9959_v34  ;;  %v488_v62 = vor.u32 %v487_v56, %v483_v53  ;;  %v527_v15 = vshrl.u32 %v10225_v63, 16  ;;  %v513_v17 = vrot.slane %v10195_v45, 1  ;;  %v517_v19 = vrot.slane %v507_v61, 2  ;;  %v2966_v34 = vld [vmem:[%s14021_s3 + $0x50] sm:$0xff]  ;;  %v2972_v40 = vld [vmem:[%s14021_s3 + $0x80] sm:$0xff] }
  0x2a   : > { %8957 = vmatpush3.bf16.msra.mxu1 %v9960_v38  ;;  %8906 = vmatprep.subr.bf16.mxu0 %v9961_v41  ;;  %v539_v22 = vrot.slane %v529_v11, 2  ;;  %v9980_v27 = vmov 0   ;;  %v9981_v53 = vmov 1966171168   ;;  %v2969_v56 = vld [vmem:[%s14021_s3 + $0x68] sm:$0x1] }
  0x2b   : > { %8958 = vmatprep.subr.bf16.mxu1 %v9962_v43  ;;  %v538_v21 = vrot.slane %v527_v15, 1  ;;  %9923 = vset.pattern.permute.xlu0 %v9980_v27  ;;  %v2959_v43 = vld [vmem:[%s14021_s3 + $0x18] sm:$0x1] }
  0x2c   : > { %467 = vrot.lane.b32.xlu1 %v446_v44, %s9979_s18  ;;  %465 = vrot.lane.b32.xlu0 %v443_v47, %s9979_s18  ;;  %v454_v44 = vrot.slane %v376_v16, 2  ;;  %v9963_v47 = vld [vmem:[%s14019_s1 + $0x30] sm:$0xff]   ;;  %v531_v16 = vrot.slane %v529_v11, 1 }
  0x2d   : > { %8907 = vmatpush3.bf16.msra.mxu0 %v9963_v47  ;;  %v540_v24 = vor.u32 %v539_v22, %v538_v21  ;;  %9924 = vset.pattern.permute.xlu1 %v9980_v27 }
  0x2e   : > { %8959 = vmatpush3.bf16.msra.mxu1 %v9964_v49  ;;  %v455_v55 = vor.u32 %v454_v44, %v453_v42  ;;  %v532_v20 = vor.u32 %v531_v16, %v527_v15  ;;  %v2961_v44 = vld [vmem:[%s14021_s3 + $0x28] sm:$0x1]  ;;  %v2963_v49 = vld [vmem:[%s14021_s3 + $0x38] sm:$0x1] }
  0x2f   : > { %8960 = vmatprep.subr.bf16.mxu1 %v9966_v52 }
  0x30   : > { %414 = vrot.lane.b32.xlu1 %v405_v51, %s9977_s28  ;;  %387 = vrot.lane.b32.xlu0 %v330_v57, %s9978_s11  ;;  %v9965_v51 = vld [vmem:[%s14019_s1 + $0x78] sm:$0xff]  }
  0x31   : > { %8908 = vmatprep.subr.bf16.mxu0 %v9965_v51  ;;  %v9968_v57 = vld [vmem:[%s14019_s1 + $0xb8] sm:$0xff]  }
  0x32   : > { %8909 = vmatpush3.bf16.msra.mxu0 %v9967_v54  ;;  %8961 = vmatpush3.bf16.msra.mxu1 %v9968_v57  ;;  %v705_v54 = vunpack.c.l.s4 %v9981_v53 }
  0x34   : > { %397 = vrot.lane.b32.xlu1 %v365_v4, %s9978_s11  ;;  %459 = vrot.lane.b32.xlu0 %v434_v10, %s9979_s18  ;;  %v509_v4 = vrot.slane %v507_v61, 1  ;;  %v495_v10 = vrot.slane %v485_v48, 2 }
  0x36   : > { %v510_v12 = vor.u32 %v509_v4, %v505_v3 }
  0x38   : > { %424 = vrot.lane.b32.xlu1 %v410_v60, %s9977_s28  ;;  %399 = vrot.lane.b32.xlu0 %v372_v18, %s9978_s11  ;;  %v457_v60 = vrot.slane %v383_v28, 2  ;;  %v516_v18 = vrot.slane %v505_v3, 1  ;;  %v2960_v28 = vld [vmem:[%s14021_s3 + $0x20] sm:$0xff]  ;;  %v2973_v3 = vld [vmem:[%s14021_s3 + $0x88] sm:$0x1] }
  0x3a   : > { %v458_v0 = vor.u32 %v457_v60, %v456_v59  ;;  %v518_v23 = vor.u32 %v517_v19, %v516_v18 }
  0x3c   : > { %469 = vrot.lane.b32.xlu1 %v449_v25, %s9979_s18  ;;  %426 = vrot.lane.b32.xlu0 %v411_v13, %s9977_s28  ;;  %v496_v13 = vor.u32 %v495_v10, %v494_v9  ;;  %v535_v25 = vrot.slane %v10225_v63, 1 }
  0x40   : > { %401 = vrot.lane.b32.xlu1 %v379_v35, %s9978_s11  ;;  %471 = vrot.lane.b32.xlu0 %v452_v39, %s9979_s18  ;;  %v2956_v35 = vld [vmem:[%s14021_s3] sm:$0xff]  ;;  %v2957_v39 = vld [vmem:[%s14021_s3 + $0x8] sm:$0x1] }
  0x44   : > { %428 = vrot.lane.b32.xlu1 %v412_v32, %s9977_s28  ;;  %403 = vrot.lane.b32.xlu0 %v386_v50, %s9978_s11  ;;  %v2968_v32 = vld [vmem:[%s14021_s3 + $0x60] sm:$0xff]  ;;  %v2965_v50 = vld [vmem:[%s14021_s3 + $0x48] sm:$0x1] }
  0x48   : > { %473 = vrot.lane.b32.xlu1 %v455_v55, %s9979_s18  ;;  %430 = vrot.lane.b32.xlu0 %v413_v58, %s9977_s28  ;;  %v2967_v55 = vld [vmem:[%s14021_s3 + $0x58] sm:$0x1]  ;;  %v707_v58 = vlaneseq }
  0x4c   : > { %489 = vrot.lane.b32.xlu1 %v488_v62, %s9978_s11  ;;  %475 = vrot.lane.b32.xlu0 %v458_v0, %s9979_s18  ;;  %v706_v62 = vunpack.c.0.s8 %v705_v54  ;;  %v2971_v0 = vld [vmem:[%s14021_s3 + $0x78] sm:$0x1] }
  0x50   : > { %492 = vrot.lane.b32.xlu1 %v491_v7, %s9977_s28  ;;  %511 = vrot.lane.b32.xlu0 %v510_v12, %s9978_s11  ;;  %v10306_v7 = vshrl.u32 %v707_v58, 7 }
  0x52   : > { %14161 = vst [vmem:[#allocation3_spill] sm:$0xff] %v10306_v7 }
  0x54   : > { %497 = vrot.lane.b32.xlu1 %v496_v13, %s9979_s18  ;;  %514 = vrot.lane.b32.xlu0 %v513_v17, %s9977_s28 }
  0x58   : > { %533 = vrot.lane.b32.xlu1 %v532_v20, %s9978_s11  ;;  %519 = vrot.lane.b32.xlu0 %v518_v23, %s9979_s18 }
  0x5c   : > { %541 = vrot.lane.b32.xlu1 %v540_v24, %s9979_s18  ;;  %536 = vrot.lane.b32.xlu0 %v535_v25, %s9977_s28 }
  0x60   : > { %2984 = vperm.xlu0 %9923, %v2958_v26   ;;  %2992 = vperm.xlu1 %9924, %v2960_v28  }
  0x64   : > { %3008 = vperm.xlu0 %9923, %v2964_v29   ;;  %3000 = vperm.xlu1 %9924, %v2962_v31  }
  0x68   : > { %3024 = vperm.xlu0 %9923, %v2968_v32   ;;  %3016 = vperm.xlu1 %9924, %v2966_v34  }
  0x6c   : > { %2976 = vperm.xlu0 %9923, %v2956_v35   ;;  %3032 = vperm.xlu1 %9924, %v2970_v36  }
  0x70   : > { %2980 = vperm.xlu0 %9923, %v2957_v39   ;;  %3040 = vperm.xlu1 %9924, %v2972_v40  }
  0x74   : > { %2988 = vperm.xlu1 %9924, %v2959_v43   ;;  %2996 = vperm.xlu0 %9923, %v2961_v44  }
  0x78   : > { %3004 = vperm.xlu1 %9924, %v2963_v49   ;;  %3012 = vperm.xlu0 %9923, %v2965_v50  }
  0x7c   : > { %3020 = vperm.xlu1 %9924, %v2967_v55   ;;  %3028 = vperm.xlu0 %9923, %v2969_v56  }
  0x80   : > { %3036 = vperm.xlu1 %9924, %v2971_v0   ;;  %3044 = vperm.xlu0 %9923, %v2973_v3  }
  0x8a   : > { %v419_v38 = vpop.permute.xlu1 %418  ;;  %v417_v41 = vpop.permute.xlu0 %416 }
  0x8e   : > { %v423_v42 = vpop.permute.xlu1 %422  ;;  %v421_v47 = vpop.permute.xlu0 %420 }
  0x92   : > { %v394_v48 = vpop.permute.xlu1 %393  ;;  %v390_v51 = vpop.permute.xlu0 %389 }
  0x93   : > { %v547_v59 = vsel %vm543_vm0, %v10044_v2, %v390_v51  ;;  %v551_v10 = vsel %vm543_vm0, %v10053_v6, %v394_v48 }
  0x94   : > { %v570_v18 = vsel %vm562_vm1, %v551_v10, %v421_v47 }
  0x96   : > { %v396_v52 = vpop.permute.xlu1 %395  ;;  %v392_v57 = vpop.permute.xlu0 %391 }
  0x97   : > { %v549_v60 = vsel %vm543_vm0, %v10041_v1, %v392_v57  ;;  %v553_v2 = vsel %vm543_vm0, %v10049_v5, %v396_v52  ;;  %v566_v1 = vsel %vm562_vm1, %v547_v59, %v417_v41  ;;  %v10314_v5 = vsub.s32 %v706_v62, %v10306_v7 }
  0x98   : > { %v568_v4 = vsel %vm562_vm1, %v549_v60, %v419_v38  ;;  %v572_v13 = vsel %vm562_vm1, %v553_v2, %v423_v42 }
  0x9a   : > { %v464_v61 = vpop.permute.xlu1 %463  ;;  %v462_v9 = vpop.permute.xlu0 %461 }
  0x9b   : > { %v587_v11 = vsel %vm581_vm2, %v568_v4, %v464_v61  ;;  %v585_v12 = vsel %vm581_vm2, %v566_v1, %v462_v9 }
  0x9c   : > { %v758_v16 = vcombine.low %v585_v12, %v587_v11  ;;  %v759_v26 = vcombine.high %v585_v12, %v587_v11 }
  0x9e   : > { %v468_v15 = vpop.permute.xlu1 %467  ;;  %v466_v19 = vpop.permute.xlu0 %465  ;;  %v768_v23 = vrot.slane %v758_v16, %v10314_v5  ;;  %v775_v41 = vrot.slane %v759_v26, %v10314_v5 }
  0x9f   : > { %v10317_v17 = vsel %vm581_vm2, %v572_v13, %v468_v15  ;;  %v589_v6 = vsel %vm581_vm2, %v570_v18, %v466_v19 }
  0xa0   : > { %v760_v20 = vcombine.low %v589_v6, %v10317_v17  ;;  %v761_v21 = vcombine.high %v589_v6, %v10317_v17  ;;  %v702_v28 = vcombine.low %v587_v11, %v589_v6  ;;  %v703_v32 = vcombine.high %v587_v11, %v589_v6 }
  0xa2   : > { %v415_v22 = vpop.permute.xlu1 %414  ;;  %v10325_v24 = vrot.slane %v760_v20, %v10314_v5  ;;  %v388_v25 = vpop.permute.xlu0 %387  ;;  %v10332_v34 = vrot.slane %v761_v21, %v10314_v5  ;;  %v724_v42 = vrot.slane %v702_v28, %v10314_v5  ;;  %v731_v48 = vrot.slane %v703_v32, %v10314_v5 }
  0xa3   : > { %v545_v27 = vsel %vm543_vm0, %v10083_v33, %v388_v25 }
  0xa4   : > { %v790_v29 = vcombine.low %v768_v23, %v10325_v24  ;;  %v791_v31 = vcombine.high %v768_v23, %v10325_v24  ;;  %v564_v36 = vsel %vm562_vm1, %v545_v27, %v415_v22  ;;  %v792_v49 = vcombine.low %v775_v41, %v10332_v34 }
  0xa6   : > { %v398_v35 = vpop.permute.xlu1 %397  ;;  %v460_v38 = vpop.permute.xlu0 %459  ;;  %v799_v39 = vrot.slane %v790_v29, %v10314_v5  ;;  %v813_v40 = vrot.slane %v791_v31, %v10314_v5  ;;  %v806_v0 = vrot.slane %v792_v49, %v10314_v5 }
  0xa7   : > { %v583_v33 = vsel %vm581_vm2, %v564_v36, %v460_v38  ;;  %v555_v50 = vsel %vm543_vm0, %v10087_v37, %v398_v35 }
  0xa8   : > { %v700_v43 = vcombine.low %v583_v33, %v585_v12  ;;  %v701_v44 = vcombine.high %v583_v33, %v585_v12  ;;  %v814_v47 = vcombine.high %v799_v39, %v799_v39  ;;  %v1122_v52 = vunpack.i.h.s16 %v813_v40 }
  0xa9   : > { %v815_v56 = vcombine.high %v813_v40, %v813_v40  ;;  %v1120_v58 = vunpack.i.h.s16 %v799_v39 }
  0xaa   : > { %v425_v51 = vpop.permute.xlu1 %424  ;;  %v710_v53 = vrot.slane %v700_v43, %v10314_v5  ;;  %v717_v54 = vrot.slane %v701_v44, %v10314_v5  ;;  %v400_v55 = vpop.permute.xlu0 %399  ;;  %v1124_v57 = vunpack.i.h.s16 %v814_v47  ;;  %v8636_v4 = vpack.i.b16 %v814_v47, %v1122_v52 }
  0xab   : > { %v574_v3 = vsel %vm562_vm1, %v555_v50, %v425_v51  ;;  %v557_v37 = vsel %vm543_vm0, %v10100_v46, %v400_v55  ;;  %v1126_v16 = vunpack.i.h.s16 %v815_v56  ;;  %v8635_v6 = vpack.i.b16 %v813_v40, %v1120_v58 }
  0xac   : > { %v732_v59 = vcombine.low %v710_v53, %v724_v42  ;;  %v733_v60 = vcombine.high %v710_v53, %v724_v42  ;;  %v734_v61 = vcombine.low %v717_v54, %v731_v48  ;;  %v8637_v62 = vpack.i.b16 %v815_v56, %v1124_v57 }
  0xad   : > { %v10377_v49 = vpack.i.b16 %v806_v0, %v1126_v16 }
  0xae   : > { %v470_v2 = vpop.permute.xlu1 %469  ;;  %v741_v1 = vrot.slane %v732_v59, %v10314_v5  ;;  %v748_v9 = vrot.slane %v734_v61, %v10314_v5  ;;  %v755_v10 = vrot.slane %v733_v60, %v10314_v5  ;;  %v427_v12 = vpop.permute.xlu0 %426  ;;  %v1284_v18 = vcombine.low %v8636_v4, %v8637_v62 }
  0xaf   : > { %v593_v11 = vsel %vm581_vm2, %v574_v3, %v470_v2  ;;  %v576_v23 = vsel %vm562_vm1, %v557_v37, %v427_v12 }
  0xb0   : > { %v816_v13 = vcombine.low %v10317_v17, %v593_v11  ;;  %v817_v15 = vcombine.high %v10317_v17, %v593_v11  ;;  %v8634_v19 = vpack.i.b16 %v799_v39, %v748_v9  ;;  %v1281_v46 = vcombine.low %v741_v1, %v755_v10 }
  0xb1   : > { %v8654_v20 = vcombine.high %v741_v1, %v755_v10  ;;  %v1312_v26 = vrot.slane %v1284_v18, %v10314_v5 }
  0xb2   : > { %v10357_v21 = vrot.slane %v816_v13, %v10314_v5  ;;  %v10360_v22 = vrot.slane %v817_v15, %v10314_v5  ;;  %v402_v25 = vpop.permute.xlu1 %401  ;;  %v472_v27 = vpop.permute.xlu0 %471  ;;  %v1283_v28 = vcombine.low %v8634_v19, %v8635_v6  ;;  %v1291_v29 = vrot.slane %v1281_v46, %v10314_v5 }
  0xb3   : > { %v559_v17 = vsel %vm543_vm0, %v10131_v8, %v402_v25  ;;  %v1298_v31 = vrot.slane %v8654_v20, %v10314_v5  ;;  %v595_v38 = vsel %vm581_vm2, %v576_v23, %v472_v27 }
  0xb4   : > { %v832_v32 = vcombine.low %v724_v42, %v10357_v21  ;;  %v833_v35 = vcombine.high %v724_v42, %v10357_v21  ;;  %v834_v36 = vcombine.low %v731_v48, %v10360_v22  ;;  %v858_v39 = vcombine.low %v593_v11, %v595_v38 }
  0xb5   : > { %v859_v40 = vcombine.high %v593_v11, %v595_v38  ;;  %v1305_v41 = vrot.slane %v1283_v28, %v10314_v5  ;;  %v1314_v33 = vcombine.high %v1291_v29, %v1298_v31  ;;  %v1313_v43 = vcombine.low %v1291_v29, %v1298_v31 }
  0xb6   : > { %v429_v8 = vpop.permute.xlu1 %428  ;;  %v10374_v44 = vrot.slane %v832_v32, %v10314_v5  ;;  %v855_v47 = vrot.slane %v833_v35, %v10314_v5  ;;  %v848_v42 = vrot.slane %v834_v36, %v10314_v5  ;;  %v10381_v48 = vrot.slane %v858_v39, %v10314_v5  ;;  %v404_v51 = vpop.permute.xlu0 %403 }
  0xb7   : > { %v10384_v50 = vrot.slane %v859_v40, %v10314_v5  ;;  %v1316_v52 = vcombine.high %v1305_v41, %v1312_v26  ;;  %v578_v53 = vsel %vm562_vm1, %v559_v17, %v429_v8  ;;  %v561_v54 = vsel %vm543_vm0, %v10142_v14, %v404_v51 }
  0xb8   : > { %v1330_v55 = vrot.slane %v1314_v33, %v10314_v5  ;;  %v1315_v56 = vcombine.low %v1305_v41, %v1312_v26  ;;  %v874_v57 = vcombine.low %v10325_v24, %v10381_v48  ;;  %v875_v58 = vcombine.high %v10325_v24, %v10381_v48 }
  0xb9   : > { %v876_v59 = vcombine.low %v10332_v34, %v10384_v50  ;;  %v1344_v60 = vrot.slane %v1316_v52, %v10314_v5  ;;  %v1323_v62 = vrot.slane %v1313_v43, %v10314_v5  ;;  %v856_v14 = vcombine.high %v10374_v44, %v10374_v44 }
  0xba   : > { %v474_v61 = vpop.permute.xlu1 %473  ;;  %v1337_v0 = vrot.slane %v1315_v56, %v10314_v5  ;;  %v857_v3 = vcombine.high %v855_v47, %v855_v47  ;;  %v883_v37 = vrot.slane %v874_v57, %v10314_v5  ;;  %v897_v2 = vrot.slane %v875_v58, %v10314_v5  ;;  %v431_v4 = vpop.permute.xlu0 %430 }
  0xbb   : > { %v597_v24 = vsel %vm581_vm2, %v578_v53, %v474_v61  ;;  %v1349_v34 = vcombine.low %v10377_v49, %v10374_v44  ;;  %v890_v1 = vrot.slane %v876_v59, %v10314_v5  ;;  %v1347_v11 = vcombine.low %v1330_v55, %v1344_v60 }
  0xbc   : > { %v900_v9 = vcombine.low %v595_v38, %v597_v24  ;;  %v901_v10 = vcombine.high %v595_v38, %v597_v24  ;;  %v10407_v12 = vcombine.high %v897_v2, %v897_v2  ;;  %v1348_v13 = vcombine.high %v1330_v55, %v1344_v60 }
  0xbd   : > { %v1345_v15 = vcombine.low %v1323_v62, %v1337_v0  ;;  %v1346_v16 = vcombine.high %v1323_v62, %v1337_v0  ;;  %2070 = vmatprep.mubr.bf16.mxu0 %v1347_v11  ;;  %v10415_v46 = vcombine.high %v883_v37, %v883_v37  ;;  %v1138_v20 = vunpack.i.h.s16 %v883_v37 }
  0xbe   : > { %v10410_v18 = vrot.slane %v900_v9, %v10314_v5  ;;  %v10413_v19 = vrot.slane %v901_v10, %v10314_v5  ;;  %v490_v6 = vpop.permute.xlu1 %489  ;;  %v1144_v23 = vunpack.i.h.s16 %v10407_v12  ;;  %v580_v25 = vsel %vm562_vm1, %v561_v54, %v431_v4  ;;  %2150 = vmatprep.mubr.bf16.mxu1 %v1348_v13  ;;  %v476_v26 = vpop.permute.xlu0 %475 }
  0xbf   : > { %2071 = vmatmul.mubr.bf16.vlgmr.msra.gmra.mrb[0].mxu0 %v1345_v15  ;;  %v1140_v17 = vunpack.i.h.s16 %v897_v2  ;;  %v8639_v27 = vpack.i.b16 %v883_v37, %v848_v42  ;;  %2151 = vmatmul.mubr.bf16.vlgmr.msra.gmra.mrb[0].mxu1 %v1346_v16  ;;  %v601_v31 = vsel %vm543_vm0, %v10173_v30, %v490_v6  ;;  %v599_v32 = vsel %vm581_vm2, %v580_v25, %v476_v26 }
  0xc0   : > { %v916_v28 = vcombine.low %v10357_v21, %v10410_v18  ;;  %v918_v29 = vcombine.low %v10360_v22, %v10413_v19  ;;  %v917_v35 = vcombine.high %v10357_v21, %v10410_v18  ;;  %v942_v36 = vcombine.low %v597_v24, %v599_v32 }
  0xc1   : > { %v943_v38 = vcombine.high %v597_v24, %v599_v32  ;;  %v8640_v39 = vpack.i.b16 %v897_v2, %v1138_v20  ;;  %v10428_v40 = vpack.i.b16 %v890_v1, %v1144_v23  ;;  %v8641_v33 = vpack.i.b16 %v10415_v46, %v1140_v17 }
  0xc2   : > { %v493_v41 = vpop.permute.xlu1 %492  ;;  %v1350_v8 = vcombine.low %v855_v47, %v856_v14  ;;  %v1351_v43 = vcombine.low %v857_v3, %v8639_v27  ;;  %v10432_v22 = vrot.slane %v918_v29, %v10314_v5  ;;  %v10435_v30 = vrot.slane %v942_v36, %v10314_v5  ;;  %v512_v49 = vpop.permute.xlu0 %511 }
  0xc3   : > { %v10438_v44 = vrot.slane %v943_v38, %v10314_v5  ;;  %v603_v21 = vsel %vm562_vm1, %v601_v31, %v493_v41  ;;  %v607_v42 = vsel %vm543_vm0, %v10195_v45, %v512_v49  ;;  %v1352_v51 = vcombine.low %v8640_v39, %v8641_v33 }
  0xc4   : > { %v1359_v52 = vrot.slane %v1349_v34, %v10314_v5  ;;  %v1366_v47 = vrot.slane %v1350_v8, %v10314_v5  ;;  %v958_v53 = vcombine.low %v10381_v48, %v10435_v30  ;;  %v959_v54 = vcombine.high %v10381_v48, %v10435_v30 }
  0xc5   : > { %v960_v55 = vcombine.low %v10384_v50, %v10438_v44  ;;  %v1373_v56 = vrot.slane %v1351_v43, %v10314_v5  ;;  %v1380_v58 = vrot.slane %v1352_v51, %v10314_v5  ;;  %v10454_v60 = vrot.slane %v916_v28, %v10314_v5 }
  0xc6   : > { %v498_v57 = vpop.permute.xlu1 %497  ;;  %v1382_v45 = vcombine.high %v1359_v52, %v1366_v47  ;;  %v1381_v59 = vcombine.low %v1359_v52, %v1366_v47  ;;  %v10457_v61 = vrot.slane %v958_v53, %v10314_v5  ;;  %v10460_v62 = vrot.slane %v959_v54, %v10314_v5  ;;  %v515_v0 = vpop.permute.xlu0 %514 }
  0xc7   : > { %v605_v48 = vsel %vm581_vm2, %v603_v21, %v498_v57  ;;  %v939_v50 = vrot.slane %v917_v35, %v10314_v5  ;;  %v974_v14 = vrot.slane %v960_v55, %v10314_v5  ;;  %v1384_v2 = vcombine.high %v1373_v56, %v1380_v58 }
  0xc8   : > { %v984_v3 = vcombine.low %v599_v32, %v605_v48  ;;  %v985_v37 = vcombine.high %v599_v32, %v605_v48  ;;  %v10467_v24 = vcombine.high %v10460_v62, %v10460_v62  ;;  %v609_v4 = vsel %vm562_vm1, %v607_v42, %v515_v0 }
  0xc9   : > { %v1398_v34 = vrot.slane %v1382_v45, %v10314_v5  ;;  %v1383_v1 = vcombine.low %v1373_v56, %v1380_v58  ;;  %v1412_v11 = vrot.slane %v1384_v2, %v10314_v5  ;;  %v1391_v15 = vrot.slane %v1381_v59, %v10314_v5 }
  0xca   : > { %v10472_v9 = vrot.slane %v984_v3, %v10314_v5  ;;  %v10475_v10 = vrot.slane %v985_v37, %v10314_v5  ;;  %v534_v13 = vpop.permute.xlu1 %533  ;;  %v1162_v16 = vunpack.i.h.s16 %v10467_v24  ;;  %v520_v6 = vpop.permute.xlu0 %519  ;;  %v1142_v23 = vunpack.i.h.s16 %v10415_v46 }
  0xcb   : > { %v1405_v20 = vrot.slane %v1383_v1, %v10314_v5  ;;  %v1156_v25 = vunpack.i.h.s16 %v10457_v61  ;;  %v1415_v27 = vcombine.low %v1398_v34, %v1412_v11  ;;  %v613_v28 = vsel %vm543_vm0, %v10225_v63, %v534_v13 }
  0xcc   : > { %v1000_v26 = vcombine.low %v10410_v18, %v10472_v9  ;;  %v1001_v17 = vcombine.high %v10410_v18, %v10472_v9  ;;  %v1002_v29 = vcombine.low %v10413_v19, %v10475_v10  ;;  %v1416_v31 = vcombine.high %v1398_v34, %v1412_v11 }
  0xcd   : > { %v611_v32 = vsel %vm581_vm2, %v609_v4, %v520_v6  ;;  %v1413_v35 = vcombine.low %v1391_v15, %v1405_v20  ;;  %v10492_v46 = vpack.i.b16 %v974_v14, %v1162_v16  ;;  %2078 = vmatprep.mubr.bf16.mxu0 %v1415_v27  ;;  %v1414_v39 = vcombine.high %v1391_v15, %v1405_v20 }
  0xce   : > { %v1026_v36 = vcombine.low %v605_v48, %v611_v32  ;;  %v1027_v38 = vcombine.high %v605_v48, %v611_v32  ;;  %v542_v41 = vpop.permute.xlu1 %541  ;;  %2158 = vmatprep.mubr.bf16.mxu1 %v1416_v31  ;;  %v537_v33 = vpop.permute.xlu0 %536  ;;  %v8642_v8 = vpack.i.b16 %v10407_v12, %v1142_v23  ;;  %v8644_v63 = vpack.i.b16 %v10457_v61, %v10432_v22 }
  0xcf   : > { %2079 = vmatmul.mubr.bf16.gmra.mrb[4].mxu0 %v1413_v35  ;;  %v8645_v19 = vpack.i.b16 %v10460_v62, %v1156_v25  ;;  %2159 = vmatmul.mubr.bf16.gmra.mrb[4].mxu1 %v1414_v39  ;;  %v615_v49 = vsel %vm562_vm1, %v613_v28, %v537_v33  ;;  %v1418_v42 = vcombine.low %v10454_v60, %v939_v50  ;;  %v1158_v48 = vunpack.i.h.s16 %v10460_v62 }
  0xd0   : > { %v1034_v43 = vrot.slane %v1026_v36, %v10314_v5  ;;  %v1041_v21 = vrot.slane %v1027_v38, %v10314_v5  ;;  %v617_v51 = vsel %vm581_vm2, %v615_v49, %v542_v41  ;;  %v1417_v52 = vcombine.low %v8642_v8, %v10428_v40 }
  0xd1   : > { %v8655_v12 = vcombine.high %v10454_v60, %v939_v50  ;;  %v1420_v47 = vcombine.low %v8644_v63, %v8645_v19  ;;  %v1016_v22 = vrot.slane %v1002_v29, %v10314_v5  ;;  %v1068_v55 = vcombine.low %v611_v32, %v617_v51 }
  0xd2   : > { %v1042_v53 = vcombine.low %v10435_v30, %v1034_v43  ;;  %v1043_v54 = vcombine.high %v10435_v30, %v1034_v43  ;;  %v1044_v56 = vcombine.low %v10438_v44, %v1041_v21  ;;  %v1069_v57 = vcombine.high %v611_v32, %v617_v51 }
  0xd3   : > { %v1427_v58 = vrot.slane %v1417_v52, %v10314_v5  ;;  %v1434_v45 = vrot.slane %v1418_v42, %v10314_v5  ;;  %v1076_v40 = vrot.slane %v1068_v55, %v10314_v5  ;;  %v1441_v60 = vrot.slane %v8655_v12, %v10314_v5 }
  0xd4   : > { %v1065_v59 = vrot.slane %v1043_v54, %v10314_v5  ;;  %v1083_v0 = vrot.slane %v1069_v57, %v10314_v5  ;;  %v1448_v30 = vrot.slane %v1420_v47, %v10314_v5  ;;  %v1051_v44 = vrot.slane %v1042_v53, %v10314_v5 }
  0xd5   : > { %v1450_v50 = vcombine.high %v1427_v58, %v1434_v45  ;;  %v1449_v14 = vcombine.low %v1427_v58, %v1434_v45  ;;  %v1084_v37 = vcombine.low %v10472_v9, %v1076_v40  ;;  %v1085_v2 = vcombine.high %v10472_v9, %v1076_v40 }
  0xd6   : > { %v1067_v3 = vcombine.high %v1065_v59, %v1065_v59  ;;  %v1058_v4 = vrot.slane %v1044_v56, %v10314_v5  ;;  %v1086_v34 = vcombine.low %v10475_v10, %v1083_v0  ;;  %v1452_v1 = vcombine.high %v1441_v60, %v1448_v30 }
  0xd7   : > { %v1451_v11 = vcombine.low %v1441_v60, %v1448_v30  ;;  %v1093_v62 = vrot.slane %v1084_v37, %v10314_v5  ;;  %v1107_v13 = vrot.slane %v1085_v2, %v10314_v5  ;;  %v1466_v15 = vrot.slane %v1450_v50, %v10314_v5 }
  0xd8   : > { %v982_v16 = vcombine.high %v10457_v61, %v10457_v61  ;;  %v1480_v6 = vrot.slane %v1452_v1, %v10314_v5  ;;  %v1459_v20 = vrot.slane %v1449_v14, %v10314_v5  ;;  %v1009_v25 = vrot.slane %v1000_v26, %v10314_v5 }
  0xd9   : > { %v1473_v23 = vrot.slane %v1451_v11, %v10314_v5  ;;  %v1180_v10 = vunpack.i.h.s16 %v1067_v3  ;;  %v1100_v27 = vrot.slane %v1086_v34, %v10314_v5  ;;  %v1555_v28 = vcombine.low %v1093_v62, %v1107_v13 }
  0xda   : > { %v1023_v29 = vrot.slane %v1001_v17, %v10314_v5  ;;  %v8656_v31 = vcombine.high %v1093_v62, %v1107_v13  ;;  %v1483_v32 = vcombine.low %v1466_v15, %v1480_v6  ;;  %v1484_v61 = vcombine.high %v1466_v15, %v1480_v6 }
  0xdb   : > { %v1481_v35 = vcombine.low %v1459_v20, %v1473_v23  ;;  %v1482_v36 = vcombine.high %v1459_v20, %v1473_v23  ;;  %v1024_v38 = vcombine.high %v1009_v25, %v1009_v25  ;;  %v1160_v41 = vunpack.i.h.s16 %v982_v16 }
  0xdc   : > { %v1025_v39 = vcombine.high %v1023_v29, %v1023_v29  ;;  %2086 = vmatprep.mubr.bf16.mxu0 %v1483_v32  ;;  %2166 = vmatprep.mubr.bf16.mxu1 %v1484_v61  ;;  %v8646_v26 = vpack.i.b16 %v982_v16, %v1158_v48  ;;  %v8649_v33 = vpack.i.b16 %v1051_v44, %v1016_v22  ;;  %v1174_v63 = vunpack.i.h.s16 %v1051_v44  ;;  %v8691_v61 = vld [vmem:[%s14022_s4 + $0x100] sm:$0xff] }
  0xdd   : > { %v1486_v8 = vcombine.low %v10492_v46, %v1009_v25  ;;  %2087 = vmatmul.mubr.bf16.gmra.mrb[8].mxu0 %v1481_v35  ;;  %2167 = vmatmul.mubr.bf16.gmra.mrb[8].mxu1 %v1482_v36  ;;  %v8647_v18 = vpack.i.b16 %v10467_v24, %v1160_v41  ;;  %v1487_v9 = vcombine.low %v1023_v29, %v1024_v38  ;;  %v1176_v19 = vunpack.i.h.s16 %v1065_v59  ;;  %v8692_v35 = vld [vmem:[%s14022_s4 + $0x108] sm:$0xff]  ;;  %v8709_v36 = vld [vmem:[%s14022_s4 + $0x200] sm:$0xff] }
  0xde   : > { %v1066_v17 = vcombine.high %v1051_v44, %v1051_v44  ;;  %v8653_v43 = vpack.i.b16 %v1058_v4, %v1180_v10  ;;  %v1488_v21 = vcombine.low %v1025_v39, %v8649_v33  ;;  %v8650_v49 = vpack.i.b16 %v1065_v59, %v1174_v63  ;;  %v8710_v41 = vld [vmem:[%s14022_s4 + $0x208] sm:$0xff]  ;;  %v8693_v33 = vld [vmem:[%s14022_s4 + $0x110] sm:$0xff] }
  0xdf   : > { %v1485_v42 = vcombine.low %v8646_v26, %v8647_v18  ;;  %v1502_v51 = vrot.slane %v1486_v8, %v10314_v5  ;;  %v1509_v47 = vrot.slane %v1487_v9, %v10314_v5  ;;  %v1577_v22 = vrot.slane %v1555_v28, %v10314_v5  ;;  %v8694_v8 = vld [vmem:[%s14022_s4 + $0x118] sm:$0xff]  ;;  %v8711_v18 = vld [vmem:[%s14022_s4 + $0x210] sm:$0xff] }
  0xe0   : > { %v1178_v52 = vunpack.i.h.s16 %v1066_v17  ;;  %v8651_v12 = vpack.i.b16 %v1066_v17, %v1176_v19  ;;  %v1516_v46 = vrot.slane %v1488_v21, %v10314_v5  ;;  %v1584_v53 = vrot.slane %v8656_v31, %v10314_v5  ;;  %v8712_v9 = vld [vmem:[%s14022_s4 + $0x218] sm:$0xff]  ;;  %v8695_v19 = vld [vmem:[%s14022_s4 + $0x120] sm:$0xff] }
  0xe1   : > { %v1190_v24 = vunpack.i.l.s16 %v1100_v27  ;;  %v1495_v54 = vrot.slane %v1485_v42, %v10314_v5  ;;  %v14025_v38 = vmov 0.0|0.0   ;;  %v9703_v39 = vpack.c.bf16 %v8692_v35, %v8691_v61  ;;  %v8713_v42 = vld [vmem:[%s14022_s4 + $0x220] sm:$0xff]  ;;  %v8715_v61 = vld [vmem:[%s14022_s4 + $0x230] sm:$0xff]  ;;  %v8716_v35 = vld [vmem:[%s14022_s4 + $0x238] sm:$0xff] }
  0xe2   : > { %v8652_v55 = vpack.i.b16 %v1067_v3, %v1178_v52  ;;  %v1520_v56 = vcombine.high %v1509_v47, %v1516_v46  ;;  %v1519_v57 = vcombine.low %v1509_v47, %v1516_v46  ;;  %v1553_v58 = vcombine.low %v8650_v49, %v8651_v12  ;;  %9702 = vmatprep.subr.bf16.mxu0 %v14025_v38  ;;  %v8633_v49 = vld [vmem:[%s14020_s2] ss:$0 sm:$0xff] }
  0xe3   : > { %v1518_v45 = vcombine.high %v1495_v54, %v1502_v51  ;;  %v1517_v59 = vcombine.low %v1495_v54, %v1502_v51  ;;  %v1588_v0 = vcombine.high %v1577_v22, %v1584_v53  ;;  %v1627_v44 = vrot.slane %v1190_v24, %v10314_v5  ;;  %9726 = vmatprep.subr.bf16.mxu1 %v14025_v38  ;;  %v8714_v51 = vld [vmem:[%s14022_s4 + $0x228] sm:$0xff]  ;;  %v10608_v54 = vpop.permute.xlu0 %2984 }
  0xe4   : > { %v1554_v40 = vcombine.low %v8652_v55, %v8653_v43  ;;  %v1548_v60 = vrot.slane %v1520_v56, %v10314_v5  ;;  %v1541_v48 = vrot.slane %v1519_v57, %v10314_v5  ;;  %v1563_v3 = vrot.slane %v1553_v58, %v10314_v5  ;;  %9704 = vmatpush3.bf16.msra.mxu0 %v9703_v39  ;;  %v8696_v43 = vld [vmem:[%s14022_s4 + $0x128] sm:$0xff] }
  0xe5   : > { %v1534_v30 = vrot.slane %v1518_v45, %v10314_v5  ;;  %v1527_v50 = vrot.slane %v1517_v59, %v10314_v5  ;;  %v1616_v11 = vrot.slane %v1588_v0, %v10314_v5  ;;  %v1587_v13 = vcombine.low %v1577_v22, %v1584_v53  ;;  %9705 = vmatprep.subr.bf16.mxu0 %v14025_v38  ;;  %v10606_v53 = vpop.permute.xlu1 %2992 }
  0xe6   : > { %v1570_v14 = vrot.slane %v1554_v40, %v10314_v5  ;;  %v1628_v15 = vcombine.high %v1627_v44, %v1627_v44  ;;  %v1635_v31 = vrot.slane %v1627_v44, %v10314_v5  ;;  %v9727_v26 = vpack.c.bf16 %v8710_v41, %v8709_v36 }
  0xe7   : > { %v1551_v37 = vcombine.low %v1534_v30, %v1548_v60  ;;  %v1552_v2 = vcombine.high %v1534_v30, %v1548_v60  ;;  %v1549_v4 = vcombine.low %v1527_v50, %v1541_v48  ;;  %v1550_v34 = vcombine.high %v1527_v50, %v1541_v48  ;;  %v10621_v0 = vpop.permute.xlu0 %3008 }
  0xe8   : > { %v1586_v1 = vcombine.high %v1563_v3, %v1570_v14  ;;  %v1585_v62 = vcombine.low %v1563_v3, %v1570_v14  ;;  %v1609_v25 = vrot.slane %v1587_v13, %v10314_v5  ;;  %v1642_v10 = vrot.slane %v1628_v15, %v10314_v5  ;;  %9728 = vmatpush3.bf16.msra.mxu1 %v9727_v26  ;;  %v8697_v3 = vld [vmem:[%s14022_s4 + $0x130] sm:$0xff] }
  0xe9   : > { %2094 = vmatprep.mubr.bf16.mxu0 %v1551_v37  ;;  %2174 = vmatprep.mubr.bf16.mxu1 %v1552_v2  ;;  %v1643_v32 = vcombine.high %v1635_v31, %v1635_v31  ;;  %v9706_v63 = vpack.c.bf16 %v8694_v8, %v8693_v33  ;;  %v9730_v17 = vpack.c.bf16 %v8712_v9, %v8711_v18  ;;  %v10615_v58 = vpop.permute.xlu1 %3000  ;;  %v8698_v37 = vld [vmem:[%s14022_s4 + $0x138] sm:$0xff]  ;;  %v14027_v8 = vmov 0.0  }
  0xea   : > { %2095 = vmatmul.mubr.bf16.gmra.mrb[12].mxu0 %v1549_v4  ;;  %2175 = vmatmul.mubr.bf16.gmra.mrb[12].mxu1 %v1550_v34  ;;  %v1602_v16 = vrot.slane %v1586_v1, %v10314_v5  ;;  %v1595_v23 = vrot.slane %v1585_v62, %v10314_v5  ;;  %v1644_v29 = vcombine.high %v1642_v10, %v1642_v10 }
  0xeb   : > { %9729 = vmatprep.subr.bf16.mxu1 %v14025_v38  ;;  %9707 = vmatpush3.bf16.msra.mxu0 %v9706_v63  ;;  %v9709_v21 = vpack.c.bf16 %v8696_v43, %v8695_v19  ;;  %v9733_v52 = vpack.c.bf16 %v8714_v51, %v8713_v42  ;;  %v1191_v12 = vcombine.high %v8633_v49, %v8633_v49  ;;  %v10681_v42 = vsub.s32 0, %v10306_v7 }
  0xec   : > { %v1619_v6 = vcombine.low %v1602_v16, %v1616_v11  ;;  %v1620_v20 = vcombine.high %v1602_v16, %v1616_v11  ;;  %v1617_v27 = vcombine.low %v1595_v23, %v1609_v25  ;;  %v1618_v28 = vcombine.high %v1595_v23, %v1609_v25  ;;  %9708 = vmatprep.subr.bf16.mxu0 %v14025_v38 }
  0xed   : > { %9731 = vmatpush3.bf16.msra.mxu1 %v9730_v17  ;;  %v1198_v47 = vrot.slane %v8633_v49, %v10314_v5  ;;  %v1205_v46 = vrot.slane %v1191_v12, %v10314_v5  ;;  %14163 = vst [vmem:[#allocation5_spill] sm:$0xff] %v10621_v0  ;;  %v10632_v1 = vpop.permute.xlu1 %3016  ;;  %v9712_v11 = vpack.c.bf16 %v8698_v37, %v8697_v3  ;;  %14172 = vst [vmem:[#allocation14_spill] sm:$0xff] %v10681_v42 }
  0xee   : > { %2102 = vmatprep.mubr.bf16.mxu0 %v1619_v6  ;;  %2182 = vmatprep.mubr.bf16.mxu1 %v1620_v20  ;;  %14164 = vst [vmem:[#allocation6_spill] sm:$0xff] %v10632_v1  ;;  %v9736_v41 = vpack.c.bf16 %v8716_v35, %v8715_v61  ;;  %v14185_v1 = vrot.slane %v10608_v54, %v10681_v42 }
  0xef   : > { %9732 = vmatprep.subr.bf16.mxu1 %v14025_v38  ;;  %9710 = vmatpush3.bf16.msra.mxu0 %v9709_v21  ;;  %v1206_v22 = vcombine.high %v1198_v47, %v1198_v47  ;;  %v1207_v24 = vcombine.high %v1205_v46, %v1205_v46  ;;  %v10611_v55 = vrot.slane %v1198_v47, %v10314_v5 }
  0xf0   : > { %9711 = vmatprep.subr.bf16.mxu0 %v14025_v38  ;;  %v1221_v56 = vrot.slane %v1205_v46, %v10314_v5 }
  0xf1   : > { %9734 = vmatpush3.bf16.msra.mxu1 %v9733_v52  ;;  %14162 = vst [vmem:[#allocation4_spill] sm:$0xff] %v10611_v55  ;;  %v1228_v57 = vrot.slane %v1206_v22, %v10314_v5  ;;  %v1235_v45 = vrot.slane %v1207_v24, %v10314_v5  ;;  %v1236_v59 = vcombine.high %v10611_v55, %v10611_v55  ;;  %v10686_v52 = vsub.s32 3, %v10306_v7 }
  0xf2   : > { %2103 = vmatmul.mubr.bf16.gmra.mrb[16].mxu0 %v1617_v27  ;;  %2183 = vmatmul.mubr.bf16.gmra.mrb[16].mxu1 %v1618_v28  ;;  %v1237_v40 = vcombine.high %v1221_v56, %v1221_v56  ;;  %v1910_v44 = vcombine.low %v10611_v55, %v10611_v55  ;;  %v10643_v27 = vpop.permute.xlu0 %3024  ;;  %v10691_v22 = vsub.s32 1, %v10306_v7  ;;  %v10694_v24 = vsub.s32 2, %v10306_v7 }
  0xf3   : > { %2110 = vmatprep.mubr.bf16.mxu0 %v1642_v10  ;;  %2190 = vmatprep.mubr.bf16.mxu1 %v1644_v29  ;;  %v1238_v60 = vcombine.high %v1228_v57, %v1228_v57  ;;  %v1861_v48 = vcombine.low %v10611_v55, %v1228_v57  ;;  %v8689_v30 = vcombine.high %v10611_v55, %v1228_v57  ;;  %v10646_v29 = vpop.permute.xlu1 %3032 }
  0xf4   : > { %9735 = vmatprep.subr.bf16.mxu1 %v14025_v38  ;;  %v1863_v50 = vcombine.low %v1221_v56, %v1235_v45  ;;  %v8690_v14 = vcombine.high %v1221_v56, %v1235_v45  ;;  %v1911_v2 = vcombine.low %v1228_v57, %v1236_v59  ;;  %v1913_v34 = vcombine.low %v1235_v45, %v1237_v40 }
  0xf5   : > { %v1912_v4 = vcombine.low %v1238_v60, %v1221_v56  ;;  %v1239_v62 = vcombine.high %v1235_v45, %v1235_v45  ;;  %9713 = vmatpush3.bf16.msra.mxu0 %v9712_v11  ;;  %v1871_v13 = vrot.slane %v1861_v48, %v10314_v5  ;;  %v1878_v15 = vrot.slane %v8689_v30, %v10314_v5 }
  0xf6   : > { %v1885_v16 = vrot.slane %v1863_v50, %v10314_v5  ;;  %v1892_v6 = vrot.slane %v8690_v14, %v10314_v5  ;;  %9714 = vmatprep.subr.bf16.mxu0 %v14025_v38  ;;  %v1920_v20 = vrot.slane %v1910_v44, %v10314_v5  ;;  %v1927_v23 = vrot.slane %v1911_v2, %v10314_v5  ;;  %v10654_v26 = vpop.permute.xlu0 %2976 }
  0xf7   : > { %v1934_v25 = vrot.slane %v1912_v4, %v10314_v5  ;;  %v1941_v10 = vrot.slane %v1913_v34, %v10314_v5  ;;  %14165 = vst [vmem:[#allocation7_spill] sm:$0xff] %v10643_v27  ;;  %v1959_v28 = vcombine.low %v1239_v62, %v10611_v55  ;;  %14166 = vst [vmem:[#allocation8_spill] sm:$0xff] %v10646_v29  ;;  %9737 = vmatpush3.bf16.msra.mxu1 %v9736_v41  ;;  %v10674_v19 = vpop.permute.xlu1 %3040 }
  0xf8   : > { %v1942_v36 = vcombine.low %v1920_v20, %v1927_v23  ;;  %9738 = vmatprep.subr.bf16.mxu1 %v14025_v38  ;;  %14170 = vst [vmem:[#allocation12_spill] sm:$0xff] %v10674_v19  ;;  %v1968_v21 = vcombine.low %v1878_v15, %v1885_v16  ;;  %v1984_v47 = vcombine.low %v1892_v6, %v1920_v20  ;;  %v10699_v45 = vsub.s32 4, %v10306_v7 }
  0xf9   : > { %v1943_v39 = vcombine.low %v1934_v25, %v1941_v10  ;;  %v1966_v33 = vrot.slane %v1959_v28, %v10314_v5  ;;  %v1985_v46 = vcombine.low %v1927_v23, %v1934_v25  ;;  %v10708_v60 = vsub.s32 5, %v10306_v7 }
  0xfa   : > { %2111 = vmatmul.mubr.bf16.gmra.mrb[20].mxu0 %v1635_v31  ;;  %2191 = vmatmul.mubr.bf16.gmra.mrb[20].mxu1 %v1643_v32  ;;  %v1893_v31 = vcombine.low %v1871_v13, %v1878_v15  ;;  %v1894_v32 = vcombine.low %v1885_v16, %v1892_v6  ;;  %v10669_v9 = vrot.slane %v1942_v36, %v10314_v5  ;;  %v10688_v12 = vpop.permute.xlu0 %2980  ;;  %v10717_v14 = vsub.s32 6, %v10306_v7 }
  0xfb   : > { %9222 = vmatprep.mubr.msk.f32.mxu0 %vm9983_vm3, %v14027_v8  ;;  %9284 = vmatprep.mubr.msk.f32.mxu1 %vm9983_vm3, %v14027_v8  ;;  %v10672_v17 = vrot.slane %v1943_v39, %v10314_v5  ;;  %v1967_v43 = vcombine.low %v1966_v33, %v1871_v13  ;;  %v2001_v57 = vcombine.low %v1941_v10, %v1966_v33  ;;  %v10710_v48 = vpop.permute.xlu1 %2988  ;;  %v10720_v44 = vsub.s32 7, %v10306_v7 }
  0xfc   : > { %v10660_v63 = vrot.slane %v1893_v31, %v10314_v5  ;;  %v10663_v18 = vrot.slane %v1894_v32, %v10314_v5  ;;  %14168 = vst [vmem:[#allocation10_spill] sm:$0xff] %v10669_v9  ;;  %v10705_v40 = vrot.slane %v1968_v21, %v10314_v5  ;;  %14175 = vst [vmem:[#allocation17_spill] sm:$0xff] %v10708_v60 }
  0xfd   : > { %14169 = vst [vmem:[#allocation11_spill] sm:$0xff] %v10672_v17  ;;  %v1958_v51 = vcombine.low %v10669_v9, %v10672_v17  ;;  %v10702_v59 = vrot.slane %v1967_v43, %v10314_v5  ;;  %v10727_v2 = vrot.slane %v1984_v47, %v10314_v5  ;;  %v10730_v4 = vrot.slane %v1985_v46, %v10314_v5 }
  0xfe   : > { %14167 = vst [vmem:[#allocation9_spill] sm:$0xff] %v10663_v18  ;;  %v10678_v49 = vcombine.low %v10660_v63, %v10663_v18  ;;  %14174 = vst [vmem:[#allocation16_spill] sm:$0xff] %v10705_v40  ;;  %v10732_v34 = vpop.permute.xlu0 %2996  ;;  %v10741_v15 = vrot.slane %v2001_v57, %v10314_v5 }
  0xff   : > { %14173 = vst [vmem:[#allocation15_spill] sm:$0xff] %v10702_v59  ;;  %14176 = vst [vmem:[#allocation18_spill] sm:$0xff] %v10730_v4  ;;  %v10767_v39 = vpop.permute.xlu1 %3004 }
 0x100   : > { %14171 = vst [vmem:[#allocation13_spill] sm:$0xff] %v10678_v49  ;;  %14177 = vst [vmem:[#allocation19_spill] sm:$0xff] %v10732_v34 }
 0x101   : > { %14178 = vst [vmem:[#allocation20_spill] sm:$0xff] %v10741_v15  ;;  %14179 = vst [vmem:[#allocation21_spill] sm:$0xff] %v10767_v39 }
 0x102   : > { %v10785_v33 = vpop.permute.xlu0 %3012 }
 0x103   : > { %14180 = vst [vmem:[#allocation22_spill] sm:$0xff] %v10785_v33 }
 0x192   : > { %v8910_v47 = vpop.f32.mrb[0].mxu0  ;;  %v8962_v25 = vpop.f32.mrb[0].mxu1 }
 0x193   : > { %v8911_v35 = vpop.f32.mrb[1].mxu0  ;;  %v8963_v41 = vpop.f32.mrb[1].mxu1 }
 0x194   : > { %v8912_v38 = vadd.f32 %v8911_v35, %v8910_v47  ;;  %v8913_v36 = vpop.f32.mrb[2].mxu0  ;;  %v8964_v61 = vadd.f32 %v8963_v41, %v8962_v25  ;;  %v8965_v43 = vpop.f32.mrb[2].mxu1 }
 0x195   : > { %v8914_v32 = vpop.f32.mrb[3].mxu0  ;;  %v8966_v62 = vpop.f32.mrb[3].mxu1 }
 0x196   : > { %v2073_v8 = vadd.f32 %v8912_v38, %v10678_v49  ;;  %v8915_v57 = vadd.f32 %v8914_v32, %v8913_v36  ;;  %v10812_v41 = vpop.permute.xlu1 %3020  ;;  %v8967_v21 = vadd.f32 %v8966_v62, %v8965_v43  ;;  %v10840_v25 = vpop.permute.xlu0 %3028 }
 0x197   : > { %14181 = vst [vmem:[#allocation23_spill] sm:$0xff] %v10812_v41  ;;  %14182 = vst [vmem:[#allocation24_spill] sm:$0xff] %v10840_v25 }
 0x198   : > { %v2153_v32 = vadd.f32 %v8964_v61, %v2073_v8  ;;  %v2076_v36 = vadd.f32 %v8915_v57, %v1958_v51 }
 0x19a   : > { %v2209_v61 = vcombine.high %v2153_v32, %v2153_v32  ;;  %v10836_v51 = vrot.slane %v2153_v32, %v10314_v5  ;;  %v2156_v57 = vadd.f32 %v8967_v21, %v2076_v36  ;;  %v10855_v46 = vpop.permute.xlu1 %3036 }
 0x19b   : > { %14183 = vst [vmem:[#allocation25_spill] sm:$0xff] %v10855_v46 }
 0x19c   : > { %v2223_v32 = vrot.slane %v2209_v61, %v10314_v5  ;;  %v2224_v21 = vcombine.high %v10836_v51, %v10836_v51  ;;  %v2258_v36 = vcombine.high %v2156_v57, %v2156_v57  ;;  %v2265_v43 = vrot.slane %v2156_v57, %v10314_v5 }
 0x19d   : > { %v10936_v55 = vrot.slane %v10836_v51, %v10314_v5  ;;  %v14186_v51 = vrot.slane %v10608_v54, %v10691_v22 }
 0x19e   : > { %v2225_v8 = vcombine.high %v2223_v32, %v2223_v32  ;;  %v2272_v57 = vrot.slane %v2258_v36, %v10314_v5  ;;  %v2273_v11 = vcombine.high %v2265_v43, %v2265_v43  ;;  %v10876_v61 = vrot.slane %v2224_v21, %v10314_v5  ;;  %v10885_v36 = vpop.permute.xlu0 %3044 }
 0x19f   : > { %v10879_v47 = vrot.slane %v2265_v43, %v10314_v5  ;;  %14184 = vst [vmem:[#allocation26_spill] sm:$0xff] %v10885_v36  ;;  %v10888_v28 = vrot.slane %v2223_v32, %v10314_v5 }
 0x1a0   : > { %v2274_v35 = vcombine.high %v2272_v57, %v2272_v57  ;;  %v2253_v43 = vrot.slane %v2225_v8, %v10314_v5  ;;  %v2295_v3 = vrot.slane %v2273_v11, %v10314_v5  ;;  %v2256_v62 = vcombine.high %v10876_v61, %v10876_v61 }
 0x1a1   : > { %v2303_v23 = vcombine.high %v10879_v47, %v10879_v47  ;;  %v2798_v8 = vmul.f32 0.2, %v10888_v28  ;;  %v2288_v20 = vrot.slane %v2272_v57, %v10314_v5 }
 0x1a2   : > { %v8916_v37 = vpop.f32.mrb[4].mxu0  ;;  %v10903_v13 = vrot.slane %v2274_v35, %v10314_v5  ;;  %v8968_v38 = vpop.f32.mrb[4].mxu1  ;;  %v2305_v21 = vcombine.high %v2295_v3, %v2295_v3  ;;  %v2803_v16 = vmul.f32 0.2, %v2295_v3  ;;  %v2799_v6 = vmul.f32 0.2, %v2253_v43 }
 0x1a3   : > { %v8917_v31 = vpop.f32.mrb[5].mxu0  ;;  %v8969_v32 = vpop.f32.mrb[5].mxu1  ;;  %v2804_v50 = vmul.f32 0.2, %v2303_v23  ;;  %v2255_v35 = vcombine.high %v10888_v28, %v10888_v28  ;;  %v2797_v49 = vmul.f32 0.2, %v2256_v62 }
 0x1a4   : > { %v10913_v10 = vpop.f32.mrb[6].mxu0  ;;  %v10921_v30 = vpop.f32.mrb[6].mxu1  ;;  %v2805_v46 = vmul.f32 0.2, %v2305_v21  ;;  %v2807_v57 = vmul.f32 0.2, %v10903_v13  ;;  %v2884_v41 = vmax.f32 %v2295_v3, %v2803_v16  ;;  %v2879_v16 = vmax.f32 %v10888_v28, %v2798_v8 }
 0x1a5   : > { %v10923_v56 = vpop.f32.mrb[7].mxu0  ;;  %v10932_v36 = vpop.f32.mrb[7].mxu1  ;;  %v2885_v25 = vmax.f32 %v2303_v23, %v2804_v50  ;;  %v2806_v27 = vmul.f32 0.2, %v2288_v20  ;;  %v2880_v33 = vmax.f32 %v2253_v43, %v2799_v6  ;;  %v8918_v50 = vadd.f32 %v8917_v31, %v8916_v37 }
 0x1a6   : > { %v2886_v11 = vmax.f32 %v2305_v21, %v2805_v46  ;;  %v3460_v17 = vmul.f32 %v14185_v1, %v2884_v41  ;;  %v2888_v23 = vmax.f32 %v10903_v13, %v2807_v57  ;;  %v14187_v46 = vrot.slane %v10608_v54, %v10694_v24 }
 0x1a7   : > { %v3461_v39 = vmul.f32 %v14186_v51, %v2885_v25  ;;  %v8970_v7 = vadd.f32 %v8969_v32, %v8968_v38  ;;  %v2800_v1 = vmul.f32 0.2, %v2255_v35  ;;  %v10957_v41 = vcombine.high %v10936_v55, %v10936_v55 }
 0x1a8   : > { %v10953_v21 = vmul.f32 %v14187_v46, %v2886_v11  ;;  %v2878_v28 = vmax.f32 %v2256_v62, %v2797_v49  ;;  %v14188_v6 = vcombine.low %v10702_v59, %v10705_v40  ;;  %v2887_v31 = vmax.f32 %v2288_v20, %v2806_v27 }
 0x1a9   : > { %v3585_v25 = vcombine.low %v3460_v17, %v3461_v39  ;;  %v2881_v11 = vmax.f32 %v2255_v35, %v2800_v1  ;;  %v2257_v38 = vcombine.high %v2253_v43, %v2253_v43  ;;  %v14189_v32 = vrot.slane %v10654_v26, %v10699_v45 }
 0x1aa   : > { %v2081_v8 = vadd.f32 %v8918_v50, %v14188_v6  ;;  %v4796_v57 = vcombine.low %v3461_v39, %v10953_v21  ;;  %v14190_v49 = vrot.slane %v10654_v26, %v10708_v60  ;;  %v2794_v50 = vmul.f32 0.2, %v10936_v55 }
 0x1ab   : > { %v3455_v46 = vmul.f32 %v14189_v32, %v2879_v16  ;;  %v2795_v6 = vmul.f32 0.2, %v10876_v61  ;;  %v14191_v27 = vrot.slane %v10654_v26, %v10717_v14  ;;  %v14194_v43 = vrot.slane %v10654_v26, %v10686_v52 }
 0x1ac   : > { %v2161_v51 = vadd.f32 %v8970_v7, %v2081_v8  ;;  %v3456_v62 = vmul.f32 %v14190_v49, %v2880_v33  ;;  %v14192_v7 = vrot.slane %v10608_v54, %v10699_v45  ;;  %v2796_v8 = vmul.f32 0.2, %v10957_v41 }
 0x1ad   : > { %v10976_v17 = vmul.f32 %v14191_v27, %v2881_v11  ;;  %v10986_v35 = vmul.f32 %v14194_v43, %v2878_v28  ;;  %v14195_v11 = vrot.slane %v10608_v54, %v10686_v52  ;;  %v10996_v49 = vrot.slane %v3585_v25, %v10314_v5 }
 0x1ae   : > { %v10981_v39 = vmul.f32 %v14192_v7, %v2888_v23  ;;  %v2307_v33 = vcombine.high %v2161_v51, %v2161_v51  ;;  %v2314_v16 = vrot.slane %v2161_v51, %v10314_v5  ;;  %v3913_v1 = vcombine.low %v3455_v46, %v3456_v62 }
 0x1af   : > { %v10993_v32 = vmul.f32 %v14195_v11, %v2887_v31  ;;  %14196 = vst [vmem:[#allocation28_spill] sm:$0xff] %v10996_v49  ;;  %v4795_v23 = vcombine.low %v3456_v62, %v10976_v17  ;;  %v2801_v51 = vmul.f32 0.2, %v2257_v38  ;;  %v11007_v31 = vcombine.high %v2288_v20, %v2288_v20 }
 0x1b0   : > { %14193 = vst [vmem:[#allocation27_spill] sm:$0xff] %v10981_v39  ;;  %v8922_v27 = vpop.f32.mrb[8].mxu0  ;;  %v10999_v7 = vpop.f32.mrb[8].mxu1  ;;  %v2321_v28 = vrot.slane %v2307_v33, %v10314_v5  ;;  %v2322_v43 = vcombine.high %v2314_v16, %v2314_v16  ;;  %v11003_v37 = vrot.slane %v3913_v1, %v10314_v5  ;;  %v11013_v62 = vrot.slane %v4796_v57, %v10314_v5 }
 0x1b1   : > { %v8923_v3 = vpop.f32.mrb[9].mxu0  ;;  %v11005_v40 = vpop.f32.mrb[9].mxu1  ;;  %v11010_v25 = vrot.slane %v4795_v23, %v10314_v5  ;;  %v4842_v11 = vcombine.low %v10993_v32, %v10981_v39  ;;  %v4794_v20 = vcombine.low %v10986_v35, %v3455_v46  ;;  %v2802_v39 = vmul.f32 0.2, %v10879_v47 }
 0x1b2   : > { %14197 = vst [vmem:[#allocation29_spill] sm:$0xff] %v11003_v37  ;;  %14198 = vst [vmem:[#allocation30_spill] sm:$0xff] %v11013_v62  ;;  %v11017_v33 = vpop.f32.mrb[10].mxu0  ;;  %v11019_v59 = vpop.f32.mrb[10].mxu1  ;;  %v11022_v1 = vrot.slane %v2321_v28, %v10314_v5  ;;  %v11025_v0 = vrot.slane %v2322_v43, %v10314_v5  ;;  %v2875_v46 = vmax.f32 %v10936_v55, %v2794_v50  ;;  %v11049_v9 = vmul.f32 0.2, %v11007_v31 }
 0x1b3   : > { %14199 = vst [vmem:[#allocation31_spill] sm:$0xff] %v11019_v59  ;;  %v11028_v23 = vpop.f32.mrb[11].mxu0  ;;  %v11030_v34 = vpop.f32.mrb[11].mxu1  ;;  %v2876_v29 = vmax.f32 %v10876_v61, %v2795_v6  ;;  %v2323_v49 = vcombine.high %v2321_v28, %v2321_v28  ;;  %v11053_v55 = vrot.slane %v4794_v20, %v10314_v5  ;;  %v14203_v6 = vrot.slane %v10654_v26, %v10681_v42 }
 0x1b4   : > { %14200 = vst [vmem:[#allocation32_spill] sm:$0xff] %v11028_v23  ;;  %14201 = vst [vmem:[#allocation33_spill] sm:$0xff] %v11030_v34  ;;  %v2354_v59 = vcombine.high %v11025_v0, %v11025_v0  ;;  %v2882_v34 = vmax.f32 %v2257_v38, %v2801_v51  ;;  %v2877_v23 = vmax.f32 %v10957_v41, %v2796_v8  ;;  %v2814_v18 = vmul.f32 0.2, %v11022_v1 }
 0x1b5   : > { %14202 = vst [vmem:[#allocation34_spill] sm:$0xff] %v11053_v55  ;;  %v2883_v51 = vmax.f32 %v10879_v47, %v2802_v39  ;;  %v11066_v8 = vmul.f32 %v14203_v6, %v2875_v46  ;;  %v11069_v28 = vrot.slane %v2314_v16, %v10314_v5  ;;  %v3586_v39 = vcombine.low %v10953_v21, %v10993_v32 }
 0x1b6   : > { %v2813_v43 = vmul.f32 0.2, %v2354_v59  ;;  %v2895_v50 = vmax.f32 %v11022_v1, %v2814_v18  ;;  %v14205_v18 = vrot.slane %v10654_v26, %v10720_v44  ;;  %v14206_v61 = vrot.slane %v10654_v26, %v10691_v22 }
 0x1b7   : > { %14204 = vst [vmem:[#allocation35_spill] sm:$0xff] %v11066_v8  ;;  %v14208_v16 = vrot.slane %v10654_v26, %v10694_v24  ;;  %v14210_v21 = vrot.slane %v10606_v53, %v10694_v24  ;;  %v14211_v26 = vrot.slane %v10688_v12, %v10681_v42  ;;  %v8924_v6 = vadd.f32 %v8923_v3, %v8922_v27 }
 0x1b8   : > { %v2894_v20 = vmax.f32 %v2354_v59, %v2813_v43  ;;  %v3458_v38 = vmul.f32 %v14205_v18, %v2882_v34  ;;  %v11081_v41 = vmul.f32 %v14206_v61, %v2876_v29  ;;  %v11087_v59 = vrot.slane %v2323_v49, %v10314_v5 }
 0x1b9   : > { %v3453_v46 = vmul.f32 %v14208_v16, %v2877_v23  ;;  %v14209_v34 = vrot.slane %v10606_v53, %v10691_v22  ;;  %v11097_v32 = vmul.f32 %v14210_v21, %v2895_v50  ;;  %v7275_v29 = vcombine.low %v11053_v55, %v11010_v25 }
 0x1ba   : > { %14207 = vst [vmem:[#allocation36_spill] sm:$0xff] %v11081_v41  ;;  %v3459_v23 = vmul.f32 %v14211_v26, %v2883_v51  ;;  %v8921_v49 = vadd.f32 %v10923_v56, %v10913_v10  ;;  %v8973_v61 = vadd.f32 %v10932_v36, %v10921_v30  ;;  %v11111_v50 = vcombine.high %v11069_v28, %v11069_v28 }
 0x1bb   : > { %v11092_v43 = vmul.f32 %v14209_v34, %v2894_v20  ;;  %v3912_v20 = vcombine.low %v3453_v46, %v10986_v35  ;;  %v6130_v16 = vcombine.low %v10976_v17, %v3458_v38  ;;  %v11121_v56 = vrot.slane %v4842_v11, %v10314_v5 }
 0x1bc   : > { %v7267_v30 = vcombine.low %v3458_v38, %v3459_v23  ;;  %v14213_v10 = vcombine.low %v10727_v2, %v10730_v4  ;;  %v14214_v3 = vcombine.low %v10741_v15, %v10660_v63  ;;  %v4793_v21 = vcombine.low %v11081_v41, %v3453_v46 }
 0x1bd   : > { %v11116_v12 = vpop.f32.mrb[12].mxu0  ;;  %v11118_v51 = vpop.f32.mrb[12].mxu1  ;;  %14212 = vst [vmem:[#allocation37_spill] sm:$0xff] %v11121_v56  ;;  %v8976_v11 = vadd.f32 %v11005_v40, %v10999_v7  ;;  %v2306_v38 = vcombine.high %v10903_v13, %v10903_v13  ;;  %v2815_v63 = vmul.f32 0.2, %v11087_v59  ;;  %v6137_v13 = vrot.slane %v6130_v16, %v10314_v5 }
 0x1be   : > { %v2084_v36 = vadd.f32 %v8921_v49, %v14213_v10  ;;  %v2089_v35 = vadd.f32 %v8924_v6, %v14214_v3  ;;  %v11129_v27 = vpop.f32.mrb[13].mxu0  ;;  %v11131_v34 = vpop.f32.mrb[13].mxu1  ;;  %v11146_v49 = vrot.slane %v3586_v39, %v10314_v5  ;;  %v7274_v6 = vrot.slane %v7267_v30, %v10314_v5 }
 0x1bf   : > { %v11140_v26 = vpop.f32.mrb[14].mxu0  ;;  %v11142_v23 = vpop.f32.mrb[14].mxu1  ;;  %v2812_v40 = vmul.f32 0.2, %v11111_v50  ;;  %v2809_v17 = vmul.f32 0.2, %v2306_v38  ;;  %v11156_v57 = vrot.slane %v3912_v20, %v10314_v5  ;;  %v11163_v30 = vrot.slane %v4793_v21, %v10314_v5 }
 0x1c0   : > { %14215 = vst [vmem:[#allocation38_spill] sm:$0xff] %v11146_v49  ;;  %v2164_v10 = vadd.f32 %v8973_v61, %v2084_v36  ;;  %v11149_v3 = vpop.f32.mrb[15].mxu0  ;;  %v11151_v46 = vpop.f32.mrb[15].mxu1  ;;  %v2169_v7 = vadd.f32 %v8976_v11, %v2089_v35  ;;  %v7276_v47 = vcombine.low %v7274_v6, %v11121_v56  ;;  %v2353_v61 = vcombine.high %v11022_v1, %v11022_v1 }
 0x1c1   : > { %14216 = vst [vmem:[#allocation39_spill] sm:$0xff] %v11156_v57  ;;  %14217 = vst [vmem:[#allocation40_spill] sm:$0xff] %v11163_v30  ;;  %v2890_v16 = vmax.f32 %v2306_v38, %v2809_v17  ;;  %v2896_v35 = vmax.f32 %v11087_v59, %v2815_v63  ;;  %v11170_v20 = vrot.slane %v7275_v29, %v10314_v5  ;;  %v2810_v55 = vmul.f32 0.2, %v11069_v28 }
 0x1c2   : > { %v2356_v39 = vcombine.high %v2164_v10, %v2164_v10  ;;  %v2363_v18 = vrot.slane %v2164_v10, %v10314_v5  ;;  %v11166_v36 = vrot.slane %v2169_v7, %v10314_v5  ;;  %v11173_v11 = vrot.slane %v7276_v47, %v10314_v5 }
 0x1c3   : > { %14218 = vst [vmem:[#allocation41_spill] sm:$0xff] %v11170_v20  ;;  %v2893_v10 = vmax.f32 %v11111_v50, %v2812_v40  ;;  %v6139_v1 = vcombine.low %v6137_v13, %v11146_v49  ;;  %v2405_v21 = vcombine.high %v2169_v7, %v2169_v7  ;;  %v14220_v41 = vrot.slane %v10608_v54, %v10717_v14 }
 0x1c4   : > { %14219 = vst [vmem:[#allocation42_spill] sm:$0xff] %v11173_v11  ;;  %v2370_v6 = vrot.slane %v2356_v39, %v10314_v5  ;;  %v2371_v29 = vcombine.high %v2363_v18, %v2363_v18  ;;  %v11191_v50 = vrot.slane %v11166_v36, %v10314_v5  ;;  %v2816_v7 = vmul.f32 0.2, %v2353_v61 }
 0x1c5   : > { %v11181_v8 = vmul.f32 %v14220_v41, %v2890_v16  ;;  %v11183_v17 = vpop.f32.mrb[16].mxu0  ;;  %v11185_v38 = vpop.f32.mrb[16].mxu1  ;;  %v11199_v41 = vcombine.high %v11087_v59, %v11087_v59  ;;  %v6138_v16 = vcombine.low %v11156_v57, %v11003_v37  ;;  %v14225_v20 = vrot.slane %v10606_v53, %v10686_v52 }
 0x1c6   : > { %14221 = vst [vmem:[#allocation43_spill] sm:$0xff] %v11185_v38  ;;  %v2372_v63 = vcombine.high %v2370_v6, %v2370_v6  ;;  %v11193_v40 = vpop.f32.mrb[17].mxu0  ;;  %v11195_v13 = vpop.f32.mrb[17].mxu1  ;;  %v14226_v59 = vcombine.low %v11010_v25, %v11013_v62  ;;  %v14230_v57 = vrot.slane %v10606_v53, %v10681_v42  ;;  %v11234_v25 = vrot.slane %v6139_v1, %v10314_v5 }
 0x1c7   : > { %14222 = vst [vmem:[#allocation44_spill] sm:$0xff] %v11195_v13  ;;  %v11205_v47 = vpop.f32.mrb[18].mxu0  ;;  %v11207_v11 = vpop.f32.mrb[18].mxu1  ;;  %v11212_v19 = vmul.f32 %v14225_v20, %v2896_v35  ;;  %v11249_v1 = vrot.slane %v6138_v16, %v10314_v5  ;;  %v11254_v56 = vrot.slane %v2363_v18, %v10314_v5 }
 0x1c8   : > { %14223 = vst [vmem:[#allocation45_spill] sm:$0xff] %v11205_v47  ;;  %14224 = vst [vmem:[#allocation46_spill] sm:$0xff] %v11207_v11  ;;  %v11218_v15 = vrot.slane %v14226_v59, %v10314_v5  ;;  %v11221_v39 = vrot.slane %v2372_v63, %v10314_v5  ;;  %v11224_v30 = vpop.f32.mrb[19].mxu0  ;;  %v11226_v37 = vpop.f32.mrb[19].mxu1  ;;  %v3469_v35 = vmul.f32 %v14230_v57, %v2893_v10  ;;  %v2811_v59 = vmul.f32 0.2, %v11025_v0 }
 0x1c9   : > { %14228 = vst [vmem:[#allocation48_spill] sm:$0xff] %v11224_v30  ;;  %14229 = vst [vmem:[#allocation49_spill] sm:$0xff] %v11226_v37  ;;  %v11238_v63 = vrot.slane %v2371_v29, %v10314_v5  ;;  %v2419_v37 = vrot.slane %v2405_v21, %v10314_v5  ;;  %v2826_v11 = vmul.f32 0.2, %v11191_v50  ;;  %v11245_v57 = vmul.f32 0.2, %v11199_v41 }
 0x1ca   : > { %14227 = vst [vmem:[#allocation47_spill] sm:$0xff] %v11218_v15  ;;  %14231 = vst [vmem:[#allocation50_spill] sm:$0xff] %v11234_v25  ;;  %v2404_v15 = vcombine.high %v11221_v39, %v11221_v39  ;;  %v2897_v10 = vmax.f32 %v2353_v61, %v2816_v7  ;;  %v3588_v20 = vcombine.low %v3469_v35, %v11092_v43 }
 0x1cb   : > { %14232 = vst [vmem:[#allocation51_spill] sm:$0xff] %v11249_v1  ;;  %v3634_v29 = vcombine.low %v11097_v32, %v11212_v19  ;;  %v2891_v21 = vmax.f32 %v11069_v28, %v2810_v55  ;;  %v11260_v47 = vrot.slane %v2370_v6, %v10314_v5  ;;  %v2420_v61 = vcombine.high %v11166_v36, %v11166_v36 }
 0x1cc   : > { %v2825_v62 = vmul.f32 0.2, %v2404_v15  ;;  %v2892_v7 = vmax.f32 %v11025_v0, %v2811_v59  ;;  %v11267_v16 = vcombine.high %v11238_v63, %v11238_v63  ;;  %v2421_v35 = vcombine.high %v2419_v37, %v2419_v37 }
 0x1cd   : > { %v2907_v4 = vmax.f32 %v11191_v50, %v2826_v11  ;;  %v11270_v55 = vpop.f32.mrb[20].mxu0  ;;  %v11272_v28 = vpop.f32.mrb[20].mxu1  ;;  %v11275_v6 = vrot.slane %v3588_v20, %v10314_v5  ;;  %v14236_v36 = vcombine.low %v11092_v43, %v11097_v32  ;;  %v14238_v59 = vmax.f32 %v11007_v31, %v11049_v9 }
 0x1ce   : > { %v2906_v18 = vmax.f32 %v2404_v15, %v2825_v62  ;;  %14233 = vst [vmem:[#allocation52_spill] sm:$0xff] %v11270_v55  ;;  %14234 = vst [vmem:[#allocation53_spill] sm:$0xff] %v11272_v28  ;;  %v14239_v15 = vrot.slane %v10608_v54, %v10708_v60  ;;  %v14240_v11 = vrot.slane %v10606_v53, %v10699_v45  ;;  %v11296_v20 = vpop.f32.mrb[21].mxu0  ;;  %v11298_v25 = vpop.f32.mrb[21].mxu1  ;;  %v2818_v43 = vmul.f32 0.2, %v11254_v56 }
 0x1cf   : > { %14235 = vst [vmem:[#allocation54_spill] sm:$0xff] %v11275_v6  ;;  %v11281_v0 = vrot.slane %v14236_v36, %v10314_v5  ;;  %14241 = vst [vmem:[#allocation56_spill] sm:$0xff] %v11296_v20  ;;  %v14243_v32 = vrot.slane %v10615_v58, %v10699_v45  ;;  %v14244_v31 = vrot.slane %v10615_v58, %v10708_v60  ;;  %v14251_v28 = vld [vmem:[#allocation33_spill] sm:$0xff]  ;;  %v2823_v20 = vmul.f32 0.2, %v11221_v39 }
 0x1d0   : > { %v11289_v62 = vmul.f32 %v14239_v15, %v14238_v59  ;;  %v11294_v30 = vmul.f32 %v14240_v11, %v2897_v10  ;;  %14242 = vst [vmem:[#allocation57_spill] sm:$0xff] %v11298_v25  ;;  %v14246_v10 = vrot.slane %v10608_v54, %v10720_v44  ;;  %v8943_v15 = vpop.f32.mrb[22].mxu0  ;;  %v8995_v11 = vpop.f32.mrb[22].mxu1  ;;  %v11318_v1 = vcombine.high %v11260_v47, %v11260_v47 }
 0x1d1   : > { %14237 = vst [vmem:[#allocation55_spill] sm:$0xff] %v11281_v0  ;;  %v11304_v9 = vmul.f32 %v14243_v32, %v2906_v18  ;;  %v11309_v36 = vmul.f32 %v14244_v31, %v2907_v4  ;;  %v11321_v25 = vrot.slane %v2419_v37, %v10314_v5  ;;  %v11324_v18 = vrot.slane %v2420_v61, %v10314_v5  ;;  %v8944_v54 = vpop.f32.mrb[23].mxu0 }
 0x1d2   : > { %v11314_v59 = vmul.f32 %v14246_v10, %v2891_v21  ;;  %v14247_v4 = vrot.slane %v10710_v48, %v10681_v42  ;;  %v8996_v21 = vpop.f32.mrb[23].mxu1  ;;  %v2821_v31 = vmul.f32 0.2, %v11267_v16  ;;  %v2822_v10 = vmul.f32 0.2, %v11260_v47 }
 0x1d3   : > { %14245 = vst [vmem:[#allocation58_spill] sm:$0xff] %v11309_v36  ;;  %v11334_v15 = vrot.slane %v2421_v35, %v10314_v5  ;;  %v11339_v61 = vrot.slane %v3634_v29, %v10314_v5  ;;  %v14249_v35 = vld [vmem:[#allocation32_spill] sm:$0xff]  ;;  %v14250_v21 = vld [vmem:[#allocation31_spill] sm:$0xff]  ;;  %v2401_v29 = vcombine.high %v11254_v56, %v11254_v56  ;;  %v11356_v48 = vmul.f32 0.2, %v11318_v1 }
 0x1d4   : > { %v11329_v32 = vmul.f32 %v14247_v4, %v2892_v7  ;;  %v6155_v7 = vcombine.low %v11181_v8, %v11314_v59  ;;  %v2899_v4 = vmax.f32 %v11254_v56, %v2818_v43  ;;  %v8927_v54 = vadd.f32 %v14249_v35, %v11017_v33  ;;  %v14253_v43 = vld [vmem:[#allocation9_spill] sm:$0xff] }
 0x1d5   : > { %14248 = vst [vmem:[#allocation59_spill] sm:$0xff] %v11339_v61  ;;  %v8979_v37 = vadd.f32 %v14251_v28, %v14250_v21  ;;  %v2451_v55 = vcombine.high %v11321_v25, %v11321_v25  ;;  %v2819_v28 = vmul.f32 0.2, %v11238_v63  ;;  %v2820_v21 = vmul.f32 0.2, %v2401_v29 }
 0x1d6   : > { %v7292_v11 = vcombine.low %v11314_v59, %v11329_v32  ;;  %v11361_v59 = vrot.slane %v6155_v7, %v10314_v5  ;;  %v14254_v32 = vld [vmem:[#allocation10_spill] sm:$0xff]  ;;  %v2898_v56 = vmax.f32 %v11199_v41, %v11245_v57  ;;  %v2902_v36 = vmax.f32 %v11267_v16, %v2821_v31 }
 0x1d7   : > { %v14255_v33 = vcombine.low %v14253_v43, %v14254_v32  ;;  %v2453_v6 = vcombine.high %v11334_v15, %v11334_v15  ;;  %v2830_v49 = vmul.f32 0.2, %v11321_v25  ;;  %v2900_v43 = vmax.f32 %v11238_v63, %v2819_v28 }
 0x1d8   : > { %14252 = vst [vmem:[#allocation32_spill] sm:$0xff] %v11361_v59  ;;  %v14256_v32 = vrot.slane %v10606_v53, %v10708_v60  ;;  %v2903_v41 = vmax.f32 %v11260_v47, %v2822_v10  ;;  %v2904_v57 = vmax.f32 %v11221_v39, %v2823_v20  ;;  %v2827_v16 = vmul.f32 0.2, %v11324_v18  ;;  %v14259_v20 = vld [vmem:[#allocation19_spill] sm:$0xff] }
 0x1d9   : > { %v2092_v35 = vadd.f32 %v8927_v54, %v14255_v33  ;;  %v2901_v54 = vmax.f32 %v2401_v29, %v2820_v21  ;;  %v14257_v31 = vrot.slane %v10606_v53, %v10717_v14  ;;  %v2832_v63 = vmul.f32 0.2, %v2451_v55 }
 0x1da   : > { %v11379_v33 = vmul.f32 %v14256_v32, %v2898_v56  ;;  %v2833_v47 = vmul.f32 0.2, %v2453_v6  ;;  %v14260_v10 = vrot.slane %v14259_v20, %v10681_v42  ;;  %v14261_v56 = vrot.slane %v10615_v58, %v10681_v42 }
 0x1db   : > { %v2172_v13 = vadd.f32 %v8979_v37, %v2092_v35  ;;  %v11387_v38 = vmul.f32 %v14257_v31, %v2899_v4  ;;  %v2831_v37 = vmul.f32 0.2, %v11334_v15  ;;  %v14258_v35 = vrot.slane %v10606_v53, %v10720_v44 }
 0x1dc   : > { %v11401_v21 = vmul.f32 %v14260_v10, %v2901_v54  ;;  %v2450_v4 = vcombine.high %v11191_v50, %v11191_v50  ;;  %v3478_v32 = vmul.f32 %v14261_v56, %v2902_v36  ;;  %v2911_v53 = vmax.f32 %v11321_v25, %v2830_v49 }
 0x1dd   : > { %v2461_v29 = vrot.slane %v2172_v13, %v10314_v5  ;;  %v11394_v28 = vmul.f32 %v14258_v35, %v2900_v43  ;;  %v2454_v43 = vcombine.high %v2172_v13, %v2172_v13  ;;  %v2452_v20 = vcombine.high %v11324_v18, %v11324_v18 }
 0x1de   : > { %v14262_v50 = vrot.slane %v10615_v58, %v10691_v22  ;;  %v2912_v49 = vmax.f32 %v11334_v15, %v2831_v37  ;;  %v2913_v13 = vmax.f32 %v2451_v55, %v2832_v63  ;;  %v4845_v25 = vcombine.low %v11212_v19, %v11294_v30  ;;  %v14266_v55 = vld [vmem:[#allocation5_spill] sm:$0xff] }
 0x1df   : > { %v2477_v31 = vrot.slane %v2461_v29, %v10314_v5  ;;  %v2469_v35 = vcombine.high %v2461_v29, %v2461_v29  ;;  %v2905_v36 = vmax.f32 %v11318_v1, %v11356_v48  ;;  %v14264_v29 = vrot.slane %v10615_v58, %v10694_v24 }
 0x1e0   : > { %v11419_v10 = vmul.f32 %v14262_v50, %v2903_v41  ;;  %v2828_v7 = vmul.f32 0.2, %v2450_v4  ;;  %v2914_v41 = vmax.f32 %v2453_v6, %v2833_v47  ;;  %v2468_v50 = vrot.slane %v2454_v43, %v10314_v5 }
 0x1e1   : > { %v11429_v56 = vmul.f32 %v14264_v29, %v2904_v57  ;;  %v2834_v54 = vmul.f32 0.2, %v2477_v31  ;;  %v2499_v15 = vcombine.high %v2477_v31, %v2477_v31  ;;  %v14267_v37 = vrot.slane %v14266_v55, %v10681_v42 }
 0x1e2   : > { %14263 = vst [vmem:[#allocation31_spill] sm:$0xff] %v11419_v10  ;;  %v3636_v39 = vcombine.low %v3478_v32, %v11419_v10  ;;  %v11439_v1 = vrot.slane %v2469_v35, %v10314_v5  ;;  %v2829_v63 = vmul.f32 0.2, %v2452_v20  ;;  %v14268_v57 = vrot.slane %v14266_v55, %v10691_v22  ;;  %v14272_v32 = vld [vmem:[#allocation27_spill] sm:$0xff]  ;;  %v14310_v10 = vld [vmem:[#allocation48_spill] sm:$0xff] }
 0x1e3   : > { %14265 = vst [vmem:[#allocation33_spill] sm:$0xff] %v11429_v56  ;;  %v11436_v19 = vmul.f32 %v14267_v37, %v2911_v53  ;;  %v2915_v48 = vmax.f32 %v2477_v31, %v2834_v54  ;;  %v14270_v6 = vrot.slane %v14266_v55, %v10694_v24  ;;  %v3587_v43 = vcombine.low %v14272_v32, %v11289_v62 }
 0x1e4   : > { %v11444_v29 = vmul.f32 %v14268_v57, %v2912_v49  ;;  %v11454_v53 = vrot.slane %v4845_v25, %v10314_v5  ;;  %v11457_v35 = vrot.slane %v7292_v11, %v10314_v5  ;;  %v2908_v31 = vmax.f32 %v11324_v18, %v2827_v16  ;;  %v14279_v16 = vld [vmem:[#allocation21_spill] sm:$0xff] }
 0x1e5   : > { %v11449_v47 = vmul.f32 %v14270_v6, %v2913_v13  ;;  %v2909_v54 = vmax.f32 %v2450_v4, %v2828_v7  ;;  %v2910_v37 = vmax.f32 %v2452_v20, %v2829_v63  ;;  %v2484_v49 = vrot.slane %v2468_v50, %v10314_v5 }
 0x1e6   : > { %14269 = vst [vmem:[#allocation9_spill] sm:$0xff] %v11444_v29  ;;  %14273 = vst [vmem:[#allocation19_spill] sm:$0xff] %v11454_v53  ;;  %v2836_v57 = vmul.f32 0.2, %v2499_v15  ;;  %v14275_v13 = vrot.slane %v14266_v55, %v10699_v45  ;;  %v14276_v32 = vrot.slane %v14266_v55, %v10686_v52  ;;  %v14277_v11 = vrot.slane %v10615_v58, %v10717_v14 }
 0x1e7   : > { %14271 = vst [vmem:[#allocation10_spill] sm:$0xff] %v11449_v47  ;;  %14274 = vst [vmem:[#allocation5_spill] sm:$0xff] %v11457_v35  ;;  %v14278_v18 = vrot.slane %v10615_v58, %v10720_v44  ;;  %v14280_v4 = vrot.slane %v14279_v16, %v10681_v42  ;;  %v2838_v16 = vmul.f32 0.2, %v2484_v49 }
 0x1e8   : > { %v11464_v6 = vmul.f32 %v14275_v13, %v2915_v48  ;;  %v11469_v25 = vmul.f32 %v14276_v32, %v2914_v41  ;;  %v11474_v59 = vmul.f32 %v14277_v11, %v2908_v31  ;;  %v2501_v48 = vcombine.high %v11439_v1, %v11439_v1  ;;  %v14303_v11 = vld [vmem:[#allocation38_spill] sm:$0xff] }
 0x1e9   : > { %v11479_v7 = vmul.f32 %v14278_v18, %v2909_v54  ;;  %v11484_v20 = vmul.f32 %v14280_v4, %v2910_v37  ;;  %v14281_v41 = vcombine.low %v11289_v62, %v11181_v8  ;;  %v7602_v31 = vcombine.low %v11457_v35, %v11454_v53  ;;  %v14304_v35 = vld [vmem:[#allocation28_spill] sm:$0xff] }
 0x1ea   : > { %v2470_v13 = vcombine.high %v2468_v50, %v2468_v50  ;;  %v14283_v54 = vrot.slane %v10615_v58, %v10686_v52  ;;  %v3635_v37 = vcombine.low %v11294_v30, %v11379_v33  ;;  %v11510_v18 = vrot.slane %v3636_v39, %v10314_v5 }
 0x1eb   : > { %v11492_v63 = vrot.slane %v14281_v41, %v10314_v5  ;;  %v2837_v50 = vmul.f32 0.2, %v2501_v48  ;;  %v2917_v58 = vmax.f32 %v2499_v15, %v2836_v57  ;;  %v2919_v8 = vmax.f32 %v2484_v49, %v2838_v16 }
 0x1ec   : > { %v11499_v32 = vmul.f32 %v14283_v54, %v2905_v36  ;;  %v11513_v36 = vrot.slane %v3587_v43, %v10314_v5  ;;  %v11522_v54 = vrot.slane %v7602_v31, %v10314_v5  ;;  %v2498_v39 = vrot.slane %v2470_v13, %v10314_v5 }
 0x1ed   : > { %14282 = vst [vmem:[#allocation27_spill] sm:$0xff] %v11492_v63  ;;  %v2918_v62 = vmax.f32 %v2501_v48, %v2837_v50  ;;  %v11526_v15 = vrot.slane %v3635_v37, %v10314_v5  ;;  %v14287_v43 = vcombine.low %v11379_v33, %v11387_v38  ;;  %v8930_v4 = vadd.f32 %v11129_v27, %v11116_v12  ;;  %v14293_v33 = vld [vmem:[#allocation22_spill] sm:$0xff]  ;;  %v14297_v27 = vld [vmem:[#allocation15_spill] sm:$0xff] }
 0x1ee   : > { %14284 = vst [vmem:[#allocation21_spill] sm:$0xff] %v11513_v36  ;;  %v4893_v41 = vcombine.low %v11499_v32, %v11304_v9  ;;  %14285 = vst [vmem:[#allocation60_spill] sm:$0xff] %v11522_v54  ;;  %v8982_v31 = vadd.f32 %v11131_v34, %v11118_v51  ;;  %v2500_v30 = vcombine.high %v2484_v49, %v2484_v49  ;;  %v14296_v51 = vld [vmem:[#allocation11_spill] sm:$0xff] }
 0x1ef   : > { %14286 = vst [vmem:[#allocation61_spill] sm:$0xff] %v11526_v15  ;;  %v11532_v57 = vrot.slane %v14287_v43, %v10314_v5  ;;  %v14289_v48 = vrot.slane %v14266_v55, %v10717_v14  ;;  %v14291_v37 = vrot.slane %v14266_v55, %v10720_v44  ;;  %v14294_v16 = vrot.slane %v14293_v33, %v10681_v42 }
 0x1f0   : > { %v11554_v12 = vrot.slane %v4893_v41, %v10314_v5  ;;  %v14298_v34 = vcombine.low %v14296_v51, %v14297_v27  ;;  %v14302_v27 = vld [vmem:[#allocation44_spill] sm:$0xff]  ;;  %v3617_v54 = vcombine.low %v14304_v35, %v14303_v11  ;;  %v14311_v63 = vcombine.low %v11387_v38, %v11394_v28 }
 0x1f1   : > { %14288 = vst [vmem:[#allocation62_spill] sm:$0xff] %v11532_v57  ;;  %v11541_v13 = vmul.f32 %v14289_v48, %v2917_v58  ;;  %v11546_v50 = vmul.f32 %v14291_v37, %v2918_v62  ;;  %v11551_v43 = vmul.f32 %v14294_v16, %v2919_v8  ;;  %v8933_v58 = vadd.f32 %v11149_v3, %v11140_v26  ;;  %v14299_v16 = vld [vmem:[#allocation16_spill] sm:$0xff]  ;;  %v14301_v3 = vld [vmem:[#allocation43_spill] sm:$0xff]  ;;  %v14305_v8 = vld [vmem:[#allocation54_spill] sm:$0xff] }
 0x1f2   : > { %14295 = vst [vmem:[#allocation22_spill] sm:$0xff] %v11554_v12  ;;  %v2097_v49 = vadd.f32 %v8930_v4, %v14298_v34  ;;  %v8985_v48 = vadd.f32 %v11151_v46, %v11142_v23  ;;  %v2502_v62 = vcombine.high %v2498_v39, %v2498_v39  ;;  %v2835_v37 = vmul.f32 0.2, %v11439_v1 }
 0x1f3   : > { %14290 = vst [vmem:[#allocation63_spill] sm:$0xff] %v11541_v13  ;;  %14292 = vst [vmem:[#allocation64_spill] sm:$0xff] %v11546_v50  ;;  %v14300_v51 = vcombine.low %v14299_v16, %v10727_v2  ;;  %v8936_v26 = vadd.f32 %v11193_v40, %v11183_v17  ;;  %v8988_v23 = vadd.f32 %v14302_v27, %v14301_v3  ;;  %v2839_v46 = vmul.f32 0.2, %v2498_v39  ;;  %v14306_v2 = vld [vmem:[#allocation18_spill] sm:$0xff]  ;;  %v14309_v27 = vld [vmem:[#allocation45_spill] sm:$0xff] }
 0x1f4   : > { %v2177_v33 = vadd.f32 %v8982_v31, %v2097_v49  ;;  %v2840_v34 = vmul.f32 0.2, %v2500_v30  ;;  %v3618_v53 = vcombine.low %v11513_v36, %v14305_v8  ;;  %v2841_v17 = vmul.f32 0.2, %v2502_v62 }
 0x1f5   : > { %v2100_v4 = vadd.f32 %v8933_v58, %v14300_v51  ;;  %v14307_v58 = vld [vmem:[#allocation20_spill] sm:$0xff]  ;;  %v3625_v40 = vrot.slane %v3617_v54, %v10314_v5  ;;  %v11587_v0 = vadd.f32 %v14310_v10, %v14309_v27  ;;  %v11593_v11 = vrot.slane %v14311_v63, %v10314_v5 }
 0x1f6   : > { %v2503_v41 = vcombine.high %v2177_v33, %v2177_v33  ;;  %v2510_v31 = vrot.slane %v2177_v33, %v10314_v5  ;;  %v14308_v16 = vcombine.low %v14306_v2, %v14307_v58  ;;  %v3632_v3 = vrot.slane %v3618_v53, %v10314_v5 }
 0x1f7   : > { %v2180_v49 = vadd.f32 %v8985_v48, %v2100_v4  ;;  %14312 = vst [vmem:[#allocation11_spill] sm:$0xff] %v11593_v11  ;;  %v14313_v53 = vcombine.low %v11394_v28, %v11401_v21  ;;  %v2916_v58 = vmax.f32 %v11439_v1, %v2835_v37  ;;  %v2921_v38 = vmax.f32 %v2500_v30, %v2840_v34 }
 0x1f8   : > { %v2105_v51 = vadd.f32 %v8936_v26, %v14308_v16  ;;  %v2517_v48 = vrot.slane %v2503_v41, %v10314_v5  ;;  %v2526_v33 = vrot.slane %v2510_v31, %v10314_v5  ;;  %v2920_v26 = vmax.f32 %v2498_v39, %v2839_v46 }
 0x1f9   : > { %v2552_v4 = vcombine.high %v2180_v49, %v2180_v49  ;;  %v11601_v54 = vrot.slane %v14313_v53, %v10314_v5  ;;  %v3633_v2 = vcombine.low %v3625_v40, %v3632_v3  ;;  %v2922_v41 = vmax.f32 %v2502_v62, %v2841_v17  ;;  %v14317_v62 = vld [vmem:[#allocation6_spill] sm:$0xff] }
 0x1fa   : > { %v11603_v10 = vadd.f32 %v8988_v23, %v2105_v51  ;;  %v2519_v63 = vcombine.high %v2517_v48, %v2517_v48  ;;  %v2533_v16 = vrot.slane %v2517_v48, %v10314_v5  ;;  %v2518_v39 = vcombine.high %v2510_v31, %v2510_v31 }
 0x1fb   : > { %14314 = vst [vmem:[#allocation15_spill] sm:$0xff] %v11601_v54  ;;  %v2842_v46 = vmul.f32 0.2, %v2526_v33  ;;  %9223 = vmatmul.mubr.msk.f32.vlgmr.msra.gmra.mrb[24].mxu0 %vm562_vm1, %v3633_v2  ;;  %v2559_v1 = vrot.slane %v2180_v49, %v10314_v5  ;;  %v2566_v30 = vrot.slane %v2552_v4, %v10314_v5  ;;  %v14316_v37 = vmov 0.0   ;;  %v14320_v49 = vld [vmem:[#allocation58_spill] sm:$0xff] }
 0x1fc   : > { %v11613_v21 = vrot.slane %v2519_v63, %v10314_v5  ;;  %9225 = vmatprep.mubr.msk.f32.mxu0 %vm9983_vm3, %v14316_v37  ;;  %v14318_v23 = vrot.slane %v14317_v62, %v10681_v42  ;;  %v3685_v31 = vcombine.low %v11449_v47, %v11469_v25  ;;  %v2846_v51 = vmul.f32 0.2, %v2533_v16 }
 0x1fd   : > { %v2923_v17 = vmax.f32 %v2526_v33, %v2842_v46  ;;  %v14319_v40 = vrot.slane %v14317_v62, %v10691_v22  ;;  %v4894_v48 = vcombine.low %v14320_v49, %v11474_v59  ;;  %v14321_v4 = vrot.slane %v14266_v55, %v10708_v60 }
 0x1fe   : > { %14315 = vst [vmem:[#allocation16_spill] sm:$0xff] %v11613_v21  ;;  %v11622_v34 = vmul.f32 %v14318_v23, %v2920_v26  ;;  %v2551_v26 = vcombine.high %v11613_v21, %v11613_v21  ;;  %v2540_v2 = vrot.slane %v2518_v39, %v10314_v5  ;;  %v2927_v63 = vmax.f32 %v2533_v16, %v2846_v51 }
 0x1ff   : > { %v11629_v3 = vmul.f32 %v14319_v40, %v2921_v38  ;;  %v3492_v53 = vmul.f32 %v14321_v4, %v2916_v58  ;;  %v14322_v46 = vrot.slane %v14317_v62, %v10694_v24  ;;  %v14324_v38 = vrot.slane %v14317_v62, %v10686_v52 }
 0x200   : > { %v2548_v27 = vcombine.high %v2526_v33, %v2526_v33  ;;  %v2849_v28 = vmul.f32 0.2, %v2551_v26  ;;  %v2567_v55 = vcombine.high %v2559_v1, %v2559_v1  ;;  %v2568_v58 = vcombine.high %v2566_v30, %v2566_v30 }
 0x201   : > { %v11642_v23 = vmul.f32 %v14322_v46, %v2922_v41  ;;  %v11647_v40 = vmul.f32 %v14324_v38, %v2923_v17  ;;  %v11650_v4 = vrot.slane %v3685_v31, %v10314_v5  ;;  %v14326_v39 = vrot.slane %v14317_v62, %v10720_v44 }
 0x202   : > { %v2575_v46 = vrot.slane %v2559_v1, %v10314_v5  ;;  %v11661_v17 = vrot.slane %v4894_v48, %v10314_v5  ;;  %v14329_v33 = vcombine.low %v11469_v25, %v11464_v6  ;;  %v3686_v31 = vcombine.low %v11464_v6, %v3492_v53 }
 0x203   : > { %14323 = vst [vmem:[#allocation43_spill] sm:$0xff] %v11642_v23  ;;  %14325 = vst [vmem:[#allocation44_spill] sm:$0xff] %v11647_v40  ;;  %v11655_v51 = vmul.f32 %v14326_v39, %v2927_v63  ;;  %v2930_v54 = vmax.f32 %v2551_v26, %v2849_v28  ;;  %v14331_v63 = vcombine.low %v11474_v59, %v11479_v7  ;;  %v2844_v11 = vmul.f32 0.2, %v2548_v27 }
 0x204   : > { %14328 = vst [vmem:[#allocation18_spill] sm:$0xff] %v11661_v17  ;;  %v11667_v38 = vrot.slane %v14329_v33, %v10314_v5  ;;  %v4942_v1 = vcombine.low %v3492_v53, %v11541_v13  ;;  %v2550_v41 = vcombine.high %v2540_v2, %v2540_v2  ;;  %v2582_v48 = vrot.slane %v2566_v30, %v10314_v5 }
 0x205   : > { %14327 = vst [vmem:[#allocation54_spill] sm:$0xff] %v11655_v51  ;;  %v11674_v39 = vrot.slane %v14331_v63, %v10314_v5  ;;  %v2843_v51 = vmul.f32 0.2, %v2540_v2  ;;  %v11679_v25 = vrot.slane %v2567_v55, %v10314_v5  ;;  %v2596_v33 = vrot.slane %v2568_v58, %v10314_v5  ;;  %v14336_v55 = vld [vmem:[#allocation7_spill] sm:$0xff] }
 0x206   : > { %14330 = vst [vmem:[#allocation20_spill] sm:$0xff] %v11667_v38  ;;  %v14333_v6 = vcombine.low %v11479_v7, %v11484_v20  ;;  %v2549_v59 = vcombine.high %v2533_v16, %v2533_v16  ;;  %v2850_v26 = vmul.f32 0.2, %v2575_v46  ;;  %v2854_v63 = vmul.f32 0.2, %v2582_v48 }
 0x207   : > { %14332 = vst [vmem:[#allocation45_spill] sm:$0xff] %v11674_v39  ;;  %v11689_v53 = vrot.slane %v3686_v31, %v10314_v5  ;;  %v2599_v30 = vcombine.high %v11679_v25, %v11679_v25  ;;  %v2600_v39 = vcombine.high %v2596_v33, %v2596_v33  ;;  %v14337_v13 = vrot.slane %v14336_v55, %v10691_v22 }
 0x208   : > { %v11686_v28 = vrot.slane %v14333_v6, %v10314_v5  ;;  %v2931_v38 = vmax.f32 %v2575_v46, %v2850_v26  ;;  %v2598_v17 = vcombine.high %v2582_v48, %v2582_v48  ;;  %v2855_v7 = vmul.f32 0.2, %v2596_v33 }
 0x209   : > { %14335 = vst [vmem:[#allocation6_spill] sm:$0xff] %v11689_v53  ;;  %v11696_v58 = vmul.f32 %v14337_v13, %v2930_v54  ;;  %v2935_v20 = vmax.f32 %v2582_v48, %v2854_v63  ;;  %v11699_v16 = vrot.slane %v4942_v1, %v10314_v5  ;;  %v2845_v6 = vmul.f32 0.2, %v2550_v41 }
 0x20a   : > { %14334 = vst [vmem:[#allocation48_spill] sm:$0xff] %v11686_v28  ;;  %v2924_v28 = vmax.f32 %v2540_v2, %v2843_v51  ;;  %v2925_v31 = vmax.f32 %v2548_v27, %v2844_v11  ;;  %v2848_v57 = vmul.f32 0.2, %v2549_v59  ;;  %v14339_v12 = vrot.slane %v14336_v55, %v10694_v24 }
 0x20b   : > { %14338 = vst [vmem:[#allocation58_spill] sm:$0xff] %v11699_v16  ;;  %v2856_v36 = vmul.f32 0.2, %v2598_v17  ;;  %v2936_v35 = vmax.f32 %v2596_v33, %v2855_v7  ;;  %v2597_v13 = vcombine.high %v2575_v46, %v2575_v46  ;;  %v2853_v54 = vmul.f32 0.2, %v2599_v30 }
 0x20c   : > { %v11704_v47 = vmul.f32 %v14339_v12, %v2931_v38  ;;  %v2857_v26 = vmul.f32 0.2, %v2600_v39  ;;  %v14340_v48 = vrot.slane %v14336_v55, %v10717_v14  ;;  %v14342_v27 = vrot.slane %v14336_v55, %v10720_v44 }
 0x20d   : > { %v2937_v11 = vmax.f32 %v2598_v17, %v2856_v36  ;;  %v2601_v12 = vcombine.high %v11603_v10, %v11603_v10  ;;  %v2926_v46 = vmax.f32 %v2550_v41, %v2845_v6  ;;  %v14344_v38 = vrot.slane %v14317_v62, %v10699_v45  ;;  %v14348_v17 = vld [vmem:[#allocation24_spill] sm:$0xff] }
 0x20e   : > { %v11709_v63 = vmul.f32 %v14340_v48, %v2935_v20  ;;  %v11716_v51 = vmul.f32 %v14342_v27, %v2936_v35  ;;  %v14346_v33 = vrot.slane %v14317_v62, %v10708_v60  ;;  %v2608_v36 = vrot.slane %v11603_v10, %v10314_v5  ;;  %v14352_v48 = vld [vmem:[#allocation49_spill] sm:$0xff] }
 0x20f   : > { %v11723_v1 = vmul.f32 %v14344_v38, %v2924_v28  ;;  %v14349_v20 = vrot.slane %v14348_v17, %v10681_v42  ;;  %v2615_v6 = vrot.slane %v2601_v12, %v10314_v5  ;;  %v14351_v28 = vld [vmem:[#allocation46_spill] sm:$0xff]  ;;  %v2851_v38 = vmul.f32 0.2, %v11679_v25 }
 0x210   : > { %14341 = vst [vmem:[#allocation7_spill] sm:$0xff] %v11709_v63  ;;  %14343 = vst [vmem:[#allocation65_spill] sm:$0xff] %v11716_v51  ;;  %v11728_v7 = vmul.f32 %v14346_v33, %v2925_v31  ;;  %v8991_v27 = vadd.f32 %v14352_v48, %v14351_v28  ;;  %v2852_v31 = vmul.f32 0.2, %v2597_v13  ;;  %v2616_v33 = vcombine.high %v2608_v36, %v2608_v36 }
 0x211   : > { %14345 = vst [vmem:[#allocation66_spill] sm:$0xff] %v11723_v1  ;;  %v11737_v41 = vmul.f32 %v14349_v20, %v2937_v11  ;;  %v2624_v2 = vrot.slane %v2608_v36, %v10314_v5  ;;  %v2934_v10 = vmax.f32 %v2599_v30, %v2853_v54  ;;  %v2938_v16 = vmax.f32 %v2600_v39, %v2857_v26  ;;  %v14358_v36 = vld [vmem:[#allocation13_spill] sm:$0xff] }
 0x212   : > { %14347 = vst [vmem:[#allocation67_spill] sm:$0xff] %v11728_v7  ;;  %v11747_v17 = vrot.slane %v2615_v6, %v10314_v5  ;;  %v14353_v11 = vcombine.low %v11546_v50, %v11551_v43  ;;  %v11756_v20 = vmul.f32 0.2, %v11613_v21  ;;  %v2929_v28 = vmax.f32 %v2549_v59, %v2848_v57  ;;  %v14360_v50 = vld [vmem:[#allocation8_spill] sm:$0xff]  ;;  %v14377_v21 = vld [vmem:[#allocation57_spill] sm:$0xff] }
 0x213   : > { %14350 = vst [vmem:[#allocation24_spill] sm:$0xff] %v11737_v41  ;;  %v2858_v48 = vmul.f32 0.2, %v2624_v2  ;;  %v14356_v39 = vrot.slane %v14317_v62, %v10717_v14  ;;  %v3734_v54 = vcombine.low %v11723_v1, %v11728_v7  ;;  %v2108_v43 = vadd.f32 %v11587_v0, %v14358_v36 }
 0x214   : > { %v11753_v12 = vrot.slane %v14353_v11, %v10314_v5  ;;  %14355 = vst [vmem:[#allocation49_spill] sm:$0xff] %v11756_v20  ;;  %v2647_v26 = vcombine.high %v11747_v17, %v11747_v17  ;;  %v2932_v11 = vmax.f32 %v11679_v25, %v2851_v38  ;;  %v2933_v35 = vmax.f32 %v2597_v13, %v2852_v31 }
 0x215   : > { %v11761_v30 = vmul.f32 %v14356_v39, %v2926_v46  ;;  %v11771_v57 = vrot.slane %v2616_v33, %v10314_v5  ;;  %v2939_v59 = vmax.f32 %v2624_v2, %v2858_v48  ;;  %v14359_v62 = vrot.slane %v14336_v55, %v10708_v60 }
 0x216   : > { %14354 = vst [vmem:[#allocation46_spill] sm:$0xff] %v11753_v12  ;;  %v2617_v39 = vcombine.high %v2615_v6, %v2615_v6  ;;  %v2864_v12 = vmul.f32 0.2, %v2647_v26  ;;  %v14361_v41 = vrot.slane %v14360_v50, %v10681_v42  ;;  %v14362_v25 = vrot.slane %v14336_v55, %v10681_v42 }
 0x217   : > { %14357 = vst [vmem:[#allocation68_spill] sm:$0xff] %v11761_v30  ;;  %v11776_v46 = vmul.f32 %v14359_v62, %v2934_v10  ;;  %v14363_v38 = vcombine.low %v11642_v23, %v11647_v40  ;;  %v14365_v10 = vrot.slane %v14360_v50, %v10691_v22  ;;  %v11808_v48 = vrot.slane %v3734_v54, %v10314_v5 }
 0x218   : > { %v11781_v51 = vmul.f32 %v14361_v41, %v2938_v16  ;;  %v11788_v13 = vmul.f32 %v14362_v25, %v2929_v28  ;;  %v11800_v41 = vcombine.high %v2624_v2, %v2624_v2  ;;  %v2945_v33 = vmax.f32 %v2647_v26, %v2864_v12 }
 0x219   : > { %v11794_v31 = vrot.slane %v14363_v38, %v10314_v5  ;;  %v11805_v28 = vmul.f32 %v14365_v10, %v2939_v59  ;;  %14366 = vst [vmem:[#allocation8_spill] sm:$0xff] %v11808_v48  ;;  %v14367_v36 = vrot.slane %v14336_v55, %v10686_v52  ;;  %v14368_v25 = vrot.slane %v14336_v55, %v10699_v45 }
 0x21a   : > { %v2648_v2 = vcombine.high %v11771_v57, %v11771_v57  ;;  %v5317_v12 = vcombine.low %v11776_v46, %v11709_v63  ;;  %v11825_v26 = vrot.slane %v2617_v39, %v10314_v5  ;;  %v14369_v54 = vrot.slane %v14360_v50, %v10720_v44  ;;  %v14375_v63 = vld [vmem:[#allocation56_spill] sm:$0xff] }
 0x21b   : > { %14364 = vst [vmem:[#allocation13_spill] sm:$0xff] %v11794_v31  ;;  %v11813_v62 = vmul.f32 %v14367_v36, %v2932_v11  ;;  %v11818_v38 = vmul.f32 %v14368_v25, %v2933_v35  ;;  %v2859_v55 = vmul.f32 0.2, %v11771_v57  ;;  %v2862_v35 = vmul.f32 0.2, %v11747_v17 }
 0x21c   : > { %v11830_v59 = vmul.f32 %v14369_v54, %v2945_v33  ;;  %v2188_v10 = vadd.f32 %v8991_v27, %v2108_v43  ;;  %v3953_v36 = vcombine.low %v14305_v8, %v11339_v61  ;;  %v2860_v25 = vmul.f32 0.2, %v11800_v41 }
 0x21d   : > { %v3969_v39 = vcombine.low %v11526_v15, %v11510_v18  ;;  %v3637_v33 = vcombine.low %v11429_v56, %v11499_v32  ;;  %v3666_v54 = vcombine.low %v11339_v61, %v11526_v15  ;;  %v2861_v0 = vmul.f32 0.2, %v2648_v2  ;;  %v14373_v32 = vld [vmem:[#allocation4_spill] sm:$0xff] }
 0x21e   : > { %14370 = vst [vmem:[#allocation69_spill] sm:$0xff] %v11830_v59  ;;  %v2650_v16 = vcombine.high %v2188_v10, %v2188_v10  ;;  %v2657_v6 = vrot.slane %v2188_v10, %v10314_v5  ;;  %v11847_v27 = vrot.slane %v3953_v36, %v10314_v5  ;;  %v2020_v59 = vrot.slane %v14373_v32, %v10314_v5  ;;  %v14374_v36 = vld [vmem:[#allocation52_spill] sm:$0xff]  ;;  %v14376_v32 = vld [vmem:[#allocation53_spill] sm:$0xff] }
 0x21f   : > { %v11850_v8 = vrot.slane %v3969_v39, %v10314_v5  ;;  %v11853_v43 = vrot.slane %v3637_v33, %v10314_v5  ;;  %v11856_v11 = vrot.slane %v3666_v54, %v10314_v5  ;;  %v8942_v20 = vadd.f32 %v14375_v63, %v14374_v36  ;;  %v3532_v39 = vld [vmem:[%s14022_s4] sm:$0xff]  ;;  %v3533_v33 = vld [vmem:[%s14022_s4 + $0x8] sm:$0xff] }
 0x220   : > { %14371 = vst [vmem:[#allocation70_spill] sm:$0xff] %v11847_v27  ;;  %v2664_v15 = vrot.slane %v2650_v16, %v10314_v5  ;;  %v2665_v61 = vcombine.high %v2657_v6, %v2657_v6  ;;  %v11862_v10 = vrot.slane %v2657_v6, %v10314_v5  ;;  %v2027_v6 = vrot.slane %v2020_v59, %v10314_v5 }
 0x221   : > { %14372 = vst [vmem:[#allocation71_spill] sm:$0xff] %v11856_v11  ;;  %v4225_v54 = vcombine.low %v11847_v27, %v11850_v8  ;;  %v3667_v16 = vcombine.low %v11510_v18, %v11853_v43  ;;  %v8994_v30 = vadd.f32 %v14377_v21, %v14376_v32  ;;  %v11880_v63 = vmul.f32 0.2, %v11825_v26 }
 0x222   : > { %v2666_v36 = vcombine.high %v2664_v15, %v2664_v15  ;;  %v2687_v7 = vrot.slane %v2665_v61, %v10314_v5  ;;  %v11885_v1 = vcombine.high %v11862_v10, %v11862_v10  ;;  %v2940_v40 = vmax.f32 %v11771_v57, %v2859_v55 }
 0x223   : > { %v2941_v23 = vmax.f32 %v11800_v41, %v2860_v25  ;;  %9285 = vmatmul.mubr.msk.f32.vlgmr.msra.gmra.mrb[24].mxu1 %vm562_vm1, %v4225_v54  ;;  %v11891_v18 = vrot.slane %v3667_v16, %v10314_v5  ;;  %v9715_v21 = vpack.c.bf16 %v3533_v33, %v3532_v39  ;;  %v2942_v59 = vmax.f32 %v2648_v2, %v2861_v0 }
 0x224   : > { %v2943_v32 = vmax.f32 %v11747_v17, %v2862_v35  ;;  %v11895_v56 = vrot.slane %v2666_v36, %v10314_v5  ;;  %v2867_v61 = vmul.f32 0.2, %v2687_v7  ;;  %9287 = vmatprep.mubr.msk.f32.mxu1 %vm9983_vm3, %v14316_v37  ;;  %v11900_v57 = vmul.f32 0.2, %v11862_v10  ;;  %v8722_v36 = vld [vmem:[%s14022_s4 + $0x300] sm:$0xff] }
 0x225   : > { %v11903_v41 = vmul.f32 0.2, %v11885_v1  ;;  %v3682_v55 = vcombine.low %v11856_v11, %v11891_v18  ;;  %v2113_v25 = vadd.f32 %v8942_v20, %v2027_v6  ;;  %9716 = vmatpush3.bf16.msra.mxu0 %v9715_v21  ;;  %v11912_v2 = vrot.slane %v5317_v12, %v10314_v5 }
 0x226   : > { %v2698_v35 = vcombine.high %v11895_v56, %v11895_v56  ;;  %v14379_v39 = vmov 0.0|0.0   ;;  %v14380_v20 = vrot.slane %v14360_v50, %v10694_v24  ;;  %v14381_v16 = vrot.slane %v14360_v50, %v10686_v52 }
 0x227   : > { %14378 = vst [vmem:[#allocation4_spill] sm:$0xff] %v11912_v2  ;;  %9717 = vmatprep.subr.bf16.mxu0 %v14379_v39  ;;  %v2948_v12 = vmax.f32 %v2687_v7, %v2867_v61  ;;  %9226 = vmatmul.mubr.msk.f32.gmra.mrb[26].mxu0 %vm562_vm1, %v3682_v55  ;;  %v14382_v21 = vrot.slane %v14360_v50, %v10699_v45  ;;  %v8723_v55 = vld [vmem:[%s14022_s4 + $0x308] sm:$0xff] }
 0x228   : > { %v11922_v54 = vmul.f32 %v14380_v20, %v2940_v40  ;;  %v11927_v6 = vmul.f32 %v14381_v16, %v2941_v23  ;;  %v14383_v40 = vrot.slane %v14360_v50, %v10708_v60  ;;  %v11944_v23 = vrot.slane %v2664_v15, %v10314_v5  ;;  %9228 = vmatprep.mubr.msk.f32.mxu0 %vm9983_vm3, %v14316_v37  ;;  %v8724_v15 = vld [vmem:[%s14022_s4 + $0x310] sm:$0xff] }
 0x229   : > { %v11936_v33 = vmul.f32 %v14382_v21, %v2942_v59  ;;  %v2873_v61 = vmul.f32 0.2, %v2698_v35  ;;  %v3534_v59 = vld [vmem:[%s14022_s4 + $0x10] sm:$0xff]  ;;  %v11957_v16 = vcombine.high %v2687_v7, %v2687_v7  ;;  %v3684_v17 = vcombine.low %v11436_v19, %v11444_v29 }
 0x22a   : > { %v11941_v20 = vmul.f32 %v14383_v40, %v2943_v32  ;;  %v3535_v32 = vld [vmem:[%s14022_s4 + $0x18] sm:$0xff]  ;;  %v2193_v40 = vadd.f32 %v8994_v30, %v2113_v25  ;;  %v14384_v11 = vcombine.low %v11304_v9, %v14320_v49  ;;  %v3716_v7 = vcombine.low %v11650_v4, %v11689_v53  ;;  %v14385_v25 = vld [vmem:[#allocation12_spill] sm:$0xff] }
 0x22b   : > { %v2954_v0 = vmax.f32 %v2698_v35, %v2873_v61  ;;  %v8725_v30 = vld [vmem:[%s14022_s4 + $0x318] sm:$0xff]  ;;  %v14386_v19 = vrot.slane %v14385_v25, %v10691_v22  ;;  %v9739_v49 = vpack.c.bf16 %v8723_v55, %v8722_v36  ;;  %v14387_v61 = vrot.slane %v14385_v25, %v10720_v44  ;;  %v3536_v22 = vld [vmem:[%s14022_s4 + $0x20] sm:$0xff]  ;;  %v8727_v55 = vld [vmem:[%s14022_s4 + $0x328] sm:$0xff] }
 0x22c   : > { %v11969_v2 = vrot.slane %v14384_v11, %v10314_v5  ;;  %v2705_v9 = vrot.slane %v2193_v40, %v10314_v5  ;;  %v9718_v11 = vpack.c.bf16 %v3535_v32, %v3534_v59  ;;  %v3700_v29 = vrot.slane %v3684_v17, %v10314_v5  ;;  %v8726_v36 = vld [vmem:[%s14022_s4 + $0x320] sm:$0xff] }
 0x22d   : > { %v11982_v35 = vmul.f32 %v14386_v19, %v2948_v12  ;;  %v11988_v21 = vmul.f32 %v14387_v61, %v2954_v0  ;;  %v11992_v27 = vrot.slane %v3716_v7, %v10314_v5  ;;  %v3537_v12 = vld [vmem:[%s14022_s4 + $0x28] sm:$0xff]  ;;  %9740 = vmatpush3.bf16.msra.mxu1 %v9739_v49  ;;  %v9742_v0 = vpack.c.bf16 %v8725_v30, %v8724_v15 }
 0x22e   : > { %v3970_v60 = vcombine.low %v11853_v43, %v11969_v2  ;;  %v2712_v44 = vrot.slane %v2705_v9, %v10314_v5  ;;  %9719 = vmatpush3.bf16.msra.mxu0 %v9718_v11  ;;  %v3732_v17 = vcombine.low %v11622_v34, %v11629_v3  ;;  %v3715_v59 = vcombine.low %v11969_v2, %v3700_v29 }
 0x22f   : > { %14388 = vst [vmem:[#allocation52_spill] sm:$0xff] %v11988_v21  ;;  %v3986_v40 = vcombine.low %v3700_v29, %v11650_v4  ;;  %9741 = vmatprep.subr.bf16.mxu1 %v14379_v39  ;;  %v4003_v34 = vcombine.low %v11794_v31, %v11808_v48  ;;  %9720 = vmatprep.subr.bf16.mxu0 %v14379_v39 }
 0x230   : > { %v12013_v32 = vrot.slane %v3970_v60, %v10314_v5  ;;  %v2874_v15 = vmul.f32 0.2, %v2712_v44  ;;  %v3742_v7 = vrot.slane %v3732_v17, %v10314_v5  ;;  %v9721_v30 = vpack.c.bf16 %v3537_v12, %v3536_v22 }
 0x231   : > { %v3735_v19 = vcombine.low %v11788_v13, %v11696_v58  ;;  %v12024_v9 = vrot.slane %v3715_v59, %v10314_v5  ;;  %v12027_v60 = vrot.slane %v3986_v40, %v10314_v5  ;;  %v12030_v29 = vrot.slane %v4003_v34, %v10314_v5  ;;  %9743 = vmatpush3.bf16.msra.mxu1 %v9742_v0 }
 0x232   : > { %v9745_v49 = vpack.c.bf16 %v8727_v55, %v8726_v36  ;;  %v2955_v11 = vmax.f32 %v2712_v44, %v2874_v15  ;;  %v3987_v61 = vcombine.low %v11689_v53, %v3742_v7  ;;  %9722 = vmatpush3.bf16.msra.mxu0 %v9721_v30  ;;  %9744 = vmatprep.subr.bf16.mxu1 %v14379_v39  ;;  %v14390_v44 = vld [vmem:[#allocation26_spill] sm:$0xff]  ;;  %v8750_v53 = vld [vmem:[%s14022_s4 + $0x150] sm:$0xff] }
 0x233   : > { %14389 = vst [vmem:[#allocation56_spill] sm:$0xff] %v12030_v29  ;;  %v3763_v22 = vrot.slane %v3735_v19, %v10314_v5  ;;  %v3731_v13 = vcombine.low %v12024_v9, %v11992_v27  ;;  %v4226_v17 = vcombine.low %v12013_v32, %v12027_v60  ;;  %v3764_v36 = vcombine.low %v3742_v7, %v11794_v31  ;;  %v3538_v7 = vld [vmem:[%s14022_s4 + $0x30] sm:$0xff]  ;;  %v3539_v30 = vld [vmem:[%s14022_s4 + $0x38] sm:$0xff] }
 0x234   : > { %v14391_v0 = vrot.slane %v14390_v44, %v10681_v42  ;;  %v12048_v59 = vrot.slane %v3987_v61, %v10314_v5  ;;  %9723 = vmatprep.subr.bf16.mxu0 %v14379_v39  ;;  %v14393_v34 = vcombine.low %v11704_v47, %v11813_v62  ;;  %v14397_v44 = vcombine.low %v11781_v51, %v11805_v28 }
 0x235   : > { %v3765_v40 = vcombine.low %v11808_v48, %v3763_v22  ;;  %9229 = vmatmul.mubr.msk.f32.gmra.mrb[28].mxu0 %vm562_vm1, %v3731_v13  ;;  %9288 = vmatmul.mubr.msk.f32.gmra.mrb[26].mxu1 %vm562_vm1, %v4226_v17  ;;  %v12067_v19 = vrot.slane %v3764_v36, %v10314_v5  ;;  %v8728_v13 = vld [vmem:[%s14022_s4 + $0x330] sm:$0xff]  ;;  %v8729_v17 = vld [vmem:[%s14022_s4 + $0x338] sm:$0xff]  ;;  %v12088_v36 = vmul.f32 0.2, %v11944_v23  ;;  %v9724_v12 = vpack.c.bf16 %v3539_v30, %v3538_v7 }
 0x236   : > { %v12045_v55 = vmul.f32 %v14391_v0, %v2955_v11  ;;  %v12056_v15 = vrot.slane %v14393_v34, %v10314_v5  ;;  %v14395_v11 = vcombine.low %v11818_v38, %v11776_v46  ;;  %v12079_v0 = vrot.slane %v14397_v44, %v10314_v5  ;;  %9290 = vmatprep.mubr.msk.f32.mxu1 %vm9983_vm3, %v14316_v37 }
 0x237   : > { %v4227_v51 = vcombine.low %v12048_v59, %v12030_v29  ;;  %9231 = vmatprep.mubr.msk.f32.mxu0 %vm9983_vm3, %v14316_v37  ;;  %v12099_v34 = vrot.slane %v3765_v40, %v10314_v5  ;;  %9746 = vmatpush3.bf16.msra.mxu1 %v9745_v49  ;;  %v9748_v21 = vpack.c.bf16 %v8729_v17, %v8728_v13 }
 0x238   : > { %14392 = vst [vmem:[#allocation53_spill] sm:$0xff] %v12045_v55  ;;  %14394 = vst [vmem:[#allocation57_spill] sm:$0xff] %v12056_v15  ;;  %v12073_v61 = vrot.slane %v14395_v11, %v10314_v5  ;;  %v4236_v11 = vcombine.low %v3763_v22, %v12056_v15  ;;  %9747 = vmatprep.subr.bf16.mxu1 %v14379_v39  ;;  %v4253_v40 = vcombine.low %v11922_v54, %v11927_v6 }
 0x239   : > { %v3780_v55 = vcombine.low %v12067_v19, %v12099_v34  ;;  %v4254_v49 = vcombine.low %v11936_v33, %v11941_v20  ;;  %v12114_v22 = vmul.f32 0.2, %v11957_v16  ;;  %v14398_v7 = vmax.f32 %v11862_v10, %v11900_v57  ;;  %9291 = vmatmul.mubr.msk.f32.gmra.mrb[28].mxu1 %vm562_vm1, %v4227_v51  ;;  %9725 = vmatpush3.bf16.msra.mxu0 %v9724_v12  ;;  %v14402_v51 = vld [vmem:[#allocation35_spill] sm:$0xff] }
 0x23a   : > { %14396 = vst [vmem:[#allocation12_spill] sm:$0xff] %v12073_v61  ;;  %v4237_v44 = vcombine.low %v12073_v61, %v12079_v0  ;;  %v3797_v46 = vcombine.low %v12056_v15, %v12073_v61  ;;  %v14399_v30 = vrot.slane %v14385_v25, %v10681_v42  ;;  %v4244_v13 = vrot.slane %v4236_v11, %v10314_v5  ;;  %v14403_v11 = vld [vmem:[#allocation36_spill] sm:$0xff] }
 0x23b   : > { %v12126_v15 = vmul.f32 0.2, %v11895_v56  ;;  %9232 = vmatmul.mubr.msk.f32.gmra.mrb[30].mxu0 %vm562_vm1, %v3780_v55  ;;  %9293 = vmatprep.mubr.msk.f32.mxu1 %vm9983_vm3, %v14316_v37  ;;  %v12132_v10 = vrot.slane %v4253_v40, %v10314_v5  ;;  %v12135_v57 = vrot.slane %v4254_v49, %v10314_v5  ;;  %v14406_v49 = vld [vmem:[#allocation39_spill] sm:$0xff] }
 0x23c   : > { %v3523_v48 = vmul.f32 %v14399_v30, %v14398_v7  ;;  %v4251_v17 = vrot.slane %v4237_v44, %v10314_v5  ;;  %v14404_v7 = vcombine.low %v14402_v51, %v14403_v11  ;;  %9234 = vmatprep.mubr.msk.f32.mxu0 %vm9983_vm3, %v14316_v37  ;;  %v12145_v55 = vrot.slane %v3797_v46, %v10314_v5  ;;  %v14407_v51 = vld [vmem:[#allocation29_spill] sm:$0xff]  ;;  %v14408_v11 = vld [vmem:[#allocation28_spill] sm:$0xff] }
 0x23d   : > { %14400 = vst [vmem:[#allocation26_spill] sm:$0xff] %v12132_v10  ;;  %14401 = vst [vmem:[#allocation72_spill] sm:$0xff] %v12135_v57  ;;  %9749 = vmatpush3.bf16.msra.mxu1 %v9748_v21  ;;  %v4269_v40 = vcombine.low %v12132_v10, %v12135_v57  ;;  %9750 = vmatprep.subr.bf16.mxu0 %v14379_v39  ;;  %v8736_v21 = vld [vmem:[%s14022_s4 + $0x48] sm:$0xff]  ;;  %v14410_v46 = vmax.f32 %v11825_v26, %v11880_v63 }
 0x23e   : > { %v3920_v44 = vrot.slane %v14404_v7, %v10314_v5  ;;  %v4512_v12 = vcombine.low %v3523_v48, %v11982_v35  ;;  %v4252_v30 = vcombine.low %v4244_v13, %v4251_v17  ;;  %14405 = vst [vmem:[#allocation35_spill] sm:$0xff] %v12145_v55  ;;  %v14409_v7 = vcombine.low %v14407_v51, %v14408_v11  ;;  %v8735_v13 = vld [vmem:[%s14022_s4 + $0x40] sm:$0xff] }
 0x23f   : > { %9762 = vmatprep.subr.bf16.mxu1 %v14379_v39  ;;  %v14411_v17 = vrot.slane %v14360_v50, %v10717_v14  ;;  %v2951_v51 = vmax.f32 %v11944_v23, %v12088_v36  ;;  %v8748_v11 = vld [vmem:[%s14022_s4 + $0x140] sm:$0xff]  ;;  %v2952_v50 = vmax.f32 %v11895_v56, %v12126_v15  ;;  %9235 = vmatmul.mubr.msk.f32.gmra.mrb[32].mxu0 %vm562_vm1, %v12145_v55  ;;  %v8749_v36 = vld [vmem:[%s14022_s4 + $0x148] sm:$0xff]  ;;  %v8738_v56 = vld [vmem:[%s14022_s4 + $0x58] sm:$0xff] }
 0x240   : > { %v3935_v61 = vcombine.low %v3920_v44, %v14406_v49  ;;  %v3950_v48 = vrot.slane %v14409_v7, %v10314_v5  ;;  %v2950_v49 = vmax.f32 %v11957_v16, %v12114_v22  ;;  %9294 = vmatmul.mubr.msk.f32.gmra.mrb[30].mxu1 %vm562_vm1, %v4252_v30  ;;  %v14412_v22 = vld [vmem:[#allocation21_spill] sm:$0xff]  ;;  %v14413_v30 = vld [vmem:[#allocation38_spill] sm:$0xff]  ;;  %v12199_v15 = vrot.slane %v4269_v40, %v10314_v5 }
 0x241   : > { %v12168_v44 = vmul.f32 %v14411_v17, %v14410_v46  ;;  %9296 = vmatprep.mubr.msk.f32.mxu1 %vm9983_vm3, %v14316_v37  ;;  %v3952_v7 = vcombine.low %v14413_v30, %v14412_v22  ;;  %v8737_v46 = vld [vmem:[%s14022_s4 + $0x50] sm:$0xff]  ;;  %9253 = vmatprep.mubr.msk.f32.mxu0 %vm9983_vm3, %v14316_v37  ;;  %v3985_v17 = vcombine.low %v11850_v8, %v12013_v32  ;;  %v8751_v8 = vld [vmem:[%s14022_s4 + $0x158] sm:$0xff] }
 0x242   : > { %v3943_v16 = vrot.slane %v3935_v61, %v10314_v5  ;;  %14414 = vst [vmem:[#allocation36_spill] sm:$0xff] %v12199_v15  ;;  %v9751_v61 = vpack.c.bf16 %v8736_v21, %v8735_v13  ;;  %v14415_v63 = vmax.f32 %v11885_v1, %v11903_v41  ;;  %v14416_v22 = vrot.slane %v14385_v25, %v10694_v24 }
 0x243   : > { %v4519_v21 = vrot.slane %v4512_v12, %v10314_v5  ;;  %v14417_v1 = vrot.slane %v14385_v25, %v10699_v45  ;;  %v9763_v41 = vpack.c.bf16 %v8749_v36, %v8748_v11  ;;  %v12237_v12 = vrot.slane %v3952_v7, %v10314_v5  ;;  %v14418_v36 = vld [vmem:[#allocation17_spill] sm:$0xff]  ;;  %v14419_v7 = vld [vmem:[#allocation40_spill] sm:$0xff] }
 0x244   : > { %v12213_v31 = vmul.f32 %v14416_v22, %v14415_v63  ;;  %v3951_v40 = vcombine.low %v3943_v16, %v3950_v48  ;;  %9297 = vmatmul.mubr.msk.f32.gmra.mrb[32].mxu1 %vm562_vm1, %v12199_v15  ;;  %v9754_v48 = vpack.c.bf16 %v8738_v56, %v8737_v46  ;;  %v4520_v63 = vcombine.low %v12079_v0, %v12132_v10  ;;  %v8739_v0 = vld [vmem:[%s14022_s4 + $0x60] sm:$0xff]  ;;  %v8740_v16 = vld [vmem:[%s14022_s4 + $0x68] sm:$0xff]  ;;  %v14440_v15 = vld [vmem:[#allocation9_spill] sm:$0xff] }
 0x245   : > { %v12227_v24 = vmul.f32 %v14417_v1, %v2951_v51  ;;  %9315 = vmatprep.mubr.msk.f32.mxu1 %vm9983_vm3, %v14316_v37  ;;  %v4521_v45 = vcombine.low %v12135_v57, %v4519_v21  ;;  %v3349_v51 = vrot.slane %v14385_v25, %v10686_v52  ;;  %v9766_v11 = vpack.c.bf16 %v8751_v8, %v8750_v53  ;;  %v14420_v46 = vld [vmem:[#allocation34_spill] sm:$0xff] }
 0x246   : > { %9254 = vmatmul.mubr.msk.f32.vlgmr.msra.gmra.mrb[24].mxu0 %vm562_vm1, %v3951_v40  ;;  %v3357_v22 = vrot.slane %v14385_v25, %v14418_v36  ;;  %v14421_v52 = vcombine.low %v14419_v7, %v14420_v46  ;;  %v12262_v40 = vrot.slane %v4520_v63, %v10314_v5  ;;  %v14423_v1 = vcombine.low %v11891_v18, %v12024_v9  ;;  %v14424_v7 = vld [vmem:[#allocation47_spill] sm:$0xff] }
 0x247   : > { %9752 = vmatpush3.bf16.msra.mxu0 %v9751_v61  ;;  %9256 = vmatprep.mubr.msk.f32.mxu0 %vm9983_vm3, %v14316_v37  ;;  %v14422_v61 = vld [vmem:[#allocation70_spill] sm:$0xff]  ;;  %v12265_v8 = vrot.slane %v4521_v45, %v10314_v5  ;;  %v12267_v21 = vmul.f32 %v3349_v51, %v2950_v49  ;;  %v14428_v45 = vld [vmem:[#allocation27_spill] sm:$0xff]  ;;  %v9757_v18 = vpack.c.bf16 %v8740_v16, %v8739_v0 }
 0x248   : > { %v12256_v56 = vrot.slane %v14421_v52, %v10314_v5  ;;  %v3968_v53 = vcombine.low %v12237_v12, %v14422_v61  ;;  %9753 = vmatprep.subr.bf16.mxu0 %v14379_v39  ;;  %9316 = vmatmul.mubr.msk.f32.vlgmr.msra.gmra.mrb[34].mxu1 %vm562_vm1, %v14423_v1  ;;  %v12273_v36 = vmul.f32 %v3357_v22, %v2952_v50  ;;  %v14425_v52 = vld [vmem:[#allocation30_spill] sm:$0xff]  ;;  %v14426_v61 = vld [vmem:[#allocation37_spill] sm:$0xff]  ;;  %v14429_v49 = vld [vmem:[#allocation55_spill] sm:$0xff] }
 0x249   : > { %v14427_v63 = vcombine.low %v14425_v52, %v14426_v61  ;;  %v14430_v51 = vcombine.low %v14428_v45, %v14429_v49  ;;  %9764 = vmatpush3.bf16.msra.mxu1 %v9763_v41  ;;  %v4874_v50 = vcombine.low %v14426_v61, %v14428_v45  ;;  %9318 = vmatprep.mubr.msk.f32.mxu1 %vm9983_vm3, %v14316_v37  ;;  %v8752_v22 = vld [vmem:[%s14022_s4 + $0x160] sm:$0xff]  ;;  %v8753_v41 = vld [vmem:[%s14022_s4 + $0x168] sm:$0xff]  ;;  %v14433_v1 = vld [vmem:[#allocation33_spill] sm:$0xff] }
 0x24a   : > { %9257 = vmatmul.mubr.msk.f32.gmra.mrb[26].mxu0 %vm562_vm1, %v3968_v53  ;;  %v4537_v0 = vcombine.low %v12213_v31, %v12267_v21  ;;  %v4538_v16 = vcombine.low %v12227_v24, %v12273_v36  ;;  %9765 = vmatprep.subr.bf16.mxu1 %v14379_v39  ;;  %v14434_v61 = vld [vmem:[#allocation31_spill] sm:$0xff]  ;;  %v14441_v45 = vcombine.low %v12099_v34, %v12145_v55 }
 0x24b   : > { %v12281_v13 = vrot.slane %v14427_v63, %v10314_v5  ;;  %v12287_v30 = vrot.slane %v14430_v51, %v10314_v5  ;;  %9755 = vmatpush3.bf16.msra.mxu0 %v9754_v48  ;;  %v12310_v48 = vcombine.high %v11825_v26, %v11825_v26  ;;  %9259 = vmatprep.mubr.msk.f32.mxu0 %vm9983_vm3, %v14316_v37  ;;  %v8741_v51 = vld [vmem:[%s14022_s4 + $0x70] sm:$0xff]  ;;  %v12347_v46 = vld [vmem:[%s14022_s4 + $0x240] sm:$0xff] }
 0x24c   : > { %v12318_v52 = vrot.slane %v4874_v50, %v10314_v5  ;;  %v14432_v26 = vcombine.low %v11992_v27, %v12067_v19  ;;  %9756 = vmatprep.subr.bf16.mxu0 %v14379_v39  ;;  %v8742_v50 = vld [vmem:[%s14022_s4 + $0x78] sm:$0xff]  ;;  %v4892_v53 = vcombine.low %v14434_v61, %v14433_v1  ;;  %v9769_v63 = vpack.c.bf16 %v8753_v41, %v8752_v22  ;;  %v8754_v19 = vld [vmem:[%s14022_s4 + $0x170] sm:$0xff]  ;;  %v14435_v9 = vld [vmem:[#allocation19_spill] sm:$0xff] }
 0x24d   : > { %9767 = vmatpush3.bf16.msra.mxu1 %v9766_v11  ;;  %v4875_v1 = vcombine.low %v14429_v49, %v14435_v9  ;;  %v12356_v22 = vrot.slane %v4537_v0, %v10314_v5  ;;  %v12359_v41 = vrot.slane %v4538_v16, %v10314_v5  ;;  %v12364_v61 = vld [vmem:[%s14022_s4 + $0x248] sm:$0xff]  ;;  %v12369_v49 = vld [vmem:[%s14022_s4 + $0x340] sm:$0xff]  ;;  %v12379_v16 = vcombine.high %v11944_v23, %v11944_v23  ;;  %v12394_v23 = vld [vmem:[%s14022_s4 + $0x250] sm:$0xff] }
 0x24e   : > { %14431 = vst [vmem:[#allocation39_spill] sm:$0xff] %v12318_v52  ;;  %9319 = vmatmul.mubr.msk.f32.gmra.mrb[36].mxu1 %vm562_vm1, %v14432_v26  ;;  %9260 = vmatmul.mubr.msk.f32.gmra.mrb[28].mxu0 %vm562_vm1, %v3985_v17  ;;  %v8755_v26 = vld [vmem:[%s14022_s4 + $0x178] sm:$0xff]  ;;  %v4908_v0 = vrot.slane %v4892_v53, %v10314_v5  ;;  %v9760_v17 = vpack.c.bf16 %v8742_v50, %v8741_v51 }
 0x24f   : > { %9321 = vmatprep.mubr.msk.f32.mxu1 %vm9983_vm3, %v14316_v37  ;;  %9758 = vmatpush3.bf16.msra.mxu0 %v9757_v18  ;;  %14437 = vst [vmem:[#allocation29_spill] sm:$0xff] %v12356_v22  ;;  %14438 = vst [vmem:[#allocation28_spill] sm:$0xff] %v12359_v41  ;;  %v12374_v18 = vld [vmem:[%s14022_s4 + $0x348] sm:$0xff]  ;;  %v14439_v11 = vld [vmem:[#allocation10_spill] sm:$0xff]  ;;  %v9772_v53 = vpack.c.bf16 %v8755_v26, %v8754_v19  ;;  %v14444_v34 = vcombine.low %v12027_v60, %v12048_v59 }
 0x250   : > { %9262 = vmatprep.mubr.msk.f32.mxu0 %vm9983_vm3, %v14316_v37  ;;  %9768 = vmatprep.subr.bf16.mxu1 %v14379_v39  ;;  %v4940_v57 = vcombine.low %v14440_v15, %v14439_v11  ;;  %v12399_v51 = vld [vmem:[%s14022_s4 + $0x258] sm:$0xff]  ;;  %v4553_v60 = vcombine.low %v12356_v22, %v12359_v41  ;;  %v12419_v59 = vrot.slane %v4875_v1, %v10314_v5  ;;  %v12441_v1 = vld [vmem:[%s14022_s4 + $0x350] sm:$0xff]  ;;  %v14453_v22 = vld [vmem:[#allocation67_spill] sm:$0xff] }
 0x251   : > { %9759 = vmatprep.subr.bf16.mxu0 %v14379_v39  ;;  %v14442_v50 = vld [vmem:[#allocation22_spill] sm:$0xff]  ;;  %9770 = vmatpush3.bf16.msra.mxu1 %v9769_v63  ;;  %v14447_v19 = vcombine.low %v12262_v40, %v12265_v8 }
 0x252   : > { %9322 = vmatmul.mubr.msk.f32.gmra.mrb[38].mxu1 %vm562_vm1, %v14441_v45  ;;  %v5258_v15 = vcombine.low %v4908_v0, %v14442_v50  ;;  %v14443_v11 = vld [vmem:[#allocation62_spill] sm:$0xff]  ;;  %9263 = vmatmul.mubr.msk.f32.gmra.mrb[30].mxu0 %vm562_vm1, %v14444_v34  ;;  %v9775_v45 = vpack.c.bf16 %v12364_v61, %v12347_v46  ;;  %v4950_v26 = vrot.slane %v4940_v57, %v10314_v5 }
 0x253   : > { %v4923_v10 = vcombine.low %v14443_v11, %v4908_v0  ;;  %9324 = vmatprep.mubr.msk.f32.mxu1 %vm9983_vm3, %v14316_v37  ;;  %9265 = vmatprep.mubr.msk.f32.mxu0 %vm9983_vm3, %v14316_v37  ;;  %v9778_v57 = vpack.c.bf16 %v12399_v51, %v12394_v23  ;;  %v14445_v46 = vld [vmem:[#allocation18_spill] sm:$0xff]  ;;  %v14446_v0 = vld [vmem:[#allocation43_spill] sm:$0xff]  ;;  %v14448_v51 = vld [vmem:[#allocation20_spill] sm:$0xff] }
 0x254   : > { %9761 = vmatpush3.bf16.msra.mxu0 %v9760_v17  ;;  %9771 = vmatprep.subr.bf16.mxu1 %v14379_v39  ;;  %v5274_v61 = vcombine.low %v14445_v46, %v4950_v26  ;;  %v4943_v34 = vcombine.low %v11629_v3, %v14446_v0  ;;  %v12446_v17 = vld [vmem:[%s14022_s4 + $0x358] sm:$0xff]  ;;  %v4924_v3 = vcombine.low %v14442_v50, %v14445_v46  ;;  %v14449_v0 = vld [vmem:[#allocation44_spill] sm:$0xff] }
 0x255   : > { %v12422_v63 = vrot.slane %v4923_v10, %v10314_v5  ;;  %9774 = vmatprep.subr.bf16.mxu0 %v14379_v39  ;;  %v12436_v10 = vrot.slane %v5258_v15, %v10314_v5  ;;  %v4972_v15 = vcombine.low %v4950_v26, %v14448_v51  ;;  %9773 = vmatpush3.bf16.msra.mxu1 %v9772_v53  ;;  %v14450_v40 = vld [vmem:[#allocation66_spill] sm:$0xff] }
 0x256   : > { %9325 = vmatmul.mubr.msk.f32.gmra.mrb[40].mxu1 %vm562_vm1, %v14447_v19  ;;  %9266 = vmatmul.mubr.msk.f32.gmra.mrb[32].mxu0 %vm562_vm1, %v12030_v29  ;;  %v12457_v8 = vrot.slane %v5274_v61, %v10314_v5  ;;  %v4971_v23 = vrot.slane %v4943_v34, %v10314_v5  ;;  %v4560_v19 = vrot.slane %v4553_v60, %v10314_v5  ;;  %v14454_v61 = vld [vmem:[#allocation68_spill] sm:$0xff]  ;;  %v14457_v34 = vld [vmem:[#allocation58_spill] sm:$0xff] }
 0x257   : > { %9327 = vmatprep.mubr.msk.f32.mxu1 %vm9983_vm3, %v14316_v37  ;;  %9346 = vmatprep.mubr.msk.f32.mxu0 %vm9983_vm3, %v14316_v37  ;;  %v14451_v50 = vcombine.low %v14449_v0, %v14450_v40  ;;  %v14455_v55 = vcombine.low %v14453_v22, %v14454_v61  ;;  %v5257_v53 = vcombine.low %v14435_v9, %v14443_v11 }
 0x258   : > { %9786 = vmatprep.subr.bf16.mxu1 %v14379_v39  ;;  %v9790_v26 = vpack.c.bf16 %v12446_v17, %v12441_v1  ;;  %v5275_v22 = vcombine.low %v14448_v51, %v14457_v34  ;;  %v14459_v17 = vcombine.low %v12256_v56, %v14424_v7  ;;  %v5316_v56 = vcombine.low %v11813_v62, %v11818_v38 }
 0x259   : > { %v12468_v41 = vrot.slane %v14451_v50, %v10314_v5  ;;  %v12474_v29 = vrot.slane %v14455_v55, %v10314_v5  ;;  %v4973_v50 = vcombine.low %v14457_v34, %v4971_v23  ;;  %v14458_v55 = vcombine.low %v11696_v58, %v11704_v47  ;;  %v8766_v47 = vld [vmem:[%s14022_s4 + $0x268] sm:$0xff] }
 0x25a   : > { %9328 = vmatmul.mubr.msk.f32.gmra.mrb[42].mxu1 %vm562_vm1, %v4560_v19  ;;  %9347 = vmatmul.mubr.msk.f32.vlgmr.msra.gmra.mrb[34].mxu0 %vm562_vm1, %v14459_v17  ;;  %v8765_v19 = vld [vmem:[%s14022_s4 + $0x260] sm:$0xff]  ;;  %v12507_v58 = vrot.slane %v4972_v15, %v10314_v5  ;;  %v12517_v7 = vrot.slane %v4924_v3, %v10314_v5  ;;  %v4890_v15 = vcombine.low %v12318_v52, %v12419_v59  ;;  %v8779_v17 = vld [vmem:[%s14022_s4 + $0x368] sm:$0xff] }
 0x25b   : > { %14452 = vst [vmem:[#allocation38_spill] sm:$0xff] %v12468_v41  ;;  %14456 = vst [vmem:[#allocation17_spill] sm:$0xff] %v12474_v29  ;;  %v5298_v40 = vrot.slane %v14458_v55, %v10314_v5  ;;  %v5299_v9 = vcombine.low %v4971_v23, %v12468_v41  ;;  %v5005_v1 = vcombine.low %v12468_v41, %v12474_v29  ;;  %9377 = vmatprep.mubr.msk.f32.mxu1 %vm9983_vm3, %v14316_v37  ;;  %v14476_v41 = vld [vmem:[#allocation49_spill] sm:$0xff] }
 0x25c   : > { %v12510_v23 = vrot.slane %v4973_v50, %v10314_v5  ;;  %9776 = vmatpush3.bf16.msra.mxu0 %v9775_v45  ;;  %9349 = vmatprep.mubr.msk.f32.mxu0 %vm9983_vm3, %v14316_v37  ;;  %v12527_v50 = vrot.slane %v5257_v53, %v10314_v5  ;;  %v12532_v38 = vrot.slane %v5316_v56, %v10314_v5  ;;  %v8778_v53 = vld [vmem:[%s14022_s4 + $0x360] sm:$0xff] }
 0x25d   : > { %v5300_v0 = vcombine.low %v12474_v29, %v5298_v40  ;;  %v12521_v55 = vrot.slane %v5005_v1, %v10314_v5  ;;  %9777 = vmatprep.subr.bf16.mxu0 %v14379_v39  ;;  %v14461_v45 = vcombine.low %v12281_v13, %v12287_v30  ;;  %v12539_v3 = vrot.slane %v5275_v22, %v10314_v5  ;;  %v14463_v22 = vld [vmem:[#allocation4_spill] sm:$0xff] }
 0x25e   : > { %v4988_v62 = vcombine.low %v12507_v58, %v12510_v23  ;;  %14460 = vst [vmem:[#allocation40_spill] sm:$0xff] %v12532_v38  ;;  %v9781_v1 = vpack.c.bf16 %v8766_v47, %v8765_v19  ;;  %v12548_v56 = vrot.slane %v5299_v9, %v10314_v5  ;;  %v14462_v30 = vpack.c.bf16 %v12374_v18, %v12369_v49 }
 0x25f   : > { %9378 = vmatmul.mubr.msk.f32.vlgmr.msra.gmra.mrb[44].mxu1 %vm562_vm1, %v14461_v45  ;;  %v12551_v60 = vrot.slane %v5300_v0, %v10314_v5  ;;  %9350 = vmatmul.mubr.msk.f32.gmra.mrb[36].mxu0 %vm562_vm1, %v4890_v15  ;;  %v5273_v13 = vcombine.low %v12527_v50, %v12436_v10  ;;  %v5332_v19 = vcombine.low %v12532_v38, %v14463_v22  ;;  %v12649_v29 = vmul.f32 0.2, %v12310_v48 }
 0x260   : > { %9788 = vmatpush3.bf16.msra.mxu1 %v14462_v30  ;;  %9380 = vmatprep.mubr.msk.f32.mxu1 %vm9983_vm3, %v14316_v37  ;;  %v4939_v9 = vcombine.low %v12422_v63, %v12517_v7  ;;  %v14464_v18 = vcombine.low %v11805_v28, %v11922_v54  ;;  %v9793_v15 = vpack.c.bf16 %v8779_v17, %v8778_v53  ;;  %v8767_v28 = vld [vmem:[%s14022_s4 + $0x270] sm:$0xff]  ;;  %v8768_v54 = vld [vmem:[%s14022_s4 + $0x278] sm:$0xff] }
 0x261   : > { %9779 = vmatpush3.bf16.msra.mxu0 %v9778_v57  ;;  %v5315_v49 = vcombine.low %v12548_v56, %v12551_v60  ;;  %9789 = vmatprep.subr.bf16.mxu1 %v14379_v39  ;;  %v12577_v45 = vrot.slane %v5332_v19, %v10314_v5  ;;  %v5578_v57 = vcombine.low %v5298_v40, %v12532_v38  ;;  %v14475_v38 = vld [vmem:[#allocation16_spill] sm:$0xff] }
 0x262   : > { %v5577_v0 = vrot.slane %v14464_v18, %v10314_v5  ;;  %9352 = vmatprep.mubr.msk.f32.mxu0 %vm9983_vm3, %v14316_v37  ;;  %9780 = vmatprep.subr.bf16.mxu0 %v14379_v39  ;;  %v5290_v30 = vcombine.low %v12457_v8, %v12539_v3  ;;  %v14465_v40 = vcombine.low %v11927_v6, %v11936_v33 }
 0x263   : > { %9381 = vmatmul.mubr.msk.f32.gmra.mrb[46].mxu1 %vm562_vm1, %v5273_v13  ;;  %9353 = vmatmul.mubr.msk.f32.gmra.mrb[38].mxu0 %vm562_vm1, %v4939_v9  ;;  %v14466_v19 = vcombine.low %v11941_v20, %v12168_v44  ;;  %v5849_v47 = vcombine.low %v11982_v35, %v12213_v31  ;;  %v12611_v33 = vrot.slane %v5578_v57, %v10314_v5  ;;  %v14467_v9 = vld [vmem:[#allocation48_spill] sm:$0xff] }
 0x264   : > { %v5579_v53 = vcombine.low %v14463_v22, %v5577_v0  ;;  %v12595_v17 = vrot.slane %v14465_v40, %v10314_v5  ;;  %9791 = vmatpush3.bf16.msra.mxu1 %v9790_v26  ;;  %9383 = vmatprep.mubr.msk.f32.mxu1 %vm9983_vm3, %v14316_v37  ;;  %v9784_v31 = vpack.c.bf16 %v8768_v54, %v8767_v28  ;;  %v8780_v35 = vld [vmem:[%s14022_s4 + $0x370] sm:$0xff]  ;;  %v2872_v28 = vmul.f32 0.2, %v12379_v16 }
 0x265   : > { %v12604_v18 = vrot.slane %v14466_v19, %v10314_v5  ;;  %9782 = vmatpush3.bf16.msra.mxu0 %v9781_v1  ;;  %9355 = vmatprep.mubr.msk.f32.mxu0 %vm9983_vm3, %v14316_v37  ;;  %v8781_v1 = vld [vmem:[%s14022_s4 + $0x378] sm:$0xff]  ;;  %v5856_v57 = vrot.slane %v5849_v47, %v10314_v5  ;;  %v14469_v40 = vld [vmem:[#allocation24_spill] sm:$0xff]  ;;  %v14471_v47 = vld [vmem:[#allocation63_spill] sm:$0xff]  ;;  %v14477_v51 = vmax.f32 %v14475_v38, %v14476_v41 }
 0x266   : > { %v12614_v6 = vrot.slane %v5579_v53, %v10314_v5  ;;  %v5857_v26 = vcombine.low %v5577_v0, %v12595_v17  ;;  %9792 = vmatprep.subr.bf16.mxu1 %v14379_v39  ;;  %v14468_v53 = vld [vmem:[#allocation65_spill] sm:$0xff]  ;;  %9783 = vmatprep.subr.bf16.mxu0 %v14379_v39  ;;  %v14472_v13 = vld [vmem:[#allocation64_spill] sm:$0xff]  ;;  %v14480_v38 = vld [vmem:[#allocation7_spill] sm:$0xff] }
 0x267   : > { %v14470_v19 = vcombine.low %v14468_v53, %v14469_v40  ;;  %9384 = vmatmul.mubr.msk.f32.gmra.mrb[48].mxu1 %vm562_vm1, %v5290_v30  ;;  %v14473_v52 = vcombine.low %v14471_v47, %v14472_v13  ;;  %9356 = vmatmul.mubr.msk.f32.gmra.mrb[40].mxu0 %vm562_vm1, %v4988_v62  ;;  %v5858_v40 = vcombine.low %v12604_v18, %v5856_v57  ;;  %v14478_v13 = vld [vmem:[#allocation23_spill] sm:$0xff]  ;;  %v14482_v57 = vld [vmem:[#allocation32_spill] sm:$0xff] }
 0x268   : > { %9794 = vmatpush3.bf16.msra.mxu1 %v9793_v15  ;;  %v12654_v30 = vrot.slane %v5857_v26, %v10314_v5  ;;  %9386 = vmatprep.mubr.msk.f32.mxu1 %vm9983_vm3, %v14316_v37  ;;  %v9796_v62 = vpack.c.bf16 %v8781_v1, %v8780_v35  ;;  %v8787_v15 = vld [vmem:[%s14022_s4 + $0x80] sm:$0xff]  ;;  %v8788_v41 = vld [vmem:[%s14022_s4 + $0x88] sm:$0xff]  ;;  %v8802_v1 = vld [vmem:[%s14022_s4 + $0x190] sm:$0xff] }
 0x269   : > { %v12635_v20 = vrot.slane %v14470_v19, %v10314_v5  ;;  %v12646_v0 = vrot.slane %v14473_v52, %v10314_v5  ;;  %v14474_v19 = vld [vmem:[#allocation46_spill] sm:$0xff]  ;;  %v14479_v52 = vrot.slane %v14478_v13, %v10681_v42  ;;  %9358 = vmatprep.mubr.msk.f32.mxu0 %vm9983_vm3, %v14316_v37  ;;  %v14483_v13 = vld [vmem:[#allocation59_spill] sm:$0xff]  ;;  %9785 = vmatpush3.bf16.msra.mxu0 %v9784_v31 }
 0x26a   : > { %9795 = vmatprep.subr.bf16.mxu1 %v14379_v39  ;;  %v12690_v35 = vrot.slane %v5858_v40, %v10314_v5  ;;  %v2953_v42 = vmax.f32 %v12379_v16, %v2872_v28  ;;  %9798 = vmatprep.subr.bf16.mxu0 %v14379_v39  ;;  %v9799_v40 = vpack.c.bf16 %v8788_v41, %v8787_v15  ;;  %v8800_v16 = vld [vmem:[%s14022_s4 + $0x180] sm:$0xff] }
 0x26b   : > { %v12664_v47 = vmul.f32 %v14479_v52, %v14477_v51  ;;  %v14481_v51 = vcombine.low %v14480_v38, %v14468_v53  ;;  %v14484_v52 = vcombine.low %v14482_v57, %v14483_v13  ;;  %9387 = vmatmul.mubr.msk.f32.gmra.mrb[50].mxu1 %vm562_vm1, %v5315_v49  ;;  %v14485_v53 = vld [vmem:[#allocation11_spill] sm:$0xff]  ;;  %v14486_v38 = vld [vmem:[#allocation61_spill] sm:$0xff]  ;;  %9359 = vmatmul.mubr.msk.f32.gmra.mrb[42].mxu0 %vm562_vm1, %v12521_v55 }
 0x26c   : > { %9389 = vmatprep.mubr.msk.f32.mxu1 %vm9983_vm3, %v14316_v37  ;;  %v8801_v49 = vld [vmem:[%s14022_s4 + $0x188] sm:$0xff]  ;;  %9797 = vmatpush3.bf16.msra.mxu1 %v9796_v62  ;;  %v3361_v13 = vrot.slane %v14385_v25, %v10717_v14  ;;  %v6188_v41 = vcombine.low %v14485_v53, %v11853_v43  ;;  %v8789_v62 = vld [vmem:[%s14022_s4 + $0x90] sm:$0xff]  ;;  %v14488_v43 = vld [vmem:[#allocation6_spill] sm:$0xff] }
 0x26d   : > { %v12680_v26 = vrot.slane %v14481_v51, %v10314_v5  ;;  %v12686_v54 = vrot.slane %v14484_v52, %v10314_v5  ;;  %v6474_v51 = vcombine.low %v14486_v38, %v14485_v53  ;;  %9408 = vmatprep.mubr.msk.f32.mxu0 %vm9983_vm3, %v14316_v37  ;;  %9810 = vmatprep.subr.bf16.mxu1 %v14379_v39  ;;  %v8790_v38 = vld [vmem:[%s14022_s4 + $0x98] sm:$0xff] }
 0x26e   : > { %v14487_v14 = vld [vmem:[#allocation45_spill] sm:$0xff]  ;;  %v6484_v53 = vcombine.low %v14488_v43, %v12646_v0  ;;  %v9811_v31 = vpack.c.bf16 %v8801_v49, %v8800_v16  ;;  %v12742_v52 = vmul.f32 %v3361_v13, %v2953_v42  ;;  %v8791_v42 = vld [vmem:[%s14022_s4 + $0xa0] sm:$0xff]  ;;  %v8792_v49 = vld [vmem:[%s14022_s4 + $0xa8] sm:$0xff] }
 0x26f   : > { %v12718_v15 = vrot.slane %v6474_v51, %v10314_v5  ;;  %v6189_v25 = vcombine.low %v11969_v2, %v14487_v14  ;;  %v6483_v51 = vcombine.low %v14487_v14, %v11650_v4  ;;  %9390 = vmatmul.mubr.msk.f32.gmra.mrb[52].mxu1 %vm562_vm1, %v12577_v45  ;;  %v12747_v2 = vrot.slane %v6188_v41, %v10314_v5  ;;  %v8803_v16 = vld [vmem:[%s14022_s4 + $0x198] sm:$0xff] }
 0x270   : > { %v14489_v4 = vcombine.low %v12419_v59, %v12422_v63  ;;  %9439 = vmatprep.mubr.msk.f32.mxu1 %vm9983_vm3, %v14316_v37  ;;  %v12771_v63 = vrot.slane %v6484_v53, %v10314_v5  ;;  %v5568_v41 = vcombine.low %v12517_v7, %v12507_v58  ;;  %v9802_v14 = vpack.c.bf16 %v8790_v38, %v8789_v62  ;;  %v14490_v43 = vld [vmem:[#allocation13_spill] sm:$0xff]  ;;  %v8805_v38 = vld [vmem:[%s14022_s4 + $0x1a8] sm:$0xff] }
 0x271   : > { %v12765_v13 = vrot.slane %v6189_v25, %v10314_v5  ;;  %v12768_v59 = vrot.slane %v6483_v51, %v10314_v5  ;;  %v5847_v25 = vcombine.low %v12539_v3, %v12548_v56  ;;  %v14491_v58 = vcombine.low %v12436_v10, %v12457_v8  ;;  %v8804_v56 = vld [vmem:[%s14022_s4 + $0x1a0] sm:$0xff] }
 0x272   : > { %9409 = vmatmul.mubr.msk.f32.vlgmr.msra.gmra.mrb[44].mxu0 %vm562_vm1, %v14489_v4  ;;  %v6213_v4 = vcombine.low %v12646_v0, %v14490_v43  ;;  %v9814_v0 = vpack.c.bf16 %v8803_v16, %v8802_v1  ;;  %v9805_v62 = vpack.c.bf16 %v8792_v49, %v8791_v42  ;;  %v5874_v10 = vcombine.low %v12267_v21, %v12227_v24  ;;  %v14493_v1 = vld [vmem:[#allocation12_spill] sm:$0xff]  ;;  %v14498_v51 = vld [vmem:[#allocation26_spill] sm:$0xff] }
 0x273   : > { %9800 = vmatpush3.bf16.msra.mxu0 %v9799_v40  ;;  %9411 = vmatprep.mubr.msk.f32.mxu0 %vm9983_vm3, %v14316_v37  ;;  %v14492_v40 = vld [vmem:[#allocation54_spill] sm:$0xff]  ;;  %v5875_v8 = vcombine.low %v12273_v36, %v12742_v52  ;;  %v6517_v16 = vcombine.low %v14493_v1, %v12680_v26  ;;  %v9817_v24 = vpack.c.bf16 %v8805_v38, %v8804_v56  ;;  %v8793_v21 = vld [vmem:[%s14022_s4 + $0xb0] sm:$0xff] }
 0x274   : > { %9801 = vmatprep.subr.bf16.mxu0 %v14379_v39  ;;  %9440 = vmatmul.mubr.msk.f32.vlgmr.msra.gmra.mrb[54].mxu1 %vm562_vm1, %v14491_v58  ;;  %v12799_v43 = vrot.slane %v6213_v4, %v10314_v5  ;;  %v6222_v53 = vcombine.low %v14454_v61, %v14492_v40  ;;  %v5611_v36 = vcombine.low %v12595_v17, %v12604_v18  ;;  %v14494_v49 = vld [vmem:[#allocation56_spill] sm:$0xff]  ;;  %v14495_v58 = vld [vmem:[#allocation57_spill] sm:$0xff] }
 0x275   : > { %9812 = vmatpush3.bf16.msra.mxu1 %v9811_v31  ;;  %9442 = vmatprep.mubr.msk.f32.mxu1 %vm9983_vm3, %v14316_v37  ;;  %v8806_v4 = vld [vmem:[%s14022_s4 + $0x1b0] sm:$0xff]  ;;  %v12848_v31 = vrot.slane %v5874_v10, %v10314_v5  ;;  %v12851_v42 = vrot.slane %v5875_v8, %v10314_v5 }
 0x276   : > { %9412 = vmatmul.mubr.msk.f32.gmra.mrb[46].mxu0 %vm562_vm1, %v5568_v41  ;;  %v6229_v61 = vrot.slane %v6222_v53, %v10314_v5  ;;  %9813 = vmatprep.subr.bf16.mxu1 %v14379_v39  ;;  %v8807_v53 = vld [vmem:[%s14022_s4 + $0x1b8] sm:$0xff]  ;;  %v14496_v38 = vld [vmem:[#allocation8_spill] sm:$0xff]  ;;  %v14497_v41 = vcombine.low %v12510_v23, %v12521_v55 }
 0x277   : > { %9803 = vmatpush3.bf16.msra.mxu0 %v9802_v14  ;;  %9414 = vmatprep.mubr.msk.f32.mxu0 %vm9983_vm3, %v14316_v37  ;;  %v8794_v14 = vld [vmem:[%s14022_s4 + $0xb8] sm:$0xff] }
 0x278   : > { %9443 = vmatmul.mubr.msk.f32.gmra.mrb[56].mxu1 %vm562_vm1, %v5847_v25  ;;  %9804 = vmatprep.subr.bf16.mxu0 %v14379_v39  ;;  %v6500_v56 = vcombine.low %v6229_v61, %v14495_v58  ;;  %v6230_v1 = vcombine.low %v14496_v38, %v6229_v61  ;;  %v12841_v25 = vrot.slane %v6517_v16, %v10314_v5  ;;  %v14499_v16 = vld [vmem:[#allocation69_spill] sm:$0xff]  ;;  %v14503_v38 = vld [vmem:[#allocation52_spill] sm:$0xff] }
 0x279   : > { %9815 = vmatpush3.bf16.msra.mxu1 %v9814_v0  ;;  %v6755_v58 = vcombine.low %v12680_v26, %v14498_v51  ;;  %9445 = vmatprep.mubr.msk.f32.mxu1 %vm9983_vm3, %v14316_v37  ;;  %v6764_v10 = vcombine.low %v12168_v44, %v14499_v16  ;;  %v9808_v8 = vpack.c.bf16 %v8794_v14, %v8793_v21  ;;  %v8814_v14 = vld [vmem:[%s14022_s4 + $0x288] sm:$0xff] }
 0x27a   : > { %9415 = vmatmul.mubr.msk.f32.gmra.mrb[48].mxu0 %vm562_vm1, %v14497_v41  ;;  %v12858_v0 = vrot.slane %v6500_v56, %v10314_v5  ;;  %v12861_v23 = vrot.slane %v6230_v1, %v10314_v5  ;;  %9816 = vmatprep.subr.bf16.mxu1 %v14379_v39  ;;  %v9820_v26 = vpack.c.bf16 %v8807_v53, %v8806_v4  ;;  %v14502_v4 = vld [vmem:[#allocation35_spill] sm:$0xff]  ;;  %v14509_v53 = vld [vmem:[#allocation72_spill] sm:$0xff] }
 0x27b   : > { %9806 = vmatpush3.bf16.msra.mxu0 %v9805_v62  ;;  %9417 = vmatprep.mubr.msk.f32.mxu0 %vm9983_vm3, %v14316_v37  ;;  %v12869_v51 = vrot.slane %v6755_v58, %v10314_v5  ;;  %v14500_v62 = vcombine.low %v12551_v60, %v12577_v45  ;;  %v14501_v41 = vcombine.low %v12611_v33, %v12614_v6  ;;  %v8813_v60 = vld [vmem:[%s14022_s4 + $0x280] sm:$0xff]  ;;  %v14505_v58 = vld [vmem:[#allocation5_spill] sm:$0xff] }
 0x27c   : > { %9807 = vmatprep.subr.bf16.mxu0 %v14379_v39  ;;  %v12895_v56 = vrot.slane %v6764_v10, %v10314_v5  ;;  %v7019_v33 = vcombine.low %v12742_v52, %v14503_v38  ;;  %v12904_v6 = vrot.slane %v5611_v36, %v10314_v5  ;;  %v14504_v1 = vld [vmem:[#allocation27_spill] sm:$0xff]  ;;  %v14508_v52 = vld [vmem:[#allocation29_spill] sm:$0xff]  ;;  %v14511_v61 = vcombine.low %v12654_v30, %v12690_v35 }
 0x27d   : > { %9446 = vmatmul.mubr.msk.f32.gmra.mrb[58].mxu1 %vm562_vm1, %v14500_v62  ;;  %v14506_v10 = vcombine.low %v14504_v1, %v14505_v58  ;;  %v9823_v1 = vpack.c.bf16 %v8814_v14, %v8813_v60  ;;  %v8827_v58 = vld [vmem:[%s14022_s4 + $0x388] sm:$0xff]  ;;  %v8815_v14 = vld [vmem:[%s14022_s4 + $0x290] sm:$0xff] }
 0x27e   : > { %9418 = vmatmul.mubr.msk.f32.gmra.mrb[50].mxu0 %vm562_vm1, %v14501_v41  ;;  %9818 = vmatpush3.bf16.msra.mxu1 %v9817_v24  ;;  %v5890_v24 = vcombine.low %v12848_v31, %v12851_v42  ;;  %v7010_v41 = vcombine.low %v12895_v56, %v14508_v52  ;;  %v12920_v36 = vrot.slane %v7019_v33, %v10314_v5  ;;  %v8816_v52 = vld [vmem:[%s14022_s4 + $0x298] sm:$0xff]  ;;  %v8817_v33 = vld [vmem:[%s14022_s4 + $0x2a0] sm:$0xff] }
 0x27f   : > { %9448 = vmatprep.mubr.msk.f32.mxu1 %vm9983_vm3, %v14316_v37  ;;  %9420 = vmatprep.mubr.msk.f32.mxu0 %vm9983_vm3, %v14316_v37  ;;  %v12912_v62 = vrot.slane %v14506_v10, %v10314_v5  ;;  %v14512_v10 = vld [vmem:[#allocation15_spill] sm:$0xff] }
 0x280   : > { %9809 = vmatpush3.bf16.msra.mxu0 %v9808_v8  ;;  %9819 = vmatprep.subr.bf16.mxu1 %v14379_v39  ;;  %14510 = vst [vmem:[#allocation70_spill] sm:$0xff] %v12920_v36  ;;  %v8826_v8 = vld [vmem:[%s14022_s4 + $0x380] sm:$0xff]  ;;  %v14513_v30 = vcombine.low %v14443_v11, %v14512_v10  ;;  %v12954_v11 = vrot.slane %v7010_v41, %v10314_v5 }
 0x281   : > { %14507 = vst [vmem:[#allocation34_spill] sm:$0xff] %v12912_v62  ;;  %9449 = vmatmul.mubr.msk.f32.gmra.mrb[60].mxu1 %vm562_vm1, %v14511_v61  ;;  %9822 = vmatprep.subr.bf16.mxu0 %v14379_v39  ;;  %v14515_v61 = vld [vmem:[#allocation21_spill] sm:$0xff]  ;;  %v5897_v21 = vrot.slane %v5890_v24, %v10314_v5  ;;  %v9835_v41 = vpack.c.bf16 %v8827_v58, %v8826_v8  ;;  %v14519_v24 = vld [vmem:[#allocation36_spill] sm:$0xff] }
 0x282   : > { %v12939_v35 = vrot.slane %v14513_v30, %v10314_v5  ;;  %9421 = vmatmul.mubr.msk.f32.gmra.mrb[52].mxu0 %vm562_vm1, %v12904_v6  ;;  %9451 = vmatprep.mubr.msk.f32.mxu1 %vm9983_vm3, %v14316_v37  ;;  %v6163_v60 = vcombine.low %v14515_v61, %v14482_v57  ;;  %v14516_v30 = vld [vmem:[#allocation28_spill] sm:$0xff]  ;;  %v14517_v61 = vld [vmem:[#allocation22_spill] sm:$0xff]  ;;  %v14520_v57 = vcombine.low %v14445_v46, %v14467_v9 }
 0x283   : > { %9821 = vmatpush3.bf16.msra.mxu1 %v9820_v26  ;;  %9470 = vmatprep.mubr.msk.f32.mxu0 %vm9983_vm3, %v14316_v37  ;;  %v14518_v44 = vcombine.low %v14512_v10, %v14517_v61  ;;  %v8828_v26 = vld [vmem:[%s14022_s4 + $0x390] sm:$0xff]  ;;  %v9826_v8 = vpack.c.bf16 %v8816_v52, %v8815_v14  ;;  %v8829_v58 = vld [vmem:[%s14022_s4 + $0x398] sm:$0xff]  ;;  %v8818_v46 = vld [vmem:[%s14022_s4 + $0x2a8] sm:$0xff] }
 0x284   : > { %14514 = vst [vmem:[#allocation47_spill] sm:$0xff] %v12939_v35  ;;  %9834 = vmatprep.subr.bf16.mxu1 %v14379_v39  ;;  %v12979_v35 = vrot.slane %v14520_v57, %v10314_v5  ;;  %v14524_v52 = vld [vmem:[#allocation38_spill] sm:$0xff]  ;;  %v6170_v36 = vrot.slane %v6163_v60, %v10314_v5  ;;  %v14528_v60 = vld [vmem:[#allocation71_spill] sm:$0xff] }
 0x285   : > { %v12967_v28 = vrot.slane %v14518_v44, %v10314_v5  ;;  %v14521_v44 = vld [vmem:[#allocation20_spill] sm:$0xff]  ;;  %9452 = vmatmul.mubr.msk.f32.gmra.mrb[62].mxu1 %vm562_vm1, %v5897_v21  ;;  %v14523_v21 = vcombine.low %v14457_v34, %v14474_v19  ;;  %v7350_v57 = vcombine.low %v14474_v19, %v14524_v52  ;;  %v14529_v34 = vcombine.low %v12237_v12, %v12686_v54 }
 0x286   : > { %v14522_v10 = vcombine.low %v14467_v9, %v14521_v44  ;;  %v14525_v44 = vld [vmem:[#allocation51_spill] sm:$0xff]  ;;  %9501 = vmatprep.mubr.msk.f32.mxu1 %vm9983_vm3, %v14316_v37  ;;  %v6171_v52 = vcombine.low %v6170_v36, %v14528_v60  ;;  %v14530_v12 = vcombine.low %v14463_v22, %v12635_v20  ;;  %v14531_v36 = vmax.f32 %v12310_v48, %v12649_v29  ;;  %v14537_v48 = vld [vmem:[#allocation40_spill] sm:$0xff] }
 0x287   : > { %v13003_v14 = vrot.slane %v14523_v21, %v10314_v5  ;;  %v7341_v9 = vcombine.low %v12967_v28, %v12979_v35  ;;  %v7359_v21 = vcombine.low %v14492_v40, %v12664_v47  ;;  %v7892_v40 = vcombine.low %v12635_v20, %v12595_v17  ;;  %v8830_v22 = vld [vmem:[%s14022_s4 + $0x3a0] sm:$0xff]  ;;  %v8831_v29 = vld [vmem:[%s14022_s4 + $0x3a8] sm:$0xff] }
 0x288   : > { %v12985_v61 = vrot.slane %v14522_v10, %v10314_v5  ;;  %v14526_v10 = vld [vmem:[#allocation50_spill] sm:$0xff]  ;;  %v13047_v54 = vrot.slane %v14530_v12, %v10314_v5 }
 0x289   : > { %v14527_v62 = vcombine.low %v14525_v44, %v14526_v10  ;;  %v9838_v44 = vpack.c.bf16 %v8829_v58, %v8828_v26  ;;  %v9829_v10 = vpack.c.bf16 %v8818_v46, %v8817_v33  ;;  %9502 = vmatmul.mubr.msk.f32.vlgmr.msra.gmra.mrb[64].mxu1 %vm562_vm1, %v14529_v34  ;;  %v7366_v19 = vrot.slane %v7359_v21, %v10314_v5  ;;  %v14532_v33 = vld [vmem:[#allocation25_spill] sm:$0xff]  ;;  %v14533_v26 = vld [vmem:[#allocation14_spill] sm:$0xff] }
 0x28a   : > { %v8145_v47 = vcombine.low %v13003_v14, %v12521_v55  ;;  %9836 = vmatpush3.bf16.msra.mxu1 %v9835_v41  ;;  %v14534_v58 = vrot.slane %v14532_v33, %v14533_v26  ;;  %v14535_v34 = vld [vmem:[#allocation53_spill] sm:$0xff]  ;;  %9504 = vmatprep.mubr.msk.f32.mxu1 %vm9983_vm3, %v14316_v37  ;;  %v14540_v26 = vcombine.low %v12747_v2, %v12765_v13 }
 0x28b   : > { %9471 = vmatmul.mubr.msk.f32.vlgmr.msra.gmra.mrb[54].mxu0 %vm562_vm1, %v14527_v62  ;;  %v13023_v62 = vrot.slane %v7350_v57, %v10314_v5  ;;  %v14536_v17 = vcombine.low %v14503_v38, %v14535_v34  ;;  %v7637_v20 = vcombine.low %v7366_v19, %v14537_v48  ;;  %v14538_v21 = vld [vmem:[#allocation17_spill] sm:$0xff]  ;;  %v13072_v38 = vrot.slane %v7892_v40, %v10314_v5 }
 0x28c   : > { %9824 = vmatpush3.bf16.msra.mxu0 %v9823_v1  ;;  %9473 = vmatprep.mubr.msk.f32.mxu0 %vm9983_vm3, %v14316_v37  ;;  %v7890_v1 = vcombine.low %v12979_v35, %v12539_v3  ;;  %v3522_v46 = vmul.f32 %v14534_v58, %v14531_v36  ;;  %v14539_v36 = vcombine.low %v12718_v15, %v12013_v32  ;;  %v8820_v40 = vld [vmem:[%s14022_s4 + $0x2b8] sm:$0xff] }
 0x28d   : > { %9825 = vmatprep.subr.bf16.mxu0 %v14379_v39  ;;  %v7358_v57 = vcombine.low %v12539_v3, %v13023_v62  ;;  %v13059_v41 = vrot.slane %v14536_v17, %v10314_v5  ;;  %9837 = vmatprep.subr.bf16.mxu1 %v14379_v39  ;;  %v7900_v15 = vcombine.low %v12577_v45, %v13072_v38  ;;  %v9985_v45 = vmov 1983009808  }
 0x28e   : > { %9505 = vmatmul.mubr.msk.f32.gmra.mrb[66].mxu1 %vm562_vm1, %v14539_v36  ;;  %v9841_v58 = vpack.c.bf16 %v8831_v29, %v8830_v22  ;;  %v8832_v29 = vld [vmem:[%s14022_s4 + $0x3b0] sm:$0xff]  ;;  %v8839_v36 = vld [vmem:[%s14022_s4 + $0xc0] sm:$0xff] }
 0x28f   : > { %9474 = vmatmul.mubr.msk.f32.gmra.mrb[56].mxu0 %vm562_vm1, %v6171_v52  ;;  %v7367_v52 = vcombine.low %v14538_v21, %v7366_v19  ;;  %v8164_v12 = vcombine.low %v12851_v42, %v13059_v41  ;;  %v8819_v19 = vld [vmem:[%s14022_s4 + $0x2b0] sm:$0xff]  ;;  %9839 = vmatpush3.bf16.msra.mxu1 %v9838_v44  ;;  %v14541_v21 = vcombine.low %v12768_v59, %v12771_v63 }
 0x290   : > { %9827 = vmatpush3.bf16.msra.mxu0 %v9826_v8  ;;  %9476 = vmatprep.mubr.msk.f32.mxu0 %vm9983_vm3, %v14316_v37  ;;  %v7901_v8 = vcombine.low %v14499_v16, %v3522_v46  ;;  %v13092_v16 = vrot.slane %v7637_v20, %v10314_v5  ;;  %v9832_v22 = vpack.c.bf16 %v8820_v40, %v8819_v19  ;;  %v8840_v19 = vld [vmem:[%s14022_s4 + $0xc8] sm:$0xff] }
 0x291   : > { %9828 = vmatprep.subr.bf16.mxu0 %v14379_v39  ;;  %v13095_v33 = vrot.slane %v7367_v52, %v10314_v5  ;;  %9507 = vmatprep.mubr.msk.f32.mxu1 %vm9983_vm3, %v14316_v37  ;;  %v14542_v52 = vcombine.low %v11992_v27, %v12799_v43 }
 0x292   : > { %v13104_v46 = vrot.slane %v7901_v8, %v10314_v5  ;;  %v7645_v34 = vcombine.low %v12521_v55, %v13092_v16  ;;  %v8146_v44 = vcombine.low %v13092_v16, %v13047_v54  ;;  %9840 = vmatprep.subr.bf16.mxu1 %v14379_v39  ;;  %9508 = vmatmul.mubr.msk.f32.gmra.mrb[68].mxu1 %vm562_vm1, %v14541_v21  ;;  %v8842_v21 = vld [vmem:[%s14022_s4 + $0xd8] sm:$0xff] }
 0x293   : > { %9477 = vmatmul.mubr.msk.f32.gmra.mrb[58].mxu0 %vm562_vm1, %v14540_v26  ;;  %v7891_v17 = vcombine.low %v13023_v62, %v13095_v33  ;;  %9842 = vmatpush3.bf16.msra.mxu1 %v9841_v58  ;;  %v14543_v26 = vcombine.low %v14494_v49, %v12858_v0  ;;  %v9847_v58 = vpack.c.bf16 %v8840_v19, %v8839_v36  ;;  %v8843_v36 = vld [vmem:[%s14022_s4 + $0xe0] sm:$0xff]  ;;  %v8844_v19 = vld [vmem:[%s14022_s4 + $0xe8] sm:$0xff] }
 0x294   : > { %9830 = vmatpush3.bf16.msra.mxu0 %v9829_v10  ;;  %9479 = vmatprep.mubr.msk.f32.mxu0 %vm9983_vm3, %v14316_v37  ;;  %v8833_v10 = vld [vmem:[%s14022_s4 + $0x3b8] sm:$0xff]  ;;  %v8147_v48 = vcombine.low %v13104_v46, %v12848_v31  ;;  %v7909_v20 = vcombine.low %v12604_v18, %v13104_v46  ;;  %v8171_v55 = vrot.slane %v8164_v12, %v10314_v5  ;;  %v4118_v18 = vunpack.c.l.s4 %v9985_v45  ;;  %v14567_v62 = vld [vmem:[#allocation3_spill] sm:$0xff] }
 0x295   : > { %9831 = vmatprep.subr.bf16.mxu0 %v14379_v39  ;;  %9510 = vmatprep.mubr.msk.f32.mxu1 %vm9983_vm3, %v14316_v37  ;;  %v9844_v31 = vpack.c.bf16 %v8833_v10, %v8832_v29  ;;  %v8853_v29 = vld [vmem:[%s14022_s4 + $0x1c8] sm:$0xff]  ;;  %v6752_v10 = vcombine.low %v14528_v60, %v12747_v2  ;;  %v8854_v60 = vld [vmem:[%s14022_s4 + $0x1d0] sm:$0xff] }
 0x296   : > { %v13137_v8 = vrot.slane %v8147_v48, %v10314_v5  ;;  %9843 = vmatprep.subr.bf16.mxu1 %v14379_v39  ;;  %9511 = vmatmul.mubr.msk.f32.gmra.mrb[70].mxu1 %vm562_vm1, %v14543_v26  ;;  %v8841_v48 = vld [vmem:[%s14022_s4 + $0xd0] sm:$0xff]  ;;  %v14544_v26 = vcombine.low %v12013_v32, %v12768_v59  ;;  %v8857_v32 = vld [vmem:[%s14022_s4 + $0x1e8] sm:$0xff]  ;;  %v8846_v59 = vld [vmem:[%s14022_s4 + $0xf8] sm:$0xff]  ;;  %v4119_v35 = vunpack.c.0.s8 %v4118_v18 }
 0x297   : > { %9480 = vmatmul.mubr.msk.f32.gmra.mrb[60].mxu0 %vm562_vm1, %v14542_v52  ;;  %9513 = vmatprep.mubr.msk.f32.mxu1 %vm9983_vm3, %v14316_v37  ;;  %v9850_v2 = vpack.c.bf16 %v8842_v21, %v8841_v48  ;;  %v14547_v48 = vcombine.low %v12799_v43, %v12861_v23  ;;  %v8859_v43 = vld [vmem:[%s14022_s4 + $0x1f8] sm:$0xff] }
 0x298   : > { %9482 = vmatprep.mubr.msk.f32.mxu0 %vm9983_vm3, %v14316_v37  ;;  %9833 = vmatpush3.bf16.msra.mxu0 %v9832_v22  ;;  %v8155_v40 = vcombine.low %v12904_v6, %v13137_v8  ;;  %v8852_v22 = vld [vmem:[%s14022_s4 + $0x1c0] sm:$0xff] }
 0x299   : > { %9846 = vmatprep.subr.bf16.mxu0 %v14379_v39  ;;  %9845 = vmatpush3.bf16.msra.mxu1 %v9844_v31  ;;  %v9859_v52 = vpack.c.bf16 %v8853_v29, %v8852_v22  ;;  %v8855_v31 = vld [vmem:[%s14022_s4 + $0x1d8] sm:$0xff]  ;;  %v9853_v29 = vpack.c.bf16 %v8844_v19, %v8843_v36  ;;  %v8867_v19 = vld [vmem:[%s14022_s4 + $0x2d0] sm:$0xff] }
 0x29a   : > { %9858 = vmatprep.subr.bf16.mxu1 %v14379_v39  ;;  %9514 = vmatmul.mubr.msk.f32.gmra.mrb[72].mxu1 %vm562_vm1, %v12841_v25  ;;  %v9862_v22 = vpack.c.bf16 %v8855_v31, %v8854_v60  ;;  %v14551_v60 = vcombine.low %v14519_v24, %v12954_v11  ;;  %v8878_v11 = vld [vmem:[%s14022_s4 + $0x3c0] sm:$0xff]  ;;  %v8879_v24 = vld [vmem:[%s14022_s4 + $0x3c8] sm:$0xff] }
 0x29b   : > { %9483 = vmatmul.mubr.msk.f32.gmra.mrb[62].mxu0 %vm562_vm1, %v12861_v23  ;;  %9563 = vmatprep.mubr.msk.f32.mxu1 %vm9983_vm3, %v14316_v37  ;;  %v14548_v23 = vcombine.low %v12858_v0, %v12841_v25  ;;  %v14550_v25 = vcombine.low %v14509_v53, %v12895_v56  ;;  %v14552_v53 = vld [vmem:[#allocation70_spill] sm:$0xff] }
 0x29c   : > { %9532 = vmatprep.mubr.msk.f32.mxu0 %vm9983_vm3, %v14316_v37  ;;  %v14553_v56 = vcombine.low %v14516_v30, %v14552_v53  ;;  %v8868_v30 = vld [vmem:[%s14022_s4 + $0x2d8] sm:$0xff] }
 0x29d   : > { %v6779_v0 = vrot.slane %v14550_v25, %v10314_v5  ;;  %v8883_v25 = vld [vmem:[%s14022_s4 + $0x3e8] sm:$0xff] }
 0x29e   : > { %9564 = vmatmul.mubr.msk.f32.vlgmr.msra.gmra.mrb[74].mxu1 %vm562_vm1, %v14544_v26  ;;  %v7034_v31 = vrot.slane %v14553_v56, %v10314_v5  ;;  %v14554_v26 = vld [vmem:[#allocation41_spill] sm:$0xff] }
 0x29f   : > { %9533 = vmatmul.mubr.msk.f32.vlgmr.msra.gmra.mrb[64].mxu0 %vm562_vm1, %v6752_v10  ;;  %9860 = vmatpush3.bf16.msra.mxu1 %v9859_v52  ;;  %v8856_v10 = vld [vmem:[%s14022_s4 + $0x1e0] sm:$0xff]  ;;  %v14549_v52 = vcombine.low %v14502_v4, %v12869_v51  ;;  %v8866_v4 = vld [vmem:[%s14022_s4 + $0x2c8] sm:$0xff] }
 0x2a0   : > { %9848 = vmatpush3.bf16.msra.mxu0 %v9847_v58  ;;  %9535 = vmatprep.mubr.msk.f32.mxu0 %vm9983_vm3, %v14316_v37  ;;  %v14545_v58 = vcombine.low %v12765_v13, %v11992_v27  ;;  %v14546_v27 = vcombine.low %v12771_v63, %v14494_v49  ;;  %v8845_v13 = vld [vmem:[%s14022_s4 + $0xf0] sm:$0xff]  ;;  %v9865_v21 = vpack.c.bf16 %v8857_v32, %v8856_v10  ;;  %v8865_v51 = vld [vmem:[%s14022_s4 + $0x2c0] sm:$0xff] }
 0x2a1   : > { %9849 = vmatprep.subr.bf16.mxu0 %v14379_v39  ;;  %9566 = vmatprep.mubr.msk.f32.mxu1 %vm9983_vm3, %v14316_v37  ;;  %v9856_v63 = vpack.c.bf16 %v8846_v59, %v8845_v13  ;;  %v8858_v49 = vld [vmem:[%s14022_s4 + $0x1f0] sm:$0xff]  ;;  %v9871_v36 = vpack.c.bf16 %v8866_v4, %v8865_v51  ;;  %v9874_v10 = vpack.c.bf16 %v8868_v30, %v8867_v19  ;;  %v8869_v13 = vld [vmem:[%s14022_s4 + $0x2e0] sm:$0xff]  ;;  %v8870_v59 = vld [vmem:[%s14022_s4 + $0x2e8] sm:$0xff] }
 0x2a2   : > { %9861 = vmatprep.subr.bf16.mxu1 %v14379_v39  ;;  %9567 = vmatmul.mubr.msk.f32.gmra.mrb[76].mxu1 %vm562_vm1, %v14546_v27  ;;  %v8880_v32 = vld [vmem:[%s14022_s4 + $0x3d0] sm:$0xff]  ;;  %v8881_v27 = vld [vmem:[%s14022_s4 + $0x3d8] sm:$0xff] }
 0x2a3   : > { %9536 = vmatmul.mubr.msk.f32.gmra.mrb[66].mxu0 %vm562_vm1, %v14545_v58  ;;  %9863 = vmatpush3.bf16.msra.mxu1 %v9862_v22  ;;  %v14555_v58 = vld [vmem:[#allocation42_spill] sm:$0xff]  ;;  %v8871_v4 = vld [vmem:[%s14022_s4 + $0x2f0] sm:$0xff] }
 0x2a4   : > { %9851 = vmatpush3.bf16.msra.mxu0 %v9850_v2  ;;  %9538 = vmatprep.mubr.msk.f32.mxu0 %vm9983_vm3, %v14316_v37  ;;  %v9868_v2 = vpack.c.bf16 %v8859_v43, %v8858_v49  ;;  %v14556_v22 = vcombine.low %v14554_v26, %v14555_v58  ;;  %v14560_v49 = vld [vmem:[#allocation34_spill] sm:$0xff] }
 0x2a5   : > { %9852 = vmatprep.subr.bf16.mxu0 %v14379_v39  ;;  %9569 = vmatprep.mubr.msk.f32.mxu1 %vm9983_vm3, %v14316_v37  ;;  %v14561_v43 = vcombine.low %v14560_v49, %v12527_v50 }
 0x2a6   : > { %9864 = vmatprep.subr.bf16.mxu1 %v14379_v39  ;;  %9570 = vmatmul.mubr.msk.f32.gmra.mrb[78].mxu1 %vm562_vm1, %v14548_v23  ;;  %v9886_v23 = vpack.c.bf16 %v8881_v27, %v8880_v32 }
 0x2a7   : > { %9539 = vmatmul.mubr.msk.f32.gmra.mrb[68].mxu0 %vm562_vm1, %v14547_v48  ;;  %9866 = vmatpush3.bf16.msra.mxu1 %v9865_v21  ;;  %v14557_v48 = vld [vmem:[#allocation39_spill] sm:$0xff]  ;;  %v14558_v21 = vld [vmem:[#allocation60_spill] sm:$0xff] }
 0x2a8   : > { %9854 = vmatpush3.bf16.msra.mxu0 %v9853_v29  ;;  %9541 = vmatprep.mubr.msk.f32.mxu0 %vm9983_vm3, %v14316_v37  ;;  %v9883_v29 = vpack.c.bf16 %v8879_v24, %v8878_v11 }
 0x2a9   : > { %9855 = vmatprep.subr.bf16.mxu0 %v14379_v39  ;;  %9572 = vmatprep.mubr.msk.f32.mxu1 %vm9983_vm3, %v14316_v37 }
 0x2aa   : > { %9867 = vmatprep.subr.bf16.mxu1 %v14379_v39  ;;  %9573 = vmatmul.mubr.msk.f32.gmra.mrb[80].mxu1 %vm562_vm1, %v14551_v60  ;;  %v8872_v60 = vld [vmem:[%s14022_s4 + $0x2f8] sm:$0xff] }
 0x2ab   : > { %9542 = vmatmul.mubr.msk.f32.gmra.mrb[70].mxu0 %vm562_vm1, %v14549_v52  ;;  %9575 = vmatprep.mubr.msk.f32.mxu1 %vm9983_vm3, %v14316_v37  ;;  %v9877_v52 = vpack.c.bf16 %v8870_v59, %v8869_v13  ;;  %v9880_v56 = vpack.c.bf16 %v8872_v60, %v8871_v4 }
 0x2ac   : > { %9544 = vmatprep.mubr.msk.f32.mxu0 %vm9983_vm3, %v14316_v37  ;;  %9857 = vmatpush3.bf16.msra.mxu0 %v9856_v63  ;;  %v14559_v63 = vcombine.low %v14557_v48, %v14558_v21 }
 0x2ad   : > { %9870 = vmatprep.subr.bf16.mxu0 %v14379_v39  ;;  %9869 = vmatpush3.bf16.msra.mxu1 %v9868_v2  ;;  %v8882_v2 = vld [vmem:[%s14022_s4 + $0x3e0] sm:$0xff] }
 0x2ae   : > { %9882 = vmatprep.subr.bf16.mxu1 %v14379_v39  ;;  %9576 = vmatmul.mubr.msk.f32.gmra.mrb[82].mxu1 %vm562_vm1, %v7034_v31  ;;  %v9889_v53 = vpack.c.bf16 %v8883_v25, %v8882_v2  ;;  %v8884_v31 = vld [vmem:[%s14022_s4 + $0x3f0] sm:$0xff]  ;;  %v13480_v2 = vld [vmem:[#allocation2] ss:$0 sm:$0xff] }
 0x2af   : > { %9545 = vmatmul.mubr.msk.f32.gmra.mrb[72].mxu0 %vm562_vm1, %v6779_v0  ;;  %9625 = vmatprep.mubr.msk.f32.mxu1 %vm9983_vm3, %v14316_v37  ;;  %v14562_v0 = vld [vmem:[#allocation47_spill] sm:$0xff] }
 0x2b0   : > { %9594 = vmatprep.mubr.msk.f32.mxu0 %vm9983_vm3, %v14316_v37  ;;  %v14563_v51 = vcombine.low %v14562_v0, %v12517_v7 }
 0x2b2   : > { %9626 = vmatmul.mubr.msk.f32.vlgmr.msra.gmra.mrb[84].mxu1 %vm562_vm1, %v14559_v63 }
 0x2b3   : > { %9595 = vmatmul.mubr.msk.f32.vlgmr.msra.gmra.mrb[74].mxu0 %vm562_vm1, %v14556_v22  ;;  %9884 = vmatpush3.bf16.msra.mxu1 %v9883_v29 }
 0x2b4   : > { %9872 = vmatpush3.bf16.msra.mxu0 %v9871_v36  ;;  %9597 = vmatprep.mubr.msk.f32.mxu0 %vm9983_vm3, %v14316_v37  ;;  %v8885_v36 = vld [vmem:[%s14022_s4 + $0x3f8] sm:$0xff] }
 0x2b5   : > { %9873 = vmatprep.subr.bf16.mxu0 %v14379_v39  ;;  %9628 = vmatprep.mubr.msk.f32.mxu1 %vm9983_vm3, %v14316_v37  ;;  %v9892_v11 = vpack.c.bf16 %v8885_v36, %v8884_v31 }
 0x2b6   : > { %9885 = vmatprep.subr.bf16.mxu1 %v14379_v39  ;;  %9629 = vmatmul.mubr.msk.f32.gmra.mrb[86].mxu1 %vm562_vm1, %v14563_v51 }
 0x2b7   : > { %9598 = vmatmul.mubr.msk.f32.gmra.mrb[76].mxu0 %vm562_vm1, %v14561_v43  ;;  %9887 = vmatpush3.bf16.msra.mxu1 %v9886_v23 }
 0x2b8   : > { %9875 = vmatpush3.bf16.msra.mxu0 %v9874_v10  ;;  %9600 = vmatprep.mubr.msk.f32.mxu0 %vm9983_vm3, %v14316_v37 }
 0x2b9   : > { %9876 = vmatprep.subr.bf16.mxu0 %v14379_v39  ;;  %9631 = vmatprep.mubr.msk.f32.mxu1 %vm9983_vm3, %v14316_v37 }
 0x2ba   : > { %9888 = vmatprep.subr.bf16.mxu1 %v14379_v39 }
 0x2bb   : > { %9601 = vmatmul.mubr.msk.f32.gmra.mrb[78].mxu0 %vm562_vm1, %v7341_v9  ;;  %v14564_v9 = vcombine.low %v12985_v61, %v13003_v14  ;;  %9890 = vmatpush3.bf16.msra.mxu1 %v9889_v53 }
 0x2bc   : > { %9878 = vmatpush3.bf16.msra.mxu0 %v9877_v52  ;;  %9603 = vmatprep.mubr.msk.f32.mxu0 %vm9983_vm3, %v14316_v37 }
 0x2bd   : > { %9632 = vmatmul.mubr.msk.f32.gmra.mrb[88].mxu1 %vm562_vm1, %v14564_v9  ;;  %9879 = vmatprep.subr.bf16.mxu0 %v14379_v39 }
 0x2be   : > { %9634 = vmatprep.mubr.msk.f32.mxu1 %vm9983_vm3, %v14316_v37  ;;  %9891 = vmatprep.subr.bf16.mxu1 %v14379_v39  ;;  %v14565_v39 = vcombine.low %v12527_v50, %v12967_v28 }
 0x2bf   : > { %9604 = vmatmul.mubr.msk.f32.gmra.mrb[80].mxu0 %vm562_vm1, %v7358_v57  ;;  %9893 = vmatpush3.bf16.msra.mxu1 %v9892_v11  ;;  %v14566_v57 = vcombine.low %v12517_v7, %v12985_v61  ;;  %v7916_v7 = vrot.slane %v7909_v20, %v10314_v5 }
 0x2c0   : > { %9606 = vmatprep.mubr.msk.f32.mxu0 %vm9983_vm3, %v14316_v37  ;;  %9881 = vmatpush3.bf16.msra.mxu0 %v9880_v56 }
 0x2c1   : > { %9635 = vmatmul.mubr.msk.f32.gmra.mrb[90].mxu1 %vm562_vm1, %v7645_v34 }
 0x2c2   : > { %9637 = vmatprep.mubr.msk.f32.mxu1 %vm9983_vm3, %v14316_v37 }
 0x2c3   : > { %9607 = vmatmul.mubr.msk.f32.gmra.mrb[82].mxu0 %vm562_vm1, %v13095_v33 }
 0x2c4   : > { %9656 = vmatprep.mubr.msk.f32.mxu0 %vm9983_vm3, %v14316_v37 }
 0x2c5   : > { %9638 = vmatmul.mubr.msk.f32.gmra.mrb[92].mxu1 %vm562_vm1, %v13047_v54 }
 0x2c6   : > { %9687 = vmatprep.mubr.msk.f32.mxu1 %vm9983_vm3, %v14316_v37 }
 0x2c7   : > { %9657 = vmatmul.mubr.msk.f32.vlgmr.msra.gmra.mrb[84].mxu0 %vm562_vm1, %v14565_v39 }
 0x2c8   : > { %9659 = vmatprep.mubr.msk.f32.mxu0 %vm9983_vm3, %v14316_v37 }
 0x2c9   : > { %9688 = vmatmul.mubr.msk.f32.vlgmr.msra.gmra.mrb[94].mxu1 %vm562_vm1, %v14566_v57 }
 0x2ca   : > { %9690 = vmatprep.mubr.msk.f32.mxu1 %vm9983_vm3, %v14316_v37 }
 0x2cb   : > { %9660 = vmatmul.mubr.msk.f32.gmra.mrb[86].mxu0 %vm562_vm1, %v7890_v1  ;;  %v13448_v1 = vsub.s32 %v4119_v35, %v14567_v62 }
 0x2cc   : > { %9662 = vmatprep.mubr.msk.f32.mxu0 %vm9983_vm3, %v14316_v37 }
 0x2cd   : > { %9691 = vmatmul.mubr.msk.f32.gmra.mrb[96].mxu1 %vm562_vm1, %v8145_v47 }
 0x2ce   : > { %9693 = vmatprep.mubr.msk.f32.mxu1 %vm9983_vm3, %v14316_v37 }
 0x2cf   : > { %9663 = vmatmul.mubr.msk.f32.gmra.mrb[88].mxu0 %vm562_vm1, %v7891_v17 }
 0x2d0   : > { %9665 = vmatprep.mubr.msk.f32.mxu0 %vm9983_vm3, %v14316_v37 }
 0x2d1   : > { %9694 = vmatmul.mubr.msk.f32.gmra.mrb[98].mxu1 %vm562_vm1, %v8146_v44 }
 0x2d2   : > { %9696 = vmatprep.mubr.msk.f32.mxu1 %vm9983_vm3, %v14316_v37 }
 0x2d3   : > { %9666 = vmatmul.mubr.msk.f32.gmra.mrb[90].mxu0 %vm562_vm1, %v7900_v15 }
 0x2d4   : > { %9668 = vmatprep.mubr.msk.f32.mxu0 %vm9983_vm3, %v14316_v37 }
 0x2d5   : > { %9697 = vmatmul.mubr.msk.f32.gmra.mrb[100].mxu1 %vm562_vm1, %v8155_v40 }
 0x2d6   : > { %9699 = vmatprep.mubr.msk.f32.mxu1 %vm9983_vm3, %v14316_v37 }
 0x2d7   : > { %9669 = vmatmul.mubr.msk.f32.gmra.mrb[92].mxu0 %vm562_vm1, %v7916_v7  ;;  %v8395_v7 = vcombine.high %v13480_v2, %v13480_v2 }
 0x2d9   : > { %9700 = vmatmul.mubr.msk.f32.gmra.mrb[102].mxu1 %vm562_vm1, %v8171_v55 }
 0x2f6   : > { %v4353_v50 = vpop.f32.mrb[24].mxu1 }
 0x2f7   : > { %v9286_v3 = vpop.f32.mrb[25].mxu1  ;;  %v4382_v37 = vcombine.high %v4353_v50, %v4353_v50  ;;  %v4389_v41 = vrot.slane %v4353_v50, %v13448_v1 }
 0x2f9   : > { %v4396_v12 = vrot.slane %v4382_v37, %v13448_v1  ;;  %v4397_v40 = vcombine.high %v4389_v41, %v4389_v41 }
 0x2fb   : > { %v4398_v24 = vcombine.high %v4396_v12, %v4396_v12 }
 0x308   : > { %v4358_v28 = vpop.f32.mrb[26].mxu1 }
 0x309   : > { %v9289_v6 = vpop.f32.mrb[27].mxu1  ;;  %v4399_v47 = vcombine.high %v4358_v28, %v4358_v28  ;;  %v4406_v16 = vrot.slane %v4358_v28, %v13448_v1 }
 0x30b   : > { %v4413_v33 = vrot.slane %v4399_v47, %v13448_v1  ;;  %v4414_v58 = vcombine.high %v4406_v16, %v4406_v16 }
 0x30c   : > { %v4363_v61 = vpop.f32.mrb[28].mxu1 }
 0x30d   : > { %v9292_v14 = vpop.f32.mrb[29].mxu1  ;;  %v4416_v54 = vcombine.high %v4363_v61, %v4363_v61  ;;  %v13455_v15 = vrot.slane %v4363_v61, %v13448_v1  ;;  %v4415_v22 = vcombine.high %v4413_v33, %v4413_v33 }
 0x30f   : > { %v13458_v46 = vrot.slane %v4416_v54, %v13448_v1  ;;  %v4431_v29 = vcombine.high %v13455_v15, %v13455_v15 }
 0x311   : > { %v4432_v10 = vcombine.high %v13458_v46, %v13458_v46 }
 0x313   : > { %v4368_v38 = vpop.f32.mrb[30].mxu1 }
 0x314   : > { %v4433_v42 = vcombine.high %v4368_v38, %v4368_v38  ;;  %v9295_v5 = vpop.f32.mrb[31].mxu1  ;;  %v13461_v17 = vrot.slane %v4368_v38, %v13448_v1 }
 0x316   : > { %v13464_v44 = vrot.slane %v4433_v42, %v13448_v1  ;;  %v4448_v21 = vcombine.high %v13461_v17, %v13461_v17 }
 0x317   : > { %v4373_v34 = vpop.f32.mrb[32].mxu1 }
 0x318   : > { %v9298_v20 = vpop.f32.mrb[33].mxu1  ;;  %v13472_v32 = vrot.slane %v4373_v34, %v13448_v1  ;;  %v4449_v63 = vcombine.high %v13464_v44, %v13464_v44  ;;  %v13502_v34 = vrot.slane %v13480_v2, %v13448_v1 }
 0x319   : > { %v4087_v8 = vpop.f32.mrb[24].mxu0 }
 0x31a   : > { %v4116_v19 = vcombine.high %v4087_v8, %v4087_v8  ;;  %v4123_v30 = vrot.slane %v4087_v8, %v13448_v1  ;;  %v9255_v26 = vpop.f32.mrb[25].mxu0  ;;  %v4457_v9 = vcombine.high %v13472_v32, %v13472_v32 }
 0x31b   : > { %v4637_v48 = vpop.f32.mrb[34].mxu1 }
 0x31c   : > { %v4130_v27 = vrot.slane %v4116_v19, %v13448_v1  ;;  %v4131_v13 = vcombine.high %v4123_v30, %v4123_v30  ;;  %v4476_v59 = vadd.f32 %v4389_v41, %v4123_v30  ;;  %v4666_v49 = vcombine.high %v4637_v48, %v4637_v48  ;;  %v9317_v23 = vpop.f32.mrb[35].mxu1 }
 0x31d   : > { %v4673_v43 = vrot.slane %v4637_v48, %v13448_v1  ;;  %v4092_v52 = vpop.f32.mrb[26].mxu0 }
 0x31e   : > { %v4132_v25 = vcombine.high %v4130_v27, %v4130_v27  ;;  %v4477_v0 = vadd.f32 %v4397_v40, %v4131_v13  ;;  %v4478_v51 = vadd.f32 %v4396_v12, %v4130_v27  ;;  %v4133_v4 = vcombine.high %v4092_v52, %v4092_v52  ;;  %v9258_v60 = vpop.f32.mrb[27].mxu0 }
 0x31f   : > { %v4680_v53 = vrot.slane %v4666_v49, %v13448_v1  ;;  %v4681_v56 = vcombine.high %v4673_v43, %v4673_v43  ;;  %v13483_v31 = vadd.f32 %v4673_v43, %v4476_v59  ;;  %v4140_v36 = vrot.slane %v4092_v52, %v13448_v1 }
 0x320   : > { %v4479_v11 = vadd.f32 %v4398_v24, %v4132_v25  ;;  %v4147_v39 = vrot.slane %v4133_v4, %v13448_v1 }
 0x321   : > { %v4642_v57 = vpop.f32.mrb[36].mxu1  ;;  %v4682_v55 = vcombine.high %v4680_v53, %v4680_v53  ;;  %v13491_v50 = vadd.f32 %v4681_v56, %v4477_v0  ;;  %v13493_v3 = vadd.f32 %v4680_v53, %v4478_v51  ;;  %v4148_v45 = vcombine.high %v4140_v36, %v4140_v36  ;;  %v4097_v28 = vpop.f32.mrb[28].mxu0 }
 0x322   : > { %v9320_v18 = vpop.f32.mrb[37].mxu1  ;;  %v4149_v6 = vcombine.high %v4147_v39, %v4147_v39  ;;  %v4480_v35 = vadd.f32 %v4406_v16, %v4140_v36  ;;  %v4482_v61 = vadd.f32 %v4413_v33, %v4147_v39  ;;  %v4683_v14 = vcombine.high %v4642_v57, %v4642_v57  ;;  %v9261_v62 = vpop.f32.mrb[29].mxu0 }
 0x323   : > { %v13495_v37 = vadd.f32 %v4682_v55, %v4479_v11  ;;  %v4481_v47 = vadd.f32 %v4414_v58, %v4148_v45  ;;  %v4690_v54 = vrot.slane %v4642_v57, %v13448_v1  ;;  %v4150_v38 = vcombine.high %v4097_v28, %v4097_v28 }
 0x324   : > { %v4483_v42 = vadd.f32 %v4415_v22, %v4149_v6  ;;  %v4697_v5 = vrot.slane %v4683_v14, %v13448_v1  ;;  %v4157_v41 = vrot.slane %v4097_v28, %v13448_v1 }
 0x325   : > { %v4647_v12 = vpop.f32.mrb[38].mxu1  ;;  %v4698_v16 = vcombine.high %v4690_v54, %v4690_v54  ;;  %v13504_v33 = vadd.f32 %v4690_v54, %v4480_v35  ;;  %v4164_v20 = vrot.slane %v4150_v38, %v13448_v1  ;;  %v4102_v24 = vpop.f32.mrb[30].mxu0 }
 0x326   : > { %v4700_v8 = vcombine.high %v4647_v12, %v4647_v12  ;;  %v9323_v40 = vpop.f32.mrb[39].mxu1  ;;  %v4699_v19 = vcombine.high %v4697_v5, %v4697_v5  ;;  %v13507_v30 = vadd.f32 %v4697_v5, %v4482_v61  ;;  %v4165_v26 = vcombine.high %v4157_v41, %v4157_v41  ;;  %v9264_v22 = vpop.f32.mrb[31].mxu0 }
 0x327   : > { %v4484_v58 = vadd.f32 %v13455_v15, %v4157_v41  ;;  %v13510_v27 = vadd.f32 %v4698_v16, %v4481_v47  ;;  %v4166_v13 = vcombine.high %v4164_v20, %v4164_v20  ;;  %v4486_v59 = vadd.f32 %v13458_v46, %v4164_v20 }
 0x328   : > { %v4707_v48 = vrot.slane %v4647_v12, %v13448_v1  ;;  %v13514_v49 = vadd.f32 %v4699_v19, %v4483_v42  ;;  %v4485_v43 = vadd.f32 %v4431_v29, %v4165_v26  ;;  %v4714_v23 = vrot.slane %v4700_v8, %v13448_v1 }
 0x329   : > { %v4167_v52 = vcombine.high %v4102_v24, %v4102_v24  ;;  %v4652_v25 = vpop.f32.mrb[40].mxu1  ;;  %v4487_v0 = vadd.f32 %v4432_v10, %v4166_v13  ;;  %v4174_v60 = vrot.slane %v4102_v24, %v13448_v1  ;;  %v4107_v56 = vpop.f32.mrb[32].mxu0 }
 0x32a   : > { %v4715_v51 = vcombine.high %v4707_v48, %v4707_v48  ;;  %v13523_v4 = vadd.f32 %v4707_v48, %v4484_v58  ;;  %v9326_v53 = vpop.f32.mrb[41].mxu1  ;;  %v4716_v36 = vcombine.high %v4714_v23, %v4714_v23  ;;  %v13526_v11 = vadd.f32 %v4714_v23, %v4486_v59  ;;  %v9267_v39 = vpop.f32.mrb[33].mxu0 }
 0x32b   : > { %v4181_v15 = vrot.slane %v4167_v52, %v13448_v1  ;;  %v4717_v29 = vcombine.high %v4652_v25, %v4652_v25  ;;  %v4182_v55 = vcombine.high %v4174_v60, %v4174_v60  ;;  %v4488_v46 = vadd.f32 %v13461_v17, %v4174_v60 }
 0x32c   : > { %v13529_v57 = vadd.f32 %v4715_v51, %v4485_v43  ;;  %v4724_v10 = vrot.slane %v4652_v25, %v13448_v1  ;;  %v13533_v45 = vadd.f32 %v4716_v36, %v4487_v0  ;;  %v4190_v47 = vrot.slane %v4107_v56, %v13448_v1 }
 0x32d   : > { %v4183_v18 = vcombine.high %v4181_v15, %v4181_v15  ;;  %v4490_v28 = vadd.f32 %v13464_v44, %v4181_v15  ;;  %v4731_v6 = vrot.slane %v4717_v29, %v13448_v1  ;;  %v4657_v35 = vpop.f32.mrb[42].mxu1  ;;  %v4489_v61 = vadd.f32 %v4448_v21, %v4182_v55  ;;  %v5089_v38 = vpop.f32.mrb[34].mxu0 }
 0x32e   : > { %v4732_v14 = vcombine.high %v4724_v10, %v4724_v10  ;;  %v13540_v62 = vadd.f32 %v4724_v10, %v4488_v46  ;;  %v9329_v54 = vpop.f32.mrb[43].mxu1  ;;  %v4740_v12 = vrot.slane %v4657_v35, %v13448_v1  ;;  %v9348_v16 = vpop.f32.mrb[35].mxu0  ;;  %v4191_v17 = vcombine.high %v4190_v47, %v4190_v47 }
 0x32f   : > { %v4491_v42 = vadd.f32 %v4449_v63, %v4183_v18  ;;  %v4733_v5 = vcombine.high %v4731_v6, %v4731_v6  ;;  %v13546_v41 = vadd.f32 %v4731_v6, %v4490_v28  ;;  %v4492_v21 = vadd.f32 %v13472_v32, %v4190_v47 }
 0x330   : > { %v13549_v20 = vadd.f32 %v4732_v14, %v4489_v61  ;;  %v5118_v8 = vcombine.high %v5089_v38, %v5089_v38  ;;  %v4741_v24 = vcombine.high %v4740_v12, %v4740_v12  ;;  %v5125_v19 = vrot.slane %v5089_v38, %v13448_v1 }
 0x331   : > { %v13552_v40 = vadd.f32 %v4733_v5, %v4491_v42  ;;  %v13559_v44 = vrot.slane %v8395_v7, %v13448_v1  ;;  %v4493_v63 = vadd.f32 %v4457_v9, %v4191_v17  ;;  %v13564_v58 = vadd.f32 %v4740_v12, %v4492_v21 }
 0x332   : > { %v5416_v26 = vpop.f32.mrb[44].mxu1  ;;  %v5132_v22 = vrot.slane %v5118_v8, %v13448_v1  ;;  %v5094_v48 = vpop.f32.mrb[36].mxu0  ;;  %v5133_v43 = vcombine.high %v5125_v19, %v5125_v19  ;;  %v5212_v23 = vadd.f32 %v5125_v19, %v13483_v31 }
 0x333   : > { %v5445_v13 = vcombine.high %v5416_v26, %v5416_v26  ;;  %v9379_v59 = vpop.f32.mrb[45].mxu1  ;;  %v5452_v52 = vrot.slane %v5416_v26, %v13448_v1  ;;  %v5135_v25 = vcombine.high %v5094_v48, %v5094_v48  ;;  %v9351_v2 = vpop.f32.mrb[37].mxu0  ;;  %v13569_v7 = vadd.f32 %v4741_v24, %v4493_v63 }
 0x334   : > { %v5134_v0 = vcombine.high %v5132_v22, %v5132_v22  ;;  %v5214_v32 = vadd.f32 %v5132_v22, %v13493_v3  ;;  %v5213_v51 = vadd.f32 %v5133_v43, %v13491_v50  ;;  %v5142_v56 = vrot.slane %v5094_v48, %v13448_v1 }
 0x335   : > { %v5459_v9 = vrot.slane %v5445_v13, %v13448_v1  ;;  %v5460_v60 = vcombine.high %v5452_v52, %v5452_v52  ;;  %v13574_v53 = vadd.f32 %v5452_v52, %v5212_v23  ;;  %v5149_v39 = vrot.slane %v5135_v25, %v13448_v1 }
 0x336   : > { %v5421_v36 = vpop.f32.mrb[46].mxu1  ;;  %v5215_v31 = vadd.f32 %v5134_v0, %v13495_v37  ;;  %v5099_v46 = vpop.f32.mrb[38].mxu0  ;;  %v5150_v10 = vcombine.high %v5142_v56, %v5142_v56  ;;  %v5216_v50 = vadd.f32 %v5142_v56, %v13504_v33 }
 0x337   : > { %v5461_v15 = vcombine.high %v5459_v9, %v5459_v9  ;;  %v13578_v29 = vadd.f32 %v5459_v9, %v5214_v32  ;;  %v9382_v55 = vpop.f32.mrb[47].mxu1  ;;  %v13581_v3 = vadd.f32 %v5460_v60, %v5213_v51  ;;  %v5462_v18 = vcombine.high %v5421_v36, %v5421_v36  ;;  %v9354_v28 = vpop.f32.mrb[39].mxu0 }
 0x338   : > { %v5151_v35 = vcombine.high %v5149_v39, %v5149_v39  ;;  %v5218_v61 = vadd.f32 %v5149_v39, %v13507_v30  ;;  %v5469_v37 = vrot.slane %v5421_v36, %v13448_v1  ;;  %v5217_v14 = vadd.f32 %v5150_v10, %v13510_v27 }
 0x339   : > { %v13584_v6 = vadd.f32 %v5461_v15, %v5215_v31  ;;  %v5476_v47 = vrot.slane %v5462_v18, %v13448_v1  ;;  %v5152_v54 = vcombine.high %v5099_v46, %v5099_v46  ;;  %v5159_v38 = vrot.slane %v5099_v46, %v13448_v1 }
 0x33a   : > { %v5426_v42 = vpop.f32.mrb[48].mxu1  ;;  %v5219_v5 = vadd.f32 %v5151_v35, %v13514_v49  ;;  %v5477_v33 = vcombine.high %v5469_v37, %v5469_v37  ;;  %v13592_v12 = vadd.f32 %v5469_v37, %v5216_v50  ;;  %v5104_v21 = vpop.f32.mrb[40].mxu0 }
 0x33b   : > { %v5479_v16 = vcombine.high %v5426_v42, %v5426_v42  ;;  %v9385_v17 = vpop.f32.mrb[49].mxu1  ;;  %v5478_v8 = vcombine.high %v5476_v47, %v5476_v47  ;;  %v13594_v30 = vadd.f32 %v5476_v47, %v5218_v61  ;;  %v5166_v24 = vrot.slane %v5152_v54, %v13448_v1  ;;  %v9357_v19 = vpop.f32.mrb[41].mxu0 }
 0x33c   : > { %v5167_v27 = vcombine.high %v5159_v38, %v5159_v38  ;;  %v13597_v26 = vadd.f32 %v5477_v33, %v5217_v14  ;;  %v5220_v63 = vadd.f32 %v5159_v38, %v13523_v4  ;;  %v5486_v22 = vrot.slane %v5426_v42, %v13448_v1 }
 0x33d   : > { %v5493_v49 = vrot.slane %v5479_v16, %v13448_v1  ;;  %v13602_v13 = vadd.f32 %v5478_v8, %v5219_v5  ;;  %v5168_v59 = vcombine.high %v5166_v24, %v5166_v24  ;;  %v5222_v43 = vadd.f32 %v5166_v24, %v13526_v11 }
 0x33e   : > { %v5221_v48 = vadd.f32 %v5167_v27, %v13529_v57  ;;  %v5431_v23 = vpop.f32.mrb[50].mxu1  ;;  %v5494_v52 = vcombine.high %v5486_v22, %v5486_v22  ;;  %v13606_v2 = vadd.f32 %v5486_v22, %v5220_v63  ;;  %v5169_v0 = vcombine.high %v5104_v21, %v5104_v21  ;;  %v5109_v9 = vpop.f32.mrb[42].mxu0 }
 0x33f   : > { %v5495_v25 = vcombine.high %v5493_v49, %v5493_v49  ;;  %v9388_v32 = vpop.f32.mrb[51].mxu1  ;;  %v5223_v4 = vadd.f32 %v5168_v59, %v13533_v45  ;;  %v13609_v51 = vadd.f32 %v5493_v49, %v5222_v43  ;;  %v5176_v60 = vrot.slane %v5104_v21, %v13448_v1  ;;  %v9360_v36 = vpop.f32.mrb[43].mxu0 }
 0x340   : > { %v5496_v56 = vcombine.high %v5431_v23, %v5431_v23  ;;  %v13612_v31 = vadd.f32 %v5494_v52, %v5221_v48  ;;  %v5183_v11 = vrot.slane %v5169_v0, %v13448_v1  ;;  %v5503_v57 = vrot.slane %v5431_v23, %v13448_v1 }
 0x341   : > { %v5192_v15 = vrot.slane %v5109_v9, %v13448_v1  ;;  %v13617_v39 = vadd.f32 %v5495_v25, %v5223_v4  ;;  %v5184_v55 = vcombine.high %v5176_v60, %v5176_v60  ;;  %v5224_v46 = vadd.f32 %v5176_v60, %v13540_v62 }
 0x342   : > { %v5510_v45 = vrot.slane %v5496_v56, %v13448_v1  ;;  %v5436_v10 = vpop.f32.mrb[52].mxu1  ;;  %v5185_v50 = vcombine.high %v5183_v11, %v5183_v11  ;;  %v5226_v18 = vadd.f32 %v5183_v11, %v13546_v41  ;;  %v5511_v28 = vcombine.high %v5503_v57, %v5503_v57 }
 0x343   : > { %v5193_v35 = vcombine.high %v5192_v15, %v5192_v15  ;;  %v9391_v61 = vpop.f32.mrb[53].mxu1  ;;  %v5225_v14 = vadd.f32 %v5184_v55, %v13549_v20  ;;  %v13623_v54 = vadd.f32 %v5503_v57, %v5224_v46  ;;  %v5228_v38 = vadd.f32 %v5192_v15, %v13564_v58 }
 0x344   : > { %v5512_v47 = vcombine.high %v5510_v45, %v5510_v45  ;;  %v5227_v62 = vadd.f32 %v5185_v50, %v13552_v40  ;;  %v13627_v5 = vadd.f32 %v5510_v45, %v5226_v18  ;;  %v5519_v41 = vrot.slane %v5436_v10, %v13448_v1 }
 0x345   : > { %v5695_v37 = vpop.f32.mrb[44].mxu0  ;;  %v5229_v33 = vadd.f32 %v5193_v35, %v13569_v7  ;;  %v13631_v16 = vadd.f32 %v5511_v28, %v5225_v14  ;;  %v13636_v8 = vcombine.high %v13502_v34, %v13502_v34 }
 0x346   : > { %v9410_v42 = vpop.f32.mrb[45].mxu0  ;;  %v5724_v17 = vcombine.high %v5695_v37, %v5695_v37  ;;  %v5731_v21 = vrot.slane %v5695_v37, %v13448_v1  ;;  %v13638_v58 = vadd.f32 %v5512_v47, %v5227_v62  ;;  %v5520_v24 = vcombine.high %v5519_v41, %v5519_v41 }
 0x347   : > { %v5974_v20 = vpop.f32.mrb[54].mxu1  ;;  %v13640_v40 = vadd.f32 %v5519_v41, %v5228_v38 }
 0x348   : > { %v6003_v27 = vcombine.high %v5974_v20, %v5974_v20  ;;  %v9441_v19 = vpop.f32.mrb[55].mxu1  ;;  %v5738_v63 = vrot.slane %v5724_v17, %v13448_v1  ;;  %v5739_v22 = vcombine.high %v5731_v21, %v5731_v21  ;;  %v5818_v49 = vadd.f32 %v5731_v21, %v13574_v53 }
 0x349   : > { %v5700_v7 = vpop.f32.mrb[46].mxu0  ;;  %v6010_v59 = vrot.slane %v5974_v20, %v13448_v1  ;;  %v13645_v43 = vadd.f32 %v5520_v24, %v5229_v33 }
 0x34a   : > { %v9413_v48 = vpop.f32.mrb[47].mxu0  ;;  %v6017_v23 = vrot.slane %v6003_v27, %v13448_v1  ;;  %v5741_v52 = vcombine.high %v5700_v7, %v5700_v7  ;;  %v5748_v25 = vrot.slane %v5700_v7, %v13448_v1  ;;  %v5740_v0 = vcombine.high %v5738_v63, %v5738_v63 }
 0x34b   : > { %v5819_v32 = vadd.f32 %v5739_v22, %v13581_v3  ;;  %v5820_v9 = vadd.f32 %v5738_v63, %v13578_v29  ;;  %v6018_v4 = vcombine.high %v6010_v59, %v6010_v59  ;;  %v5979_v60 = vpop.f32.mrb[56].mxu1  ;;  %v13651_v36 = vadd.f32 %v6010_v59, %v5818_v49 }
 0x34c   : > { %v6019_v56 = vcombine.high %v6017_v23, %v6017_v23  ;;  %v5755_v53 = vrot.slane %v5741_v52, %v13448_v1  ;;  %v5756_v11 = vcombine.high %v5748_v25, %v5748_v25  ;;  %v9444_v57 = vpop.f32.mrb[57].mxu1  ;;  %v5821_v55 = vadd.f32 %v5740_v0, %v13584_v6 }
 0x34d   : > { %v5705_v15 = vpop.f32.mrb[48].mxu0  ;;  %v13655_v46 = vadd.f32 %v6018_v4, %v5819_v32  ;;  %v13657_v45 = vadd.f32 %v6017_v23, %v5820_v9  ;;  %v5822_v3 = vadd.f32 %v5748_v25, %v13592_v12  ;;  %v6020_v28 = vcombine.high %v5979_v60, %v5979_v60 }
 0x34e   : > { %v9416_v10 = vpop.f32.mrb[49].mxu0  ;;  %v5757_v29 = vcombine.high %v5755_v53, %v5755_v53  ;;  %v5823_v50 = vadd.f32 %v5756_v11, %v13597_v26  ;;  %v5824_v18 = vadd.f32 %v5755_v53, %v13594_v30  ;;  %v13662_v35 = vadd.f32 %v6019_v56, %v5821_v55 }
 0x34f   : > { %v6027_v61 = vrot.slane %v5979_v60, %v13448_v1  ;;  %v5758_v37 = vcombine.high %v5705_v15, %v5705_v15  ;;  %v5765_v6 = vrot.slane %v5705_v15, %v13448_v1  ;;  %v6034_v38 = vrot.slane %v6020_v28, %v13448_v1 }
 0x350   : > { %v5984_v14 = vpop.f32.mrb[58].mxu1  ;;  %v5825_v47 = vadd.f32 %v5757_v29, %v13602_v13 }
 0x351   : > { %v6037_v12 = vcombine.high %v5984_v14, %v5984_v14  ;;  %v6044_v42 = vrot.slane %v5984_v14, %v13448_v1  ;;  %v9447_v62 = vpop.f32.mrb[59].mxu1  ;;  %v5710_v26 = vpop.f32.mrb[50].mxu0  ;;  %v6035_v33 = vcombine.high %v6027_v61, %v6027_v61  ;;  %v13669_v30 = vadd.f32 %v6027_v61, %v5822_v3 }
 0x352   : > { %v5772_v41 = vrot.slane %v5758_v37, %v13448_v1  ;;  %v5773_v17 = vcombine.high %v5765_v6, %v5765_v6  ;;  %v9419_v21 = vpop.f32.mrb[51].mxu0  ;;  %v6036_v20 = vcombine.high %v6034_v38, %v6034_v38  ;;  %v13672_v24 = vadd.f32 %v6034_v38, %v5824_v18 }
 0x353   : > { %v5826_v27 = vadd.f32 %v5765_v6, %v13606_v2  ;;  %v6051_v13 = vrot.slane %v6037_v12, %v13448_v1  ;;  %v13676_v19 = vadd.f32 %v6035_v33, %v5823_v50  ;;  %v6052_v48 = vcombine.high %v6044_v42, %v6044_v42 }
 0x354   : > { %v5774_v7 = vcombine.high %v5772_v41, %v5772_v41  ;;  %v5827_v63 = vadd.f32 %v5773_v17, %v13612_v31  ;;  %v5828_v22 = vadd.f32 %v5772_v41, %v13609_v51  ;;  %v5989_v49 = vpop.f32.mrb[60].mxu1  ;;  %v13680_v59 = vadd.f32 %v6036_v20, %v5825_v47 }
 0x355   : > { %v6053_v23 = vcombine.high %v6051_v13, %v6051_v13  ;;  %v13682_v52 = vadd.f32 %v6044_v42, %v5826_v27  ;;  %v9450_v25 = vpop.f32.mrb[61].mxu1  ;;  %v5715_v0 = vpop.f32.mrb[52].mxu0  ;;  %v5775_v9 = vcombine.high %v5710_v26, %v5710_v26  ;;  %v5782_v4 = vrot.slane %v5710_v26, %v13448_v1 }
 0x356   : > { %v5829_v2 = vadd.f32 %v5774_v7, %v13617_v39  ;;  %v13685_v32 = vadd.f32 %v6051_v13, %v5828_v22  ;;  %v9422_v60 = vpop.f32.mrb[53].mxu0  ;;  %v13688_v31 = vadd.f32 %v6052_v48, %v5827_v63  ;;  %v6054_v51 = vcombine.high %v5989_v49, %v5989_v49 }
 0x357   : > { %v6061_v56 = vrot.slane %v5989_v49, %v13448_v1  ;;  %v5798_v53 = vrot.slane %v5715_v0, %v13448_v1  ;;  %v5789_v57 = vrot.slane %v5775_v9, %v13448_v1  ;;  %v5790_v15 = vcombine.high %v5782_v4, %v5782_v4 }
 0x358   : > { %v13692_v11 = vadd.f32 %v6053_v23, %v5829_v2  ;;  %v5830_v39 = vadd.f32 %v5782_v4, %v13623_v54  ;;  %v5994_v55 = vpop.f32.mrb[62].mxu1  ;;  %v6068_v3 = vrot.slane %v6054_v51, %v13448_v1 }
 0x359   : > { %v6069_v10 = vcombine.high %v6061_v56, %v6061_v56  ;;  %v5799_v29 = vcombine.high %v5798_v53, %v5798_v53  ;;  %v5834_v50 = vadd.f32 %v5798_v53, %v13640_v40  ;;  %v9453_v18 = vpop.f32.mrb[63].mxu1  ;;  %v5791_v61 = vcombine.high %v5789_v57, %v5789_v57 }
 0x35a   : > { %v5831_v37 = vadd.f32 %v5790_v15, %v13631_v16  ;;  %v5832_v6 = vadd.f32 %v5789_v57, %v13627_v5  ;;  %v13700_v14 = vadd.f32 %v6061_v56, %v5830_v39  ;;  %v6070_v38 = vcombine.high %v6068_v3, %v6068_v3 }
 0x35b   : > { %v5835_v54 = vadd.f32 %v5799_v29, %v13645_v43  ;;  %v6077_v12 = vrot.slane %v5994_v55, %v13448_v1  ;;  %v5833_v62 = vadd.f32 %v5791_v61, %v13638_v58 }
 0x35c   : > { %v13705_v26 = vadd.f32 %v6069_v10, %v5831_v37  ;;  %v13707_v40 = vadd.f32 %v6068_v3, %v5832_v6  ;;  %v6601_v16 = vpop.f32.mrb[64].mxu1 }
 0x35d   : > { %v6078_v41 = vcombine.high %v6077_v12, %v6077_v12  ;;  %v13710_v5 = vadd.f32 %v6077_v12, %v5834_v50  ;;  %v6630_v21 = vcombine.high %v6601_v16, %v6601_v16  ;;  %v9503_v20 = vpop.f32.mrb[65].mxu1  ;;  %v13713_v27 = vadd.f32 %v6070_v38, %v5833_v62 }
 0x35e   : > { %v6314_v28 = vpop.f32.mrb[54].mxu0  ;;  %v6637_v7 = vrot.slane %v6601_v16, %v13448_v1 }
 0x35f   : > { %v9472_v47 = vpop.f32.mrb[55].mxu0  ;;  %v6343_v42 = vcombine.high %v6314_v28, %v6314_v28  ;;  %v6350_v33 = vrot.slane %v6314_v28, %v13448_v1  ;;  %v13717_v22 = vadd.f32 %v6078_v41, %v5835_v54  ;;  %v6644_v23 = vrot.slane %v6630_v21, %v13448_v1 }
 0x360   : > { %v6645_v0 = vcombine.high %v6637_v7, %v6637_v7 }
 0x361   : > { %v6357_v17 = vrot.slane %v6343_v42, %v13448_v1  ;;  %v6358_v13 = vcombine.high %v6350_v33, %v6350_v33  ;;  %v6437_v58 = vadd.f32 %v6350_v33, %v13651_v36  ;;  %v6606_v4 = vpop.f32.mrb[66].mxu1  ;;  %v6646_v36 = vcombine.high %v6644_v23, %v6644_v23 }
 0x362   : > { %v6319_v43 = vpop.f32.mrb[56].mxu0  ;;  %v9506_v53 = vpop.f32.mrb[67].mxu1  ;;  %v6647_v39 = vcombine.high %v6606_v4, %v6606_v4 }
 0x363   : > { %v9475_v63 = vpop.f32.mrb[57].mxu0  ;;  %v6359_v49 = vcombine.high %v6357_v17, %v6357_v17  ;;  %v6439_v48 = vadd.f32 %v6357_v17, %v13657_v45  ;;  %v6438_v25 = vadd.f32 %v6358_v13, %v13655_v46  ;;  %v13722_v2 = vadd.f32 %v6637_v7, %v6437_v58 }
 0x364   : > { %v6360_v9 = vcombine.high %v6319_v43, %v6319_v43  ;;  %v6367_v56 = vrot.slane %v6319_v43, %v13448_v1  ;;  %v6654_v46 = vrot.slane %v6606_v4, %v13448_v1  ;;  %v6661_v28 = vrot.slane %v6647_v39, %v13448_v1 }
 0x365   : > { %v6440_v60 = vadd.f32 %v6359_v49, %v13662_v35  ;;  %v13725_v51 = vadd.f32 %v6644_v23, %v6439_v48  ;;  %v13728_v15 = vadd.f32 %v6645_v0, %v6438_v25  ;;  %v6611_v37 = vpop.f32.mrb[68].mxu1 }
 0x366   : > { %v6324_v57 = vpop.f32.mrb[58].mxu0  ;;  %v6374_v45 = vrot.slane %v6360_v9, %v13448_v1  ;;  %v6375_v10 = vcombine.high %v6367_v56, %v6367_v56  ;;  %v6441_v35 = vadd.f32 %v6367_v56, %v13669_v30  ;;  %v6662_v61 = vcombine.high %v6654_v46, %v6654_v46  ;;  %v9509_v12 = vpop.f32.mrb[69].mxu1 }
 0x367   : > { %v9478_v55 = vpop.f32.mrb[59].mxu0  ;;  %v13732_v3 = vadd.f32 %v6646_v36, %v6440_v60  ;;  %v6377_v29 = vcombine.high %v6324_v57, %v6324_v57  ;;  %v6384_v38 = vrot.slane %v6324_v57, %v13448_v1  ;;  %v6663_v62 = vcombine.high %v6661_v28, %v6661_v28 }
 0x368   : > { %v6376_v50 = vcombine.high %v6374_v45, %v6374_v45  ;;  %v6443_v18 = vadd.f32 %v6374_v45, %v13672_v24  ;;  %v6442_v6 = vadd.f32 %v6375_v10, %v13676_v19  ;;  %v13738_v47 = vadd.f32 %v6654_v46, %v6441_v35 }
 0x369   : > { %v6391_v54 = vrot.slane %v6377_v29, %v13448_v1  ;;  %v6664_v24 = vcombine.high %v6611_v37, %v6611_v37  ;;  %v6392_v17 = vcombine.high %v6384_v38, %v6384_v38  ;;  %v6445_v19 = vadd.f32 %v6384_v38, %v13682_v52 }
 0x36a   : > { %v6329_v42 = vpop.f32.mrb[60].mxu0  ;;  %v6444_v30 = vadd.f32 %v6376_v50, %v13680_v59  ;;  %v13743_v33 = vadd.f32 %v6661_v28, %v6443_v18  ;;  %v13745_v41 = vadd.f32 %v6662_v61, %v6442_v6  ;;  %v6671_v13 = vrot.slane %v6611_v37, %v13448_v1  ;;  %v6616_v59 = vpop.f32.mrb[70].mxu1 }
 0x36b   : > { %v9481_v16 = vpop.f32.mrb[61].mxu0  ;;  %v6393_v21 = vcombine.high %v6391_v54, %v6391_v54  ;;  %v6447_v43 = vadd.f32 %v6391_v54, %v13685_v32  ;;  %v6678_v58 = vrot.slane %v6664_v24, %v13448_v1  ;;  %v6446_v7 = vadd.f32 %v6392_v17, %v13688_v31  ;;  %v9512_v23 = vpop.f32.mrb[71].mxu1 }
 0x36c   : > { %v13748_v20 = vadd.f32 %v6663_v62, %v6444_v30  ;;  %v6394_v49 = vcombine.high %v6329_v42, %v6329_v42  ;;  %v6401_v48 = vrot.slane %v6329_v42, %v13448_v1  ;;  %v6679_v0 = vcombine.high %v6671_v13, %v6671_v13 }
 0x36d   : > { %v6448_v63 = vadd.f32 %v6393_v21, %v13692_v11  ;;  %v6680_v52 = vcombine.high %v6678_v58, %v6678_v58  ;;  %v13756_v9 = vadd.f32 %v6671_v13, %v6445_v19  ;;  %v13758_v4 = vadd.f32 %v6678_v58, %v6447_v43  ;;  %v6621_v39 = vpop.f32.mrb[72].mxu1 }
 0x36e   : > { %v6334_v25 = vpop.f32.mrb[62].mxu0  ;;  %v6408_v60 = vrot.slane %v6394_v49, %v13448_v1  ;;  %v6409_v36 = vcombine.high %v6401_v48, %v6401_v48  ;;  %v6449_v56 = vadd.f32 %v6401_v48, %v13700_v14  ;;  %v6681_v31 = vcombine.high %v6616_v59, %v6616_v59  ;;  %v9515_v29 = vpop.f32.mrb[73].mxu1 }
 0x36f   : > { %v9484_v32 = vpop.f32.mrb[63].mxu0  ;;  %v13762_v53 = vadd.f32 %v6679_v0, %v6446_v7  ;;  %v13764_v11 = vadd.f32 %v6680_v52, %v6448_v63  ;;  %v6688_v57 = vrot.slane %v6616_v59, %v13448_v1  ;;  %v6417_v45 = vrot.slane %v6334_v25, %v13448_v1 }
 0x370   : > { %v6410_v46 = vcombine.high %v6408_v60, %v6408_v60  ;;  %v6450_v55 = vadd.f32 %v6409_v36, %v13705_v26  ;;  %v6451_v10 = vadd.f32 %v6408_v60, %v13707_v40  ;;  %v6695_v35 = vrot.slane %v6681_v31, %v13448_v1 }
 0x371   : > { %v6696_v14 = vcombine.high %v6688_v57, %v6688_v57  ;;  %v13771_v18 = vadd.f32 %v6688_v57, %v6449_v56  ;;  %v6418_v28 = vcombine.high %v6417_v45, %v6417_v45  ;;  %v6453_v61 = vadd.f32 %v6417_v45, %v13710_v5  ;;  %v7111_v62 = vpop.f32.mrb[74].mxu1 }
 0x372   : > { %v6856_v50 = vpop.f32.mrb[64].mxu0  ;;  %v6452_v6 = vadd.f32 %v6410_v46, %v13713_v27  ;;  %v6697_v38 = vcombine.high %v6695_v35, %v6695_v35  ;;  %v13775_v54 = vadd.f32 %v6695_v35, %v6451_v10  ;;  %v6704_v26 = vrot.slane %v6621_v39, %v13448_v1  ;;  %v9565_v27 = vpop.f32.mrb[75].mxu1 }
 0x373   : > { %v9534_v37 = vpop.f32.mrb[65].mxu0  ;;  %v13778_v12 = vadd.f32 %v6696_v14, %v6450_v55  ;;  %v6454_v40 = vadd.f32 %v6418_v28, %v13717_v22  ;;  %v6885_v42 = vcombine.high %v6856_v50, %v6856_v50  ;;  %v6892_v30 = vrot.slane %v6856_v50, %v13448_v1 }
 0x374   : > { %v13782_v24 = vadd.f32 %v6697_v38, %v6452_v6  ;;  %v6705_v16 = vcombine.high %v6704_v26, %v6704_v26  ;;  %v13784_v5 = vadd.f32 %v6704_v26, %v6453_v61  ;;  %v7140_v17 = vcombine.high %v7111_v62, %v7111_v62 }
 0x375   : > { %v6899_v19 = vrot.slane %v6885_v42, %v13448_v1  ;;  %v6900_v43 = vcombine.high %v6892_v30, %v6892_v30  ;;  %v6979_v13 = vadd.f32 %v6892_v30, %v13722_v2  ;;  %v7147_v58 = vrot.slane %v7111_v62, %v13448_v1  ;;  %v7116_v52 = vpop.f32.mrb[76].mxu1 }
 0x376   : > { %v6861_v21 = vpop.f32.mrb[66].mxu0  ;;  %v13789_v59 = vadd.f32 %v6705_v16, %v6454_v40  ;;  %v7154_v7 = vrot.slane %v7140_v17, %v13448_v1  ;;  %v9568_v56 = vpop.f32.mrb[77].mxu1  ;;  %v7157_v35 = vcombine.high %v7116_v52, %v7116_v52  ;;  %v7164_v50 = vrot.slane %v7116_v52, %v13448_v1 }
 0x377   : > { %v9537_v22 = vpop.f32.mrb[67].mxu0  ;;  %v6902_v63 = vcombine.high %v6861_v21, %v6861_v21  ;;  %v6909_v49 = vrot.slane %v6861_v21, %v13448_v1  ;;  %v6901_v48 = vcombine.high %v6899_v19, %v6899_v19  ;;  %v6980_v23 = vadd.f32 %v6900_v43, %v13728_v15 }
 0x378   : > { %v6981_v25 = vadd.f32 %v6899_v19, %v13725_v51  ;;  %v7155_v0 = vcombine.high %v7147_v58, %v7147_v58  ;;  %v7156_v32 = vcombine.high %v7154_v7, %v7154_v7  ;;  %v13795_v60 = vadd.f32 %v7147_v58, %v6979_v13 }
 0x379   : > { %v6916_v2 = vrot.slane %v6902_v63, %v13448_v1  ;;  %v6917_v36 = vcombine.high %v6909_v49, %v6909_v49  ;;  %v6982_v57 = vadd.f32 %v6901_v48, %v13732_v3  ;;  %v6983_v15 = vadd.f32 %v6909_v49, %v13738_v47  ;;  %v7121_v28 = vpop.f32.mrb[78].mxu1 }
 0x37a   : > { %v6866_v31 = vpop.f32.mrb[68].mxu0  ;;  %v13799_v45 = vadd.f32 %v7155_v0, %v6980_v23  ;;  %v13801_v39 = vadd.f32 %v7154_v7, %v6981_v25  ;;  %v7171_v37 = vrot.slane %v7157_v35, %v13448_v1  ;;  %v7174_v47 = vcombine.high %v7121_v28, %v7121_v28  ;;  %v9571_v38 = vpop.f32.mrb[79].mxu1 }
 0x37b   : > { %v9540_v46 = vpop.f32.mrb[69].mxu0  ;;  %v6918_v51 = vcombine.high %v6916_v2, %v6916_v2  ;;  %v6984_v55 = vadd.f32 %v6917_v36, %v13745_v41  ;;  %v6985_v10 = vadd.f32 %v6916_v2, %v13743_v33  ;;  %v13806_v29 = vadd.f32 %v7156_v32, %v6982_v57 }
 0x37c   : > { %v6919_v14 = vcombine.high %v6866_v31, %v6866_v31  ;;  %v6926_v3 = vrot.slane %v6866_v31, %v13448_v1  ;;  %v7181_v6 = vrot.slane %v7121_v28, %v13448_v1  ;;  %v7172_v26 = vcombine.high %v7164_v50, %v7164_v50 }
 0x37d   : > { %v6986_v61 = vadd.f32 %v6918_v51, %v13748_v20  ;;  %v13813_v33 = vadd.f32 %v7164_v50, %v6983_v15  ;;  %v7173_v62 = vcombine.high %v7171_v37, %v7171_v37  ;;  %v13816_v16 = vadd.f32 %v7171_v37, %v6985_v10  ;;  %v7126_v13 = vpop.f32.mrb[80].mxu1 }
 0x37e   : > { %v6871_v41 = vpop.f32.mrb[70].mxu0  ;;  %v6933_v40 = vrot.slane %v6919_v14, %v13448_v1  ;;  %v6934_v42 = vcombine.high %v6926_v3, %v6926_v3  ;;  %v6987_v17 = vadd.f32 %v6926_v3, %v13756_v9  ;;  %v7188_v20 = vrot.slane %v7174_v47, %v13448_v1  ;;  %v9574_v49 = vpop.f32.mrb[81].mxu1 }
 0x37f   : > { %v9543_v30 = vpop.f32.mrb[71].mxu0  ;;  %v13820_v27 = vadd.f32 %v7172_v26, %v6984_v55  ;;  %v13824_v58 = vadd.f32 %v7173_v62, %v6986_v61  ;;  %v7189_v22 = vcombine.high %v7181_v6, %v7181_v6  ;;  %v6936_v25 = vcombine.high %v6871_v41, %v6871_v41 }
 0x380   : > { %v6935_v21 = vcombine.high %v6933_v40, %v6933_v40  ;;  %v6988_v19 = vadd.f32 %v6934_v42, %v13762_v53  ;;  %v6989_v43 = vadd.f32 %v6933_v40, %v13758_v4  ;;  %v7190_v7 = vcombine.high %v7188_v20, %v7188_v20 }
 0x381   : > { %v13826_v63 = vadd.f32 %v7181_v6, %v6987_v17  ;;  %v6943_v0 = vrot.slane %v6871_v41, %v13448_v1  ;;  %v7191_v4 = vcombine.high %v7126_v13, %v7126_v13  ;;  %v7198_v32 = vrot.slane %v7126_v13, %v13448_v1  ;;  %v7131_v57 = vpop.f32.mrb[82].mxu1 }
 0x382   : > { %v6876_v48 = vpop.f32.mrb[72].mxu0  ;;  %v6990_v9 = vadd.f32 %v6935_v21, %v13764_v11  ;;  %v13829_v23 = vadd.f32 %v7188_v20, %v6989_v43  ;;  %v13832_v53 = vadd.f32 %v7189_v22, %v6988_v19  ;;  %v6950_v56 = vrot.slane %v6936_v25, %v13448_v1  ;;  %v9577_v10 = vpop.f32.mrb[83].mxu1 }
 0x383   : > { %v9546_v52 = vpop.f32.mrb[73].mxu0  ;;  %v6959_v2 = vrot.slane %v6876_v48, %v13448_v1  ;;  %v6951_v31 = vcombine.high %v6943_v0, %v6943_v0  ;;  %v6991_v11 = vadd.f32 %v6943_v0, %v13771_v18  ;;  %v7205_v15 = vrot.slane %v7191_v4, %v13448_v1 }
 0x384   : > { %v13836_v36 = vadd.f32 %v7190_v7, %v6990_v9  ;;  %v7206_v46 = vcombine.high %v7198_v32, %v7198_v32  ;;  %v6952_v50 = vcombine.high %v6950_v56, %v6950_v56  ;;  %v6993_v3 = vadd.f32 %v6950_v56, %v13775_v54 }
 0x385   : > { %v6960_v51 = vcombine.high %v6959_v2, %v6959_v2  ;;  %v6995_v55 = vadd.f32 %v6959_v2, %v13784_v5  ;;  %v6992_v14 = vadd.f32 %v6951_v31, %v13778_v12  ;;  %v13844_v28 = vadd.f32 %v7198_v32, %v6991_v11  ;;  %v7738_v12 = vpop.f32.mrb[84].mxu1 }
 0x386   : > { %v7451_v35 = vpop.f32.mrb[74].mxu0  ;;  %v7207_v37 = vcombine.high %v7205_v15, %v7205_v15  ;;  %v7214_v47 = vrot.slane %v7131_v57, %v13448_v1  ;;  %v6994_v38 = vadd.f32 %v6952_v50, %v13782_v24  ;;  %v13851_v5 = vadd.f32 %v7205_v15, %v6993_v3  ;;  %v9627_v62 = vpop.f32.mrb[85].mxu1 }
 0x387   : > { %v9596_v61 = vpop.f32.mrb[75].mxu0  ;;  %v6996_v18 = vadd.f32 %v6960_v51, %v13789_v59  ;;  %v7480_v6 = vcombine.high %v7451_v35, %v7451_v35  ;;  %v13849_v41 = vadd.f32 %v7206_v46, %v6992_v14  ;;  %v7487_v26 = vrot.slane %v7451_v35, %v13448_v1 }
 0x388   : > { %v7215_v40 = vcombine.high %v7214_v47, %v7214_v47  ;;  %v13854_v54 = vadd.f32 %v7214_v47, %v6995_v55  ;;  %v7767_v30 = vcombine.high %v7738_v12, %v7738_v12  ;;  %v13857_v17 = vadd.f32 %v7207_v37, %v6994_v38 }
 0x389   : > { %v7494_v42 = vrot.slane %v7480_v6, %v13448_v1  ;;  %v7495_v20 = vcombine.high %v7487_v26, %v7487_v26  ;;  %v7574_v24 = vadd.f32 %v7487_v26, %v13795_v60  ;;  %v7774_v21 = vrot.slane %v7738_v12, %v13448_v1  ;;  %v7743_v0 = vpop.f32.mrb[86].mxu1 }
 0x38a   : > { %v7456_v59 = vpop.f32.mrb[76].mxu0  ;;  %v13861_v43 = vadd.f32 %v7215_v40, %v6996_v18  ;;  %v7781_v7 = vrot.slane %v7767_v30, %v13448_v1  ;;  %v9630_v2 = vpop.f32.mrb[87].mxu1  ;;  %v7784_v11 = vcombine.high %v7743_v0, %v7743_v0 }
 0x38b   : > { %v9599_v19 = vpop.f32.mrb[77].mxu0  ;;  %v7496_v13 = vcombine.high %v7494_v42, %v7494_v42  ;;  %v7576_v22 = vadd.f32 %v7494_v42, %v13801_v39  ;;  %v7575_v49 = vadd.f32 %v7495_v20, %v13799_v45  ;;  %v7782_v48 = vcombine.high %v7774_v21, %v7774_v21 }
 0x38c   : > { %v13866_v9 = vadd.f32 %v7774_v21, %v7574_v24  ;;  %v7497_v25 = vcombine.high %v7456_v59, %v7456_v59  ;;  %v7783_v60 = vcombine.high %v7781_v7, %v7781_v7  ;;  %v7504_v32 = vrot.slane %v7456_v59, %v13448_v1 }
 0x38d   : > { %v7577_v52 = vadd.f32 %v7496_v13, %v13806_v29  ;;  %v13869_v4 = vadd.f32 %v7781_v7, %v7576_v22  ;;  %v13872_v31 = vadd.f32 %v7782_v48, %v7575_v49  ;;  %v7791_v45 = vrot.slane %v7743_v0, %v13448_v1 }
 0x38e   : > { %v7461_v56 = vpop.f32.mrb[78].mxu0  ;;  %v7511_v39 = vrot.slane %v7497_v25, %v13448_v1  ;;  %v7512_v46 = vcombine.high %v7504_v32, %v7504_v32  ;;  %v7578_v29 = vadd.f32 %v7504_v32, %v13813_v33  ;;  %v7798_v35 = vrot.slane %v7784_v11, %v13448_v1 }
 0x38f   : > { %v9602_v57 = vpop.f32.mrb[79].mxu0  ;;  %v13876_v15 = vadd.f32 %v7783_v60, %v7577_v52  ;;  %v7514_v51 = vcombine.high %v7461_v56, %v7461_v56  ;;  %v7799_v50 = vcombine.high %v7791_v45, %v7791_v45  ;;  %v7521_v37 = vrot.slane %v7461_v56, %v13448_v1 }
 0x390   : > { %v7513_v55 = vcombine.high %v7511_v39, %v7511_v39  ;;  %v7580_v10 = vadd.f32 %v7511_v39, %v13816_v16  ;;  %v7748_v14 = vpop.f32.mrb[88].mxu1  ;;  %v7579_v3 = vadd.f32 %v7512_v46, %v13820_v27  ;;  %v13882_v61 = vadd.f32 %v7791_v45, %v7578_v29 }
 0x391   : > { %v7528_v18 = vrot.slane %v7514_v51, %v13448_v1  ;;  %v9633_v47 = vpop.f32.mrb[89].mxu1  ;;  %v7800_v38 = vcombine.high %v7798_v35, %v7798_v35  ;;  %v7801_v16 = vcombine.high %v7748_v14, %v7748_v14  ;;  %v7529_v42 = vcombine.high %v7521_v37, %v7521_v37 }
 0x392   : > { %v7466_v6 = vpop.f32.mrb[80].mxu0  ;;  %v7581_v33 = vadd.f32 %v7513_v55, %v13824_v58  ;;  %v13887_v26 = vadd.f32 %v7798_v35, %v7580_v10  ;;  %v13889_v40 = vadd.f32 %v7799_v50, %v7579_v3  ;;  %v7582_v27 = vadd.f32 %v7521_v37, %v13826_v63 }
 0x393   : > { %v9605_v12 = vpop.f32.mrb[81].mxu0  ;;  %v7530_v30 = vcombine.high %v7528_v18, %v7528_v18  ;;  %v7584_v59 = vadd.f32 %v7528_v18, %v13829_v23  ;;  %v7808_v20 = vrot.slane %v7748_v14, %v13448_v1  ;;  %v7815_v24 = vrot.slane %v7801_v16, %v13448_v1 }
 0x394   : > { %v13892_v62 = vadd.f32 %v7800_v38, %v7581_v33  ;;  %v7753_v58 = vpop.f32.mrb[90].mxu1  ;;  %v7583_v21 = vadd.f32 %v7529_v42, %v13832_v53  ;;  %v7531_v13 = vcombine.high %v7466_v6, %v7466_v6  ;;  %v7538_v22 = vrot.slane %v7466_v6, %v13448_v1 }
 0x395   : > { %v7585_v19 = vadd.f32 %v7530_v30, %v13836_v36  ;;  %v9636_v7 = vpop.f32.mrb[91].mxu1  ;;  %v7816_v48 = vcombine.high %v7808_v20, %v7808_v20  ;;  %v7817_v63 = vcombine.high %v7815_v24, %v7815_v24  ;;  %v13900_v25 = vadd.f32 %v7808_v20, %v7582_v27 }
 0x396   : > { %v7471_v49 = vpop.f32.mrb[82].mxu0  ;;  %v13902_v0 = vadd.f32 %v7815_v24, %v7584_v59  ;;  %v7545_v52 = vrot.slane %v7531_v13, %v13448_v1  ;;  %v7546_v60 = vcombine.high %v7538_v22, %v7538_v22  ;;  %v7586_v32 = vadd.f32 %v7538_v22, %v13844_v28 }
 0x397   : > { %v9608_v23 = vpop.f32.mrb[83].mxu0  ;;  %v7818_v53 = vcombine.high %v7753_v58, %v7753_v58  ;;  %v13906_v2 = vadd.f32 %v7816_v48, %v7583_v21  ;;  %v13908_v36 = vadd.f32 %v7817_v63, %v7585_v19  ;;  %v7825_v56 = vrot.slane %v7753_v58, %v13448_v1 }
 0x398   : > { %v7554_v39 = vrot.slane %v7471_v49, %v13448_v1  ;;  %v7758_v11 = vpop.f32.mrb[92].mxu1  ;;  %v7547_v45 = vcombine.high %v7545_v52, %v7545_v52  ;;  %v7587_v57 = vadd.f32 %v7546_v60, %v13849_v41  ;;  %v7588_v46 = vadd.f32 %v7545_v52, %v13851_v5 }
 0x399   : > { %v7832_v29 = vrot.slane %v7818_v53, %v13448_v1  ;;  %v9639_v51 = vpop.f32.mrb[93].mxu1  ;;  %v7833_v28 = vcombine.high %v7825_v56, %v7825_v56  ;;  %v13915_v10 = vadd.f32 %v7825_v56, %v7586_v32  ;;  %v7841_v41 = vrot.slane %v7758_v11, %v13448_v1 }
 0x39a   : > { %v7993_v55 = vpop.f32.mrb[84].mxu0  ;;  %v7555_v35 = vcombine.high %v7554_v39, %v7554_v39  ;;  %v7590_v50 = vadd.f32 %v7554_v39, %v13854_v54  ;;  %v7589_v3 = vadd.f32 %v7547_v45, %v13857_v17 }
 0x39b   : > { %v9658_v14 = vpop.f32.mrb[85].mxu0  ;;  %v7834_v37 = vcombine.high %v7832_v29, %v7832_v29  ;;  %v13919_v18 = vadd.f32 %v7832_v29, %v7588_v46  ;;  %v13922_v47 = vadd.f32 %v7833_v28, %v7587_v57  ;;  %v8022_v6 = vcombine.high %v7993_v55, %v7993_v55 }
 0x39c   : > { %v7591_v5 = vadd.f32 %v7555_v35, %v13861_v43  ;;  %v8029_v33 = vrot.slane %v7993_v55, %v13448_v1  ;;  %v8248_v38 = vpop.f32.mrb[94].mxu1  ;;  %v7842_v12 = vcombine.high %v7841_v41, %v7841_v41  ;;  %v13928_v54 = vadd.f32 %v7841_v41, %v7590_v50 }
 0x39d   : > { %v13926_v16 = vadd.f32 %v7834_v37, %v7589_v3  ;;  %v8277_v42 = vcombine.high %v8248_v38, %v8248_v38  ;;  %v9689_v17 = vpop.f32.mrb[95].mxu1  ;;  %v8036_v27 = vrot.slane %v8022_v6, %v13448_v1  ;;  %v8284_v24 = vrot.slane %v8248_v38, %v13448_v1 }
 0x39e   : > { %v7998_v30 = vpop.f32.mrb[86].mxu0  ;;  %v8037_v59 = vcombine.high %v8029_v33, %v8029_v33  ;;  %v8116_v20 = vadd.f32 %v8029_v33, %v13866_v9  ;;  %v13933_v58 = vadd.f32 %v7842_v12, %v7591_v5 }
 0x39f   : > { %v9661_v43 = vpop.f32.mrb[87].mxu0  ;;  %v8291_v21 = vrot.slane %v8277_v42, %v13448_v1  ;;  %v8039_v19 = vcombine.high %v7998_v30, %v7998_v30  ;;  %v8046_v13 = vrot.slane %v7998_v30, %v13448_v1  ;;  %v8038_v22 = vcombine.high %v8036_v27, %v8036_v27 }
 0x3a0   : > { %v8117_v7 = vadd.f32 %v8037_v59, %v13872_v31  ;;  %v8118_v49 = vadd.f32 %v8036_v27, %v13869_v4  ;;  %v8292_v48 = vcombine.high %v8284_v24, %v8284_v24  ;;  %v8253_v63 = vpop.f32.mrb[96].mxu1  ;;  %v8371_v52 = vadd.f32 %v8284_v24, %v8116_v20 }
 0x3a1   : > { %v8293_v23 = vcombine.high %v8291_v21, %v8291_v21  ;;  %v8053_v9 = vrot.slane %v8039_v19, %v13448_v1  ;;  %v8054_v60 = vcombine.high %v8046_v13, %v8046_v13  ;;  %v9692_v32 = vpop.f32.mrb[97].mxu1  ;;  %v8119_v56 = vadd.f32 %v8038_v22, %v13876_v15 }
 0x3a2   : > { %v8003_v53 = vpop.f32.mrb[88].mxu0  ;;  %v8372_v39 = vadd.f32 %v8292_v48, %v8117_v7  ;;  %v8373_v11 = vadd.f32 %v8291_v21, %v8118_v49  ;;  %v8120_v45 = vadd.f32 %v8046_v13, %v13882_v61  ;;  %v8414_v4 = vadd.f32 %v13502_v34, %v8371_v52 }
 0x3a3   : > { %v9664_v31 = vpop.f32.mrb[89].mxu0  ;;  %v8055_v57 = vcombine.high %v8053_v9, %v8053_v9  ;;  %v8121_v46 = vadd.f32 %v8054_v60, %v13889_v40  ;;  %v8122_v29 = vadd.f32 %v8053_v9, %v13887_v26  ;;  %v8374_v51 = vadd.f32 %v8293_v23, %v8119_v56 }
 0x3a4   : > { %v8415_v55 = vadd.f32 %v13636_v8, %v8372_v39  ;;  %v8416_v28 = vadd.f32 %v13559_v44, %v8373_v11  ;;  %v8294_v35 = vcombine.high %v8253_v63, %v8253_v63  ;;  %v8258_v50 = vpop.f32.mrb[98].mxu1  ;;  %v8301_v61 = vrot.slane %v8253_v63, %v13448_v1 }
 0x3a5   : > { %v8123_v15 = vadd.f32 %v8055_v57, %v13892_v62  ;;  %v8056_v14 = vcombine.high %v8003_v53, %v8003_v53  ;;  %v8063_v3 = vrot.slane %v8003_v53, %v13448_v1  ;;  %v9695_v37 = vpop.f32.mrb[99].mxu1  ;;  %v8417_v6 = vadd.f32 %v13502_v34, %v8374_v51 }
 0x3a6   : > { %v8008_v41 = vpop.f32.mrb[90].mxu0  ;;  %v8450_v40 = vcombine.low %v8414_v4, %v8415_v55  ;;  %v8464_v26 = vrot.slane %v8416_v28, %v13448_v1  ;;  %v8308_v5 = vrot.slane %v8294_v35, %v13448_v1  ;;  %v8309_v38 = vcombine.high %v8301_v61, %v8301_v61 }
 0x3a7   : > { %v9667_v33 = vpop.f32.mrb[91].mxu0  ;;  %v8375_v12 = vadd.f32 %v8301_v61, %v8120_v45  ;;  %v8070_v42 = vrot.slane %v8056_v14, %v13448_v1  ;;  %v8071_v62 = vcombine.high %v8063_v3, %v8063_v3  ;;  %v8124_v59 = vadd.f32 %v8063_v3, %v13900_v25 }
 0x3a8   : > { %v8457_v17 = vrot.slane %v8450_v40, %v13448_v1  ;;  %v8310_v30 = vcombine.high %v8308_v5, %v8308_v5  ;;  %v8377_v27 = vadd.f32 %v8308_v5, %v8122_v29  ;;  %v8263_v20 = vpop.f32.mrb[100].mxu1  ;;  %v8376_v24 = vadd.f32 %v8309_v38, %v8121_v46 }
 0x3a9   : > { %v8418_v43 = vadd.f32 %v13636_v8, %v8375_v12  ;;  %v8072_v21 = vcombine.high %v8070_v42, %v8070_v42  ;;  %v8125_v19 = vadd.f32 %v8071_v62, %v13906_v2  ;;  %v9698_v13 = vpop.f32.mrb[101].mxu1  ;;  %v8126_v25 = vadd.f32 %v8070_v42, %v13902_v0 }
 0x3aa   : > { %v8013_v22 = vpop.f32.mrb[92].mxu0  ;;  %v8465_v7 = vcombine.low %v8457_v17, %v8464_v26  ;;  %v8378_v49 = vadd.f32 %v8310_v30, %v8123_v15  ;;  %v8420_v48 = vadd.f32 %v13502_v34, %v8377_v27  ;;  %v8419_v23 = vadd.f32 %v13559_v44, %v8376_v24 }
 0x3ab   : > { %v9670_v63 = vpop.f32.mrb[93].mxu0  ;;  %v8466_v52 = vcombine.low %v8417_v6, %v8418_v43  ;;  %v8127_v9 = vadd.f32 %v8072_v21, %v13908_v36  ;;  %v8311_v60 = vcombine.high %v8258_v50, %v8258_v50  ;;  %v8318_v2 = vrot.slane %v8258_v50, %v13448_v1 }
 0x3ac   : > { %8553 = vst.msk [vmem:[%s13960_s9] sm:$0x3f] %vm8552_vm4, %v8465_v7  ;;  %v8421_v32 = vadd.f32 %v13636_v8, %v8378_v49  ;;  %v8073_v53 = vcombine.high %v8008_v41, %v8008_v41  ;;  %v8080_v56 = vrot.slane %v8008_v41, %v13448_v1  ;;  %v8268_v39 = vpop.f32.mrb[102].mxu1  ;;  %v8480_v0 = vrot.slane %v8419_v23, %v13448_v1 }
 0x3ad   : > { %v8473_v11 = vrot.slane %v8466_v52, %v13448_v1  ;;  %v8325_v45 = vrot.slane %v8311_v60, %v13448_v1  ;;  %v8328_v31 = vcombine.high %v8263_v20, %v8263_v20  ;;  %v9701_v36 = vpop.f32.mrb[103].mxu1  ;;  %v8326_v57 = vcombine.high %v8318_v2, %v8318_v2 }
 0x3ae   : > { %v8482_v4 = vcombine.low %v8420_v48, %v8421_v32  ;;  %v8379_v46 = vadd.f32 %v8318_v2, %v8124_v59  ;;  %v8087_v29 = vrot.slane %v8073_v53, %v13448_v1  ;;  %v8088_v35 = vcombine.high %v8080_v56, %v8080_v56 }
 0x3af   : > { %v8481_v51 = vcombine.low %v8473_v11, %v8480_v0  ;;  %v8327_v55 = vcombine.high %v8325_v45, %v8325_v45  ;;  %v8381_v28 = vadd.f32 %v8325_v45, %v8126_v25  ;;  %v8380_v50 = vadd.f32 %v8326_v57, %v8125_v19 }
 0x3b0   : > { %v8422_v15 = vadd.f32 %v13559_v44, %v8379_v46  ;;  %v8489_v61 = vrot.slane %v8482_v4, %v13448_v1  ;;  %v8089_v14 = vcombine.high %v8087_v29, %v8087_v29  ;;  %v8128_v41 = vadd.f32 %v8080_v56, %v13915_v10 }
 0x3b1   : > { %8554 = vst.msk [vmem:[%s13960_s9 + $0x8] sm:$0x3f] %vm8552_vm4, %v8481_v51  ;;  %v8382_v3 = vadd.f32 %v8327_v55, %v8127_v9  ;;  %v8424_v37 = vadd.f32 %v13636_v8, %v8381_v28  ;;  %v8129_v40 = vadd.f32 %v8088_v35, %v13922_v47  ;;  %v8423_v26 = vadd.f32 %v13502_v34, %v8380_v50 }
 0x3b2   : > { %v8496_v5 = vrot.slane %v8422_v15, %v13448_v1  ;;  %v8130_v6 = vadd.f32 %v8087_v29, %v13919_v18  ;;  %v8131_v33 = vadd.f32 %v8089_v14, %v13926_v16  ;;  %v8335_v12 = vrot.slane %v8263_v20, %v13448_v1 }
 0x3b3   : > { %v8425_v38 = vadd.f32 %v13559_v44, %v8382_v3  ;;  %v8342_v42 = vrot.slane %v8328_v31, %v13448_v1  ;;  %v8096_v62 = vrot.slane %v8013_v22, %v13448_v1  ;;  %v8498_v17 = vcombine.low %v8423_v26, %v8424_v37 }
 0x3b4   : > { %v8497_v10 = vcombine.low %v8489_v61, %v8496_v5  ;;  %v8351_v47 = vrot.slane %v8268_v39, %v13448_v1  ;;  %v8343_v27 = vcombine.high %v8335_v12, %v8335_v12  ;;  %v8383_v24 = vadd.f32 %v8335_v12, %v8128_v41 }
 0x3b5   : > { %v8512_v30 = vrot.slane %v8425_v38, %v13448_v1  ;;  %v8344_v59 = vcombine.high %v8342_v42, %v8342_v42  ;;  %v8505_v18 = vrot.slane %v8498_v17, %v13448_v1  ;;  %v8385_v16 = vadd.f32 %v8342_v42, %v8130_v6 }
 0x3b6   : > { %8555 = vst.msk [vmem:[%s13960_s9 + $0x10] sm:$0x3f] %vm8552_vm4, %v8497_v10  ;;  %v8097_v20 = vcombine.high %v8096_v62, %v8096_v62  ;;  %v8132_v43 = vadd.f32 %v8096_v62, %v13928_v54  ;;  %v8384_v21 = vadd.f32 %v8343_v27, %v8129_v40  ;;  %v8352_v13 = vcombine.high %v8351_v47, %v8351_v47 }
 0x3b7   : > { %v8386_v19 = vadd.f32 %v8344_v59, %v8131_v33  ;;  %v8513_v22 = vcombine.low %v8505_v18, %v8512_v30  ;;  %v8426_v48 = vadd.f32 %v13502_v34, %v8383_v24  ;;  %v8428_v63 = vadd.f32 %v13559_v44, %v8385_v16 }
 0x3b8   : > { %v8133_v7 = vadd.f32 %v8097_v20, %v13933_v58  ;;  %v8387_v49 = vadd.f32 %v8351_v47, %v8132_v43  ;;  %v8427_v25 = vadd.f32 %v13636_v8, %v8384_v21 }
 0x3b9   : > { %v8429_v23 = vadd.f32 %v13502_v34, %v8386_v19  ;;  %8556 = vst.msk [vmem:[%s13960_s9 + $0x18] sm:$0x3f] %vm8552_vm4, %v8513_v22  ;;  %v8528_v2 = vrot.slane %v8428_v63, %v13448_v1 }
 0x3ba   : > { %v8388_v54 = vadd.f32 %v8352_v13, %v8133_v7  ;;  %v8430_v52 = vadd.f32 %v13636_v8, %v8387_v49  ;;  %v8514_v9 = vcombine.low %v8426_v48, %v8427_v25 }
 0x3bc   : > { %v8431_v60 = vadd.f32 %v13559_v44, %v8388_v54  ;;  %v8530_v58 = vcombine.low %v8429_v23, %v8430_v52  ;;  %v8521_v32 = vrot.slane %v8514_v9, %v13448_v1 }
 0x3be   : > { %v8537_v53 = vrot.slane %v8530_v58, %v13448_v1  ;;  %v8544_v56 = vrot.slane %v8431_v60, %v13448_v1  ;;  %v8529_v39 = vcombine.low %v8521_v32, %v8528_v2 }
 0x3c0   : > { %v8545_v11 = vcombine.low %v8537_v53, %v8544_v56  ;;  %8557 = vst.msk [vmem:[%s13960_s9 + $0x20] sm:$0x3f] %vm8552_vm4, %v8529_v39 }
 0x3c2   : > { %8558 = vst.msk [vmem:[%s13960_s9 + $0x28] sm:$0x3f] %vm8552_vm4, %v8545_v11 }
 0x3c3 PF: > { %s18_s23 = sadd.s32 1, %s9975_s23  }
 0x3c4   : > { %p15_p4 = scmp.ge.s32.totalorder %s18_s23, 4  }
 0x3c6   :  { %17 = sbr.rel (!%p15_p4) target bundleno = 3 (0x3), region = 89 }

</bundles_post_ra>
